<compile_context>
chip_gen: v5e
topology: v5e:2x2
jax: 0.10.0
libtpu: 0.0.40
codegen_flags: <defaults>
</compile_context>

<pallas_src>
import functools

import jax
import jax.numpy as jnp
from jax import lax
from jax.experimental import pallas as pl
from jax.experimental.pallas import tpu as pltpu


# ----------------------------------------------------------------------------
# helpers
# ----------------------------------------------------------------------------
def _round_up(x, m):
    return ((x + m - 1) // m) * m


def _vmem_capacity_bytes():
    try:
        return int(pltpu.get_tpu_info().vmem_capacity_bytes)
    except Exception:
        return 128 * 1024 * 1024


def _device_kind():
    try:
        return jax.devices()[0].device_kind.lower()
    except Exception:
        return ""


def _use_bf16_exp():
    # bf16 EUP only on v6e / v7x; keep f32 exp on v5e and older generations.
    kind = _device_kind()
    return any(tag in kind for tag in ("v6", "v7", "7x"))


def _vmem_cap_limit(vmem_cap):
    return max(min(int(0.80 * vmem_cap), vmem_cap - (8 << 20)), 32 << 20)


def _attn_step_bytes(tile_r, tile_s, hf_pad, heads, out_pad, out_bytes):
    """Conservative per-grid-step VMEM estimate for the attention kernel."""
    return (2 * tile_r * tile_s                      # int8 adj, double buffered
            + 2 * tile_s * hf_pad * 2                # h (bf16), double buffered
            + 2 * heads * tile_s * 4                 # alpha_src_t
            + 2 * tile_r * heads * 4                 # alpha_dst
            + 2 * tile_r * out_pad * out_bytes       # output block
            + tile_r * out_pad * 4                   # acc scratch
            + 2 * tile_r * 128 * 4                   # m / l scratch (lane padded)
            + 6 * tile_r * tile_s * 4                # in-kernel f32 slabs (e, p, ...)
            + (1 << 20))


def _attn_vmem_limit(tile_r, tile_s, hf_pad, heads, out_pad, out_bytes, vmem_cap):
    need = _attn_step_bytes(tile_r, tile_s, hf_pad, heads, out_pad, out_bytes)
    return int(min(max(2 * need, 32 << 20), _vmem_cap_limit(vmem_cap)))


def _xform_vmem_limit(tile_t, fin, hf_pad, heads, vmem_cap):
    need = (2 * tile_t * fin * 4 + fin * hf_pad * 2
            + 2 * tile_t * hf_pad * 2 + 2 * tile_t * hf_pad * 4
            + 4 * tile_t * heads * 4 + 2 * hf_pad * heads * 4 + (1 << 20))
    return int(min(max(2 * need, 32 << 20), _vmem_cap_limit(vmem_cap)))


def _choose_tiles(n_pad, hf_pad, heads, out_pad, out_bytes, *, vmem_cap,
                  force_multi_row, tile_r=None, tile_s=None):
    """Pick (row tile, source tile); both divide n_pad exactly."""
    budget = max(int(0.5 * vmem_cap), 24 << 20)

    def ok_r(c):
        return 0 < c <= n_pad and n_pad % c == 0 and (c % 32 == 0 or c == n_pad)

    def ok_s(c):
        return 0 < c <= n_pad and n_pad % c == 0 and (c % 128 == 0 or c == n_pad)

    if tile_r is not None:
        if not ok_r(int(tile_r)):
            raise ValueError(f"tile_r={tile_r} incompatible with n_pad={n_pad}")
        cand_r = [int(tile_r)]
    else:
        cand_r = sorted({c for c in (n_pad, 2048, 1024, 512, 256, 128, 64, 32)
                         if ok_r(c)}, reverse=True)
        if force_multi_row:  # v7x: keep >= 2 row tiles so both TCs get work
            multi = [c for c in cand_r if n_pad // c >= 2]
            cand_r = multi or cand_r

    if tile_s is not None:
        if not ok_s(int(tile_s)):
            raise ValueError(f"tile_s={tile_s} incompatible with n_pad={n_pad}")
        cand_s = [int(tile_s)]
    else:
        cand_s = sorted({c for c in (n_pad, 4096, 2048, 1024, 512, 256, 128)
                         if ok_s(c)}, reverse=True)

    for tr in cand_r:
        for ts in cand_s:
            if _attn_step_bytes(tr, ts, hf_pad, heads, out_pad, out_bytes) <= budget:
                return tr, ts
    return cand_r[-1], cand_s[-1]


def _choose_transform_tile(n_pad, force_multi_row):
    tile_t = next((c for c in (1024, 512, 256, 128) if n_pad % c == 0), n_pad)
    tile_t = min(tile_t, n_pad)
    if force_multi_row and n_pad // tile_t < 2 and tile_t >= 256:
        tile_t //= 2
    return tile_t


# ----------------------------------------------------------------------------
# Kernel 1: node-feature transform + batched attention-logit halves
# ----------------------------------------------------------------------------
def transform_kernel(x_ref, w_ref, adstb_ref, asrcr_ref,
                     h_out_ref, adst_out_ref, asrct_out_ref):
    x = x_ref[...].astype(jnp.bfloat16)
    w = w_ref[...]                                            # bf16 (pre-cast)
    # h = x @ W  (MXU, bf16 operands, f32 accumulate)
    h = jnp.dot(x, w, preferred_element_type=jnp.float32)    # (T, HFp)
    h_out_ref[...] = h.astype(jnp.bfloat16)

    # alpha_dst[i, hd] = <h_i[hd], a_dst[hd]>  — one batched matmul
    adst_out_ref[...] = jnp.dot(h, adstb_ref[...],
                                preferred_element_type=jnp.float32)   # (T, heads)
    # alpha_src_t[hd, j] = <h_j[hd], a_src[hd]> — already transposed (heads, T)
    asrct_out_ref[...] = lax.dot_general(
        asrcr_ref[...], h,
        dimension_numbers=(((1,), (1,)), ((), ())),
        preferred_element_type=jnp.float32)                            # (heads, T)


# ----------------------------------------------------------------------------
# Kernel 2: masked online-softmax attention + aggregation
#   grid = (dest-row tiles ["parallel"], source tiles ["arbitrary"])
# ----------------------------------------------------------------------------
def attention_kernel(adj_ref, adst_ref, asrct_ref, h_ref, b_ref, out_ref,
                     m_sc, l_sc, acc_sc, *,
                     heads, fout, out_dim, out_pad, apply_relu,
                     negative_slope, exp_bf16):
    j = pl.program_id(1)

    @pl.when(j == 0)
    def _():
        # m is floored at 0: softmax is shift-invariant, and the floor keeps
        # exp(-1e30 - m) == 0 even for (row, src-tile) blocks with no edges.
        m_sc[...] = jnp.zeros_like(m_sc)
        l_sc[...] = jnp.zeros_like(l_sc)
        acc_sc[...] = jnp.zeros_like(acc_sc)

    adj_f = adj_ref[...].astype(jnp.float32)                 # (T, S) from int8
    adj_bias = (adj_f - 1.0) * jnp.float32(1e30)             # 0 edge / -1e30 off
    h = h_ref[...]                                           # (S, HFp) bf16
    ones_col = jnp.ones((h.shape[0], 1), jnp.bfloat16)       # row-sum via MXU
    ns = jnp.float32(negative_slope)

    for hd in range(heads):                                  # static unroll
        c0 = hd * fout
        a_d = adst_ref[:, hd:hd + 1]                         # (T, 1) f32
        a_s = asrct_ref[hd:hd + 1, :]                        # (1, S) f32
        e = a_d + a_s                                        # (T, S)
        e = jnp.where(e > 0, e, ns * e)                      # LeakyReLU
        e = e + adj_bias                                     # mask (applied once)

        m_old = m_sc[:, hd:hd + 1]
        m_new = jnp.maximum(m_old, jnp.max(e, axis=1, keepdims=True))
        corr = jnp.exp(m_old - m_new)                        # (T, 1) f32
        em = e - m_new                                       # f32 for stability
        if exp_bf16:
            p = jnp.exp(em.astype(jnp.bfloat16))             # bf16 EUP (v6e/v7x)
        else:
            p = jnp.exp(em).astype(jnp.bfloat16)             # f32 EUP (v5e)

        # Unnormalized aggregation + denominator, both on the MXU (huge slack).
        agg = jnp.dot(p, h[:, c0:c0 + fout],
                      preferred_element_type=jnp.float32)    # (T, fout)
        sm = jnp.dot(p, ones_col,
                     preferred_element_type=jnp.float32)     # (T, 1)
        acc_sc[:, c0:c0 + fout] = corr * acc_sc[:, c0:c0 + fout] + agg
        l_sc[:, hd:hd + 1] = corr * l_sc[:, hd:hd + 1] + sm
        m_sc[:, hd:hd + 1] = m_new

    @pl.when(j == pl.num_programs(1) - 1)
    def _():
        # Normalize once after all source tiles; per-head static-offset stores.
        for hd in range(heads):
            c0 = hd * fout
            inv_l = pl.reciprocal(
                jnp.maximum(l_sc[:, hd:hd + 1], jnp.float32(1e-20)), approx=True)
            o = acc_sc[:, c0:c0 + fout] * inv_l
            o = o + b_ref[:, c0:c0 + fout].astype(jnp.float32)
            if apply_relu:
                o = jnp.maximum(o, 0.0)
            out_ref[:, c0:c0 + fout] = o.astype(out_ref.dtype)
        if out_pad > out_dim:
            out_ref[:, out_dim:out_pad] = jnp.zeros(
                (out_ref.shape[0], out_pad - out_dim), out_ref.dtype)


# ----------------------------------------------------------------------------
# One GAT layer (concat-over-heads form) on zero-padded inputs
# ----------------------------------------------------------------------------
def gat_layer(x_pad, adj_pad, params, *, heads, fout, apply_relu,
              out_dtype=jnp.float32, negative_slope=0.2,
              tile_r=None, tile_s=None):
    """x_pad: (n_pad, fin); adj_pad: (n_pad, n_pad) int8 with adj[dst, src]=1.

    Returns (n_pad, round_up(heads*fout, 128)) in out_dtype; columns beyond
    heads*fout are zero (kept lane-padded so the next layer needs no slice).
    """
    w, a_src, a_dst, bias = params
    n_pad, fin = x_pad.shape
    hf = heads * fout
    hf_pad = _round_up(hf, 128)
    out_dim, out_pad = hf, hf_pad
    out_bytes = jnp.dtype(out_dtype).itemsize

    vmem_cap = _vmem_capacity_bytes()
    force_multi_row = vmem_cap < (100 << 20)       # v7x: 64 MiB per TensorCore
    tr, ts = _choose_tiles(n_pad, hf_pad, heads, out_pad, out_bytes,
                           vmem_cap=vmem_cap, force_multi_row=force_multi_row,
                           tile_r=tile_r, tile_s=tile_s)
    tile_t = _choose_transform_tile(n_pad, force_multi_row)

    # Lane-padded parameter blocks (zeros beyond the real heads*fout columns).
    w_p = jnp.pad(w, ((0, 0), (0, hf_pad - hf))).astype(jnp.bfloat16)
    eye = jnp.eye(heads, dtype=jnp.float32)
    a_dst_block = jnp.pad(
        (a_dst[:, :, None] * eye[:, None, :]).reshape(hf, heads),
        ((0, hf_pad - hf), (0, 0)))                           # (hf_pad, heads)
    a_src_rows = jnp.pad(
        (eye[:, :, None] * a_src[:, None, :]).reshape(heads, hf),
        ((0, 0), (0, hf_pad - hf)))                           # (heads, hf_pad)

    # ---- stage 1: transform (row-tiled, "parallel") -------------------------
    t_cost = pl.CostEstimate(
        flops=int(2 * n_pad * fin * hf_pad + 4 * n_pad * hf_pad * heads),
        transcendentals=0,
        bytes_accessed=int(n_pad * fin * 4 + fin * hf_pad * 2
                           + n_pad * hf_pad * 2 + 2 * n_pad * heads * 4
                           + 2 * hf_pad * heads * 4))
    h_bf16, alpha_dst, alpha_src_t = pl.pallas_call(
        transform_kernel,
        grid=(n_pad // tile_t,),
        out_shape=(jax.ShapeDtypeStruct((n_pad, hf_pad), jnp.bfloat16),
                   jax.ShapeDtypeStruct((n_pad, heads), jnp.float32),
                   jax.ShapeDtypeStruct((heads, n_pad), jnp.float32)),
        in_specs=[
            pl.BlockSpec((tile_t, fin), lambda i: (i, 0)),
            pl.BlockSpec((fin, hf_pad), lambda i: (0, 0)),
            pl.BlockSpec((hf_pad, heads), lambda i: (0, 0)),
            pl.BlockSpec((heads, hf_pad), lambda i: (0, 0)),
        ],
        out_specs=(
            pl.BlockSpec((tile_t, hf_pad), lambda i: (i, 0)),
            pl.BlockSpec((tile_t, heads), lambda i: (i, 0)),
            pl.BlockSpec((heads, tile_t), lambda i: (0, i)),
        ),
        compiler_params=pltpu.CompilerParams(
            dimension_semantics=("parallel",),
            vmem_limit_bytes=_xform_vmem_limit(tile_t, fin, hf_pad, heads,
                                               vmem_cap)),
        cost_estimate=t_cost,
    )(x_pad, w_p, a_dst_block, a_src_rows)

    # ---- stage 2: tiled masked-softmax attention + aggregation --------------
    a_cost = pl.CostEstimate(
        flops=int(heads * 2 * n_pad * n_pad * (fout + 1)
                  + 8 * heads * n_pad * n_pad),
        transcendentals=int(heads * n_pad * n_pad),
        bytes_accessed=int(n_pad * n_pad + n_pad * hf_pad * 2
                           + 2 * n_pad * heads * 4
                           + n_pad * out_pad * out_bytes + out_dim * 4))
    kernel = functools.partial(
        attention_kernel, heads=heads, fout=fout, out_dim=out_dim,
        out_pad=out_pad, apply_relu=apply_relu,
        negative_slope=negative_slope, exp_bf16=_use_bf16_exp())
    out = pl.pallas_call(
        kernel,
        grid=(n_pad // tr, n_pad // ts),
        out_shape=jax.ShapeDtypeStruct((n_pad, out_pad), out_dtype),
        in_specs=[
            # TODO(synk): if the adj DMA is exposed at small source tiles, add
            # pipeline_mode=pl.Buffered(3) on this spec (int8 tiles are tiny).
            pl.BlockSpec((tr, ts), lambda i, j: (i, j)),        # adj (int8)
            pl.BlockSpec((tr, heads), lambda i, j: (i, 0)),     # alpha_dst
            pl.BlockSpec((heads, ts), lambda i, j: (0, j)),     # alpha_src (T)
            pl.BlockSpec((ts, hf_pad), lambda i, j: (j, 0)),    # h (bf16)
            pl.BlockSpec((1, out_dim), lambda i, j: (0, 0)),    # bias
        ],
        out_specs=pl.BlockSpec((tr, out_pad), lambda i, j: (i, 0)),
        scratch_shapes=[
            pltpu.VMEM((tr, heads), jnp.float32),    # running max
            pltpu.VMEM((tr, heads), jnp.float32),    # running denominator
            pltpu.VMEM((tr, out_pad), jnp.float32),  # unnormalized accumulator
        ],
        compiler_params=pltpu.CompilerParams(
            dimension_semantics=("parallel", "arbitrary"),
            vmem_limit_bytes=_attn_vmem_limit(tr, ts, hf_pad, heads, out_pad,
                                              out_bytes, vmem_cap)),
        cost_estimate=a_cost,
    )(adj_pad, alpha_dst, alpha_src_t, h_bf16, bias)
    return out


# ----------------------------------------------------------------------------
# Parameter init (glorot-style like PyG defaults; bias = 0)
# ----------------------------------------------------------------------------
def init_gat_params(key, fin, fout, heads, concat):
    kw, ks, kd = jax.random.split(key, 3)
    limit_w = (6.0 / (fin + heads * fout)) ** 0.5
    limit_a = (6.0 / (fout + 1)) ** 0.5
    w = jax.random.uniform(kw, (fin, heads * fout), jnp.float32, -limit_w, limit_w)
    a_src = jax.random.uniform(ks, (heads, fout), jnp.float32, -limit_a, limit_a)
    a_dst = jax.random.uniform(kd, (heads, fout), jnp.float32, -limit_a, limit_a)
    out_dim = heads * fout if concat else fout
    bias = jnp.zeros((1, out_dim), jnp.float32)
    return (w, a_src, a_dst, bias)


def init_encoder_params(key, in_channels, hidden_dim, latent_dim, heads):
    k1, k2, k3 = jax.random.split(key, 3)
    return {
        "gat1": init_gat_params(k1, in_channels, hidden_dim, heads, True),
        "gat_mu": init_gat_params(k2, hidden_dim * heads, latent_dim, 1, False),
        "gat_logstd": init_gat_params(k3, hidden_dim * heads, latent_dim, 1, False),
    }


# ----------------------------------------------------------------------------
# Encoder forward:  relu(gat1(x)) -> (gat_mu, gat_logstd)   [mu/logstd fused]
# ----------------------------------------------------------------------------
def encoder_forward(params, x, adj_i8, *, heads, hidden_dim, latent_dim,
                    tile_r=None, tile_s=None):
    n, _ = x.shape
    n_pad = _round_up(n, 256)                     # every tile divides exactly
    x_pad = jnp.pad(x, ((0, n_pad - n), (0, 0)))
    adj_pad = jnp.pad(adj_i8, ((0, n_pad - n), (0, n_pad - n)))

    # relu(gat1(x)) — kept lane-padded bf16; consumed directly by the next layer.
    h1 = gat_layer(x_pad, adj_pad, params["gat1"], heads=heads, fout=hidden_dim,
                   apply_relu=True, out_dtype=jnp.bfloat16,
                   tile_r=tile_r, tile_s=tile_s)

    # Fuse gat_mu + gat_logstd: a heads=1/concat=False GATConv equals its single
    # head, so two of them == one 2-"head" concat layer with stacked params.
    w_mu, asrc_mu, adst_mu, b_mu = params["gat_mu"]
    w_ls, asrc_ls, adst_ls, b_ls = params["gat_logstd"]
    fin2 = w_mu.shape[0]
    w_f = jnp.concatenate([w_mu, w_ls], axis=1)
    w_f = jnp.pad(w_f, ((0, h1.shape[1] - fin2), (0, 0)))  # consume padded h1 as-is
    fused = (w_f,
             jnp.concatenate([asrc_mu, asrc_ls], axis=0),
             jnp.concatenate([adst_mu, adst_ls], axis=0),
             jnp.concatenate([b_mu, b_ls], axis=1))
    out = gat_layer(h1, adj_pad, fused, heads=2, fout=latent_dim,
                    apply_relu=False, out_dtype=jnp.float32,
                    tile_r=tile_r, tile_s=tile_s)
    mu = out[:n, :latent_dim]
    logstd = out[:n, latent_dim:2 * latent_dim]
    return mu, logstd


def edge_index_to_adj(edge_index, num_nodes):
    # adj[dst, src] = 1 for each edge (src -> dst), plus self-loops; int8 in HBM.
    # TODO(synk): sparse edge_index -> dense adj densification stays in XLA.
    src, dst = edge_index[0], edge_index[1]
    adj = jnp.zeros((num_nodes, num_nodes), jnp.int8)
    adj = adj.at[dst, src].set(jnp.int8(1))
    idx = jnp.arange(num_nodes)
    adj = adj.at[idx, idx].set(jnp.int8(1))
    return adj


# ----------------------------------------------------------------------------
# Pure-JAX f32 reference (for a loose correctness check)
# ----------------------------------------------------------------------------
def _gat_reference(x, adj, params, heads, fout, relu):
    w, a_src, a_dst, bias = params
    n = x.shape[0]
    h = (x @ w).reshape(n, heads, fout)
    adst = jnp.einsum("nhf,hf->nh", h, a_dst)
    asrc = jnp.einsum("nhf,hf->nh", h, a_src)
    e = adst[:, None, :] + asrc[None, :, :]                  # (dst, src, head)
    e = jnp.where(e > 0, e, 0.2 * e)
    e = jnp.where((adj > 0)[:, :, None], e, -jnp.inf)
    attn = jax.nn.softmax(e, axis=1)
    out = jnp.einsum("dsh,shf->dhf", attn, h).reshape(n, heads * fout) + bias
    return jnp.maximum(out, 0.0) if relu else out


def encoder_reference(params, x, adj, *, heads, hidden_dim, latent_dim):
    h1 = _gat_reference(x, adj, params["gat1"], heads, hidden_dim, True)
    mu = _gat_reference(h1, adj, params["gat_mu"], 1, latent_dim, False)
    logstd = _gat_reference(h1, adj, params["gat_logstd"], 1, latent_dim, False)
    return mu, logstd


# ----------------------------------------------------------------------------
if __name__ == "__main__":
    N = 64            # nodes (padded to 256 internally)
    IN_CHANNELS = 4
    HIDDEN_DIM = 8
    LATENT_DIM = 8
    HEADS = 4
    TILE_R = 64       # n_pad=256 -> 4 destination-row tiles ("parallel")
    TILE_S = 128      # -> 2 source tiles (exercises the online-softmax reduction)

    key = jax.random.PRNGKey(0)
    k_x, k_p = jax.random.split(key)

    # Node features and a deterministic bidirectional ring graph.
    x = jax.random.normal(k_x, (N, IN_CHANNELS), jnp.float32)
    src = jnp.arange(N, dtype=jnp.int32)
    dst = (src + 1) % N
    edge_index = jnp.stack([jnp.concatenate([src, dst]),
                            jnp.concatenate([dst, src])], axis=0)   # (2, 2N)
    adj = edge_index_to_adj(edge_index, N)

    params = init_encoder_params(k_p, IN_CHANNELS, HIDDEN_DIM, LATENT_DIM, HEADS)

    fwd = jax.jit(functools.partial(encoder_forward, heads=HEADS,
                                    hidden_dim=HIDDEN_DIM,
                                    latent_dim=LATENT_DIM,
                                    tile_r=TILE_R, tile_s=TILE_S))
    mu, logstd = fwd(params, x, adj)
    jax.block_until_ready((mu, logstd))

    assert mu.shape == (N, LATENT_DIM) and logstd.shape == (N, LATENT_DIM)
    assert bool(jnp.all(jnp.isfinite(mu))) and bool(jnp.all(jnp.isfinite(logstd)))

    mu_ref, ls_ref = encoder_reference(params, x, adj, heads=HEADS,
                                       hidden_dim=HIDDEN_DIM,
                                       latent_dim=LATENT_DIM)
    err = max(float(jnp.max(jnp.abs(mu - mu_ref))),
              float(jnp.max(jnp.abs(logstd - ls_ref))))
    assert err < 0.1, f"mismatch vs f32 reference: max abs err = {err}"
    print("KERNEL_OK")
</pallas_src>

<mosaic_0001>
module attributes {stable_mosaic.version = 11 : i64} {
  func.func @transform_kernel(%arg0: i32, %arg1: memref<256x4xf32, #tpu.memory_space<vmem>>, %arg2: memref<4x128xbf16, #tpu.memory_space<vmem>>, %arg3: memref<128x4xf32, #tpu.memory_space<vmem>>, %arg4: memref<4x128xf32, #tpu.memory_space<vmem>>, %arg5: memref<256x128xbf16, #tpu.memory_space<vmem>>, %arg6: memref<256x4xf32, #tpu.memory_space<vmem>>, %arg7: memref<4x256xf32, #tpu.memory_space<vmem>>) attributes {dimension_semantics = [#tpu.dimension_semantics<parallel>], iteration_bounds = array<i64: 1>, scalar_prefetch = 0 : i64, scratch_operands = 0 : i64, tpu.core_type = #tpu.core_type<tc>, window_params = [{transform_indices = @transform_0, window_bounds = array<i64: 256, 4>}, {pipeline_mode = #tpu.pipeline_mode<synchronous>, transform_indices = @transform_1, window_bounds = array<i64: 4, 128>}, {pipeline_mode = #tpu.pipeline_mode<synchronous>, transform_indices = @transform_2, window_bounds = array<i64: 128, 4>}, {pipeline_mode = #tpu.pipeline_mode<synchronous>, transform_indices = @transform_3, window_bounds = array<i64: 4, 128>}, {transform_indices = @transform_4, window_bounds = array<i64: 256, 128>}, {transform_indices = @transform_5, window_bounds = array<i64: 256, 4>}, {transform_indices = @transform_6, window_bounds = array<i64: 4, 256>}]} {
    %c0 = arith.constant 0 : index
    %c0_0 = arith.constant 0 : index
    %0 = vector.load %arg1[%c0, %c0_0] : memref<256x4xf32, #tpu.memory_space<vmem>>, vector<256x4xf32>
    %1 = arith.truncf %0 : vector<256x4xf32> to vector<256x4xbf16>
    %c0_1 = arith.constant 0 : index
    %c0_2 = arith.constant 0 : index
    %2 = vector.load %arg2[%c0_1, %c0_2] : memref<4x128xbf16, #tpu.memory_space<vmem>>, vector<4x128xbf16>
    %cst = arith.constant dense<0.000000e+00> : vector<256x128xf32>
    %3 = tpu.matmul %1, %2, %cst {dimension_numbers = #tpu.dot_dimension_numbers<[1], [0], [0], [1], [0, 0, 1, 1], [], []>} : vector<256x4xbf16>, vector<4x128xbf16>, vector<256x128xf32> -> vector<256x128xf32>
    %4 = arith.truncf %3 : vector<256x128xf32> to vector<256x128xbf16>
    %c0_3 = arith.constant 0 : index
    %c0_4 = arith.constant 0 : index
    %5 = vector.load %arg5[%c0_3, %c0_4] : memref<256x128xbf16, #tpu.memory_space<vmem>>, vector<256x128xbf16>
    tpu.vector_store %arg5[%c0_3, %c0_4], %4 {strides = array<i32>} : memref<256x128xbf16, #tpu.memory_space<vmem>>, vector<256x128xbf16>,
    %c0_5 = arith.constant 0 : index
    %c0_6 = arith.constant 0 : index
    %6 = vector.load %arg3[%c0_5, %c0_6] : memref<128x4xf32, #tpu.memory_space<vmem>>, vector<128x4xf32>
    %cst_7 = arith.constant dense<0.000000e+00> : vector<256x4xf32>
    %7 = tpu.matmul %3, %6, %cst_7 {dimension_numbers = #tpu.dot_dimension_numbers<[1], [0], [0], [1], [0, 0, 1, 1], [], []>} : vector<256x128xf32>, vector<128x4xf32>, vector<256x4xf32> -> vector<256x4xf32>
    %c0_8 = arith.constant 0 : index
    %c0_9 = arith.constant 0 : index
    %8 = vector.load %arg6[%c0_8, %c0_9] : memref<256x4xf32, #tpu.memory_space<vmem>>, vector<256x4xf32>
    tpu.vector_store %arg6[%c0_8, %c0_9], %7 {strides = array<i32>} : memref<256x4xf32, #tpu.memory_space<vmem>>, vector<256x4xf32>,
    %c0_10 = arith.constant 0 : index
    %c0_11 = arith.constant 0 : index
    %9 = vector.load %arg4[%c0_10, %c0_11] : memref<4x128xf32, #tpu.memory_space<vmem>>, vector<4x128xf32>
    %cst_12 = arith.constant dense<0.000000e+00> : vector<4x256xf32>
    %10 = tpu.matmul %9, %3, %cst_12 {dimension_numbers = #tpu.dot_dimension_numbers<[1], [1], [0], [0], [0, 0, 1, 0], [], []>} : vector<4x128xf32>, vector<256x128xf32>, vector<4x256xf32> -> vector<4x256xf32>
    %c0_13 = arith.constant 0 : index
    %c0_14 = arith.constant 0 : index
    %11 = vector.load %arg7[%c0_13, %c0_14] : memref<4x256xf32, #tpu.memory_space<vmem>>, vector<4x256xf32>
    tpu.vector_store %arg7[%c0_13, %c0_14], %10 {strides = array<i32>} : memref<4x256xf32, #tpu.memory_space<vmem>>, vector<4x256xf32>,
    return
  }
  func.func @transform_0(%arg0: i32) -> (i32, i32) {
    %c0_i32 = arith.constant 0 : i32
    %c0_i32_0 = arith.constant 0 : i32
    return %arg0, %c0_i32 : i32, i32
  }
  func.func @transform_1(%arg0: i32) -> (i32, i32) {
    %c0_i32 = arith.constant 0 : i32
    %c0_i32_0 = arith.constant 0 : i32
    %c0_i32_1 = arith.constant 0 : i32
    return %c0_i32, %c0_i32_0 : i32, i32
  }
  func.func @transform_2(%arg0: i32) -> (i32, i32) {
    %c0_i32 = arith.constant 0 : i32
    %c0_i32_0 = arith.constant 0 : i32
    %c0_i32_1 = arith.constant 0 : i32
    return %c0_i32, %c0_i32_0 : i32, i32
  }
  func.func @transform_3(%arg0: i32) -> (i32, i32) {
    %c0_i32 = arith.constant 0 : i32
    %c0_i32_0 = arith.constant 0 : i32
    %c0_i32_1 = arith.constant 0 : i32
    return %c0_i32, %c0_i32_0 : i32, i32
  }
  func.func @transform_4(%arg0: i32) -> (i32, i32) {
    %c0_i32 = arith.constant 0 : i32
    %c0_i32_0 = arith.constant 0 : i32
    return %arg0, %c0_i32 : i32, i32
  }
  func.func @transform_5(%arg0: i32) -> (i32, i32) {
    %c0_i32 = arith.constant 0 : i32
    %c0_i32_0 = arith.constant 0 : i32
    return %arg0, %c0_i32 : i32, i32
  }
  func.func @transform_6(%arg0: i32) -> (i32, i32) {
    %c0_i32 = arith.constant 0 : i32
    %c0_i32_0 = arith.constant 0 : i32
    return %c0_i32, %arg0 : i32, i32
  }
}

module attributes {stable_mosaic.version = 11 : i64} {
  func.func @transform_kernel(%arg0: i32, %arg1: memref<256x128xbf16, #tpu.memory_space<vmem>>, %arg2: memref<128x128xbf16, #tpu.memory_space<vmem>>, %arg3: memref<128x2xf32, #tpu.memory_space<vmem>>, %arg4: memref<2x128xf32, #tpu.memory_space<vmem>>, %arg5: memref<256x128xbf16, #tpu.memory_space<vmem>>, %arg6: memref<256x2xf32, #tpu.memory_space<vmem>>, %arg7: memref<2x256xf32, #tpu.memory_space<vmem>>) attributes {dimension_semantics = [#tpu.dimension_semantics<parallel>], iteration_bounds = array<i64: 1>, scalar_prefetch = 0 : i64, scratch_operands = 0 : i64, tpu.core_type = #tpu.core_type<tc>, window_params = [{transform_indices = @transform_0, window_bounds = array<i64: 256, 128>}, {pipeline_mode = #tpu.pipeline_mode<synchronous>, transform_indices = @transform_1, window_bounds = array<i64: 128, 128>}, {pipeline_mode = #tpu.pipeline_mode<synchronous>, transform_indices = @transform_2, window_bounds = array<i64: 128, 2>}, {pipeline_mode = #tpu.pipeline_mode<synchronous>, transform_indices = @transform_3, window_bounds = array<i64: 2, 128>}, {transform_indices = @transform_4, window_bounds = array<i64: 256, 128>}, {transform_indices = @transform_5, window_bounds = array<i64: 256, 2>}, {transform_indices = @transform_6, window_bounds = array<i64: 2, 256>}]} {
    %c0 = arith.constant 0 : index
    %c0_0 = arith.constant 0 : index
    %0 = vector.load %arg1[%c0, %c0_0] : memref<256x128xbf16, #tpu.memory_space<vmem>>, vector<256x128xbf16>
    %c0_1 = arith.constant 0 : index
    %c0_2 = arith.constant 0 : index
    %1 = vector.load %arg2[%c0_1, %c0_2] : memref<128x128xbf16, #tpu.memory_space<vmem>>, vector<128x128xbf16>
    %cst = arith.constant dense<0.000000e+00> : vector<256x128xf32>
    %2 = tpu.matmul %0, %1, %cst {dimension_numbers = #tpu.dot_dimension_numbers<[1], [0], [0], [1], [0, 0, 1, 1], [], []>} : vector<256x128xbf16>, vector<128x128xbf16>, vector<256x128xf32> -> vector<256x128xf32>
    %3 = arith.truncf %2 : vector<256x128xf32> to vector<256x128xbf16>
    %c0_3 = arith.constant 0 : index
    %c0_4 = arith.constant 0 : index
    %4 = vector.load %arg5[%c0_3, %c0_4] : memref<256x128xbf16, #tpu.memory_space<vmem>>, vector<256x128xbf16>
    tpu.vector_store %arg5[%c0_3, %c0_4], %3 {strides = array<i32>} : memref<256x128xbf16, #tpu.memory_space<vmem>>, vector<256x128xbf16>,
    %c0_5 = arith.constant 0 : index
    %c0_6 = arith.constant 0 : index
    %5 = vector.load %arg3[%c0_5, %c0_6] : memref<128x2xf32, #tpu.memory_space<vmem>>, vector<128x2xf32>
    %cst_7 = arith.constant dense<0.000000e+00> : vector<256x2xf32>
    %6 = tpu.matmul %2, %5, %cst_7 {dimension_numbers = #tpu.dot_dimension_numbers<[1], [0], [0], [1], [0, 0, 1, 1], [], []>} : vector<256x128xf32>, vector<128x2xf32>, vector<256x2xf32> -> vector<256x2xf32>
    %c0_8 = arith.constant 0 : index
    %c0_9 = arith.constant 0 : index
    %7 = vector.load %arg6[%c0_8, %c0_9] : memref<256x2xf32, #tpu.memory_space<vmem>>, vector<256x2xf32>
    tpu.vector_store %arg6[%c0_8, %c0_9], %6 {strides = array<i32>} : memref<256x2xf32, #tpu.memory_space<vmem>>, vector<256x2xf32>,
    %c0_10 = arith.constant 0 : index
    %c0_11 = arith.constant 0 : index
    %8 = vector.load %arg4[%c0_10, %c0_11] : memref<2x128xf32, #tpu.memory_space<vmem>>, vector<2x128xf32>
    %cst_12 = arith.constant dense<0.000000e+00> : vector<2x256xf32>
    %9 = tpu.matmul %8, %2, %cst_12 {dimension_numbers = #tpu.dot_dimension_numbers<[1], [1], [0], [0], [0, 0, 1, 0], [], []>} : vector<2x128xf32>, vector<256x128xf32>, vector<2x256xf32> -> vector<2x256xf32>
    %c0_13 = arith.constant 0 : index
    %c0_14 = arith.constant 0 : index
    %10 = vector.load %arg7[%c0_13, %c0_14] : memref<2x256xf32, #tpu.memory_space<vmem>>, vector<2x256xf32>
    tpu.vector_store %arg7[%c0_13, %c0_14], %9 {strides = array<i32>} : memref<2x256xf32, #tpu.memory_space<vmem>>, vector<2x256xf32>,
    return
  }
  func.func @transform_0(%arg0: i32) -> (i32, i32) {
    %c0_i32 = arith.constant 0 : i32
    %c0_i32_0 = arith.constant 0 : i32
    return %arg0, %c0_i32 : i32, i32
  }
  func.func @transform_1(%arg0: i32) -> (i32, i32) {
    %c0_i32 = arith.constant 0 : i32
    %c0_i32_0 = arith.constant 0 : i32
    %c0_i32_1 = arith.constant 0 : i32
    return %c0_i32, %c0_i32_0 : i32, i32
  }
  func.func @transform_2(%arg0: i32) -> (i32, i32) {
    %c0_i32 = arith.constant 0 : i32
    %c0_i32_0 = arith.constant 0 : i32
    %c0_i32_1 = arith.constant 0 : i32
    return %c0_i32, %c0_i32_0 : i32, i32
  }
  func.func @transform_3(%arg0: i32) -> (i32, i32) {
    %c0_i32 = arith.constant 0 : i32
    %c0_i32_0 = arith.constant 0 : i32
    %c0_i32_1 = arith.constant 0 : i32
    return %c0_i32, %c0_i32_0 : i32, i32
  }
  func.func @transform_4(%arg0: i32) -> (i32, i32) {
    %c0_i32 = arith.constant 0 : i32
    %c0_i32_0 = arith.constant 0 : i32
    return %arg0, %c0_i32 : i32, i32
  }
  func.func @transform_5(%arg0: i32) -> (i32, i32) {
    %c0_i32 = arith.constant 0 : i32
    %c0_i32_0 = arith.constant 0 : i32
    return %arg0, %c0_i32 : i32, i32
  }
  func.func @transform_6(%arg0: i32) -> (i32, i32) {
    %c0_i32 = arith.constant 0 : i32
    %c0_i32_0 = arith.constant 0 : i32
    return %c0_i32, %arg0 : i32, i32
  }
}

module attributes {stable_mosaic.version = 11 : i64} {
  func.func @attention_kernel(%arg0: i32, %arg1: i32, %arg2: memref<64x128xi8, #tpu.memory_space<vmem>>, %arg3: memref<64x4xf32, #tpu.memory_space<vmem>>, %arg4: memref<4x128xf32, #tpu.memory_space<vmem>>, %arg5: memref<128x128xbf16, #tpu.memory_space<vmem>>, %arg6: memref<1x32xf32, #tpu.memory_space<vmem>>, %arg7: memref<64x128xbf16, #tpu.memory_space<vmem>>, %arg8: memref<64x4xf32, #tpu.memory_space<vmem>>, %arg9: memref<64x4xf32, #tpu.memory_space<vmem>>, %arg10: memref<64x128xf32, #tpu.memory_space<vmem>>) attributes {dimension_semantics = [#tpu.dimension_semantics<parallel>, #tpu.dimension_semantics<arbitrary>], iteration_bounds = array<i64: 4, 2>, scalar_prefetch = 0 : i64, scratch_operands = 3 : i64, tpu.core_type = #tpu.core_type<tc>, window_params = [{transform_indices = @transform_0, window_bounds = array<i64: 64, 128>}, {transform_indices = @transform_1, window_bounds = array<i64: 64, 4>}, {transform_indices = @transform_2, window_bounds = array<i64: 4, 128>}, {transform_indices = @transform_3, window_bounds = array<i64: 128, 128>}, {pipeline_mode = #tpu.pipeline_mode<synchronous>, transform_indices = @transform_4, window_bounds = array<i64: 1, 32>}, {transform_indices = @transform_5, window_bounds = array<i64: 64, 128>}]} {
    %c0_i32 = arith.constant 0 : i32
    %0 = arith.cmpi eq, %arg1, %c0_i32 : i32
    %1 = arith.extui %0 : i1 to i32
    %c0_i32_0 = arith.constant 0 : i32
    %2 = arith.cmpi ne, %1, %c0_i32_0 : i32
    scf.if %2 {
      %cst_85 = arith.constant 0.000000e+00 : f32
      %150 = vector.broadcast %cst_85 : f32 to vector<64x4xf32>
      %c0_86 = arith.constant 0 : index
      %c0_87 = arith.constant 0 : index
      %151 = vector.load %arg8[%c0_86, %c0_87] : memref<64x4xf32, #tpu.memory_space<vmem>>, vector<64x4xf32>
      tpu.vector_store %arg8[%c0_86, %c0_87], %150 {strides = array<i32>} : memref<64x4xf32, #tpu.memory_space<vmem>>, vector<64x4xf32>,
      %cst_88 = arith.constant 0.000000e+00 : f32
      %152 = vector.broadcast %cst_88 : f32 to vector<64x4xf32>
      %c0_89 = arith.constant 0 : index
      %c0_90 = arith.constant 0 : index
      %153 = vector.load %arg9[%c0_89, %c0_90] : memref<64x4xf32, #tpu.memory_space<vmem>>, vector<64x4xf32>
      tpu.vector_store %arg9[%c0_89, %c0_90], %152 {strides = array<i32>} : memref<64x4xf32, #tpu.memory_space<vmem>>, vector<64x4xf32>,
      %cst_91 = arith.constant 0.000000e+00 : f32
      %154 = vector.broadcast %cst_91 : f32 to vector<64x128xf32>
      %c0_92 = arith.constant 0 : index
      %c0_93 = arith.constant 0 : index
      %155 = vector.load %arg10[%c0_92, %c0_93] : memref<64x128xf32, #tpu.memory_space<vmem>>, vector<64x128xf32>
      tpu.vector_store %arg10[%c0_92, %c0_93], %154 {strides = array<i32>} : memref<64x128xf32, #tpu.memory_space<vmem>>, vector<64x128xf32>,
    } else {
    }
    %c0 = arith.constant 0 : index
    %c0_1 = arith.constant 0 : index
    %3 = vector.load %arg2[%c0, %c0_1] : memref<64x128xi8, #tpu.memory_space<vmem>>, vector<64x128xi8>
    %4 = arith.sitofp %3 : vector<64x128xi8> to vector<64x128xf32>
    %cst = arith.constant 1.000000e+00 : f32
    %5 = vector.broadcast %cst : f32 to vector<64x128xf32>
    %6 = arith.subf %4, %5 : vector<64x128xf32>
    %cst_2 = arith.constant 1.000000e+30 : f32
    %7 = vector.broadcast %cst_2 : f32 to vector<64x128xf32>
    %8 = arith.mulf %6, %7 : vector<64x128xf32>
    %c0_3 = arith.constant 0 : index
    %c0_4 = arith.constant 0 : index
    %9 = vector.load %arg5[%c0_3, %c0_4] : memref<128x128xbf16, #tpu.memory_space<vmem>>, vector<128x128xbf16>
    %cst_5 = arith.constant 1.000000e+00 : bf16
    %10 = vector.broadcast %cst_5 : bf16 to vector<128x1xbf16>
    %c0_6 = arith.constant 0 : index
    %c0_7 = arith.constant 0 : index
    %11 = vector.load %arg3[%c0_6, %c0_7] : memref<64x4xf32, #tpu.memory_space<vmem>>, vector<64x1xf32>
    %c0_8 = arith.constant 0 : index
    %c0_9 = arith.constant 0 : index
    %12 = vector.load %arg4[%c0_8, %c0_9] : memref<4x128xf32, #tpu.memory_space<vmem>>, vector<1x128xf32>
    %13 = vector.broadcast %11 : vector<64x1xf32> to vector<64x128xf32>
    %14 = vector.broadcast %12 : vector<1x128xf32> to vector<64x128xf32>
    %15 = arith.addf %13, %14 : vector<64x128xf32>
    %cst_10 = arith.constant 0.000000e+00 : f32
    %16 = vector.broadcast %cst_10 : f32 to vector<64x128xf32>
    %17 = arith.cmpf ogt, %15, %16 : vector<64x128xf32>
    %cst_11 = arith.constant 2.000000e-01 : f32
    %18 = vector.broadcast %cst_11 : f32 to vector<64x128xf32>
    %19 = arith.mulf %18, %15 : vector<64x128xf32>
    %20 = arith.select %17, %15, %19 : vector<64x128xi1>, vector<64x128xf32>
    %21 = arith.addf %20, %8 : vector<64x128xf32>
    %c0_12 = arith.constant 0 : index
    %c0_13 = arith.constant 0 : index
    %22 = vector.load %arg8[%c0_12, %c0_13] : memref<64x4xf32, #tpu.memory_space<vmem>>, vector<64x1xf32>
    %cst_14 = arith.constant dense<0xFF800000> : vector<64xf32>
    %23 = vector.multi_reduction <maximumf>, %21, %cst_14 [1] : vector<64x128xf32> to vector<64xf32>
    %24 = vector.shape_cast %23 : vector<64xf32> to vector<64x1xf32>
    %25 = arith.maximumf %22, %24 : vector<64x1xf32>
    %26 = arith.subf %22, %25 : vector<64x1xf32>
    %27 = math.exp %26 : vector<64x1xf32>
    %28 = vector.broadcast %25 : vector<64x1xf32> to vector<64x128xf32>
    %29 = arith.subf %21, %28 : vector<64x128xf32>
    %30 = math.exp %29 : vector<64x128xf32>
    %31 = arith.truncf %30 : vector<64x128xf32> to vector<64x128xbf16>
    %32 = vector.extract_strided_slice %9 {offsets = [0, 0], sizes = [128, 8], strides = [1, 1]} : vector<128x128xbf16> to vector<128x8xbf16>
    %cst_15 = arith.constant dense<0.000000e+00> : vector<64x8xf32>
    %33 = tpu.matmul %31, %32, %cst_15 {dimension_numbers = #tpu.dot_dimension_numbers<[1], [0], [0], [1], [0, 0, 1, 1], [], []>} : vector<64x128xbf16>, vector<128x8xbf16>, vector<64x8xf32> -> vector<64x8xf32>
    %cst_16 = arith.constant dense<0.000000e+00> : vector<64x1xf32>
    %34 = tpu.matmul %31, %10, %cst_16 {dimension_numbers = #tpu.dot_dimension_numbers<[1], [0], [0], [1], [0, 0, 1, 1], [], []>} : vector<64x128xbf16>, vector<128x1xbf16>, vector<64x1xf32> -> vector<64x1xf32>
    %c0_17 = arith.constant 0 : index
    %c0_18 = arith.constant 0 : index
    %35 = vector.load %arg10[%c0_17, %c0_18] : memref<64x128xf32, #tpu.memory_space<vmem>>, vector<64x8xf32>
    %36 = vector.broadcast %27 : vector<64x1xf32> to vector<64x8xf32>
    %37 = arith.mulf %36, %35 : vector<64x8xf32>
    %38 = arith.addf %37, %33 : vector<64x8xf32>
    %c0_19 = arith.constant 0 : index
    %c0_20 = arith.constant 0 : index
    %39 = vector.load %arg10[%c0_19, %c0_20] : memref<64x128xf32, #tpu.memory_space<vmem>>, vector<64x8xf32>
    tpu.vector_store %arg10[%c0_19, %c0_20], %38 {strides = array<i32>} : memref<64x128xf32, #tpu.memory_space<vmem>>, vector<64x8xf32>,
    %c0_21 = arith.constant 0 : index
    %c0_22 = arith.constant 0 : index
    %40 = vector.load %arg9[%c0_21, %c0_22] : memref<64x4xf32, #tpu.memory_space<vmem>>, vector<64x1xf32>
    %41 = arith.mulf %27, %40 : vector<64x1xf32>
    %42 = arith.addf %41, %34 : vector<64x1xf32>
    %c0_23 = arith.constant 0 : index
    %c0_24 = arith.constant 0 : index
    %43 = vector.load %arg9[%c0_23, %c0_24] : memref<64x4xf32, #tpu.memory_space<vmem>>, vector<64x1xf32>
    tpu.vector_store %arg9[%c0_23, %c0_24], %42 {strides = array<i32>} : memref<64x4xf32, #tpu.memory_space<vmem>>, vector<64x1xf32>,
    %c0_25 = arith.constant 0 : index
    %c0_26 = arith.constant 0 : index
    %44 = vector.load %arg8[%c0_25, %c0_26] : memref<64x4xf32, #tpu.memory_space<vmem>>, vector<64x1xf32>
    tpu.vector_store %arg8[%c0_25, %c0_26], %25 {strides = array<i32>} : memref<64x4xf32, #tpu.memory_space<vmem>>, vector<64x1xf32>,
    %c0_27 = arith.constant 0 : index
    %c1 = arith.constant 1 : index
    %45 = vector.load %arg3[%c0_27, %c1] : memref<64x4xf32, #tpu.memory_space<vmem>>, vector<64x1xf32>
    %c1_28 = arith.constant 1 : index
    %c0_29 = arith.constant 0 : index
    %46 = vector.load %arg4[%c1_28, %c0_29] : memref<4x128xf32, #tpu.memory_space<vmem>>, vector<1x128xf32>
    %47 = vector.broadcast %45 : vector<64x1xf32> to vector<64x128xf32>
    %48 = vector.broadcast %46 : vector<1x128xf32> to vector<64x128xf32>
    %49 = arith.addf %47, %48 : vector<64x128xf32>
    %cst_30 = arith.constant 0.000000e+00 : f32
    %50 = vector.broadcast %cst_30 : f32 to vector<64x128xf32>
    %51 = arith.cmpf ogt, %49, %50 : vector<64x128xf32>
    %cst_31 = arith.constant 2.000000e-01 : f32
    %52 = vector.broadcast %cst_31 : f32 to vector<64x128xf32>
    %53 = arith.mulf %52, %49 : vector<64x128xf32>
    %54 = arith.select %51, %49, %53 : vector<64x128xi1>, vector<64x128xf32>
    %55 = arith.addf %54, %8 : vector<64x128xf32>
    %c0_32 = arith.constant 0 : index
    %c1_33 = arith.constant 1 : index
    %56 = vector.load %arg8[%c0_32, %c1_33] : memref<64x4xf32, #tpu.memory_space<vmem>>, vector<64x1xf32>
    %cst_34 = arith.constant dense<0xFF800000> : vector<64xf32>
    %57 = vector.multi_reduction <maximumf>, %55, %cst_34 [1] : vector<64x128xf32> to vector<64xf32>
    %58 = vector.shape_cast %57 : vector<64xf32> to vector<64x1xf32>
    %59 = arith.maximumf %56, %58 : vector<64x1xf32>
    %60 = arith.subf %56, %59 : vector<64x1xf32>
    %61 = math.exp %60 : vector<64x1xf32>
    %62 = vector.broadcast %59 : vector<64x1xf32> to vector<64x128xf32>
    %63 = arith.subf %55, %62 : vector<64x128xf32>
    %64 = math.exp %63 : vector<64x128xf32>
    %65 = arith.truncf %64 : vector<64x128xf32> to vector<64x128xbf16>
    %66 = vector.extract_strided_slice %9 {offsets = [0, 8], sizes = [128, 8], strides = [1, 1]} : vector<128x128xbf16> to vector<128x8xbf16>
    %cst_35 = arith.constant dense<0.000000e+00> : vector<64x8xf32>
    %67 = tpu.matmul %65, %66, %cst_35 {dimension_numbers = #tpu.dot_dimension_numbers<[1], [0], [0], [1], [0, 0, 1, 1], [], []>} : vector<64x128xbf16>, vector<128x8xbf16>, vector<64x8xf32> -> vector<64x8xf32>
    %cst_36 = arith.constant dense<0.000000e+00> : vector<64x1xf32>
    %68 = tpu.matmul %65, %10, %cst_36 {dimension_numbers = #tpu.dot_dimension_numbers<[1], [0], [0], [1], [0, 0, 1, 1], [], []>} : vector<64x128xbf16>, vector<128x1xbf16>, vector<64x1xf32> -> vector<64x1xf32>
    %c0_37 = arith.constant 0 : index
    %c8 = arith.constant 8 : index
    %69 = vector.load %arg10[%c0_37, %c8] : memref<64x128xf32, #tpu.memory_space<vmem>>, vector<64x8xf32>
    %70 = vector.broadcast %61 : vector<64x1xf32> to vector<64x8xf32>
    %71 = arith.mulf %70, %69 : vector<64x8xf32>
    %72 = arith.addf %71, %67 : vector<64x8xf32>
    %c0_38 = arith.constant 0 : index
    %c8_39 = arith.constant 8 : index
    %73 = vector.load %arg10[%c0_38, %c8_39] : memref<64x128xf32, #tpu.memory_space<vmem>>, vector<64x8xf32>
    tpu.vector_store %arg10[%c0_38, %c8_39], %72 {strides = array<i32>} : memref<64x128xf32, #tpu.memory_space<vmem>>, vector<64x8xf32>,
    %c0_40 = arith.constant 0 : index
    %c1_41 = arith.constant 1 : index
    %74 = vector.load %arg9[%c0_40, %c1_41] : memref<64x4xf32, #tpu.memory_space<vmem>>, vector<64x1xf32>
    %75 = arith.mulf %61, %74 : vector<64x1xf32>
    %76 = arith.addf %75, %68 : vector<64x1xf32>
    %c0_42 = arith.constant 0 : index
    %c1_43 = arith.constant 1 : index
    %77 = vector.load %arg9[%c0_42, %c1_43] : memref<64x4xf32, #tpu.memory_space<vmem>>, vector<64x1xf32>
    tpu.vector_store %arg9[%c0_42, %c1_43], %76 {strides = array<i32>} : memref<64x4xf32, #tpu.memory_space<vmem>>, vector<64x1xf32>,
    %c0_44 = arith.constant 0 : index
    %c1_45 = arith.constant 1 : index
    %78 = vector.load %arg8[%c0_44, %c1_45] : memref<64x4xf32, #tpu.memory_space<vmem>>, vector<64x1xf32>
    tpu.vector_store %arg8[%c0_44, %c1_45], %59 {strides = array<i32>} : memref<64x4xf32, #tpu.memory_space<vmem>>, vector<64x1xf32>,
    %c0_46 = arith.constant 0 : index
    %c2 = arith.constant 2 : index
    %79 = vector.load %arg3[%c0_46, %c2] : memref<64x4xf32, #tpu.memory_space<vmem>>, vector<64x1xf32>
    %c2_47 = arith.constant 2 : index
    %c0_48 = arith.constant 0 : index
    %80 = vector.load %arg4[%c2_47, %c0_48] : memref<4x128xf32, #tpu.memory_space<vmem>>, vector<1x128xf32>
    %81 = vector.broadcast %79 : vector<64x1xf32> to vector<64x128xf32>
    %82 = vector.broadcast %80 : vector<1x128xf32> to vector<64x128xf32>
    %83 = arith.addf %81, %82 : vector<64x128xf32>
    %cst_49 = arith.constant 0.000000e+00 : f32
    %84 = vector.broadcast %cst_49 : f32 to vector<64x128xf32>
    %85 = arith.cmpf ogt, %83, %84 : vector<64x128xf32>
    %cst_50 = arith.constant 2.000000e-01 : f32
    %86 = vector.broadcast %cst_50 : f32 to vector<64x128xf32>
    %87 = arith.mulf %86, %83 : vector<64x128xf32>
    %88 = arith.select %85, %83, %87 : vector<64x128xi1>, vector<64x128xf32>
    %89 = arith.addf %88, %8 : vector<64x128xf32>
    %c0_51 = arith.constant 0 : index
    %c2_52 = arith.constant 2 : index
    %90 = vector.load %arg8[%c0_51, %c2_52] : memref<64x4xf32, #tpu.memory_space<vmem>>, vector<64x1xf32>
    %cst_53 = arith.constant dense<0xFF800000> : vector<64xf32>
    %91 = vector.multi_reduction <maximumf>, %89, %cst_53 [1] : vector<64x128xf32> to vector<64xf32>
    %92 = vector.shape_cast %91 : vector<64xf32> to vector<64x1xf32>
    %93 = arith.maximumf %90, %92 : vector<64x1xf32>
    %94 = arith.subf %90, %93 : vector<64x1xf32>
    %95 = math.exp %94 : vector<64x1xf32>
    %96 = vector.broadcast %93 : vector<64x1xf32> to vector<64x128xf32>
    %97 = arith.subf %89, %96 : vector<64x128xf32>
    %98 = math.exp %97 : vector<64x128xf32>
    %99 = arith.truncf %98 : vector<64x128xf32> to vector<64x128xbf16>
    %100 = vector.extract_strided_slice %9 {offsets = [0, 16], sizes = [128, 8], strides = [1, 1]} : vector<128x128xbf16> to vector<128x8xbf16>
    %cst_54 = arith.constant dense<0.000000e+00> : vector<64x8xf32>
    %101 = tpu.matmul %99, %100, %cst_54 {dimension_numbers = #tpu.dot_dimension_numbers<[1], [0], [0], [1], [0, 0, 1, 1], [], []>} : vector<64x128xbf16>, vector<128x8xbf16>, vector<64x8xf32> -> vector<64x8xf32>
    %cst_55 = arith.constant dense<0.000000e+00> : vector<64x1xf32>
    %102 = tpu.matmul %99, %10, %cst_55 {dimension_numbers = #tpu.dot_dimension_numbers<[1], [0], [0], [1], [0, 0, 1, 1], [], []>} : vector<64x128xbf16>, vector<128x1xbf16>, vector<64x1xf32> -> vector<64x1xf32>
    %c0_56 = arith.constant 0 : index
    %c16 = arith.constant 16 : index
    %103 = vector.load %arg10[%c0_56, %c16] : memref<64x128xf32, #tpu.memory_space<vmem>>, vector<64x8xf32>
    %104 = vector.broadcast %95 : vector<64x1xf32> to vector<64x8xf32>
    %105 = arith.mulf %104, %103 : vector<64x8xf32>
    %106 = arith.addf %105, %101 : vector<64x8xf32>
    %c0_57 = arith.constant 0 : index
    %c16_58 = arith.constant 16 : index
    %107 = vector.load %arg10[%c0_57, %c16_58] : memref<64x128xf32, #tpu.memory_space<vmem>>, vector<64x8xf32>
    tpu.vector_store %arg10[%c0_57, %c16_58], %106 {strides = array<i32>} : memref<64x128xf32, #tpu.memory_space<vmem>>, vector<64x8xf32>,
    %c0_59 = arith.constant 0 : index
    %c2_60 = arith.constant 2 : index
    %108 = vector.load %arg9[%c0_59, %c2_60] : memref<64x4xf32, #tpu.memory_space<vmem>>, vector<64x1xf32>
    %109 = arith.mulf %95, %108 : vector<64x1xf32>
    %110 = arith.addf %109, %102 : vector<64x1xf32>
    %c0_61 = arith.constant 0 : index
    %c2_62 = arith.constant 2 : index
    %111 = vector.load %arg9[%c0_61, %c2_62] : memref<64x4xf32, #tpu.memory_space<vmem>>, vector<64x1xf32>
    tpu.vector_store %arg9[%c0_61, %c2_62], %110 {strides = array<i32>} : memref<64x4xf32, #tpu.memory_space<vmem>>, vector<64x1xf32>,
    %c0_63 = arith.constant 0 : index
    %c2_64 = arith.constant 2 : index
    %112 = vector.load %arg8[%c0_63, %c2_64] : memref<64x4xf32, #tpu.memory_space<vmem>>, vector<64x1xf32>
    tpu.vector_store %arg8[%c0_63, %c2_64], %93 {strides = array<i32>} : memref<64x4xf32, #tpu.memory_space<vmem>>, vector<64x1xf32>,
    %c0_65 = arith.constant 0 : index
    %c3 = arith.constant 3 : index
    %113 = vector.load %arg3[%c0_65, %c3] : memref<64x4xf32, #tpu.memory_space<vmem>>, vector<64x1xf32>
    %c3_66 = arith.constant 3 : index
    %c0_67 = arith.constant 0 : index
    %114 = vector.load %arg4[%c3_66, %c0_67] : memref<4x128xf32, #tpu.memory_space<vmem>>, vector<1x128xf32>
    %115 = vector.broadcast %113 : vector<64x1xf32> to vector<64x128xf32>
    %116 = vector.broadcast %114 : vector<1x128xf32> to vector<64x128xf32>
    %117 = arith.addf %115, %116 : vector<64x128xf32>
    %cst_68 = arith.constant 0.000000e+00 : f32
    %118 = vector.broadcast %cst_68 : f32 to vector<64x128xf32>
    %119 = arith.cmpf ogt, %117, %118 : vector<64x128xf32>
    %cst_69 = arith.constant 2.000000e-01 : f32
    %120 = vector.broadcast %cst_69 : f32 to vector<64x128xf32>
    %121 = arith.mulf %120, %117 : vector<64x128xf32>
    %122 = arith.select %119, %117, %121 : vector<64x128xi1>, vector<64x128xf32>
    %123 = arith.addf %122, %8 : vector<64x128xf32>
    %c0_70 = arith.constant 0 : index
    %c3_71 = arith.constant 3 : index
    %124 = vector.load %arg8[%c0_70, %c3_71] : memref<64x4xf32, #tpu.memory_space<vmem>>, vector<64x1xf32>
    %cst_72 = arith.constant dense<0xFF800000> : vector<64xf32>
    %125 = vector.multi_reduction <maximumf>, %123, %cst_72 [1] : vector<64x128xf32> to vector<64xf32>
    %126 = vector.shape_cast %125 : vector<64xf32> to vector<64x1xf32>
    %127 = arith.maximumf %124, %126 : vector<64x1xf32>
    %128 = arith.subf %124, %127 : vector<64x1xf32>
    %129 = math.exp %128 : vector<64x1xf32>
    %130 = vector.broadcast %127 : vector<64x1xf32> to vector<64x128xf32>
    %131 = arith.subf %123, %130 : vector<64x128xf32>
    %132 = math.exp %131 : vector<64x128xf32>
    %133 = arith.truncf %132 : vector<64x128xf32> to vector<64x128xbf16>
    %134 = vector.extract_strided_slice %9 {offsets = [0, 24], sizes = [128, 8], strides = [1, 1]} : vector<128x128xbf16> to vector<128x8xbf16>
    %cst_73 = arith.constant dense<0.000000e+00> : vector<64x8xf32>
    %135 = tpu.matmul %133, %134, %cst_73 {dimension_numbers = #tpu.dot_dimension_numbers<[1], [0], [0], [1], [0, 0, 1, 1], [], []>} : vector<64x128xbf16>, vector<128x8xbf16>, vector<64x8xf32> -> vector<64x8xf32>
    %cst_74 = arith.constant dense<0.000000e+00> : vector<64x1xf32>
    %136 = tpu.matmul %133, %10, %cst_74 {dimension_numbers = #tpu.dot_dimension_numbers<[1], [0], [0], [1], [0, 0, 1, 1], [], []>} : vector<64x128xbf16>, vector<128x1xbf16>, vector<64x1xf32> -> vector<64x1xf32>
    %c0_75 = arith.constant 0 : index
    %c24 = arith.constant 24 : index
    %137 = vector.load %arg10[%c0_75, %c24] : memref<64x128xf32, #tpu.memory_space<vmem>>, vector<64x8xf32>
    %138 = vector.broadcast %129 : vector<64x1xf32> to vector<64x8xf32>
    %139 = arith.mulf %138, %137 : vector<64x8xf32>
    %140 = arith.addf %139, %135 : vector<64x8xf32>
    %c0_76 = arith.constant 0 : index
    %c24_77 = arith.constant 24 : index
    %141 = vector.load %arg10[%c0_76, %c24_77] : memref<64x128xf32, #tpu.memory_space<vmem>>, vector<64x8xf32>
    tpu.vector_store %arg10[%c0_76, %c24_77], %140 {strides = array<i32>} : memref<64x128xf32, #tpu.memory_space<vmem>>, vector<64x8xf32>,
    %c0_78 = arith.constant 0 : index
    %c3_79 = arith.constant 3 : index
    %142 = vector.load %arg9[%c0_78, %c3_79] : memref<64x4xf32, #tpu.memory_space<vmem>>, vector<64x1xf32>
    %143 = arith.mulf %129, %142 : vector<64x1xf32>
    %144 = arith.addf %143, %136 : vector<64x1xf32>
    %c0_80 = arith.constant 0 : index
    %c3_81 = arith.constant 3 : index
    %145 = vector.load %arg9[%c0_80, %c3_81] : memref<64x4xf32, #tpu.memory_space<vmem>>, vector<64x1xf32>
    tpu.vector_store %arg9[%c0_80, %c3_81], %144 {strides = array<i32>} : memref<64x4xf32, #tpu.memory_space<vmem>>, vector<64x1xf32>,
    %c0_82 = arith.constant 0 : index
    %c3_83 = arith.constant 3 : index
    %146 = vector.load %arg8[%c0_82, %c3_83] : memref<64x4xf32, #tpu.memory_space<vmem>>, vector<64x1xf32>
    tpu.vector_store %arg8[%c0_82, %c3_83], %127 {strides = array<i32>} : memref<64x4xf32, #tpu.memory_space<vmem>>, vector<64x1xf32>,
    %c1_i32 = arith.constant 1 : i32
    %147 = arith.cmpi eq, %arg1, %c1_i32 : i32
    %148 = arith.extui %147 : i1 to i32
    %c0_i32_84 = arith.constant 0 : i32
    %149 = arith.cmpi ne, %148, %c0_i32_84 : i32
    scf.if %149 {
      %c0_85 = arith.constant 0 : index
      %c0_86 = arith.constant 0 : index
      %150 = vector.load %arg9[%c0_85, %c0_86] : memref<64x4xf32, #tpu.memory_space<vmem>>, vector<64x1xf32>
      %cst_87 = arith.constant 9.99999968E-21 : f32
      %151 = vector.broadcast %cst_87 : f32 to vector<64x1xf32>
      %152 = arith.maximumf %150, %151 : vector<64x1xf32>
      %153 = tpu.reciprocal %152 {approx = true} : vector<64x1xf32> -> vector<64x1xf32>
      %c0_88 = arith.constant 0 : index
      %c0_89 = arith.constant 0 : index
      %154 = vector.load %arg10[%c0_88, %c0_89] : memref<64x128xf32, #tpu.memory_space<vmem>>, vector<64x8xf32>
      %155 = vector.broadcast %153 : vector<64x1xf32> to vector<64x8xf32>
      %156 = arith.mulf %154, %155 : vector<64x8xf32>
      %c0_90 = arith.constant 0 : index
      %c0_91 = arith.constant 0 : index
      %157 = vector.load %arg6[%c0_90, %c0_91] : memref<1x32xf32, #tpu.memory_space<vmem>>, vector<1x8xf32>
      %158 = vector.broadcast %157 : vector<1x8xf32> to vector<64x8xf32>
      %159 = arith.addf %156, %158 : vector<64x8xf32>
      %cst_92 = arith.constant 0.000000e+00 : f32
      %160 = vector.broadcast %cst_92 : f32 to vector<64x8xf32>
      %161 = arith.maximumf %159, %160 : vector<64x8xf32>
      %162 = arith.truncf %161 : vector<64x8xf32> to vector<64x8xbf16>
      %c0_93 = arith.constant 0 : index
      %c0_94 = arith.constant 0 : index
      %163 = vector.load %arg7[%c0_93, %c0_94] : memref<64x128xbf16, #tpu.memory_space<vmem>>, vector<64x8xbf16>
      tpu.vector_store %arg7[%c0_93, %c0_94], %162 {strides = array<i32>} : memref<64x128xbf16, #tpu.memory_space<vmem>>, vector<64x8xbf16>,
      %c0_95 = arith.constant 0 : index
      %c1_96 = arith.constant 1 : index
      %164 = vector.load %arg9[%c0_95, %c1_96] : memref<64x4xf32, #tpu.memory_space<vmem>>, vector<64x1xf32>
      %cst_97 = arith.constant 9.99999968E-21 : f32
      %165 = vector.broadcast %cst_97 : f32 to vector<64x1xf32>
      %166 = arith.maximumf %164, %165 : vector<64x1xf32>
      %167 = tpu.reciprocal %166 {approx = true} : vector<64x1xf32> -> vector<64x1xf32>
      %c0_98 = arith.constant 0 : index
      %c8_99 = arith.constant 8 : index
      %168 = vector.load %arg10[%c0_98, %c8_99] : memref<64x128xf32, #tpu.memory_space<vmem>>, vector<64x8xf32>
      %169 = vector.broadcast %167 : vector<64x1xf32> to vector<64x8xf32>
      %170 = arith.mulf %168, %169 : vector<64x8xf32>
      %c0_100 = arith.constant 0 : index
      %c8_101 = arith.constant 8 : index
      %171 = vector.load %arg6[%c0_100, %c8_101] : memref<1x32xf32, #tpu.memory_space<vmem>>, vector<1x8xf32>
      %172 = vector.broadcast %171 : vector<1x8xf32> to vector<64x8xf32>
      %173 = arith.addf %170, %172 : vector<64x8xf32>
      %cst_102 = arith.constant 0.000000e+00 : f32
      %174 = vector.broadcast %cst_102 : f32 to vector<64x8xf32>
      %175 = arith.maximumf %173, %174 : vector<64x8xf32>
      %176 = arith.truncf %175 : vector<64x8xf32> to vector<64x8xbf16>
      %c0_103 = arith.constant 0 : index
      %c8_104 = arith.constant 8 : index
      %177 = vector.load %arg7[%c0_103, %c8_104] : memref<64x128xbf16, #tpu.memory_space<vmem>>, vector<64x8xbf16>
      tpu.vector_store %arg7[%c0_103, %c8_104], %176 {strides = array<i32>} : memref<64x128xbf16, #tpu.memory_space<vmem>>, vector<64x8xbf16>,
      %c0_105 = arith.constant 0 : index
      %c2_106 = arith.constant 2 : index
      %178 = vector.load %arg9[%c0_105, %c2_106] : memref<64x4xf32, #tpu.memory_space<vmem>>, vector<64x1xf32>
      %cst_107 = arith.constant 9.99999968E-21 : f32
      %179 = vector.broadcast %cst_107 : f32 to vector<64x1xf32>
      %180 = arith.maximumf %178, %179 : vector<64x1xf32>
      %181 = tpu.reciprocal %180 {approx = true} : vector<64x1xf32> -> vector<64x1xf32>
      %c0_108 = arith.constant 0 : index
      %c16_109 = arith.constant 16 : index
      %182 = vector.load %arg10[%c0_108, %c16_109] : memref<64x128xf32, #tpu.memory_space<vmem>>, vector<64x8xf32>
      %183 = vector.broadcast %181 : vector<64x1xf32> to vector<64x8xf32>
      %184 = arith.mulf %182, %183 : vector<64x8xf32>
      %c0_110 = arith.constant 0 : index
      %c16_111 = arith.constant 16 : index
      %185 = vector.load %arg6[%c0_110, %c16_111] : memref<1x32xf32, #tpu.memory_space<vmem>>, vector<1x8xf32>
      %186 = vector.broadcast %185 : vector<1x8xf32> to vector<64x8xf32>
      %187 = arith.addf %184, %186 : vector<64x8xf32>
      %cst_112 = arith.constant 0.000000e+00 : f32
      %188 = vector.broadcast %cst_112 : f32 to vector<64x8xf32>
      %189 = arith.maximumf %187, %188 : vector<64x8xf32>
      %190 = arith.truncf %189 : vector<64x8xf32> to vector<64x8xbf16>
      %c0_113 = arith.constant 0 : index
      %c16_114 = arith.constant 16 : index
      %191 = vector.load %arg7[%c0_113, %c16_114] : memref<64x128xbf16, #tpu.memory_space<vmem>>, vector<64x8xbf16>
      tpu.vector_store %arg7[%c0_113, %c16_114], %190 {strides = array<i32>} : memref<64x128xbf16, #tpu.memory_space<vmem>>, vector<64x8xbf16>,
      %c0_115 = arith.constant 0 : index
      %c3_116 = arith.constant 3 : index
      %192 = vector.load %arg9[%c0_115, %c3_116] : memref<64x4xf32, #tpu.memory_space<vmem>>, vector<64x1xf32>
      %cst_117 = arith.constant 9.99999968E-21 : f32
      %193 = vector.broadcast %cst_117 : f32 to vector<64x1xf32>
      %194 = arith.maximumf %192, %193 : vector<64x1xf32>
      %195 = tpu.reciprocal %194 {approx = true} : vector<64x1xf32> -> vector<64x1xf32>
      %c0_118 = arith.constant 0 : index
      %c24_119 = arith.constant 24 : index
      %196 = vector.load %arg10[%c0_118, %c24_119] : memref<64x128xf32, #tpu.memory_space<vmem>>, vector<64x8xf32>
      %197 = vector.broadcast %195 : vector<64x1xf32> to vector<64x8xf32>
      %198 = arith.mulf %196, %197 : vector<64x8xf32>
      %c0_120 = arith.constant 0 : index
      %c24_121 = arith.constant 24 : index
      %199 = vector.load %arg6[%c0_120, %c24_121] : memref<1x32xf32, #tpu.memory_space<vmem>>, vector<1x8xf32>
      %200 = vector.broadcast %199 : vector<1x8xf32> to vector<64x8xf32>
      %201 = arith.addf %198, %200 : vector<64x8xf32>
      %cst_122 = arith.constant 0.000000e+00 : f32
      %202 = vector.broadcast %cst_122 : f32 to vector<64x8xf32>
      %203 = arith.maximumf %201, %202 : vector<64x8xf32>
      %204 = arith.truncf %203 : vector<64x8xf32> to vector<64x8xbf16>
      %c0_123 = arith.constant 0 : index
      %c24_124 = arith.constant 24 : index
      %205 = vector.load %arg7[%c0_123, %c24_124] : memref<64x128xbf16, #tpu.memory_space<vmem>>, vector<64x8xbf16>
      tpu.vector_store %arg7[%c0_123, %c24_124], %204 {strides = array<i32>} : memref<64x128xbf16, #tpu.memory_space<vmem>>, vector<64x8xbf16>,
      %cst_125 = arith.constant 0.000000e+00 : bf16
      %206 = vector.broadcast %cst_125 : bf16 to vector<64x96xbf16>
      %c0_126 = arith.constant 0 : index
      %c32 = arith.constant 32 : index
      %207 = vector.load %arg7[%c0_126, %c32] : memref<64x128xbf16, #tpu.memory_space<vmem>>, vector<64x96xbf16>
      tpu.vector_store %arg7[%c0_126, %c32], %206 {strides = array<i32>} : memref<64x128xbf16, #tpu.memory_space<vmem>>, vector<64x96xbf16>,
    } else {
    }
    return
  }
  func.func @transform_0(%arg0: i32, %arg1: i32) -> (i32, i32) {
    %c0_i32 = arith.constant 0 : i32
    return %arg0, %arg1 : i32, i32
  }
  func.func @transform_1(%arg0: i32, %arg1: i32) -> (i32, i32) {
    %c0_i32 = arith.constant 0 : i32
    %c0_i32_0 = arith.constant 0 : i32
    return %arg0, %c0_i32 : i32, i32
  }
  func.func @transform_2(%arg0: i32, %arg1: i32) -> (i32, i32) {
    %c0_i32 = arith.constant 0 : i32
    %c0_i32_0 = arith.constant 0 : i32
    return %c0_i32, %arg1 : i32, i32
  }
  func.func @transform_3(%arg0: i32, %arg1: i32) -> (i32, i32) {
    %c0_i32 = arith.constant 0 : i32
    %c0_i32_0 = arith.constant 0 : i32
    return %arg1, %c0_i32 : i32, i32
  }
  func.func @transform_4(%arg0: i32, %arg1: i32) -> (i32, i32) {
    %c0_i32 = arith.constant 0 : i32
    %c0_i32_0 = arith.constant 0 : i32
    %c0_i32_1 = arith.constant 0 : i32
    return %c0_i32, %c0_i32_0 : i32, i32
  }
  func.func @transform_5(%arg0: i32, %arg1: i32) -> (i32, i32) {
    %c0_i32 = arith.constant 0 : i32
    %c0_i32_0 = arith.constant 0 : i32
    return %arg0, %c0_i32 : i32, i32
  }
}

module attributes {stable_mosaic.version = 11 : i64} {
  func.func @attention_kernel(%arg0: i32, %arg1: i32, %arg2: memref<64x128xi8, #tpu.memory_space<vmem>>, %arg3: memref<64x2xf32, #tpu.memory_space<vmem>>, %arg4: memref<2x128xf32, #tpu.memory_space<vmem>>, %arg5: memref<128x128xbf16, #tpu.memory_space<vmem>>, %arg6: memref<1x16xf32, #tpu.memory_space<vmem>>, %arg7: memref<64x128xf32, #tpu.memory_space<vmem>>, %arg8: memref<64x2xf32, #tpu.memory_space<vmem>>, %arg9: memref<64x2xf32, #tpu.memory_space<vmem>>, %arg10: memref<64x128xf32, #tpu.memory_space<vmem>>) attributes {dimension_semantics = [#tpu.dimension_semantics<parallel>, #tpu.dimension_semantics<arbitrary>], iteration_bounds = array<i64: 4, 2>, scalar_prefetch = 0 : i64, scratch_operands = 3 : i64, tpu.core_type = #tpu.core_type<tc>, window_params = [{transform_indices = @transform_0, window_bounds = array<i64: 64, 128>}, {transform_indices = @transform_1, window_bounds = array<i64: 64, 2>}, {transform_indices = @transform_2, window_bounds = array<i64: 2, 128>}, {transform_indices = @transform_3, window_bounds = array<i64: 128, 128>}, {pipeline_mode = #tpu.pipeline_mode<synchronous>, transform_indices = @transform_4, window_bounds = array<i64: 1, 16>}, {transform_indices = @transform_5, window_bounds = array<i64: 64, 128>}]} {
    %c0_i32 = arith.constant 0 : i32
    %0 = arith.cmpi eq, %arg1, %c0_i32 : i32
    %1 = arith.extui %0 : i1 to i32
    %c0_i32_0 = arith.constant 0 : i32
    %2 = arith.cmpi ne, %1, %c0_i32_0 : i32
    scf.if %2 {
      %cst_47 = arith.constant 0.000000e+00 : f32
      %82 = vector.broadcast %cst_47 : f32 to vector<64x2xf32>
      %c0_48 = arith.constant 0 : index
      %c0_49 = arith.constant 0 : index
      %83 = vector.load %arg8[%c0_48, %c0_49] : memref<64x2xf32, #tpu.memory_space<vmem>>, vector<64x2xf32>
      tpu.vector_store %arg8[%c0_48, %c0_49], %82 {strides = array<i32>} : memref<64x2xf32, #tpu.memory_space<vmem>>, vector<64x2xf32>,
      %cst_50 = arith.constant 0.000000e+00 : f32
      %84 = vector.broadcast %cst_50 : f32 to vector<64x2xf32>
      %c0_51 = arith.constant 0 : index
      %c0_52 = arith.constant 0 : index
      %85 = vector.load %arg9[%c0_51, %c0_52] : memref<64x2xf32, #tpu.memory_space<vmem>>, vector<64x2xf32>
      tpu.vector_store %arg9[%c0_51, %c0_52], %84 {strides = array<i32>} : memref<64x2xf32, #tpu.memory_space<vmem>>, vector<64x2xf32>,
      %cst_53 = arith.constant 0.000000e+00 : f32
      %86 = vector.broadcast %cst_53 : f32 to vector<64x128xf32>
      %c0_54 = arith.constant 0 : index
      %c0_55 = arith.constant 0 : index
      %87 = vector.load %arg10[%c0_54, %c0_55] : memref<64x128xf32, #tpu.memory_space<vmem>>, vector<64x128xf32>
      tpu.vector_store %arg10[%c0_54, %c0_55], %86 {strides = array<i32>} : memref<64x128xf32, #tpu.memory_space<vmem>>, vector<64x128xf32>,
    } else {
    }
    %c0 = arith.constant 0 : index
    %c0_1 = arith.constant 0 : index
    %3 = vector.load %arg2[%c0, %c0_1] : memref<64x128xi8, #tpu.memory_space<vmem>>, vector<64x128xi8>
    %4 = arith.sitofp %3 : vector<64x128xi8> to vector<64x128xf32>
    %cst = arith.constant 1.000000e+00 : f32
    %5 = vector.broadcast %cst : f32 to vector<64x128xf32>
    %6 = arith.subf %4, %5 : vector<64x128xf32>
    %cst_2 = arith.constant 1.000000e+30 : f32
    %7 = vector.broadcast %cst_2 : f32 to vector<64x128xf32>
    %8 = arith.mulf %6, %7 : vector<64x128xf32>
    %c0_3 = arith.constant 0 : index
    %c0_4 = arith.constant 0 : index
    %9 = vector.load %arg5[%c0_3, %c0_4] : memref<128x128xbf16, #tpu.memory_space<vmem>>, vector<128x128xbf16>
    %cst_5 = arith.constant 1.000000e+00 : bf16
    %10 = vector.broadcast %cst_5 : bf16 to vector<128x1xbf16>
    %c0_6 = arith.constant 0 : index
    %c0_7 = arith.constant 0 : index
    %11 = vector.load %arg3[%c0_6, %c0_7] : memref<64x2xf32, #tpu.memory_space<vmem>>, vector<64x1xf32>
    %c0_8 = arith.constant 0 : index
    %c0_9 = arith.constant 0 : index
    %12 = vector.load %arg4[%c0_8, %c0_9] : memref<2x128xf32, #tpu.memory_space<vmem>>, vector<1x128xf32>
    %13 = vector.broadcast %11 : vector<64x1xf32> to vector<64x128xf32>
    %14 = vector.broadcast %12 : vector<1x128xf32> to vector<64x128xf32>
    %15 = arith.addf %13, %14 : vector<64x128xf32>
    %cst_10 = arith.constant 0.000000e+00 : f32
    %16 = vector.broadcast %cst_10 : f32 to vector<64x128xf32>
    %17 = arith.cmpf ogt, %15, %16 : vector<64x128xf32>
    %cst_11 = arith.constant 2.000000e-01 : f32
    %18 = vector.broadcast %cst_11 : f32 to vector<64x128xf32>
    %19 = arith.mulf %18, %15 : vector<64x128xf32>
    %20 = arith.select %17, %15, %19 : vector<64x128xi1>, vector<64x128xf32>
    %21 = arith.addf %20, %8 : vector<64x128xf32>
    %c0_12 = arith.constant 0 : index
    %c0_13 = arith.constant 0 : index
    %22 = vector.load %arg8[%c0_12, %c0_13] : memref<64x2xf32, #tpu.memory_space<vmem>>, vector<64x1xf32>
    %cst_14 = arith.constant dense<0xFF800000> : vector<64xf32>
    %23 = vector.multi_reduction <maximumf>, %21, %cst_14 [1] : vector<64x128xf32> to vector<64xf32>
    %24 = vector.shape_cast %23 : vector<64xf32> to vector<64x1xf32>
    %25 = arith.maximumf %22, %24 : vector<64x1xf32>
    %26 = arith.subf %22, %25 : vector<64x1xf32>
    %27 = math.exp %26 : vector<64x1xf32>
    %28 = vector.broadcast %25 : vector<64x1xf32> to vector<64x128xf32>
    %29 = arith.subf %21, %28 : vector<64x128xf32>
    %30 = math.exp %29 : vector<64x128xf32>
    %31 = arith.truncf %30 : vector<64x128xf32> to vector<64x128xbf16>
    %32 = vector.extract_strided_slice %9 {offsets = [0, 0], sizes = [128, 8], strides = [1, 1]} : vector<128x128xbf16> to vector<128x8xbf16>
    %cst_15 = arith.constant dense<0.000000e+00> : vector<64x8xf32>
    %33 = tpu.matmul %31, %32, %cst_15 {dimension_numbers = #tpu.dot_dimension_numbers<[1], [0], [0], [1], [0, 0, 1, 1], [], []>} : vector<64x128xbf16>, vector<128x8xbf16>, vector<64x8xf32> -> vector<64x8xf32>
    %cst_16 = arith.constant dense<0.000000e+00> : vector<64x1xf32>
    %34 = tpu.matmul %31, %10, %cst_16 {dimension_numbers = #tpu.dot_dimension_numbers<[1], [0], [0], [1], [0, 0, 1, 1], [], []>} : vector<64x128xbf16>, vector<128x1xbf16>, vector<64x1xf32> -> vector<64x1xf32>
    %c0_17 = arith.constant 0 : index
    %c0_18 = arith.constant 0 : index
    %35 = vector.load %arg10[%c0_17, %c0_18] : memref<64x128xf32, #tpu.memory_space<vmem>>, vector<64x8xf32>
    %36 = vector.broadcast %27 : vector<64x1xf32> to vector<64x8xf32>
    %37 = arith.mulf %36, %35 : vector<64x8xf32>
    %38 = arith.addf %37, %33 : vector<64x8xf32>
    %c0_19 = arith.constant 0 : index
    %c0_20 = arith.constant 0 : index
    %39 = vector.load %arg10[%c0_19, %c0_20] : memref<64x128xf32, #tpu.memory_space<vmem>>, vector<64x8xf32>
    tpu.vector_store %arg10[%c0_19, %c0_20], %38 {strides = array<i32>} : memref<64x128xf32, #tpu.memory_space<vmem>>, vector<64x8xf32>,
    %c0_21 = arith.constant 0 : index
    %c0_22 = arith.constant 0 : index
    %40 = vector.load %arg9[%c0_21, %c0_22] : memref<64x2xf32, #tpu.memory_space<vmem>>, vector<64x1xf32>
    %41 = arith.mulf %27, %40 : vector<64x1xf32>
    %42 = arith.addf %41, %34 : vector<64x1xf32>
    %c0_23 = arith.constant 0 : index
    %c0_24 = arith.constant 0 : index
    %43 = vector.load %arg9[%c0_23, %c0_24] : memref<64x2xf32, #tpu.memory_space<vmem>>, vector<64x1xf32>
    tpu.vector_store %arg9[%c0_23, %c0_24], %42 {strides = array<i32>} : memref<64x2xf32, #tpu.memory_space<vmem>>, vector<64x1xf32>,
    %c0_25 = arith.constant 0 : index
    %c0_26 = arith.constant 0 : index
    %44 = vector.load %arg8[%c0_25, %c0_26] : memref<64x2xf32, #tpu.memory_space<vmem>>, vector<64x1xf32>
    tpu.vector_store %arg8[%c0_25, %c0_26], %25 {strides = array<i32>} : memref<64x2xf32, #tpu.memory_space<vmem>>, vector<64x1xf32>,
    %c0_27 = arith.constant 0 : index
    %c1 = arith.constant 1 : index
    %45 = vector.load %arg3[%c0_27, %c1] : memref<64x2xf32, #tpu.memory_space<vmem>>, vector<64x1xf32>
    %c1_28 = arith.constant 1 : index
    %c0_29 = arith.constant 0 : index
    %46 = vector.load %arg4[%c1_28, %c0_29] : memref<2x128xf32, #tpu.memory_space<vmem>>, vector<1x128xf32>
    %47 = vector.broadcast %45 : vector<64x1xf32> to vector<64x128xf32>
    %48 = vector.broadcast %46 : vector<1x128xf32> to vector<64x128xf32>
    %49 = arith.addf %47, %48 : vector<64x128xf32>
    %cst_30 = arith.constant 0.000000e+00 : f32
    %50 = vector.broadcast %cst_30 : f32 to vector<64x128xf32>
    %51 = arith.cmpf ogt, %49, %50 : vector<64x128xf32>
    %cst_31 = arith.constant 2.000000e-01 : f32
    %52 = vector.broadcast %cst_31 : f32 to vector<64x128xf32>
    %53 = arith.mulf %52, %49 : vector<64x128xf32>
    %54 = arith.select %51, %49, %53 : vector<64x128xi1>, vector<64x128xf32>
    %55 = arith.addf %54, %8 : vector<64x128xf32>
    %c0_32 = arith.constant 0 : index
    %c1_33 = arith.constant 1 : index
    %56 = vector.load %arg8[%c0_32, %c1_33] : memref<64x2xf32, #tpu.memory_space<vmem>>, vector<64x1xf32>
    %cst_34 = arith.constant dense<0xFF800000> : vector<64xf32>
    %57 = vector.multi_reduction <maximumf>, %55, %cst_34 [1] : vector<64x128xf32> to vector<64xf32>
    %58 = vector.shape_cast %57 : vector<64xf32> to vector<64x1xf32>
    %59 = arith.maximumf %56, %58 : vector<64x1xf32>
    %60 = arith.subf %56, %59 : vector<64x1xf32>
    %61 = math.exp %60 : vector<64x1xf32>
    %62 = vector.broadcast %59 : vector<64x1xf32> to vector<64x128xf32>
    %63 = arith.subf %55, %62 : vector<64x128xf32>
    %64 = math.exp %63 : vector<64x128xf32>
    %65 = arith.truncf %64 : vector<64x128xf32> to vector<64x128xbf16>
    %66 = vector.extract_strided_slice %9 {offsets = [0, 8], sizes = [128, 8], strides = [1, 1]} : vector<128x128xbf16> to vector<128x8xbf16>
    %cst_35 = arith.constant dense<0.000000e+00> : vector<64x8xf32>
    %67 = tpu.matmul %65, %66, %cst_35 {dimension_numbers = #tpu.dot_dimension_numbers<[1], [0], [0], [1], [0, 0, 1, 1], [], []>} : vector<64x128xbf16>, vector<128x8xbf16>, vector<64x8xf32> -> vector<64x8xf32>
    %cst_36 = arith.constant dense<0.000000e+00> : vector<64x1xf32>
    %68 = tpu.matmul %65, %10, %cst_36 {dimension_numbers = #tpu.dot_dimension_numbers<[1], [0], [0], [1], [0, 0, 1, 1], [], []>} : vector<64x128xbf16>, vector<128x1xbf16>, vector<64x1xf32> -> vector<64x1xf32>
    %c0_37 = arith.constant 0 : index
    %c8 = arith.constant 8 : index
    %69 = vector.load %arg10[%c0_37, %c8] : memref<64x128xf32, #tpu.memory_space<vmem>>, vector<64x8xf32>
    %70 = vector.broadcast %61 : vector<64x1xf32> to vector<64x8xf32>
    %71 = arith.mulf %70, %69 : vector<64x8xf32>
    %72 = arith.addf %71, %67 : vector<64x8xf32>
    %c0_38 = arith.constant 0 : index
    %c8_39 = arith.constant 8 : index
    %73 = vector.load %arg10[%c0_38, %c8_39] : memref<64x128xf32, #tpu.memory_space<vmem>>, vector<64x8xf32>
    tpu.vector_store %arg10[%c0_38, %c8_39], %72 {strides = array<i32>} : memref<64x128xf32, #tpu.memory_space<vmem>>, vector<64x8xf32>,
    %c0_40 = arith.constant 0 : index
    %c1_41 = arith.constant 1 : index
    %74 = vector.load %arg9[%c0_40, %c1_41] : memref<64x2xf32, #tpu.memory_space<vmem>>, vector<64x1xf32>
    %75 = arith.mulf %61, %74 : vector<64x1xf32>
    %76 = arith.addf %75, %68 : vector<64x1xf32>
    %c0_42 = arith.constant 0 : index
    %c1_43 = arith.constant 1 : index
    %77 = vector.load %arg9[%c0_42, %c1_43] : memref<64x2xf32, #tpu.memory_space<vmem>>, vector<64x1xf32>
    tpu.vector_store %arg9[%c0_42, %c1_43], %76 {strides = array<i32>} : memref<64x2xf32, #tpu.memory_space<vmem>>, vector<64x1xf32>,
    %c0_44 = arith.constant 0 : index
    %c1_45 = arith.constant 1 : index
    %78 = vector.load %arg8[%c0_44, %c1_45] : memref<64x2xf32, #tpu.memory_space<vmem>>, vector<64x1xf32>
    tpu.vector_store %arg8[%c0_44, %c1_45], %59 {strides = array<i32>} : memref<64x2xf32, #tpu.memory_space<vmem>>, vector<64x1xf32>,
    %c1_i32 = arith.constant 1 : i32
    %79 = arith.cmpi eq, %arg1, %c1_i32 : i32
    %80 = arith.extui %79 : i1 to i32
    %c0_i32_46 = arith.constant 0 : i32
    %81 = arith.cmpi ne, %80, %c0_i32_46 : i32
    scf.if %81 {
      %c0_47 = arith.constant 0 : index
      %c0_48 = arith.constant 0 : index
      %82 = vector.load %arg9[%c0_47, %c0_48] : memref<64x2xf32, #tpu.memory_space<vmem>>, vector<64x1xf32>
      %cst_49 = arith.constant 9.99999968E-21 : f32
      %83 = vector.broadcast %cst_49 : f32 to vector<64x1xf32>
      %84 = arith.maximumf %82, %83 : vector<64x1xf32>
      %85 = tpu.reciprocal %84 {approx = true} : vector<64x1xf32> -> vector<64x1xf32>
      %c0_50 = arith.constant 0 : index
      %c0_51 = arith.constant 0 : index
      %86 = vector.load %arg10[%c0_50, %c0_51] : memref<64x128xf32, #tpu.memory_space<vmem>>, vector<64x8xf32>
      %87 = vector.broadcast %85 : vector<64x1xf32> to vector<64x8xf32>
      %88 = arith.mulf %86, %87 : vector<64x8xf32>
      %c0_52 = arith.constant 0 : index
      %c0_53 = arith.constant 0 : index
      %89 = vector.load %arg6[%c0_52, %c0_53] : memref<1x16xf32, #tpu.memory_space<vmem>>, vector<1x8xf32>
      %90 = vector.broadcast %89 : vector<1x8xf32> to vector<64x8xf32>
      %91 = arith.addf %88, %90 : vector<64x8xf32>
      %c0_54 = arith.constant 0 : index
      %c0_55 = arith.constant 0 : index
      %92 = vector.load %arg7[%c0_54, %c0_55] : memref<64x128xf32, #tpu.memory_space<vmem>>, vector<64x8xf32>
      tpu.vector_store %arg7[%c0_54, %c0_55], %91 {strides = array<i32>} : memref<64x128xf32, #tpu.memory_space<vmem>>, vector<64x8xf32>,
      %c0_56 = arith.constant 0 : index
      %c1_57 = arith.constant 1 : index
      %93 = vector.load %arg9[%c0_56, %c1_57] : memref<64x2xf32, #tpu.memory_space<vmem>>, vector<64x1xf32>
      %cst_58 = arith.constant 9.99999968E-21 : f32
      %94 = vector.broadcast %cst_58 : f32 to vector<64x1xf32>
      %95 = arith.maximumf %93, %94 : vector<64x1xf32>
      %96 = tpu.reciprocal %95 {approx = true} : vector<64x1xf32> -> vector<64x1xf32>
      %c0_59 = arith.constant 0 : index
      %c8_60 = arith.constant 8 : index
      %97 = vector.load %arg10[%c0_59, %c8_60] : memref<64x128xf32, #tpu.memory_space<vmem>>, vector<64x8xf32>
      %98 = vector.broadcast %96 : vector<64x1xf32> to vector<64x8xf32>
      %99 = arith.mulf %97, %98 : vector<64x8xf32>
      %c0_61 = arith.constant 0 : index
      %c8_62 = arith.constant 8 : index
      %100 = vector.load %arg6[%c0_61, %c8_62] : memref<1x16xf32, #tpu.memory_space<vmem>>, vector<1x8xf32>
      %101 = vector.broadcast %100 : vector<1x8xf32> to vector<64x8xf32>
      %102 = arith.addf %99, %101 : vector<64x8xf32>
      %c0_63 = arith.constant 0 : index
      %c8_64 = arith.constant 8 : index
      %103 = vector.load %arg7[%c0_63, %c8_64] : memref<64x128xf32, #tpu.memory_space<vmem>>, vector<64x8xf32>
      tpu.vector_store %arg7[%c0_63, %c8_64], %102 {strides = array<i32>} : memref<64x128xf32, #tpu.memory_space<vmem>>, vector<64x8xf32>,
      %cst_65 = arith.constant 0.000000e+00 : f32
      %104 = vector.broadcast %cst_65 : f32 to vector<64x112xf32>
      %c0_66 = arith.constant 0 : index
      %c16 = arith.constant 16 : index
      %105 = vector.load %arg7[%c0_66, %c16] : memref<64x128xf32, #tpu.memory_space<vmem>>, vector<64x112xf32>
      tpu.vector_store %arg7[%c0_66, %c16], %104 {strides = array<i32>} : memref<64x128xf32, #tpu.memory_space<vmem>>, vector<64x112xf32>,
    } else {
    }
    return
  }
  func.func @transform_0(%arg0: i32, %arg1: i32) -> (i32, i32) {
    %c0_i32 = arith.constant 0 : i32
    return %arg0, %arg1 : i32, i32
  }
  func.func @transform_1(%arg0: i32, %arg1: i32) -> (i32, i32) {
    %c0_i32 = arith.constant 0 : i32
    %c0_i32_0 = arith.constant 0 : i32
    return %arg0, %c0_i32 : i32, i32
  }
  func.func @transform_2(%arg0: i32, %arg1: i32) -> (i32, i32) {
    %c0_i32 = arith.constant 0 : i32
    %c0_i32_0 = arith.constant 0 : i32
    return %c0_i32, %arg1 : i32, i32
  }
  func.func @transform_3(%arg0: i32, %arg1: i32) -> (i32, i32) {
    %c0_i32 = arith.constant 0 : i32
    %c0_i32_0 = arith.constant 0 : i32
    return %arg1, %c0_i32 : i32, i32
  }
  func.func @transform_4(%arg0: i32, %arg1: i32) -> (i32, i32) {
    %c0_i32 = arith.constant 0 : i32
    %c0_i32_0 = arith.constant 0 : i32
    %c0_i32_1 = arith.constant 0 : i32
    return %c0_i32, %c0_i32_0 : i32, i32
  }
  func.func @transform_5(%arg0: i32, %arg1: i32) -> (i32, i32) {
    %c0_i32 = arith.constant 0 : i32
    %c0_i32_0 = arith.constant 0 : i32
    return %arg0, %c0_i32 : i32, i32
  }
}

</mosaic_0001>

<bundles_post_ra>
// kernel: encoder_forward.4
= control target key start
LH: loop header
LB: loop body
LE: loop exit
PB: predicated region body
PF: predicated region fallthrough
CT: control target
= control target key end

     0   :  { %vm119_vm0 = vcmask 1041408   ;;  %vm70_vm1 = vcmask 31744   ;;  %vm481_vm2 = vcmask 1043456   ;;  %s1110_s1 = inlined_call_operand.vmem [shape: bf16[4,128], index: 1, kind: input, shape index: {}]   ;;  %s1111_s0 = inlined_call_operand.vmem [shape: f32[256,4], index: 0, kind: input, shape index: {}]   ;;  %s1112_s2 = inlined_call_operand.vmem [shape: f32[128,4], index: 2, kind: input, shape index: {}]   ;;  %s1113_s4 = inlined_call_operand.vmem [shape: bf16[256,128], index: 4, kind: output, shape index: {0}]   ;;  %s1114_s5 = inlined_call_operand.vmem [shape: f32[256,4], index: 5, kind: output, shape index: {1}]   ;;  %s1115_s3 = inlined_call_operand.vmem [shape: f32[4,128], index: 3, kind: input, shape index: {}]   ;;  %s1116_s6 = inlined_call_operand.vmem [shape: f32[4,256], index: 6, kind: output, shape index: {2}]  }
   0x1   :  { %v69_v0 = vld [vmem:[%s1110_s1] sm:$0x3]  ;;  %v22_v2 = vld [vmem:[%s1111_s0 + $0x8] sm:$0xff]  ;;  %v23_v8 = vld [vmem:[%s1111_s0 + $0x10] sm:$0xff] }
   0x2   :  { %v21_v1 = vld [vmem:[%s1111_s0] sm:$0xff]  ;;  %v121_v3 = vsel %vm119_vm0, %v69_v0, 0  ;;  %v42_v6 = vld [vmem:[%s1111_s0 + $0xa8] sm:$0xff]  ;;  %v24_v9 = vld [vmem:[%s1111_s0 + $0x18] sm:$0xff] }
   0x3   :  { %v53_v4 = vpack.c.bf16 %v22_v2, %v21_v1  ;;  %v41_v5 = vld [vmem:[%s1111_s0 + $0xa0] sm:$0xff]  ;;  %130 = vmatpush.bf16.msra.mxu0 %v121_v3  ;;  %608 = vmatpush.bf16.msra.mxu3 %v121_v3  ;;  %v43_v10 = vld [vmem:[%s1111_s0 + $0xb0] sm:$0xff]  ;;  %v44_v11 = vld [vmem:[%s1111_s0 + $0xb8] sm:$0xff]  ;;  %v54_v12 = vpack.c.bf16 %v24_v9, %v23_v8 }
   0x4   :  { %v63_v7 = vpack.c.bf16 %v42_v6, %v41_v5  ;;  %v64_v13 = vpack.c.bf16 %v44_v11, %v43_v10  ;;  %v25_v14 = vld [vmem:[%s1111_s0 + $0x20] sm:$0xff]  ;;  %v26_v15 = vld [vmem:[%s1111_s0 + $0x28] sm:$0xff]  ;;  %v27_v20 = vld [vmem:[%s1111_s0 + $0x30] sm:$0xff] }
   0x5   :  { %v45_v16 = vld [vmem:[%s1111_s0 + $0xc0] sm:$0xff]  ;;  %v46_v17 = vld [vmem:[%s1111_s0 + $0xc8] sm:$0xff]  ;;  %v55_v18 = vpack.c.bf16 %v26_v15, %v25_v14  ;;  %v28_v21 = vld [vmem:[%s1111_s0 + $0x38] sm:$0xff] }
   0x6   :  { %497 = vmatmul.msk.bf16.vlgmr.msra.gmra.mxu0 %vm70_vm1, %v53_v4  ;;  %507 = vmatmul.msk.bf16.vlgmr.msra.gmra.mxu3 %vm70_vm1, %v63_v7  ;;  %v65_v19 = vpack.c.bf16 %v46_v17, %v45_v16  ;;  %v47_v22 = vld [vmem:[%s1111_s0 + $0xd0] sm:$0xff]  ;;  %v48_v23 = vld [vmem:[%s1111_s0 + $0xd8] sm:$0xff]  ;;  %v56_v24 = vpack.c.bf16 %v28_v21, %v27_v20  ;;  %v29_v27 = vld [vmem:[%s1111_s0 + $0x40] sm:$0xff] }
   0x7   :  { %v66_v25 = vpack.c.bf16 %v48_v23, %v47_v22  ;;  %v291_v26 = vld [vmem:[%s1112_s2 + $0x78] sm:$0xff]  ;;  %v30_v28 = vld [vmem:[%s1111_s0 + $0x48] sm:$0xff]  ;;  %v49_v29 = vld [vmem:[%s1111_s0 + $0xe0] sm:$0xff] }
   0x8   :  { %292 = vmatpush.msra.mxu1 %v291_v26  ;;  %609 = vmatpush.msra.mxu2 %v291_v26  ;;  %v50_v30 = vld [vmem:[%s1111_s0 + $0xe8] sm:$0xff]  ;;  %v57_v31 = vpack.c.bf16 %v30_v28, %v29_v27  ;;  %v290_v33 = vld [vmem:[%s1112_s2 + $0x70] sm:$0xff]  ;;  %v288_v35 = vld [vmem:[%s1112_s2 + $0x60] sm:$0xff] }
   0x9   :  { %v67_v32 = vpack.c.bf16 %v50_v30, %v49_v29  ;;  %v289_v34 = vld [vmem:[%s1112_s2 + $0x68] sm:$0xff]  ;;  %v287_v36 = vld [vmem:[%s1112_s2 + $0x58] sm:$0xff]  ;;  %v286_v37 = vld [vmem:[%s1112_s2 + $0x50] sm:$0xff] }
   0xa   :  { %293 = vmatpush.msra.mxu1 %v290_v33  ;;  %610 = vmatpush.msra.mxu2 %v290_v33  ;;  %v31_v38 = vld [vmem:[%s1111_s0 + $0x50] sm:$0xff]  ;;  %v285_v39 = vld [vmem:[%s1112_s2 + $0x48] sm:$0xff]  ;;  %v32_v40 = vld [vmem:[%s1111_s0 + $0x58] sm:$0xff] }
   0xb   :  { %v51_v41 = vld [vmem:[%s1111_s0 + $0xf0] sm:$0xff]  ;;  %v52_v42 = vld [vmem:[%s1111_s0 + $0xf8] sm:$0xff]  ;;  %v284_v43 = vld [vmem:[%s1112_s2 + $0x40] sm:$0xff]  ;;  %v58_v44 = vpack.c.bf16 %v32_v40, %v31_v38 }
   0xc   :  { %294 = vmatpush.msra.mxu1 %v289_v34  ;;  %611 = vmatpush.msra.mxu2 %v289_v34  ;;  %v68_v45 = vpack.c.bf16 %v52_v42, %v51_v41  ;;  %v283_v46 = vld [vmem:[%s1112_s2 + $0x38] sm:$0xff]  ;;  %v282_v47 = vld [vmem:[%s1112_s2 + $0x30] sm:$0xff]  ;;  %v281_v48 = vld [vmem:[%s1112_s2 + $0x28] sm:$0xff] }
   0xd   :  { %v280_v49 = vld [vmem:[%s1112_s2 + $0x20] sm:$0xff]  ;;  %v279_v50 = vld [vmem:[%s1112_s2 + $0x18] sm:$0xff]  ;;  %v278_v51 = vld [vmem:[%s1112_s2 + $0x10] sm:$0xff] }
   0xe   :  { %295 = vmatpush.msra.mxu1 %v288_v35  ;;  %612 = vmatpush.msra.mxu2 %v288_v35  ;;  %v277_v52 = vld [vmem:[%s1112_s2 + $0x8] sm:$0xff]  ;;  %v33_v53 = vld [vmem:[%s1111_s0 + $0x60] sm:$0xff]  ;;  %v35_v57 = vld [vmem:[%s1111_s0 + $0x70] sm:$0xff] }
   0xf   :  { %v34_v54 = vld [vmem:[%s1111_s0 + $0x68] sm:$0xff]  ;;  %v276_v56 = vld [vmem:[%s1112_s2] sm:$0xff]  ;;  %v36_v58 = vld [vmem:[%s1111_s0 + $0x78] sm:$0xff] }
  0x10   :  { %296 = vmatpush.msra.mxu1 %v287_v36  ;;  %613 = vmatpush.msra.mxu2 %v287_v36  ;;  %v59_v55 = vpack.c.bf16 %v34_v54, %v33_v53  ;;  %v60_v59 = vpack.c.bf16 %v36_v58, %v35_v57  ;;  %v37_v60 = vld [vmem:[%s1111_s0 + $0x80] sm:$0xff]  ;;  %v38_v61 = vld [vmem:[%s1111_s0 + $0x88] sm:$0xff]  ;;  %v39_v3 = vld [vmem:[%s1111_s0 + $0x90] sm:$0xff] }
  0x11   :  { %v61_v62 = vpack.c.bf16 %v38_v61, %v37_v60  ;;  %v40_v4 = vld [vmem:[%s1111_s0 + $0x98] sm:$0xff] }
  0x12   :  { %297 = vmatpush.msra.mxu1 %v286_v37  ;;  %614 = vmatpush.msra.mxu2 %v286_v37  ;;  %v62_v7 = vpack.c.bf16 %v40_v4, %v39_v3 }
  0x14   :  { %298 = vmatpush.msra.mxu1 %v285_v39  ;;  %615 = vmatpush.msra.mxu2 %v285_v39 }
  0x16   :  { %498 = vmatmul.msk.bf16.gmra.mxu0 %vm70_vm1, %v54_v12  ;;  %508 = vmatmul.msk.bf16.gmra.mxu3 %vm70_vm1, %v64_v13 }
  0x17   :  { %299 = vmatpush.msra.mxu1 %v284_v43  ;;  %616 = vmatpush.msra.mxu2 %v284_v43 }
  0x19   :  { %300 = vmatpush.msra.mxu1 %v283_v46  ;;  %617 = vmatpush.msra.mxu2 %v283_v46 }
  0x1b   :  { %301 = vmatpush.msra.mxu1 %v282_v47  ;;  %618 = vmatpush.msra.mxu2 %v282_v47 }
  0x1d   :  { %302 = vmatpush.msra.mxu1 %v281_v48  ;;  %619 = vmatpush.msra.mxu2 %v281_v48 }
  0x1f   :  { %303 = vmatpush.msra.mxu1 %v280_v49  ;;  %620 = vmatpush.msra.mxu2 %v280_v49 }
  0x21   :  { %304 = vmatpush.msra.mxu1 %v279_v50  ;;  %621 = vmatpush.msra.mxu2 %v279_v50 }
  0x23   :  { %305 = vmatpush.msra.mxu1 %v278_v51  ;;  %622 = vmatpush.msra.mxu2 %v278_v51 }
  0x25   :  { %306 = vmatpush.msra.mxu1 %v277_v52  ;;  %623 = vmatpush.msra.mxu2 %v277_v52 }
  0x26   :  { %499 = vmatmul.msk.bf16.gmra.mxu0 %vm70_vm1, %v55_v18  ;;  %509 = vmatmul.msk.bf16.gmra.mxu3 %vm70_vm1, %v65_v19 }
  0x27   :  { %307 = vmatpush.msra.mxu1 %v276_v56  ;;  %624 = vmatpush.msra.mxu2 %v276_v56 }
  0x36   :  { %500 = vmatmul.msk.bf16.gmra.mxu0 %vm70_vm1, %v56_v24  ;;  %510 = vmatmul.msk.bf16.gmra.mxu3 %vm70_vm1, %v66_v25 }
  0x46   :  { %501 = vmatmul.msk.bf16.gmra.mxu0 %vm70_vm1, %v57_v31  ;;  %511 = vmatmul.msk.bf16.gmra.mxu3 %vm70_vm1, %v67_v32 }
  0x56   :  { %502 = vmatmul.msk.bf16.gmra.mxu0 %vm70_vm1, %v58_v44  ;;  %512 = vmatmul.msk.bf16.gmra.mxu3 %vm70_vm1, %v68_v45 }
  0x66   :  { %503 = vmatmul.msk.bf16.gmra.mxu0 %vm70_vm1, %v59_v55 }
  0x76   :  { %504 = vmatmul.msk.bf16.gmra.mxu0 %vm70_vm1, %v60_v59 }
  0x83   :  { %v815_v63 = vpop.f32.mrf.mxu0 }
  0x84   :  { %308 = vmatmul.f32.vlgmr.msra.gmra.mxu1 %v815_v63 }
  0x86   :  { %505 = vmatmul.msk.bf16.gmra.mxu0 %vm70_vm1, %v61_v62 }
  0x89   :  { %v819_v0 = vpop.f32.mrf.mxu3 }
  0x8b   :  { %v821_v1 = vpop.f32.mrf.mxu0 }
  0x8c   :  { %v516_v2 = vpack.c.bf16 %v821_v1, %v815_v63  ;;  %311 = vmatmul.f32.gmra.mxu1 %v821_v1 }
  0x8e   :  { %517 = vst [vmem:[%s1113_s4] sm:$0xff] %v516_v2  }
  0x91   :  { %v835_v5 = vpop.f32.mrf.mxu3 }
  0x92   :  { %v566_v6 = vpack.c.bf16 %v835_v5, %v819_v0 }
  0x93   :  { %v839_v8 = vpop.f32.mrf.mxu0 }
  0x94   :  { %602 = vst [vmem:[%s1113_s4 + $0x50] sm:$0xff] %v566_v6   ;;  %314 = vmatmul.f32.gmra.mxu1 %v839_v8 }
  0x96   :  { %506 = vmatmul.msk.bf16.gmra.mxu0 %vm70_vm1, %v62_v7 }
  0x99   :  { %v846_v9 = vpop.f32.mrf.mxu3 }
  0x9b   :  { %v848_v10 = vpop.f32.mrf.mxu0 }
  0x9c   :  { %v521_v11 = vpack.c.bf16 %v848_v10, %v839_v8  ;;  %317 = vmatmul.f32.gmra.mxu1 %v848_v10 }
  0x9e   :  { %593 = vst [vmem:[%s1113_s4 + $0x8] sm:$0xff] %v521_v11  }
  0xa1   :  { %v856_v12 = vpop.f32.mrf.mxu3 }
  0xa2   :  { %v571_v13 = vpack.c.bf16 %v856_v12, %v846_v9 }
  0xa3   :  { %v860_v14 = vpop.f32.mrf.mxu0 }
  0xa4   :  { %603 = vst [vmem:[%s1113_s4 + $0x58] sm:$0xff] %v571_v13   ;;  %320 = vmatmul.f32.gmra.mxu1 %v860_v14 }
  0xa9   :  { %v866_v15 = vpop.f32.mrf.mxu3 }
  0xab   :  { %v868_v16 = vpop.f32.mrf.mxu0 }
  0xac   :  { %v526_v17 = vpack.c.bf16 %v868_v16, %v860_v14  ;;  %323 = vmatmul.f32.gmra.mxu1 %v868_v16 }
  0xae   :  { %594 = vst [vmem:[%s1113_s4 + $0x10] sm:$0xff] %v526_v17  }
  0xb1   :  { %v876_v18 = vpop.f32.mrf.mxu3 }
  0xb2   :  { %v576_v19 = vpack.c.bf16 %v876_v18, %v866_v15 }
  0xb3   :  { %v880_v20 = vpop.f32.mrf.mxu0 }
  0xb4   :  { %604 = vst [vmem:[%s1113_s4 + $0x60] sm:$0xff] %v576_v19   ;;  %326 = vmatmul.f32.gmra.mxu1 %v880_v20 }
  0xb9   :  { %v886_v21 = vpop.f32.mrf.mxu3 }
  0xbb   :  { %v888_v22 = vpop.f32.mrf.mxu0 }
  0xbc   :  { %v531_v23 = vpack.c.bf16 %v888_v22, %v880_v20  ;;  %329 = vmatmul.f32.gmra.mxu1 %v888_v22 }
  0xbe   :  { %595 = vst [vmem:[%s1113_s4 + $0x18] sm:$0xff] %v531_v23  }
  0xc1   :  { %v896_v24 = vpop.f32.mrf.mxu3 }
  0xc2   :  { %v581_v25 = vpack.c.bf16 %v896_v24, %v886_v21 }
  0xc3   :  { %v900_v26 = vpop.f32.mrf.mxu0 }
  0xc4   :  { %605 = vst [vmem:[%s1113_s4 + $0x68] sm:$0xff] %v581_v25   ;;  %332 = vmatmul.f32.gmra.mxu1 %v900_v26 }
  0xc9   :  { %v906_v27 = vpop.f32.mrf.mxu3 }
  0xcb   :  { %v154_v28 = vpop.f32.mrf.mxu0 }
  0xcc   :  { %v536_v29 = vpack.c.bf16 %v154_v28, %v900_v26  ;;  %335 = vmatmul.f32.gmra.mxu1 %v154_v28 }
  0xce   :  { %596 = vst [vmem:[%s1113_s4 + $0x20] sm:$0xff] %v536_v29  }
  0xd1   :  { %v912_v30 = vpop.f32.mrf.mxu3 }
  0xd2   :  { %v586_v31 = vpack.c.bf16 %v912_v30, %v906_v27 }
  0xd3   :  { %v157_v32 = vpop.f32.mrf.mxu0 }
  0xd4   :  { %606 = vst [vmem:[%s1113_s4 + $0x70] sm:$0xff] %v586_v31   ;;  %338 = vmatmul.f32.gmra.mxu1 %v157_v32 }
  0xd9   :  { %v919_v33 = vpop.f32.mrf.mxu3 }
  0xdb   :  { %v159_v34 = vpop.f32.mrf.mxu0 }
  0xdc   :  { %v541_v35 = vpack.c.bf16 %v159_v34, %v157_v32  ;;  %341 = vmatmul.f32.gmra.mxu1 %v159_v34 }
  0xde   :  { %597 = vst [vmem:[%s1113_s4 + $0x28] sm:$0xff] %v541_v35  }
  0xe1   :  { %v924_v36 = vpop.f32.mrf.mxu3 }
  0xe2   :  { %v591_v37 = vpack.c.bf16 %v924_v36, %v919_v33  ;;  %458 = vmatpush.xpose.msrb.mxu3 %v924_v36 }
  0xe3   :  { %v162_v38 = vpop.f32.mrf.mxu0 }
  0xe4   :  { %607 = vst [vmem:[%s1113_s4 + $0x78] sm:$0xff] %v591_v37   ;;  %344 = vmatmul.f32.gmra.mxu1 %v162_v38 }
  0xe6   :  { %459 = vmatpush.xpose.msrb.mxu3 %v919_v33 }
  0xea   :  { %460 = vmatpush.xpose.msrb.mxu3 %v912_v30 }
  0xeb   :  { %v164_v39 = vpop.f32.mrf.mxu0 }
  0xec   :  { %v546_v40 = vpack.c.bf16 %v164_v39, %v162_v38  ;;  %347 = vmatmul.f32.gmra.mxu1 %v164_v39 }
  0xee   :  { %598 = vst [vmem:[%s1113_s4 + $0x30] sm:$0xff] %v546_v40   ;;  %461 = vmatpush.xpose.msrb.mxu3 %v906_v27 }
  0xf2   :  { %462 = vmatpush.xpose.msrb.mxu3 %v896_v24 }
  0xf3   :  { %v167_v41 = vpop.f32.mrf.mxu0 }
  0xf4   :  { %350 = vmatmul.f32.gmra.mxu1 %v167_v41 }
  0xf6   :  { %463 = vmatpush.xpose.msrb.mxu3 %v886_v21 }
  0xfa   :  { %464 = vmatpush.xpose.msrb.mxu3 %v876_v18 }
  0xfb   :  { %v169_v42 = vpop.f32.mrf.mxu0 }
  0xfc   :  { %v551_v43 = vpack.c.bf16 %v169_v42, %v167_v41  ;;  %353 = vmatmul.f32.gmra.mxu1 %v169_v42  ;;  %438 = vmatpush.xpose.msrb.mxu2 %v169_v42 }
  0xfe   :  { %599 = vst [vmem:[%s1113_s4 + $0x38] sm:$0xff] %v551_v43   ;;  %465 = vmatpush.xpose.msrb.mxu3 %v866_v15 }
 0x100   :  { %439 = vmatpush.xpose.msrb.mxu2 %v167_v41 }
 0x101   :  { %v309_v44 = vpop.f32.mrf.mxu1 }
 0x102   :  { %405 = vst.msk [vmem:[%s1114_s5] sm:$0xff] %vm70_vm1, %v309_v44  ;;  %466 = vmatpush.xpose.msrb.mxu3 %v856_v12 }
 0x103   :  { %v172_v45 = vpop.f32.mrf.mxu0 }
 0x104   :  { %356 = vmatmul.f32.gmra.mxu1 %v172_v45  ;;  %440 = vmatpush.xpose.msrb.mxu2 %v164_v39 }
 0x106   :  { %467 = vmatpush.xpose.msrb.mxu3 %v846_v9 }
 0x108   :  { %441 = vmatpush.xpose.msrb.mxu2 %v162_v38 }
 0x109   :  { %v312_v46 = vpop.f32.mrf.mxu1 }
 0x10a   :  { %406 = vst.msk [vmem:[%s1114_s5 + $0x8] sm:$0xff] %vm70_vm1, %v312_v46  ;;  %468 = vmatpush.xpose.msrb.mxu3 %v835_v5 }
 0x10b   :  { %v174_v47 = vpop.f32.mrf.mxu0 }
 0x10c   :  { %v556_v48 = vpack.c.bf16 %v174_v47, %v172_v45  ;;  %359 = vmatmul.f32.vlgmr.msra.gmra.mxu2 %v174_v47 }
 0x10d   :  { %442 = vmatpush.xpose.msrb.mxu2 %v159_v34 }
 0x10e   :  { %600 = vst [vmem:[%s1113_s4 + $0x40] sm:$0xff] %v556_v48   ;;  %469 = vmatpush.xpose.msrb.mxu3 %v819_v0 }
 0x111   :  { %443 = vmatpush.xpose.msrb.mxu2 %v157_v32  ;;  %v315_v49 = vpop.f32.mrf.mxu1 }
 0x112   :  { %407 = vst.msk [vmem:[%s1114_s5 + $0x10] sm:$0xff] %vm70_vm1, %v315_v49 }
 0x113   :  { %v177_v50 = vpop.f32.mrf.mxu0 }
 0x114   :  { %362 = vmatmul.f32.gmra.mxu2 %v177_v50 }
 0x115   :  { %444 = vmatpush.xpose.msrb.mxu2 %v154_v28 }
 0x119   :  { %445 = vmatpush.xpose.msrb.mxu2 %v900_v26  ;;  %v318_v51 = vpop.f32.mrf.mxu1 }
 0x11a   :  { %408 = vst.msk [vmem:[%s1114_s5 + $0x18] sm:$0xff] %vm70_vm1, %v318_v51 }
 0x11b   :  { %v179_v52 = vpop.f32.mrf.mxu0 }
 0x11c   :  { %v561_v53 = vpack.c.bf16 %v179_v52, %v177_v50  ;;  %365 = vmatmul.f32.gmra.mxu2 %v179_v52  ;;  %470 = vmatpush.xpose.msrb.mxu3 %v179_v52 }
 0x11d   :  { %446 = vmatpush.xpose.msrb.mxu2 %v888_v22 }
 0x11e   :  { %601 = vst [vmem:[%s1113_s4 + $0x48] sm:$0xff] %v561_v53  }
 0x120   :  { %471 = vmatpush.xpose.msrb.mxu3 %v177_v50 }
 0x121   :  { %447 = vmatpush.xpose.msrb.mxu2 %v880_v20  ;;  %v321_v54 = vpop.f32.mrf.mxu1 }
 0x122   :  { %409 = vst.msk [vmem:[%s1114_s5 + $0x20] sm:$0xff] %vm70_vm1, %v321_v54 }
 0x124   :  { %368 = vmatmul.f32.gmra.mxu2 %v819_v0  ;;  %472 = vmatpush.xpose.msrb.mxu3 %v174_v47 }
 0x125   :  { %448 = vmatpush.xpose.msrb.mxu2 %v868_v16 }
 0x128   :  { %473 = vmatpush.xpose.msrb.mxu3 %v172_v45 }
 0x129   :  { %449 = vmatpush.xpose.msrb.mxu2 %v860_v14  ;;  %v324_v55 = vpop.f32.mrf.mxu1 }
 0x12a   :  { %410 = vst.msk [vmem:[%s1114_s5 + $0x28] sm:$0xff] %vm70_vm1, %v324_v55 }
 0x12c   :  { %371 = vmatmul.f32.gmra.mxu2 %v835_v5 }
 0x12d   :  { %450 = vmatpush.xpose.msrb.mxu2 %v848_v10 }
 0x131   :  { %451 = vmatpush.xpose.msrb.mxu2 %v839_v8  ;;  %v327_v56 = vpop.f32.mrf.mxu1 }
 0x132   :  { %411 = vst.msk [vmem:[%s1114_s5 + $0x30] sm:$0xff] %vm70_vm1, %v327_v56 }
 0x134   :  { %374 = vmatmul.f32.gmra.mxu2 %v846_v9 }
 0x135   :  { %452 = vmatpush.xpose.msrb.mxu2 %v821_v1 }
 0x139   :  { %453 = vmatpush.xpose.msrb.mxu2 %v815_v63  ;;  %v330_v57 = vpop.f32.mrf.mxu1  ;;  %v437_v63 = vld [vmem:[%s1115_s3] sm:$0xf] }
 0x13a   :  { %412 = vst.msk [vmem:[%s1114_s5 + $0x38] sm:$0xff] %vm70_vm1, %v330_v57  ;;  %474 = vmatmul.f32.vlgmr.msrb.gmra.mxu3 %v437_v63 }
 0x13c   :  { %377 = vmatmul.f32.gmra.mxu2 %v856_v12 }
 0x141   :  { %v333_v58 = vpop.f32.mrf.mxu1 }
 0x142   :  { %413 = vst.msk [vmem:[%s1114_s5 + $0x40] sm:$0xff] %vm70_vm1, %v333_v58 }
 0x144   :  { %380 = vmatmul.f32.gmra.mxu2 %v866_v15 }
 0x149   :  { %v336_v59 = vpop.f32.mrf.mxu1 }
 0x14a   :  { %414 = vst.msk [vmem:[%s1114_s5 + $0x48] sm:$0xff] %vm70_vm1, %v336_v59 }
 0x14c   :  { %383 = vmatmul.f32.gmra.mxu2 %v876_v18 }
 0x151   :  { %v339_v60 = vpop.f32.mrf.mxu1 }
 0x152   :  { %415 = vst.msk [vmem:[%s1114_s5 + $0x50] sm:$0xff] %vm70_vm1, %v339_v60 }
 0x154   :  { %386 = vmatmul.f32.gmra.mxu2 %v886_v21 }
 0x159   :  { %v342_v61 = vpop.f32.mrf.mxu1 }
 0x15a   :  { %416 = vst.msk [vmem:[%s1114_s5 + $0x58] sm:$0xff] %vm70_vm1, %v342_v61 }
 0x15c   :  { %389 = vmatmul.f32.gmra.mxu2 %v896_v24 }
 0x161   :  { %v345_v62 = vpop.f32.mrf.mxu1 }
 0x162   :  { %417 = vst.msk [vmem:[%s1114_s5 + $0x60] sm:$0xff] %vm70_vm1, %v345_v62 }
 0x164   :  { %392 = vmatmul.f32.gmra.mxu2 %v906_v27 }
 0x169   :  { %v348_v0 = vpop.f32.mrf.mxu1 }
 0x16a   :  { %418 = vst.msk [vmem:[%s1114_s5 + $0x68] sm:$0xff] %vm70_vm1, %v348_v0 }
 0x16c   :  { %395 = vmatmul.f32.gmra.mxu2 %v912_v30 }
 0x171   :  { %v351_v1 = vpop.f32.mrf.mxu1 }
 0x172   :  { %419 = vst.msk [vmem:[%s1114_s5 + $0x70] sm:$0xff] %vm70_vm1, %v351_v1 }
 0x174   :  { %398 = vmatmul.f32.gmra.mxu2 %v919_v33 }
 0x179   :  { %v354_v2 = vpop.f32.mrf.mxu1 }
 0x17a   :  { %420 = vst.msk [vmem:[%s1114_s5 + $0x78] sm:$0xff] %vm70_vm1, %v354_v2 }
 0x17c   :  { %401 = vmatmul.f32.gmra.mxu2 %v924_v36 }
 0x181   :  { %v357_v3 = vpop.f32.mrf.mxu1 }
 0x182   :  { %421 = vst.msk [vmem:[%s1114_s5 + $0x80] sm:$0xff] %vm70_vm1, %v357_v3 }
 0x184   :  { %454 = vmatmul.f32.vlgmr.msrb.gmra.mxu2 %v437_v63 }
 0x18f   :  { %v360_v4 = vpop.f32.mrf.mxu2 }
 0x190   :  { %422 = vst.msk [vmem:[%s1114_s5 + $0x88] sm:$0xff] %vm70_vm1, %v360_v4 }
 0x197   :  { %v363_v5 = vpop.f32.mrf.mxu2 }
 0x198   :  { %423 = vst.msk [vmem:[%s1114_s5 + $0x90] sm:$0xff] %vm70_vm1, %v363_v5 }
 0x19f   :  { %v366_v6 = vpop.f32.mrf.mxu2 }
 0x1a0   :  { %424 = vst.msk [vmem:[%s1114_s5 + $0x98] sm:$0xff] %vm70_vm1, %v366_v6 }
 0x1a7   :  { %v369_v7 = vpop.f32.mrf.mxu2 }
 0x1a8   :  { %425 = vst.msk [vmem:[%s1114_s5 + $0xa0] sm:$0xff] %vm70_vm1, %v369_v7 }
 0x1af   :  { %v372_v8 = vpop.f32.mrf.mxu2 }
 0x1b0   :  { %426 = vst.msk [vmem:[%s1114_s5 + $0xa8] sm:$0xff] %vm70_vm1, %v372_v8 }
 0x1b7   :  { %v375_v9 = vpop.f32.mrf.mxu2 }
 0x1b8   :  { %427 = vst.msk [vmem:[%s1114_s5 + $0xb0] sm:$0xff] %vm70_vm1, %v375_v9 }
 0x1bd   :  { %v475_v19 = vpop.f32.mrf.mxu3 }
 0x1be   :  { %v480_v20 = vrot.slane %v475_v19, 4 }
 0x1bf   :  { %v378_v10 = vpop.f32.mrf.mxu2 }
 0x1c0   :  { %428 = vst.msk [vmem:[%s1114_s5 + $0xb8] sm:$0xff] %vm70_vm1, %v378_v10 }
 0x1c7   :  { %v381_v11 = vpop.f32.mrf.mxu2 }
 0x1c8   :  { %429 = vst.msk [vmem:[%s1114_s5 + $0xc0] sm:$0xff] %vm70_vm1, %v381_v11 }
 0x1cf   :  { %v384_v12 = vpop.f32.mrf.mxu2 }
 0x1d0   :  { %430 = vst.msk [vmem:[%s1114_s5 + $0xc8] sm:$0xff] %vm70_vm1, %v384_v12 }
 0x1d7   :  { %v387_v13 = vpop.f32.mrf.mxu2 }
 0x1d8   :  { %431 = vst.msk [vmem:[%s1114_s5 + $0xd0] sm:$0xff] %vm70_vm1, %v387_v13 }
 0x1df   :  { %v390_v14 = vpop.f32.mrf.mxu2 }
 0x1e0   :  { %432 = vst.msk [vmem:[%s1114_s5 + $0xd8] sm:$0xff] %vm70_vm1, %v390_v14 }
 0x1e7   :  { %v393_v15 = vpop.f32.mrf.mxu2 }
 0x1e8   :  { %433 = vst.msk [vmem:[%s1114_s5 + $0xe0] sm:$0xff] %vm70_vm1, %v393_v15 }
 0x1ef   :  { %v396_v16 = vpop.f32.mrf.mxu2 }
 0x1f0   :  { %434 = vst.msk [vmem:[%s1114_s5 + $0xe8] sm:$0xff] %vm70_vm1, %v396_v16 }
 0x1f7   :  { %v399_v17 = vpop.f32.mrf.mxu2 }
 0x1f8   :  { %435 = vst.msk [vmem:[%s1114_s5 + $0xf0] sm:$0xff] %vm70_vm1, %v399_v17 }
 0x1ff   :  { %v402_v18 = vpop.f32.mrf.mxu2 }
 0x200   :  { %436 = vst.msk [vmem:[%s1114_s5 + $0xf8] sm:$0xff] %vm70_vm1, %v402_v18 }
 0x207   :  { %v455_v21 = vpop.f32.mrf.mxu2 }
 0x208   :  { %v482_v22 = vsel %vm481_vm2, %v455_v21, %v480_v20 }
 0x209   :  { %484 = vst [vmem:[%s1116_s6] sm:$0xff] %v482_v22 }

// kernel: encoder_forward.6
= control target key start
LH: loop header
LB: loop body
LE: loop exit
PB: predicated region body
PF: predicated region fallthrough
CT: control target
= control target key end

     0   :  { %vm494_vm0 = vcmask 15360   ;;  %vm571_vm1 = vcmask 1041408   ;;  %s1278_s1 = inlined_call_operand.vmem [shape: bf16[128,128], index: 1, kind: input, shape index: {}]   ;;  %s1279_s0 = inlined_call_operand.vmem [shape: bf16[256,128], index: 0, kind: input, shape index: {}]   ;;  %s1280_s2 = inlined_call_operand.vmem [shape: f32[128,2], index: 2, kind: input, shape index: {}]   ;;  %s1281_s4 = inlined_call_operand.vmem [shape: bf16[256,128], index: 4, kind: output, shape index: {0}]   ;;  %s1282_s5 = inlined_call_operand.vmem [shape: f32[256,2], index: 5, kind: output, shape index: {1}]   ;;  %s1283_s3 = inlined_call_operand.vmem [shape: f32[2,128], index: 3, kind: input, shape index: {}]   ;;  %s1284_s6 = inlined_call_operand.vmem [shape: f32[2,256], index: 6, kind: output, shape index: {2}]  }
   0x1   :  { %v706_v0 = vld [vmem:[%s1278_s1 + $0x38] sm:$0xff]  ;;  %v705_v1 = vld [vmem:[%s1278_s1 + $0x30] sm:$0xff]  ;;  %v704_v2 = vld [vmem:[%s1278_s1 + $0x28] sm:$0xff] }
   0x2   :  { %212 = vmatpush.bf16.msra.mxu0 %v706_v0  ;;  %802 = vmatpush.bf16.msra.mxu2 %v706_v0  ;;  %v703_v3 = vld [vmem:[%s1278_s1 + $0x20] sm:$0xff]  ;;  %v702_v4 = vld [vmem:[%s1278_s1 + $0x18] sm:$0xff]  ;;  %v701_v5 = vld [vmem:[%s1278_s1 + $0x10] sm:$0xff] }
   0x3   :  { %v700_v6 = vld [vmem:[%s1278_s1 + $0x8] sm:$0xff]  ;;  %v699_v7 = vld [vmem:[%s1278_s1] sm:$0xff]  ;;  %v693_v11 = vld [vmem:[%s1279_s0 + $0x50] sm:$0xff] }
   0x4   :  { %v683_v8 = vld [vmem:[%s1279_s0] sm:$0xff]  ;;  %v692_v9 = vld [vmem:[%s1279_s0 + $0x48] sm:$0xff]  ;;  %v685_v12 = vld [vmem:[%s1279_s0 + $0x10] sm:$0xff] }
   0x5   :  { %v684_v10 = vld [vmem:[%s1279_s0 + $0x8] sm:$0xff]  ;;  %v694_v13 = vld [vmem:[%s1279_s0 + $0x58] sm:$0xff]  ;;  %v695_v15 = vld [vmem:[%s1279_s0 + $0x60] sm:$0xff] }
   0x6   :  { %213 = vmatpush.bf16.msra.mxu0 %v705_v1  ;;  %803 = vmatpush.bf16.msra.mxu2 %v705_v1  ;;  %v686_v14 = vld [vmem:[%s1279_s0 + $0x18] sm:$0xff]  ;;  %v687_v17 = vld [vmem:[%s1279_s0 + $0x20] sm:$0xff]  ;;  %v696_v18 = vld [vmem:[%s1279_s0 + $0x68] sm:$0xff] }
   0x7   :  { %v380_v16 = vld [vmem:[%s1280_s2 + $0x78] sm:$0xff]  ;;  %v379_v19 = vld [vmem:[%s1280_s2 + $0x70] sm:$0xff]  ;;  %v378_v20 = vld [vmem:[%s1280_s2 + $0x68] sm:$0xff] }
   0x8   :  { %381 = vmatpush.msra.mxu1 %v380_v16  ;;  %810 = vmatpush.msra.mxu3 %v380_v16  ;;  %v377_v21 = vld [vmem:[%s1280_s2 + $0x60] sm:$0xff]  ;;  %v376_v22 = vld [vmem:[%s1280_s2 + $0x58] sm:$0xff]  ;;  %v375_v23 = vld [vmem:[%s1280_s2 + $0x50] sm:$0xff] }
   0x9   :  { %v374_v24 = vld [vmem:[%s1280_s2 + $0x48] sm:$0xff]  ;;  %v373_v25 = vld [vmem:[%s1280_s2 + $0x40] sm:$0xff]  ;;  %v697_v27 = vld [vmem:[%s1279_s0 + $0x70] sm:$0xff] }
   0xa   :  { %214 = vmatpush.bf16.msra.mxu0 %v704_v2  ;;  %804 = vmatpush.bf16.msra.mxu2 %v704_v2  ;;  %v688_v26 = vld [vmem:[%s1279_s0 + $0x28] sm:$0xff]  ;;  %v372_v28 = vld [vmem:[%s1280_s2 + $0x38] sm:$0xff]  ;;  %v371_v29 = vld [vmem:[%s1280_s2 + $0x30] sm:$0xff] }
   0xb   :  { %382 = vmatpush.msra.mxu1 %v379_v19  ;;  %811 = vmatpush.msra.mxu3 %v379_v19  ;;  %v370_v30 = vld [vmem:[%s1280_s2 + $0x28] sm:$0xff]  ;;  %v369_v31 = vld [vmem:[%s1280_s2 + $0x20] sm:$0xff]  ;;  %v368_v32 = vld [vmem:[%s1280_s2 + $0x18] sm:$0xff] }
   0xc   :  { %v367_v33 = vld [vmem:[%s1280_s2 + $0x10] sm:$0xff]  ;;  %v366_v34 = vld [vmem:[%s1280_s2 + $0x8] sm:$0xff]  ;;  %v698_v36 = vld [vmem:[%s1279_s0 + $0x78] sm:$0xff] }
   0xd   :  { %383 = vmatpush.msra.mxu1 %v378_v20  ;;  %812 = vmatpush.msra.mxu3 %v378_v20  ;;  %v689_v35 = vld [vmem:[%s1279_s0 + $0x30] sm:$0xff]  ;;  %v365_v37 = vld [vmem:[%s1280_s2] sm:$0xff]  ;;  %v690_v38 = vld [vmem:[%s1279_s0 + $0x38] sm:$0xff] }
   0xe   :  { %215 = vmatpush.bf16.msra.mxu0 %v703_v3  ;;  %805 = vmatpush.bf16.msra.mxu2 %v703_v3  ;;  %v691_v39 = vld [vmem:[%s1279_s0 + $0x40] sm:$0xff] }
   0xf   :  { %384 = vmatpush.msra.mxu1 %v377_v21  ;;  %813 = vmatpush.msra.mxu3 %v377_v21 }
  0x11   :  { %385 = vmatpush.msra.mxu1 %v376_v22  ;;  %814 = vmatpush.msra.mxu3 %v376_v22 }
  0x12   :  { %216 = vmatpush.bf16.msra.mxu0 %v702_v4  ;;  %806 = vmatpush.bf16.msra.mxu2 %v702_v4 }
  0x13   :  { %386 = vmatpush.msra.mxu1 %v375_v23  ;;  %815 = vmatpush.msra.mxu3 %v375_v23 }
  0x15   :  { %387 = vmatpush.msra.mxu1 %v374_v24  ;;  %816 = vmatpush.msra.mxu3 %v374_v24 }
  0x16   :  { %217 = vmatpush.bf16.msra.mxu0 %v701_v5  ;;  %807 = vmatpush.bf16.msra.mxu2 %v701_v5 }
  0x17   :  { %388 = vmatpush.msra.mxu1 %v373_v25  ;;  %817 = vmatpush.msra.mxu3 %v373_v25 }
  0x19   :  { %389 = vmatpush.msra.mxu1 %v372_v28  ;;  %818 = vmatpush.msra.mxu3 %v372_v28 }
  0x1a   :  { %218 = vmatpush.bf16.msra.mxu0 %v700_v6  ;;  %808 = vmatpush.bf16.msra.mxu2 %v700_v6 }
  0x1b   :  { %390 = vmatpush.msra.mxu1 %v371_v29  ;;  %819 = vmatpush.msra.mxu3 %v371_v29 }
  0x1d   :  { %391 = vmatpush.msra.mxu1 %v370_v30  ;;  %820 = vmatpush.msra.mxu3 %v370_v30 }
  0x1e   :  { %219 = vmatpush.bf16.msra.mxu0 %v699_v7  ;;  %809 = vmatpush.bf16.msra.mxu2 %v699_v7 }
  0x1f   :  { %392 = vmatpush.msra.mxu1 %v369_v31  ;;  %821 = vmatpush.msra.mxu3 %v369_v31 }
  0x21   :  { %220 = vmatmul.bf16.vlgmr.msra.gmra.mxu0 %v683_v8  ;;  %265 = vmatmul.bf16.vlgmr.msra.gmra.mxu2 %v692_v9 }
  0x22   :  { %393 = vmatpush.msra.mxu1 %v368_v32  ;;  %822 = vmatpush.msra.mxu3 %v368_v32 }
  0x24   :  { %394 = vmatpush.msra.mxu1 %v367_v33  ;;  %823 = vmatpush.msra.mxu3 %v367_v33 }
  0x26   :  { %395 = vmatpush.msra.mxu1 %v366_v34  ;;  %824 = vmatpush.msra.mxu3 %v366_v34 }
  0x28   :  { %396 = vmatpush.msra.mxu1 %v365_v37  ;;  %825 = vmatpush.msra.mxu3 %v365_v37  ;;  %v527_v37 = vld [vmem:[%s1283_s3] sm:$0x3] }
  0x31   :  { %225 = vmatmul.bf16.gmra.mxu0 %v684_v10  ;;  %270 = vmatmul.bf16.gmra.mxu2 %v693_v11 }
  0x41   :  { %230 = vmatmul.bf16.gmra.mxu0 %v685_v12  ;;  %275 = vmatmul.bf16.gmra.mxu2 %v694_v13 }
  0x51   :  { %235 = vmatmul.bf16.gmra.mxu0 %v686_v14  ;;  %280 = vmatmul.bf16.gmra.mxu2 %v695_v15 }
  0x61   :  { %240 = vmatmul.bf16.gmra.mxu0 %v687_v17  ;;  %285 = vmatmul.bf16.gmra.mxu2 %v696_v18 }
  0x71   :  { %245 = vmatmul.bf16.gmra.mxu0 %v688_v26  ;;  %290 = vmatmul.bf16.gmra.mxu2 %v697_v27 }
  0x81   :  { %250 = vmatmul.bf16.gmra.mxu0 %v689_v35  ;;  %295 = vmatmul.bf16.gmra.mxu2 %v698_v36 }
  0x91   :  { %255 = vmatmul.bf16.gmra.mxu0 %v690_v38 }
  0x9e   :  { %v981_v40 = vpop.f32.mrf.mxu0 }
  0x9f   :  { %397 = vmatmul.f32.vlgmr.msra.gmra.mxu1 %v981_v40 }
  0xa1   :  { %260 = vmatmul.bf16.gmra.mxu0 %v691_v39 }
  0xa4   :  { %v984_v41 = vpop.f32.mrf.mxu2 }
  0xa6   :  { %v986_v42 = vpop.f32.mrf.mxu0 }
  0xa7   :  { %v710_v43 = vpack.c.bf16 %v986_v42, %v981_v40  ;;  %400 = vmatmul.f32.gmra.mxu1 %v986_v42 }
  0xa9   :  { %711 = vst [vmem:[%s1281_s4] sm:$0xff] %v710_v43  }
  0xac   :  { %v994_v44 = vpop.f32.mrf.mxu2 }
  0xad   :  { %v755_v45 = vpack.c.bf16 %v994_v44, %v984_v41 }
  0xae   :  { %v998_v46 = vpop.f32.mrf.mxu0 }
  0xaf   :  { %795 = vst [vmem:[%s1281_s4 + $0x48] sm:$0xff] %v755_v45   ;;  %403 = vmatmul.f32.gmra.mxu1 %v998_v46 }
  0xb4   :  { %v1004_v47 = vpop.f32.mrf.mxu2 }
  0xb6   :  { %v1006_v48 = vpop.f32.mrf.mxu0 }
  0xb7   :  { %v715_v49 = vpack.c.bf16 %v1006_v48, %v998_v46  ;;  %406 = vmatmul.f32.gmra.mxu1 %v1006_v48 }
  0xb9   :  { %787 = vst [vmem:[%s1281_s4 + $0x8] sm:$0xff] %v715_v49  }
  0xbc   :  { %v1014_v50 = vpop.f32.mrf.mxu2 }
  0xbd   :  { %v760_v51 = vpack.c.bf16 %v1014_v50, %v1004_v47 }
  0xbe   :  { %v1018_v52 = vpop.f32.mrf.mxu0 }
  0xbf   :  { %796 = vst [vmem:[%s1281_s4 + $0x50] sm:$0xff] %v760_v51   ;;  %409 = vmatmul.f32.gmra.mxu1 %v1018_v52 }
  0xc4   :  { %v1024_v53 = vpop.f32.mrf.mxu2 }
  0xc6   :  { %v1026_v54 = vpop.f32.mrf.mxu0 }
  0xc7   :  { %v720_v55 = vpack.c.bf16 %v1026_v54, %v1018_v52  ;;  %412 = vmatmul.f32.gmra.mxu1 %v1026_v54 }
  0xc9   :  { %788 = vst [vmem:[%s1281_s4 + $0x10] sm:$0xff] %v720_v55  }
  0xcc   :  { %v1034_v56 = vpop.f32.mrf.mxu2 }
  0xcd   :  { %v765_v57 = vpack.c.bf16 %v1034_v56, %v1024_v53 }
  0xce   :  { %v1038_v58 = vpop.f32.mrf.mxu0 }
  0xcf   :  { %797 = vst [vmem:[%s1281_s4 + $0x58] sm:$0xff] %v765_v57   ;;  %415 = vmatmul.f32.gmra.mxu1 %v1038_v58 }
  0xd4   :  { %v1044_v59 = vpop.f32.mrf.mxu2 }
  0xd6   :  { %v1046_v60 = vpop.f32.mrf.mxu0 }
  0xd7   :  { %v725_v61 = vpack.c.bf16 %v1046_v60, %v1038_v58  ;;  %418 = vmatmul.f32.gmra.mxu1 %v1046_v60 }
  0xd9   :  { %789 = vst [vmem:[%s1281_s4 + $0x18] sm:$0xff] %v725_v61  }
  0xdc   :  { %v1054_v62 = vpop.f32.mrf.mxu2 }
  0xdd   :  { %v770_v63 = vpack.c.bf16 %v1054_v62, %v1044_v59 }
  0xde   :  { %v1058_v0 = vpop.f32.mrf.mxu0 }
  0xdf   :  { %798 = vst [vmem:[%s1281_s4 + $0x60] sm:$0xff] %v770_v63   ;;  %421 = vmatmul.f32.gmra.mxu1 %v1058_v0 }
  0xe4   :  { %v1064_v1 = vpop.f32.mrf.mxu2 }
  0xe6   :  { %v243_v2 = vpop.f32.mrf.mxu0 }
  0xe7   :  { %v730_v3 = vpack.c.bf16 %v243_v2, %v1058_v0  ;;  %424 = vmatmul.f32.gmra.mxu1 %v243_v2 }
  0xe9   :  { %790 = vst [vmem:[%s1281_s4 + $0x20] sm:$0xff] %v730_v3  }
  0xec   :  { %v1070_v4 = vpop.f32.mrf.mxu2 }
  0xed   :  { %v775_v5 = vpack.c.bf16 %v1070_v4, %v1064_v1 }
  0xee   :  { %v246_v6 = vpop.f32.mrf.mxu0 }
  0xef   :  { %799 = vst [vmem:[%s1281_s4 + $0x68] sm:$0xff] %v775_v5   ;;  %427 = vmatmul.f32.gmra.mxu1 %v246_v6 }
  0xf4   :  { %v1077_v7 = vpop.f32.mrf.mxu2 }
  0xf6   :  { %v248_v8 = vpop.f32.mrf.mxu0 }
  0xf7   :  { %v735_v9 = vpack.c.bf16 %v248_v8, %v246_v6  ;;  %430 = vmatmul.f32.gmra.mxu1 %v248_v8 }
  0xf9   :  { %791 = vst [vmem:[%s1281_s4 + $0x28] sm:$0xff] %v735_v9  }
  0xfc   :  { %v1082_v10 = vpop.f32.mrf.mxu2 }
  0xfd   :  { %v780_v11 = vpack.c.bf16 %v1082_v10, %v1077_v7 }
  0xfe   :  { %v251_v12 = vpop.f32.mrf.mxu0 }
  0xff   :  { %800 = vst [vmem:[%s1281_s4 + $0x70] sm:$0xff] %v780_v11   ;;  %433 = vmatmul.f32.gmra.mxu1 %v251_v12 }
 0x104   :  { %v1089_v13 = vpop.f32.mrf.mxu2 }
 0x106   :  { %v253_v14 = vpop.f32.mrf.mxu0 }
 0x107   :  { %v740_v15 = vpack.c.bf16 %v253_v14, %v251_v12  ;;  %436 = vmatmul.f32.gmra.mxu1 %v253_v14 }
 0x109   :  { %792 = vst [vmem:[%s1281_s4 + $0x30] sm:$0xff] %v740_v15  }
 0x10c   :  { %v1094_v16 = vpop.f32.mrf.mxu2 }
 0x10d   :  { %v785_v17 = vpack.c.bf16 %v1094_v16, %v1089_v13  ;;  %548 = vmatpush.xpose.msrb.mxu3 %v1094_v16 }
 0x10e   :  { %v256_v18 = vpop.f32.mrf.mxu0 }
 0x10f   :  { %801 = vst [vmem:[%s1281_s4 + $0x78] sm:$0xff] %v785_v17   ;;  %439 = vmatmul.f32.gmra.mxu1 %v256_v18 }
 0x111   :  { %549 = vmatpush.xpose.msrb.mxu3 %v1089_v13 }
 0x115   :  { %550 = vmatpush.xpose.msrb.mxu3 %v1082_v10 }
 0x116   :  { %v258_v19 = vpop.f32.mrf.mxu0 }
 0x117   :  { %v745_v20 = vpack.c.bf16 %v258_v19, %v256_v18  ;;  %442 = vmatmul.f32.gmra.mxu1 %v258_v19  ;;  %528 = vmatpush.xpose.msrb.mxu2 %v258_v19 }
 0x119   :  { %793 = vst [vmem:[%s1281_s4 + $0x38] sm:$0xff] %v745_v20   ;;  %551 = vmatpush.xpose.msrb.mxu3 %v1077_v7 }
 0x11b   :  { %529 = vmatpush.xpose.msrb.mxu2 %v256_v18 }
 0x11c   :  { %v398_v21 = vpop.f32.mrf.mxu1 }
 0x11d   :  { %495 = vst.msk [vmem:[%s1282_s5] sm:$0xff] %vm494_vm0, %v398_v21  ;;  %552 = vmatpush.xpose.msrb.mxu3 %v1070_v4 }
 0x11e   :  { %v261_v22 = vpop.f32.mrf.mxu0 }
 0x11f   :  { %445 = vmatmul.f32.gmra.mxu1 %v261_v22  ;;  %530 = vmatpush.xpose.msrb.mxu2 %v253_v14 }
 0x121   :  { %553 = vmatpush.xpose.msrb.mxu3 %v1064_v1 }
 0x123   :  { %531 = vmatpush.xpose.msrb.mxu2 %v251_v12 }
 0x124   :  { %v401_v23 = vpop.f32.mrf.mxu1 }
 0x125   :  { %496 = vst.msk [vmem:[%s1282_s5 + $0x8] sm:$0xff] %vm494_vm0, %v401_v23  ;;  %554 = vmatpush.xpose.msrb.mxu3 %v1054_v62 }
 0x126   :  { %v263_v24 = vpop.f32.mrf.mxu0 }
 0x127   :  { %v750_v25 = vpack.c.bf16 %v263_v24, %v261_v22  ;;  %448 = vmatmul.f32.vlgmr.msra.gmra.mxu3 %v263_v24  ;;  %532 = vmatpush.xpose.msrb.mxu2 %v248_v8 }
 0x129   :  { %794 = vst [vmem:[%s1281_s4 + $0x40] sm:$0xff] %v750_v25   ;;  %555 = vmatpush.xpose.msrb.mxu3 %v1044_v59 }
 0x12b   :  { %533 = vmatpush.xpose.msrb.mxu2 %v246_v6 }
 0x12c   :  { %v404_v26 = vpop.f32.mrf.mxu1 }
 0x12d   :  { %497 = vst.msk [vmem:[%s1282_s5 + $0x10] sm:$0xff] %vm494_vm0, %v404_v26  ;;  %556 = vmatpush.xpose.msrb.mxu3 %v1034_v56 }
 0x12f   :  { %451 = vmatmul.f32.gmra.mxu3 %v984_v41  ;;  %534 = vmatpush.xpose.msrb.mxu2 %v243_v2 }
 0x131   :  { %557 = vmatpush.xpose.msrb.mxu3 %v1024_v53 }
 0x133   :  { %535 = vmatpush.xpose.msrb.mxu2 %v1058_v0 }
 0x134   :  { %v407_v27 = vpop.f32.mrf.mxu1 }
 0x135   :  { %498 = vst.msk [vmem:[%s1282_s5 + $0x18] sm:$0xff] %vm494_vm0, %v407_v27  ;;  %558 = vmatpush.xpose.msrb.mxu3 %v1014_v50 }
 0x137   :  { %454 = vmatmul.f32.gmra.mxu3 %v994_v44  ;;  %536 = vmatpush.xpose.msrb.mxu2 %v1046_v60 }
 0x139   :  { %559 = vmatpush.xpose.msrb.mxu3 %v1004_v47 }
 0x13b   :  { %537 = vmatpush.xpose.msrb.mxu2 %v1038_v58 }
 0x13c   :  { %v410_v28 = vpop.f32.mrf.mxu1 }
 0x13d   :  { %499 = vst.msk [vmem:[%s1282_s5 + $0x20] sm:$0xff] %vm494_vm0, %v410_v28  ;;  %560 = vmatpush.xpose.msrb.mxu3 %v994_v44 }
 0x13f   :  { %457 = vmatmul.f32.gmra.mxu3 %v1004_v47  ;;  %538 = vmatpush.xpose.msrb.mxu2 %v1026_v54 }
 0x141   :  { %561 = vmatpush.xpose.msrb.mxu3 %v984_v41 }
 0x143   :  { %539 = vmatpush.xpose.msrb.mxu2 %v1018_v52 }
 0x144   :  { %v413_v29 = vpop.f32.mrf.mxu1 }
 0x145   :  { %500 = vst.msk [vmem:[%s1282_s5 + $0x28] sm:$0xff] %vm494_vm0, %v413_v29  ;;  %562 = vmatpush.xpose.msrb.mxu3 %v263_v24 }
 0x147   :  { %460 = vmatmul.f32.gmra.mxu3 %v1014_v50  ;;  %540 = vmatpush.xpose.msrb.mxu2 %v1006_v48 }
 0x149   :  { %563 = vmatpush.xpose.msrb.mxu3 %v261_v22 }
 0x14b   :  { %541 = vmatpush.xpose.msrb.mxu2 %v998_v46 }
 0x14c   :  { %v416_v30 = vpop.f32.mrf.mxu1 }
 0x14d   :  { %501 = vst.msk [vmem:[%s1282_s5 + $0x30] sm:$0xff] %vm494_vm0, %v416_v30 }
 0x14f   :  { %463 = vmatmul.f32.gmra.mxu3 %v1024_v53  ;;  %542 = vmatpush.xpose.msrb.mxu2 %v986_v42 }
 0x153   :  { %543 = vmatpush.xpose.msrb.mxu2 %v981_v40 }
 0x154   :  { %v419_v31 = vpop.f32.mrf.mxu1 }
 0x155   :  { %502 = vst.msk [vmem:[%s1282_s5 + $0x38] sm:$0xff] %vm494_vm0, %v419_v31 }
 0x156   :  { %544 = vmatmul.f32.vlgmr.msrb.gmra.mxu2 %v527_v37 }
 0x157   :  { %466 = vmatmul.f32.gmra.mxu3 %v1034_v56 }
 0x15c   :  { %v422_v32 = vpop.f32.mrf.mxu1 }
 0x15d   :  { %503 = vst.msk [vmem:[%s1282_s5 + $0x40] sm:$0xff] %vm494_vm0, %v422_v32 }
 0x15f   :  { %469 = vmatmul.f32.gmra.mxu3 %v1044_v59 }
 0x164   :  { %v425_v33 = vpop.f32.mrf.mxu1 }
 0x165   :  { %504 = vst.msk [vmem:[%s1282_s5 + $0x48] sm:$0xff] %vm494_vm0, %v425_v33 }
 0x167   :  { %472 = vmatmul.f32.gmra.mxu3 %v1054_v62 }
 0x16c   :  { %v428_v34 = vpop.f32.mrf.mxu1 }
 0x16d   :  { %505 = vst.msk [vmem:[%s1282_s5 + $0x50] sm:$0xff] %vm494_vm0, %v428_v34 }
 0x16f   :  { %475 = vmatmul.f32.gmra.mxu3 %v1064_v1 }
 0x174   :  { %v431_v35 = vpop.f32.mrf.mxu1 }
 0x175   :  { %506 = vst.msk [vmem:[%s1282_s5 + $0x58] sm:$0xff] %vm494_vm0, %v431_v35 }
 0x177   :  { %478 = vmatmul.f32.gmra.mxu3 %v1070_v4 }
 0x17c   :  { %v434_v36 = vpop.f32.mrf.mxu1 }
 0x17d   :  { %507 = vst.msk [vmem:[%s1282_s5 + $0x60] sm:$0xff] %vm494_vm0, %v434_v36 }
 0x17f   :  { %481 = vmatmul.f32.gmra.mxu3 %v1077_v7 }
 0x184   :  { %v437_v38 = vpop.f32.mrf.mxu1 }
 0x185   :  { %508 = vst.msk [vmem:[%s1282_s5 + $0x68] sm:$0xff] %vm494_vm0, %v437_v38 }
 0x187   :  { %484 = vmatmul.f32.gmra.mxu3 %v1082_v10 }
 0x18c   :  { %v440_v39 = vpop.f32.mrf.mxu1 }
 0x18d   :  { %509 = vst.msk [vmem:[%s1282_s5 + $0x70] sm:$0xff] %vm494_vm0, %v440_v39 }
 0x18f   :  { %487 = vmatmul.f32.gmra.mxu3 %v1089_v13 }
 0x194   :  { %v443_v40 = vpop.f32.mrf.mxu1 }
 0x195   :  { %510 = vst.msk [vmem:[%s1282_s5 + $0x78] sm:$0xff] %vm494_vm0, %v443_v40 }
 0x197   :  { %490 = vmatmul.f32.gmra.mxu3 %v1094_v16 }
 0x19c   :  { %v446_v41 = vpop.f32.mrf.mxu1 }
 0x19d   :  { %511 = vst.msk [vmem:[%s1282_s5 + $0x80] sm:$0xff] %vm494_vm0, %v446_v41 }
 0x19f   :  { %564 = vmatmul.f32.vlgmr.msrb.gmra.mxu3 %v527_v37 }
 0x1aa   :  { %v449_v42 = vpop.f32.mrf.mxu3 }
 0x1ab   :  { %512 = vst.msk [vmem:[%s1282_s5 + $0x88] sm:$0xff] %vm494_vm0, %v449_v42 }
 0x1b2   :  { %v452_v43 = vpop.f32.mrf.mxu3 }
 0x1b3   :  { %513 = vst.msk [vmem:[%s1282_s5 + $0x90] sm:$0xff] %vm494_vm0, %v452_v43 }
 0x1ba   :  { %v455_v44 = vpop.f32.mrf.mxu3 }
 0x1bb   :  { %514 = vst.msk [vmem:[%s1282_s5 + $0x98] sm:$0xff] %vm494_vm0, %v455_v44 }
 0x1c2   :  { %v458_v45 = vpop.f32.mrf.mxu3 }
 0x1c3   :  { %515 = vst.msk [vmem:[%s1282_s5 + $0xa0] sm:$0xff] %vm494_vm0, %v458_v45 }
 0x1ca   :  { %v461_v46 = vpop.f32.mrf.mxu3 }
 0x1cb   :  { %516 = vst.msk [vmem:[%s1282_s5 + $0xa8] sm:$0xff] %vm494_vm0, %v461_v46 }
 0x1d2   :  { %v464_v47 = vpop.f32.mrf.mxu3 }
 0x1d3   :  { %517 = vst.msk [vmem:[%s1282_s5 + $0xb0] sm:$0xff] %vm494_vm0, %v464_v47 }
 0x1d9   :  { %v545_v58 = vpop.f32.mrf.mxu2 }
 0x1da   :  { %v467_v48 = vpop.f32.mrf.mxu3 }
 0x1db   :  { %518 = vst.msk [vmem:[%s1282_s5 + $0xb8] sm:$0xff] %vm494_vm0, %v467_v48 }
 0x1e2   :  { %v470_v49 = vpop.f32.mrf.mxu3 }
 0x1e3   :  { %519 = vst.msk [vmem:[%s1282_s5 + $0xc0] sm:$0xff] %vm494_vm0, %v470_v49 }
 0x1ea   :  { %v473_v50 = vpop.f32.mrf.mxu3 }
 0x1eb   :  { %520 = vst.msk [vmem:[%s1282_s5 + $0xc8] sm:$0xff] %vm494_vm0, %v473_v50 }
 0x1f2   :  { %v476_v51 = vpop.f32.mrf.mxu3 }
 0x1f3   :  { %521 = vst.msk [vmem:[%s1282_s5 + $0xd0] sm:$0xff] %vm494_vm0, %v476_v51 }
 0x1fa   :  { %v479_v52 = vpop.f32.mrf.mxu3 }
 0x1fb   :  { %522 = vst.msk [vmem:[%s1282_s5 + $0xd8] sm:$0xff] %vm494_vm0, %v479_v52 }
 0x202   :  { %v482_v53 = vpop.f32.mrf.mxu3 }
 0x203   :  { %523 = vst.msk [vmem:[%s1282_s5 + $0xe0] sm:$0xff] %vm494_vm0, %v482_v53 }
 0x20a   :  { %v485_v54 = vpop.f32.mrf.mxu3 }
 0x20b   :  { %524 = vst.msk [vmem:[%s1282_s5 + $0xe8] sm:$0xff] %vm494_vm0, %v485_v54 }
 0x212   :  { %v488_v55 = vpop.f32.mrf.mxu3 }
 0x213   :  { %525 = vst.msk [vmem:[%s1282_s5 + $0xf0] sm:$0xff] %vm494_vm0, %v488_v55 }
 0x21a   :  { %v491_v56 = vpop.f32.mrf.mxu3 }
 0x21b   :  { %526 = vst.msk [vmem:[%s1282_s5 + $0xf8] sm:$0xff] %vm494_vm0, %v491_v56 }
 0x222   :  { %v565_v57 = vpop.f32.mrf.mxu3 }
 0x223   :  { %v570_v59 = vrot.slane %v565_v57, 6 }
 0x225   :  { %v572_v60 = vsel %vm571_vm1, %v545_v58, %v570_v59 }
 0x226   :  { %574 = vst [vmem:[%s1284_s6] sm:$0xf] %v572_v60 }

// kernel: encoder_forward.7
= control target key start
LH: loop header
LB: loop body
LE: loop exit
PB: predicated region body
PF: predicated region fallthrough
CT: control target
= control target key end

     0   :  { %s1993_s18 = smov 0   ;;  %s1995_s19 = smov 0   ;;  %s2666_s0 = inlined_call_operand.vmem [shape: s8[256,256], index: 0, kind: input, shape index: {}]   ;;  %s2667_s1 = inlined_call_operand.vmem [shape: f32[256,2], index: 1, kind: input, shape index: {}]   ;;  %s2668_s2 = inlined_call_operand.vmem [shape: f32[2,256], index: 2, kind: input, shape index: {}]   ;;  %s2669_s3 = inlined_call_operand.vmem [shape: bf16[256,128], index: 3, kind: input, shape index: {}]   ;;  %s2670_s4 = inlined_call_operand.vmem [shape: f32[1,16], index: 4, kind: input, shape index: {}]   ;;  %s2671_s5 = inlined_call_operand.vmem [shape: f32[256,128], index: 5, kind: output, shape index: {}]  }
   0x1   :  { %s1997_s20 = smov 0   ;;  %s1999_s21 = smov 0  }
   0x2   :  { %s2001_s22 = smov 0   ;;  %s2003_s23 = smov 0  }
   0x3   :  { %s2005_s24 = smov 0  }
   0x4 LB: > { %s24_s25 = sadd.s32 1, %s1943_s22  ;;  %s27_s26 = sadd.s32 1, %s1947_s23  ;;  %s1951_s24 = sphi %s2005_s24, %s15_s24   ;;  %s1947_s23 = sphi %s2003_s23, %s2677_s23   ;;  %s1943_s22 = sphi %s2001_s22, %s2676_s22   ;;  %s1939_s21 = sphi %s1999_s21, %s2675_s21   ;;  %s1935_s20 = sphi %s1997_s20, %s2674_s20   ;;  %s1931_s19 = sphi %s1995_s19, %s2673_s19   ;;  %s1927_s18 = sphi %s1993_s18, %s2672_s18  }
   0x5   : > { %p25_p0 = scmp.ge.s32.totalorder %s24_s25, 2  ;;  %p43_p1 = scmp.ne.s32.totalorder %s1931_s19, %s1927_s18 }
   0x6   : > { %p44_p2 = scmp.eq.s32.totalorder %s1951_s24, 0  ;;  %s36_s30 = sadd.s32 1, %s1931_s19 }
   0x7   : > { %s2679_s25 = smov (%p25_p0, %s24_s25), 0  ;;  %s2681_s26 = smov (!%p25_p0, %s27_s26), %s1947_s23 }
   0x8   : > { %p45_p3 = por %p44_p2, %p43_p1  ;;  %p29_p4 = scmp.ge.s32.totalorder %s2681_s26, 4 }
   0x9   : > { %s32_s27 = ssub.s32 %s1943_s22, %s2679_s25  ;;  %p1660_p6 = scmp.ge.s32.totalorder %s1951_s24, 8 }
   0xa   : > { %s2683_s26 = smov (%p29_p4, %s2681_s26), 0 }
   0xb   : > { %s31_s28 = ssub.s32 %s1947_s23, %s2683_s26  ;;  %197 = sbr.rel (%p1660_p6) target bundleno = 24 (0x18), region = 20 }
   0xc   : > { %s33_s29 = sor.u32 %s32_s27, %s31_s28 }
   0xd   : > { %p34_p5 = scmp.eq.s32.totalorder %s33_s29, 0 }
   0xf   : > { %s2044_s6 = scalar_select %p34_p5, %s1931_s19, %s36_s30  }
  0x10   : > { %200 = sbr.rel (!%p45_p3) target bundleno = 24 (0x18), region = 24  ;;  %s202_s7 = sand.u32 (%p45_p3), 1, %s1931_s19  }
  0x11   : > { %s1718_s8 = sshll.u32 (%p45_p3), %s1947_s23, 2  ;;  %s1661_s9 = sshll.u32 (%p45_p3), %s202_s7, 4 }
  0x12   : > { %s207_s10 = sadd.s32 (%p45_p3), %s1943_s22, %s1718_s8  ;;  %s204_s15 = scalar_lea.vmem (%p45_p3), [#allocation5], %s1661_s9 }
  0x13   : > { %s1664_s11 = sshll.u32 (%p45_p3), %s207_s10, 3 }
  0x14   : > { %s209_s14 = scalar_lea.vmem (%p45_p3), %s2666_s0, %s1664_s11 }
  0x15   : > { %v240_v0 = vld [vmem:[%s209_s14] sm:$0xff]  ;;  %v242_v1 = vld [vmem:[%s209_s14 + $0x10] sm:$0xff] }
  0x16   : > { %241 = vst [vmem:[%s204_s15] sm:$0xff] %v240_v0 }
  0x17   : > { %243 = vst [vmem:[%s204_s15 + $0x8] sm:$0xff] %v242_v1 }
  0x18 PF: > { %p1665_p7 = scmp.ge.s32.totalorder %s1951_s24, 1  ;;  %p273_p8 = scmp.lt.s32.totalorder %s1951_s24, 9 }
  0x1a   : > { %p274_p9 = pnand %p1665_p7, %p273_p8 }
  0x1b   : > { %s280_s16 = sand.u32 (!%p274_p9), 1, %s1927_s18   ;;  %s1667_s17 = sshll.u32 (!%p274_p9), %s1939_s21, 3 }
  0x1c   : > { %277 = sbr.rel (%p274_p9) target bundleno = 1191 (0x4a7), region = 74  ;;  %s2057_s27 = sshll.u32 (!%p274_p9), %s280_s16, 4 }
  0x1d   : > { %p323_p10 = scmp.lt.s32.totalorder (!%p274_p9), %s1667_s17, 31  ;;  %p328_p11 = scmp.lt.s32.totalorder (!%p274_p9), %s1935_s20, 1 }
  0x1e   : > { %s1670_s30 = sshll.u32 (!%p274_p9), %s1935_s20, 4  ;;  %s282_s8 = scalar_lea.vmem (!%p274_p9), [#allocation5], %s2057_s27 }
  0x1f   : > { %p333_p12 = scmp.lt.s32.totalorder (!%p274_p9), %s1670_s30, 31  ;;  %p1674_p13 = scmp.ne.s32.totalorder (!%p274_p9), %s1935_s20, 0 }
  0x21   : > { %s2685_s17 = smov (!%p323_p10, %s1667_s17), 31  ;;  %s2687_s30 = smov (!%p333_p12, %s1670_s30), 31 }
  0x22   : > { %s329_s28 = scalar_select %p328_p11, %s1935_s20, 1 }
  0x23   : > { %s1668_s29 = sshll.u32 %s2685_s17, 3  ;;  %s1671_s15 = sshll.u32 %s2687_s30, 2 }
  0x24   : > { %s2065_s9 = scalar_lea.vmem %s2667_s1, %s1668_s29  ;;  %s1669_s10 = sshll.u32 %s329_s28, 1 }
  0x25   : > { %s2070_s18 = scalar_lea.vmem %s2668_s2, %s1669_s10  ;;  %s2075_s14 = scalar_lea.vmem %s2671_s5, %s1668_s29 }
  0x26   : > { %s2080_s7 = scalar_lea.vmem %s2669_s3, %s1671_s15  ;;  %348 = sbr.rel (%p1674_p13) target bundleno = 68 (0x44), region = 82 }
  0x2b   : > { %vm349_vm0 = vcmask 15360   ;;  %v1953_v2 = vmov 0.0  }
  0x2c   : > { %350 = vst.msk [vmem:[#allocation2] sm:$0xff] %vm349_vm0, %v1953_v2 }
  0x2d   : > { %351 = vst.msk [vmem:[#allocation2 + $0x8] sm:$0xff] %vm349_vm0, %v1953_v2 }
  0x2e   : > { %352 = vst.msk [vmem:[#allocation2 + $0x10] sm:$0xff] %vm349_vm0, %v1953_v2 }
  0x2f   : > { %353 = vst.msk [vmem:[#allocation2 + $0x18] sm:$0xff] %vm349_vm0, %v1953_v2 }
  0x30   : > { %354 = vst.msk [vmem:[#allocation2 + $0x20] sm:$0xff] %vm349_vm0, %v1953_v2 }
  0x31   : > { %355 = vst.msk [vmem:[#allocation2 + $0x28] sm:$0xff] %vm349_vm0, %v1953_v2 }
  0x32   : > { %356 = vst.msk [vmem:[#allocation2 + $0x30] sm:$0xff] %vm349_vm0, %v1953_v2 }
  0x33   : > { %357 = vst.msk [vmem:[#allocation2 + $0x38] sm:$0xff] %vm349_vm0, %v1953_v2 }
  0x34   : > { %358 = vst.msk [vmem:[#allocation3] sm:$0xff] %vm349_vm0, %v1953_v2 }
  0x35   : > { %359 = vst.msk [vmem:[#allocation3 + $0x8] sm:$0xff] %vm349_vm0, %v1953_v2 }
  0x36   : > { %360 = vst.msk [vmem:[#allocation3 + $0x10] sm:$0xff] %vm349_vm0, %v1953_v2 }
  0x37   : > { %361 = vst.msk [vmem:[#allocation3 + $0x18] sm:$0xff] %vm349_vm0, %v1953_v2 }
  0x38   : > { %362 = vst.msk [vmem:[#allocation3 + $0x20] sm:$0xff] %vm349_vm0, %v1953_v2 }
  0x39   : > { %363 = vst.msk [vmem:[#allocation3 + $0x28] sm:$0xff] %vm349_vm0, %v1953_v2 }
  0x3a   : > { %364 = vst.msk [vmem:[#allocation3 + $0x30] sm:$0xff] %vm349_vm0, %v1953_v2 }
  0x3b   : > { %365 = vst.msk [vmem:[#allocation3 + $0x38] sm:$0xff] %vm349_vm0, %v1953_v2 }
  0x3c   : > { %366 = vst [vmem:[#allocation4] sm:$0xff] %v1953_v2 }
  0x3d   : > { %367 = vst [vmem:[#allocation4 + $0x8] sm:$0xff] %v1953_v2 }
  0x3e   : > { %368 = vst [vmem:[#allocation4 + $0x10] sm:$0xff] %v1953_v2 }
  0x3f   : > { %369 = vst [vmem:[#allocation4 + $0x18] sm:$0xff] %v1953_v2 }
  0x40   : > { %370 = vst [vmem:[#allocation4 + $0x20] sm:$0xff] %v1953_v2 }
  0x41   : > { %371 = vst [vmem:[#allocation4 + $0x28] sm:$0xff] %v1953_v2 }
  0x42   : > { %372 = vst [vmem:[#allocation4 + $0x30] sm:$0xff] %v1953_v2 }
  0x43   : > { %373 = vst [vmem:[#allocation4 + $0x38] sm:$0xff] %v1953_v2 }
  0x44 PF: > { %v426_v3 = vld [vmem:[%s2065_s9 + $0x10] sm:$0xff]  ;;  %v424_v4 = vld [vmem:[%s2065_s9] sm:$0xff]  ;;  %v1954_v5 = vmov 0   ;;  %v2110_v7 = vld [vmem:[%s2065_s9 + $0x18] sm:$0xff]  ;;  %v1955_v12 = vmov 1   ;;  %s1956_s27 = smov 120  }
  0x45   : > { %1794 = vset.pattern.permute.xlu1 %v1954_v5  ;;  %1793 = vset.pattern.permute.xlu0 %v1954_v5  ;;  %v2105_v6 = vld [vmem:[%s2065_s9 + $0x20] sm:$0xff]  ;;  %v2113_v8 = vld [vmem:[%s2065_s9 + $0x8] sm:$0xff]  ;;  %v2122_v10 = vld [vmem:[%s2065_s9 + $0x38] sm:$0xff]  ;;  %vm841_vm10 = vcmask 7168   ;;  %vm1315_vm11 = vcmask 15368   ;;  %s1958_s28 = smov 1  }
  0x46   : > { %445 = vperm.xlu1 %1794, %v426_v3   ;;  %435 = vperm.xlu0 %1793, %v424_v4   ;;  %v2116_v9 = vld [vmem:[%s2065_s9 + $0x28] sm:$0xff]  ;;  %v2125_v11 = vld [vmem:[%s2065_s9 + $0x30] sm:$0xff]  ;;  %v2135_v19 = vld [vmem:[%s2070_s18] ss:$0 sm:$0xff]  ;;  %s1959_s29 = smov 8   ;;  %p1715_p0 = scmp.ne.s32.totalorder %s1935_s20, 1 }
  0x47   : > { %1795 = vset.pattern.permute.xlu2 %v1954_v5  ;;  %v374_v13 = vld [vmem:[%s282_s8] sm:$0xff]  ;;  %v375_v32 = vld [vmem:[%s282_s8 + $0x8] sm:$0xff] }
  0x48   : > { %455 = vperm.xlu2 %1795, %v2105_v6   ;;  %v378_v14 = vunpack.c.2.s8 %v374_v13  ;;  %v376_v15 = vunpack.c.0.s8 %v374_v13  ;;  %v377_v18 = vunpack.c.1.s8 %v374_v13  ;;  %v379_v21 = vunpack.c.3.s8 %v374_v13 }
  0x49   : > { %v381_v39 = vunpack.c.1.s8 %v375_v32  ;;  %v380_v42 = vunpack.c.0.s8 %v375_v32  ;;  %v383_v43 = vunpack.c.3.s8 %v375_v32  ;;  %v382_v61 = vunpack.c.2.s8 %v375_v32 }
  0x4a   : > { %v386_v16 = vcvt.s32.f32 %v378_v14  ;;  %v384_v17 = vcvt.s32.f32 %v376_v15  ;;  %v385_v26 = vcvt.s32.f32 %v377_v18  ;;  %v387_v29 = vcvt.s32.f32 %v379_v21 }
  0x4b   : > { %v389_v51 = vcvt.s32.f32 %v381_v39  ;;  %v388_v54 = vcvt.s32.f32 %v380_v42  ;;  %v391_v55 = vcvt.s32.f32 %v383_v43  ;;  %v1726_v42 = vld [vmem:[%s2080_s7 + $0x38] sm:$0xff]  ;;  %v2210_v43 = vld [vmem:[#allocation2 + $0x10] sm:$0xff] }
  0x4c   : > { %v1677_v22 = vadd.f32 -1.0, %v386_v16  ;;  %v1675_v23 = vadd.f32 -1.0, %v384_v17  ;;  %v1676_v35 = vadd.f32 -1.0, %v385_v26  ;;  %v1678_v38 = vadd.f32 -1.0, %v387_v29  ;;  %686 = vmatpush.bf16.msra.mxu0 %v1726_v42 }
  0x4d   : > { %v1680_v60 = vadd.f32 -1.0, %v389_v51  ;;  %v1679_v0 = vadd.f32 -1.0, %v388_v54  ;;  %v1682_v1 = vadd.f32 -1.0, %v391_v55  ;;  %v390_v17 = vcvt.s32.f32 %v382_v61  ;;  %v2240_v51 = vld [vmem:[#allocation2 + $0x20] sm:$0xff] }
  0x4e   : > { %450 = vperm.xlu1 %1794, %v2110_v7   ;;  %440 = vperm.xlu0 %1793, %v2113_v8   ;;  %v2139_v30 = vmul.f32 1e+30, %v1677_v22  ;;  %v2141_v31 = vmul.f32 1e+30, %v1675_v23  ;;  %v2156_v50 = vmul.f32 1e+30, %v1676_v35 }
  0x4f   : > { %v2159_v53 = vmul.f32 1e+30, %v1678_v38  ;;  %v2170_v15 = vmul.f32 1e+30, %v1680_v60  ;;  %v2172_v16 = vmul.f32 1e+30, %v1679_v0 }
  0x50   : > { %460 = vperm.xlu2 %1795, %v2116_v9   ;;  %v2174_v18 = vmul.f32 1e+30, %v1682_v1 }
  0x56   : > { %470 = vperm.xlu1 %1794, %v2122_v10   ;;  %465 = vperm.xlu0 %1793, %v2125_v11  }
  0x58   : > { %1798 = vset.pattern.permute.xlu2 %v1955_v12 }
  0x5e   : > { %1796 = vset.pattern.permute.xlu1 %v1955_v12  ;;  %1797 = vset.pattern.permute.xlu0 %v1955_v12 }
  0x5f   : > { %869 = vperm.xlu1 %1796, %v424_v4   ;;  %879 = vperm.xlu0 %1797, %v426_v3  }
  0xa2   : > { %v456_v20 = vpop.permute.xlu2 %455 }
  0xa3   : > { %v478_v45 = vadd.f32 %v2135_v19, %v456_v20 }
  0xa5   : > { %v494_v2 = vmul.f32 0.2, %v478_v45  ;;  %vm486_vm6 = vcmp.gt.f32.partialorder %v478_v45, 0.0 }
  0xa7   : > { %v502_v23 = vsel %vm486_vm6, %v478_v45, %v494_v2 }
  0xa8   : > { %v2181_v26 = vadd.f32 %v502_v23, %v2172_v16 }
  0xaa   : > { %v461_v44 = vpop.permute.xlu2 %460 }
  0xab   : > { %v479_v52 = vadd.f32 %v2135_v19, %v461_v44  ;;  %v2212_v44 = vld [vmem:[#allocation2] sm:$0xff] }
  0xad   : > { %v495_v3 = vmul.f32 0.2, %v479_v52  ;;  %vm487_vm5 = vcmp.gt.f32.partialorder %v479_v52, 0.0 }
  0xaf   : > { %v503_v22 = vsel %vm487_vm5, %v479_v52, %v495_v3 }
  0xb8   : > { %v446_v24 = vpop.permute.xlu1 %445  ;;  %v436_v25 = vpop.permute.xlu0 %435 }
  0xb9   : > { %v476_v27 = vadd.f32 %v2135_v19, %v446_v24  ;;  %v474_v28 = vadd.f32 %v2135_v19, %v436_v25  ;;  %v2178_v25 = vadd.f32 %v503_v22, %v2170_v15 }
  0xbb   : > { %v492_v33 = vmul.f32 0.2, %v476_v27  ;;  %v490_v34 = vmul.f32 0.2, %v474_v28  ;;  %vm484_vm1 = vcmp.gt.f32.partialorder %v476_v27, 0.0  ;;  %vm482_vm2 = vcmp.gt.f32.partialorder %v474_v28, 0.0 }
  0xbd   : > { %v500_v36 = vsel %vm484_vm1, %v476_v27, %v492_v33  ;;  %v498_v37 = vsel %vm482_vm2, %v474_v28, %v490_v34  ;;  %v2184_v27 = vld [vmem:[%s2070_s18 + $0x1] ss:$0 sm:$0xff]  ;;  %v1681_v28 = vadd.f32 -1.0, %v390_v17 }
  0xbe   : > { %v2146_v40 = vadd.f32 %v500_v36, %v2139_v30  ;;  %v2149_v41 = vadd.f32 %v498_v37, %v2141_v31 }
  0xbf   : > { %v2192_v34 = vmul.f32 1e+30, %v1681_v28 }
  0xc0   : > { %v451_v46 = vpop.permute.xlu1 %450  ;;  %v441_v47 = vpop.permute.xlu0 %440  ;;  %526 = vmax.xlane.f32.xlu1 %v2146_v40  ;;  %522 = vmax.xlane.f32.xlu2 %v2149_v41 }
  0xc1   : > { %v477_v48 = vadd.f32 %v2135_v19, %v451_v46  ;;  %v475_v49 = vadd.f32 %v2135_v19, %v441_v47 }
  0xc3   : > { %v493_v56 = vmul.f32 0.2, %v477_v48  ;;  %v491_v57 = vmul.f32 0.2, %v475_v49  ;;  %vm483_vm3 = vcmp.gt.f32.partialorder %v475_v49, 0.0  ;;  %vm485_vm4 = vcmp.gt.f32.partialorder %v477_v48, 0.0 }
  0xc5   : > { %v499_v58 = vsel %vm483_vm3, %v475_v49, %v491_v57  ;;  %v501_v59 = vsel %vm485_vm4, %v477_v48, %v493_v56  ;;  %v2238_v49 = vld [vmem:[#allocation2 + $0x28] sm:$0xff]  ;;  %v2252_v57 = vld [vmem:[#allocation2 + $0x30] sm:$0xff]  ;;  %vm808_vm3 = vcmask 64512   ;;  %vm1250_vm4 = vcmask 130112  }
  0xc6   : > { %v2162_v62 = vadd.f32 %v499_v58, %v2156_v50  ;;  %v2165_v63 = vadd.f32 %v501_v59, %v2159_v53 }
  0xc8   : > { %v471_v4 = vpop.permute.xlu1 %470  ;;  %v466_v13 = vpop.permute.xlu0 %465  ;;  %524 = vmax.xlane.f32.xlu0 %v2162_v62  ;;  %528 = vmax.xlane.f32.xlu2 %v2165_v63 }
  0xc9   : > { %v481_v14 = vadd.f32 %v2135_v19, %v471_v4  ;;  %v480_v21 = vadd.f32 %v2135_v19, %v466_v13  ;;  %v1725_v13 = vld [vmem:[%s2080_s7 + $0x30] sm:$0xff] }
  0xca   : > { %687 = vmatpush.bf16.msra.mxu0 %v1725_v13 }
  0xcb   : > { %v497_v20 = vmul.f32 0.2, %v481_v14  ;;  %vm489_vm7 = vcmp.gt.f32.partialorder %v481_v14, 0.0  ;;  %v496_v32 = vmul.f32 0.2, %v480_v21  ;;  %vm488_vm8 = vcmp.gt.f32.partialorder %v480_v21, 0.0 }
  0xcd   : > { %v505_v24 = vsel %vm489_vm7, %v481_v14, %v497_v20  ;;  %v504_v35 = vsel %vm488_vm8, %v480_v21, %v496_v32 }
  0xce   : > { %v2187_v29 = vadd.f32 %v505_v24, %v2174_v18  ;;  %v2195_v37 = vadd.f32 %v504_v35, %v2192_v34 }
  0xd0   : > { %532 = vmax.xlane.f32.xlu0 %v2178_v25  ;;  %530 = vmax.xlane.f32.xlu2 %v2181_v26 }
  0xd1   : > { %v870_v19 = vpop.permute.xlu1 %869 }
  0xd2   : > { %v908_v33 = vadd.f32 %v2184_v27, %v870_v19  ;;  %v1724_v19 = vld [vmem:[%s2080_s7 + $0x28] sm:$0xff] }
  0xd3   : > { %688 = vmatpush.bf16.msra.mxu0 %v1724_v19 }
  0xd4   : > { %v924_v36 = vmul.f32 0.2, %v908_v33  ;;  %vm916_vm9 = vcmp.gt.f32.partialorder %v908_v33, 0.0 }
  0xd6   : > { %v932_v38 = vsel %vm916_vm9, %v908_v33, %v924_v36 }
  0xd7   : > { %v2198_v39 = vadd.f32 %v932_v38, %v2141_v31  ;;  %v880_v31 = vpop.permute.xlu0 %879 }
  0xd8   : > { %534 = vmax.xlane.f32.xlu2 %v2195_v37  ;;  %v910_v2 = vadd.f32 %v2184_v27, %v880_v31 }
  0xd9   : > { %956 = vmax.xlane.f32.xlu1 %v2198_v39 }
  0xda   : > { %v926_v14 = vmul.f32 0.2, %v910_v2  ;;  %vm918_vm13 = vcmp.gt.f32.partialorder %v910_v2, 0.0 }
  0xdc   : > { %v934_v23 = vsel %vm918_vm13, %v910_v2, %v926_v14 }
  0xdd   : > { %v2275_v28 = vadd.f32 %v934_v23, %v2139_v30 }
  0xf0   : > { %874 = vperm.xlu2 %1798, %v2113_v8  }
  0xf2   : > { %884 = vperm.xlu1 %1796, %v2110_v7  }
  0xf8   : > { %889 = vperm.xlu2 %1798, %v2105_v6  }
  0xfa   : > { %894 = vperm.xlu1 %1796, %v2116_v9  }
 0x100   : > { %899 = vperm.xlu2 %1798, %v2125_v11   ;;  %v2226_v11 = vld [vmem:[#allocation2 + $0x18] sm:$0xff] }
 0x102   : > { %904 = vperm.xlu1 %1796, %v2122_v10   ;;  %v2224_v10 = vld [vmem:[#allocation2 + $0x8] sm:$0xff] }
 0x108   : > { %1086 = vrot.lane.b32.xlu2 %v1726_v42, %s1956_s27 }
 0x133   : > { %v527_v7 = vpop.xlane.xlu1 %526  ;;  %v523_v8 = vpop.xlane.xlu2 %522 }
 0x134   : > { %v2215_v6 = vmax.f32 %v2210_v43, %v527_v7  ;;  %v2218_v9 = vmax.f32 %v2212_v44, %v523_v8 }
 0x136   : > { %852 = vst.msk [vmem:[#allocation2 + $0x10] sm:$0xff] %vm841_vm10, %v2215_v6 }
 0x137   : > { %850 = vst.msk [vmem:[#allocation2] sm:$0xff] %vm841_vm10, %v2218_v9 }
 0x13b   : > { %v525_v45 = vpop.xlane.xlu0 %524  ;;  %v529_v46 = vpop.xlane.xlu2 %528 }
 0x13c   : > { %v2229_v47 = vmax.f32 %v2224_v10, %v525_v45  ;;  %v2232_v48 = vmax.f32 %v2226_v11, %v529_v46  ;;  %v1722_v46 = vld [vmem:[%s2080_s7 + $0x18] sm:$0xff] }
 0x13e   : > { %851 = vst.msk [vmem:[#allocation2 + $0x8] sm:$0xff] %vm841_vm10, %v2229_v47  ;;  %v2257_v61 = vld [vmem:[#allocation2] sm:$0xff] }
 0x13f   : > { %853 = vst.msk [vmem:[#allocation2 + $0x18] sm:$0xff] %vm841_vm10, %v2232_v48 }
 0x143   : > { %v533_v52 = vpop.xlane.xlu0 %532  ;;  %v531_v54 = vpop.xlane.xlu2 %530 }
 0x144   : > { %v2243_v55 = vmax.f32 %v2238_v49, %v533_v52  ;;  %v2246_v56 = vmax.f32 %v2240_v51, %v531_v54 }
 0x146   : > { %855 = vst.msk [vmem:[#allocation2 + $0x28] sm:$0xff] %vm841_vm10, %v2243_v55 }
 0x147   : > { %854 = vst.msk [vmem:[#allocation2 + $0x20] sm:$0xff] %vm841_vm10, %v2246_v56 }
 0x14b   : > { %v535_v58 = vpop.xlane.xlu2 %534 }
 0x14c   : > { %v2255_v59 = vmax.f32 %v2252_v57, %v535_v58  ;;  %v957_v60 = vpop.xlane.xlu1 %956 }
 0x14d   : > { %v2260_v0 = vmax.f32 %v2257_v61, %v957_v60 }
 0x14e   : > { %856 = vst.msk [vmem:[#allocation2 + $0x30] sm:$0xff] %vm841_vm10, %v2255_v59  ;;  %v2323_v23 = vld [vmem:[#allocation2 + $0x20] sm:$0xff] }
 0x14f   : > { %1324 = vst.msk [vmem:[#allocation2] sm:$0xff] %vm1315_vm11, %v2260_v0 }
 0x153   : > { %v875_v1 = vpop.permute.xlu2 %874 }
 0x154   : > { %v909_v3 = vadd.f32 %v2184_v27, %v875_v1  ;;  %v1719_v1 = vld [vmem:[%s2080_s7] sm:$0xff] }
 0x156   : > { %v925_v4 = vmul.f32 0.2, %v909_v3  ;;  %vm917_vm12 = vcmp.gt.f32.partialorder %v909_v3, 0.0 }
 0x158   : > { %v933_v17 = vsel %vm917_vm12, %v909_v3, %v925_v4 }
 0x159   : > { %v2270_v20 = vadd.f32 %v933_v17, %v2156_v50 }
 0x15b   : > { %958 = vmax.xlane.f32.xlu0 %v2270_v20  ;;  %v890_v21 = vpop.permute.xlu2 %889 }
 0x15c   : > { %v912_v22 = vadd.f32 %v2184_v27, %v890_v21 }
 0x15e   : > { %v928_v24 = vmul.f32 0.2, %v912_v22  ;;  %vm920_vm14 = vcmp.gt.f32.partialorder %v912_v22, 0.0 }
 0x160   : > { %v936_v32 = vsel %vm920_vm14, %v912_v22, %v928_v24 }
 0x161   : > { %v2279_v33 = vadd.f32 %v936_v32, %v2172_v16  ;;  %v1723_v16 = vld [vmem:[%s2080_s7 + $0x20] sm:$0xff] }
 0x162   : > { %689 = vmatpush.bf16.msra.mxu0 %v1723_v16 }
 0x163   : > { %960 = vmax.xlane.f32.xlu0 %v2275_v28  ;;  %964 = vmax.xlane.f32.xlu1 %v2279_v33  ;;  %v900_v58 = vpop.permute.xlu2 %899 }
 0x164   : > { %v885_v50 = vpop.permute.xlu1 %884 }
 0x165   : > { %v911_v35 = vadd.f32 %v2184_v27, %v885_v50 }
 0x166   : > { %690 = vmatpush.bf16.msra.mxu0 %v1722_v46 }
 0x167   : > { %v927_v36 = vmul.f32 0.2, %v911_v35  ;;  %vm919_vm15 = vcmp.gt.f32.partialorder %v911_v35, 0.0 }
 0x169   : > { %v935_v38 = vsel %vm919_vm15, %v911_v35, %v927_v36  ;;  %v2341_v36 = vld [vmem:[#allocation2 + $0x18] sm:$0xff] }
 0x16a   : > { %v2285_v30 = vadd.f32 %v935_v38, %v2159_v53  ;;  %v1721_v53 = vld [vmem:[%s2080_s7 + $0x10] sm:$0xff] }
 0x16b   : > { %691 = vmatpush.bf16.msra.mxu0 %v1721_v53  ;;  %v1087_v4 = vpop.permute.xlu2 %1086 }
 0x16c   : > { %v895_v42 = vpop.permute.xlu1 %894  ;;  %962 = vmax.xlane.f32.xlu0 %v2285_v30  ;;  %1096 = vmatpush.bf16.msra.mxu2 %v1087_v4 }
 0x16d   : > { %v913_v31 = vadd.f32 %v2184_v27, %v895_v42 }
 0x16f   : > { %v929_v7 = vmul.f32 0.2, %v913_v31  ;;  %vm921_vm0 = vcmp.gt.f32.partialorder %v913_v31, 0.0 }
 0x171   : > { %v937_v8 = vsel %vm921_vm0, %v913_v31, %v929_v7  ;;  %v2351_v31 = vld [vmem:[#allocation2 + $0x28] sm:$0xff] }
 0x172   : > { %v2291_v45 = vadd.f32 %v937_v8, %v2170_v15  ;;  %v1720_v15 = vld [vmem:[%s2080_s7 + $0x8] sm:$0xff] }
 0x173   : > { %692 = vmatpush.bf16.msra.mxu0 %v1720_v15 }
 0x174   : > { %966 = vmax.xlane.f32.xlu2 %v2291_v45  ;;  %v905_v52 = vpop.permute.xlu1 %904 }
 0x175   : > { %v915_v54 = vadd.f32 %v2184_v27, %v905_v52 }
 0x177   : > { %v931_v60 = vmul.f32 0.2, %v915_v54  ;;  %vm923_vm1 = vcmp.gt.f32.partialorder %v915_v54, 0.0  ;;  %693 = vmatpush.bf16.msra.mxu0 %v1719_v1 }
 0x179   : > { %v939_v2 = vsel %vm923_vm1, %v915_v54, %v931_v60 }
 0x17a   : > { %v2308_v3 = vadd.f32 %v939_v2, %v2174_v18  ;;  %v2321_v18 = vld [vmem:[#allocation2 + $0x10] sm:$0xff]  ;;  %v549_v2 = vsub.f32 %v2226_v11, %v2232_v48 }
 0x17c   : > { %1078 = vrot.lane.b32.xlu1 %v1722_v46, %s1956_s27  ;;  %v914_v46 = vadd.f32 %v2184_v27, %v900_v58  ;;  %v546_v58 = vsub.f32 %v2212_v44, %v2218_v9  ;;  %v560_v4 = vmul.f32 1.442695, %v549_v2  ;;  %v552_v44 = vsub.f32 %v2252_v57, %v2255_v59 }
 0x17e   : > { %vm922_vm2 = vcmp.gt.f32.partialorder %v914_v46, 0.0 }
 0x180   : > { %1084 = vrot.lane.b32.xlu0 %v1725_v13, %s1956_s27  ;;  %v2311_v13 = vld [vmem:[#allocation2 + $0x8] sm:$0xff] }
 0x188   : > { %1082 = vrot.lane.b32.xlu0 %v1724_v19, %s1956_s27 }
 0x18c   : > { %1076 = vrot.lane.b32.xlu2 %v1721_v53, %s1956_s27 }
 0x190   : > { %1080 = vrot.lane.b32.xlu0 %v1723_v16, %s1956_s27 }
 0x194   : > { %1006 = vperm.xlu2 %1798, %v2260_v0  }
 0x19c   : > { %1074 = vrot.lane.b32.xlu2 %v1720_v15, %s1956_s27  ;;  %v930_v15 = vmul.f32 0.2, %v914_v46 }
 0x19e   : > { %v938_v54 = vsel %vm922_vm2, %v914_v46, %v930_v15 }
 0x19f   : > { %v2368_v60 = vadd.f32 %v938_v54, %v2192_v34 }
 0x1ba   : > { %536 = vmax.xlane.f32.xlu0 %v2187_v29 }
 0x1c2   : > { %970 = vmax.xlane.f32.xlu0 %v2308_v3 }
 0x1ce   : > { %v959_v14 = vpop.xlane.xlu0 %958 }
 0x1cf   : > { %v2314_v17 = vmax.f32 %v2311_v13, %v959_v14 }
 0x1d1   : > { %v981_v21 = vsub.f32 %v2311_v13, %v2314_v17  ;;  %1325 = vst.msk [vmem:[#allocation2 + $0x8] sm:$0xff] %vm1315_vm11, %v2314_v17  ;;  %1011 = vperm.xlu1 %1796, %v2314_v17   ;;  %v521_v17 = vld [vmem:[#allocation2 + $0x38] sm:$0xff] }
 0x1d3   : > { %v990_v11 = vmul.f32 1.442695, %v981_v21 }
 0x1d6   : > { %v961_v22 = vpop.xlane.xlu0 %960  ;;  %v965_v24 = vpop.xlane.xlu1 %964  ;;  %1072 = vrot.lane.b32.xlu0 %v1719_v1, %s1956_s27  ;;  %v554_v1 = vmul.f32 1.442695, %v546_v58 }
 0x1d7   : > { %v2327_v32 = vmax.f32 %v2321_v18, %v961_v22  ;;  %v2330_v19 = vmax.f32 %v2323_v23, %v965_v24 }
 0x1d8   : > { %1809 = vpow2.f32 %v554_v1 }
 0x1d9   : > { %v982_v50 = vsub.f32 %v2321_v18, %v2327_v32  ;;  %1326 = vst.msk [vmem:[#allocation2 + $0x10] sm:$0xff] %vm1315_vm11, %v2327_v32  ;;  %v984_v35 = vsub.f32 %v2323_v23, %v2330_v19  ;;  %1016 = vperm.xlu2 %1798, %v2327_v32   ;;  %1811 = vpow2.f32 %v560_v4 }
 0x1da   : > { %1328 = vst.msk [vmem:[#allocation2 + $0x20] sm:$0xff] %vm1315_vm11, %v2330_v19 }
 0x1db   : > { %v996_v18 = vmul.f32 1.442695, %v984_v35 }
 0x1de   : > { %v2378_v14 = vpop.eup %1809 }
 0x1df   : > { %v963_v38 = vpop.xlane.xlu0 %962  ;;  %v2383_v22 = vpop.eup %1811 }
 0x1e0   : > { %v2344_v42 = vmax.f32 %v2341_v36, %v963_v38  ;;  %v1957_v38 = vmov 1065369472  }
 0x1e1   : > { %1125 = vmatpush.bf16.msra.mxu3 %v1957_v38  ;;  %715 = vmatpush.bf16.msra.mxu1 %v1957_v38 }
 0x1e2   : > { %v983_v16 = vsub.f32 %v2341_v36, %v2344_v42  ;;  %1327 = vst.msk [vmem:[#allocation2 + $0x18] sm:$0xff] %vm1315_vm11, %v2344_v42  ;;  %1021 = vperm.xlu2 %1798, %v2344_v42  }
 0x1e5   : > { %1126 = vmatpush.bf16.msra.mxu3 %v1957_v38  ;;  %716 = vmatpush.bf16.msra.mxu1 %v1957_v38 }
 0x1e7   : > { %v967_v7 = vpop.xlane.xlu2 %966 }
 0x1e8   : > { %v2354_v8 = vmax.f32 %v2351_v31, %v967_v7 }
 0x1e9   : > { %1127 = vmatpush.bf16.msra.mxu3 %v1957_v38  ;;  %717 = vmatpush.bf16.msra.mxu1 %v1957_v38 }
 0x1ea   : > { %v985_v53 = vsub.f32 %v2351_v31, %v2354_v8  ;;  %1329 = vst.msk [vmem:[#allocation2 + $0x28] sm:$0xff] %vm1315_vm11, %v2354_v8  ;;  %1026 = vperm.xlu2 %1798, %v2330_v19   ;;  %1031 = vperm.xlu0 %1797, %v2354_v8  }
 0x1ed   : > { %1128 = vmatpush.bf16.msra.mxu3 %v1957_v38  ;;  %718 = vmatpush.bf16.msra.mxu1 %v1957_v38 }
 0x1ee   : > { %v1079_v7 = vpop.permute.xlu1 %1078 }
 0x1ef   : > { %v1077_v24 = vpop.permute.xlu2 %1076 }
 0x1f1   : > { %1129 = vmatpush.bf16.msra.mxu3 %v1957_v38  ;;  %719 = vmatpush.bf16.msra.mxu1 %v1957_v38 }
 0x1f2   : > { %1799 = vset.pattern.permute.xlu2 %v1954_v5  ;;  %1800 = vset.pattern.permute.xlu0 %v1954_v5  ;;  %v1085_v52 = vpop.permute.xlu0 %1084 }
 0x1f3   : > { %572 = vperm.xlu2 %1799, %v2218_v9   ;;  %577 = vperm.xlu0 %1800, %v2229_v47   ;;  %v566_v9 = vmul.f32 1.442695, %v552_v44 }
 0x1f4   : > { %1097 = vmatpush.bf16.msra.mxu2 %v1085_v52 }
 0x1f5   : > { %1813 = vpow2.f32 %v566_v9  ;;  %1130 = vmatpush.bf16.msra.mxu3 %v1957_v38  ;;  %720 = vmatpush.bf16.msra.mxu1 %v1957_v38 }
 0x1f6   : > { %1815 = vpow2.f32 %v990_v11 }
 0x1f7   : > { %v1007_v57 = vpop.permute.xlu2 %1006 }
 0x1f8   : > { %v1044_v1 = vsub.f32 %v2198_v39, %v1007_v57  ;;  %v547_v39 = vsub.f32 %v2224_v10, %v2229_v47 }
 0x1f9   : > { %1131 = vmatpush.bf16.msra.mxu3 %v1957_v38  ;;  %721 = vmatpush.bf16.msra.mxu1 %v1957_v38 }
 0x1fa   : > { %v1083_v27 = vpop.permute.xlu0 %1082 }
 0x1fb   : > { %968 = vmax.xlane.f32.xlu1 %v2368_v60  ;;  %587 = vperm.xlu0 %1800, %v2232_v48   ;;  %v2389_v48 = vpop.eup %1813 }
 0x1fc   : > { %1098 = vmatpush.bf16.msra.mxu2 %v1083_v27  ;;  %1801 = vset.pattern.permute.xlu2 %v1955_v12  ;;  %v2392_v46 = vpop.eup %1815 }
 0x1fd   : > { %1132 = vmatpush.bf16.msra.mxu3 %v1957_v38  ;;  %722 = vmatpush.bf16.msra.mxu1 %v1957_v38 }
 0x1ff   : > { %v1075_v13 = vpop.permute.xlu2 %1074 }
 0x202   : > { %v1081_v34 = vpop.permute.xlu0 %1080 }
 0x203   : > { %597 = vperm.xlu0 %1800, %v2243_v55   ;;  %1099 = vmatpush.bf16.msra.mxu2 %v1081_v34  ;;  %v1052_v34 = vmul.f32 1.442695, %v1044_v1  ;;  %v550_v1 = vsub.f32 %v2240_v51, %v2246_v56 }
 0x205   : > { %1817 = vpow2.f32 %v1052_v34  ;;  %v562_v10 = vmul.f32 1.442695, %v550_v1 }
 0x207   : > { %1100 = vmatpush.bf16.msra.mxu2 %v1079_v7 }
 0x20b   : > { %754 = vperm.xlu0 %1800, %v2378_v14   ;;  %1101 = vmatpush.bf16.msra.mxu2 %v1077_v24  ;;  %v1818_v11 = vpop.eup %1817 }
 0x20f   : > { %1102 = vmatpush.bf16.msra.mxu2 %v1075_v13 }
 0x213   : > { %769 = vperm.xlu0 %1800, %v2383_v22  }
 0x21b   : > { %784 = vperm.xlu0 %1800, %v2389_v48  }
 0x223   : > { %1805 = vset.pattern.permute.xlu0 %v1955_v12 }
 0x224   : > { %1169 = vperm.xlu0 %1805, %v2392_v46  }
 0x22d   : > { %v537_v21 = vpop.xlane.xlu0 %536 }
 0x22e   : > { %v2396_v15 = vmax.f32 %v521_v17, %v537_v21  ;;  %v556_v21 = vmul.f32 1.442695, %v547_v39 }
 0x230   : > { %857 = vst.msk [vmem:[#allocation2 + $0x38] sm:$0xff] %vm841_vm10, %v2396_v15 }
 0x233   : > { %v1017_v2 = vpop.permute.xlu2 %1016 }
 0x235   : > { %v971_v54 = vpop.xlane.xlu0 %970 }
 0x237   : > { %v2400_v52 = vld [vmem:[#allocation2 + $0x38] sm:$0xff] }
 0x238   : > { %v2403_v27 = vmax.f32 %v2400_v52, %v971_v54  ;;  %v1046_v54 = vsub.f32 %v2275_v28, %v1017_v2  ;;  %v553_v28 = vsub.f32 %v521_v17, %v2396_v15 }
 0x23a   : > { %v987_v58 = vsub.f32 %v2400_v52, %v2403_v27  ;;  %1331 = vst.msk [vmem:[#allocation2 + $0x38] sm:$0xff] %vm1315_vm11, %v2403_v27  ;;  %1041 = vperm.xlu2 %1801, %v2403_v27   ;;  %v1056_v34 = vmul.f32 1.442695, %v1046_v54  ;;  %v568_v51 = vmul.f32 1.442695, %v553_v28  ;;  %v548_v28 = vsub.f32 %v2210_v43, %v2215_v6 }
 0x23c   : > { %v1022_v38 = vpop.permute.xlu2 %1021  ;;  %v558_v23 = vmul.f32 1.442695, %v548_v28  ;;  %v1002_v19 = vmul.f32 1.442695, %v987_v58 }
 0x23d   : > { %v1047_v7 = vsub.f32 %v2285_v30, %v1022_v38 }
 0x242   : > { %1802 = vset.pattern.permute.xlu2 %v1954_v5 }
 0x243   : > { %582 = vperm.xlu2 %1802, %v2215_v6   ;;  %v1012_v4 = vpop.permute.xlu1 %1011  ;;  %v551_v6 = vsub.f32 %v2238_v49, %v2243_v55  ;;  %v994_v55 = vmul.f32 1.442695, %v983_v16 }
 0x244   : > { %v1045_v44 = vsub.f32 %v2270_v20, %v1012_v4  ;;  %v1058_v20 = vmul.f32 1.442695, %v1047_v7  ;;  %v1027_v4 = vpop.permute.xlu2 %1026 }
 0x246   : > { %v1054_v9 = vmul.f32 1.442695, %v1045_v44 }
 0x248   : > { %1819 = vpow2.f32 %v1054_v9  ;;  %v1073_v24 = vpop.permute.xlu0 %1072 }
 0x249   : > { %1103 = vmatpush.bf16.msra.mxu2 %v1073_v24  ;;  %1821 = vpow2.f32 %v556_v21 }
 0x24a   : > { %1823 = vpow2.f32 %v1058_v20  ;;  %v954_v20 = vld [vmem:[#allocation2 + $0x30] sm:$0xff] }
 0x24b   : > { %592 = vperm.xlu2 %1802, %v2246_v56   ;;  %1825 = vpow2.f32 %v1056_v34  ;;  %v1048_v56 = vsub.f32 %v2279_v33, %v1027_v4 }
 0x24c   : > { %1827 = vpow2.f32 %v562_v10 }
 0x24d   : > { %1829 = vpow2.f32 %v568_v51  ;;  %v1060_v17 = vmul.f32 1.442695, %v1048_v56 }
 0x24e   : > { %v1820_v57 = vpop.eup %1819 }
 0x24f   : > { %v1068_v13 = vpack.c.bf16 %v1820_v57, %v1818_v11  ;;  %v2422_v47 = vpop.eup %1821 }
 0x250   : > { %v1824_v30 = vpop.eup %1823 }
 0x251   : > { %1104 = vmatmul.bf16.vlgmr.msra.gmra.mxu2 %v1068_v13  ;;  %1133 = vmatmul.bf16.vlgmr.msra.gmra.mxu3 %v1068_v13  ;;  %v1826_v44 = vpop.eup %1825 }
 0x252   : > { %v1069_v24 = vpack.c.bf16 %v1824_v30, %v1826_v44  ;;  %v2429_v39 = vpop.eup %1827  ;;  %v564_v44 = vmul.f32 1.442695, %v551_v6  ;;  %v817_v6 = vld [vmem:[#allocation3] sm:$0xff] }
 0x253   : > { %602 = vperm.xlu2 %1802, %v2255_v59   ;;  %v573_v59 = vpop.permute.xlu2 %572  ;;  %v2436_v33 = vpop.eup %1829 }
 0x254   : > { %v610_v38 = vsub.f32 %v2149_v41, %v573_v59  ;;  %v992_v41 = vmul.f32 1.442695, %v982_v50  ;;  %v998_v59 = vmul.f32 1.442695, %v985_v53 }
 0x256   : > { %v618_v57 = vmul.f32 1.442695, %v610_v38 }
 0x25b   : > { %759 = vperm.xlu2 %1802, %v2422_v47  }
 0x25c   : > { %v1032_v2 = vpop.permute.xlu0 %1031 }
 0x25d   : > { %v1049_v9 = vsub.f32 %v2291_v45, %v1032_v2 }
 0x25f   : > { %v1062_v11 = vmul.f32 1.442695, %v1049_v9 }
 0x261   : > { %1109 = vmatmul.bf16.gmra.mxu2 %v1069_v24  ;;  %1138 = vmatmul.bf16.gmra.mxu3 %v1069_v24  ;;  %1831 = vpow2.f32 %v1062_v11 }
 0x262   : > { %1833 = vpow2.f32 %v1060_v17 }
 0x263   : > { %774 = vperm.xlu2 %1802, %v2429_v39   ;;  %1835 = vpow2.f32 %v618_v57 }
 0x265   : > { %v578_v7 = vpop.permute.xlu0 %577 }
 0x266   : > { %v611_v45 = vsub.f32 %v2162_v62, %v578_v7 }
 0x267   : > { %v1832_v21 = vpop.eup %1831 }
 0x268   : > { %v620_v13 = vmul.f32 1.442695, %v611_v45  ;;  %v1834_v54 = vpop.eup %1833 }
 0x269   : > { %v1836_v34 = vpop.eup %1835  ;;  %v1070_v62 = vpack.c.bf16 %v1832_v21, %v1834_v54 }
 0x26a   : > { %1837 = vpow2.f32 %v620_v13 }
 0x26b   : > { %789 = vperm.xlu2 %1802, %v2436_v33   ;;  %1839 = vpow2.f32 %v992_v41 }
 0x26c   : > { %1841 = vpow2.f32 %v996_v18 }
 0x26e   : > { %v969_v1 = vpop.xlane.xlu1 %968 }
 0x26f   : > { %v978_v4 = vmax.f32 %v954_v20, %v969_v1 }
 0x270   : > { %v1838_v10 = vpop.eup %1837 }
 0x271   : > { %v986_v32 = vsub.f32 %v954_v20, %v978_v4  ;;  %1330 = vst.msk [vmem:[#allocation2 + $0x30] sm:$0xff] %vm1315_vm11, %v978_v4  ;;  %1036 = vperm.xlu1 %1796, %v978_v4   ;;  %1114 = vmatmul.bf16.gmra.mxu2 %v1070_v62  ;;  %v634_v50 = vpack.c.bf16 %v1838_v10, %v1836_v34  ;;  %v2443_v30 = vpop.eup %1839 }
 0x272   : > { %1143 = vmatmul.bf16.gmra.mxu3 %v1070_v62  ;;  %v2453_v35 = vpop.eup %1841 }
 0x273   : > { %v1000_v2 = vmul.f32 1.442695, %v986_v32  ;;  %1806 = vset.pattern.permute.xlu2 %v1955_v12  ;;  %694 = vmatmul.bf16.vlgmr.msra.gmra.mxu0 %v634_v50 }
 0x274   : > { %723 = vmatmul.bf16.vlgmr.msra.gmra.mxu1 %v634_v50  ;;  %1174 = vperm.xlu2 %1806, %v2443_v30   ;;  %v744_v50 = vld [vmem:[#allocation4] sm:$0xff] }
 0x275   : > { %1843 = vpow2.f32 %v1000_v2 }
 0x276   : > { %1845 = vpow2.f32 %v558_v23 }
 0x277   : > { %1847 = vpow2.f32 %v1002_v19 }
 0x278   : > { %1849 = vpow2.f32 %v564_v44 }
 0x279   : > { %1803 = vset.pattern.permute.xlu1 %v1954_v5 }
 0x27a   : > { %607 = vperm.xlu1 %1803, %v2396_v15   ;;  %v980_v15 = vsub.f32 %v2257_v61, %v2260_v0  ;;  %v588_v0 = vpop.permute.xlu0 %587 }
 0x27b   : > { %v2456_v43 = vpop.eup %1843  ;;  %v613_v9 = vsub.f32 %v2165_v63, %v588_v0 }
 0x27c   : > { %1184 = vperm.xlu2 %1806, %v2453_v35   ;;  %1194 = vperm.xlu0 %1805, %v2456_v43   ;;  %v2462_v52 = vpop.eup %1845  ;;  %v988_v27 = vmul.f32 1.442695, %v980_v15 }
 0x27d   : > { %v2465_v5 = vpop.eup %1847  ;;  %v624_v36 = vmul.f32 1.442695, %v613_v9  ;;  %v745_v9 = vld [vmem:[#allocation4 + $0x8] sm:$0xff] }
 0x27e   : > { %v2470_v49 = vpop.eup %1849  ;;  %1851 = vpow2.f32 %v988_v27 }
 0x27f   : > { %1853 = vpow2.f32 %v994_v55 }
 0x280   : > { %1855 = vpow2.f32 %v998_v59 }
 0x281   : > { %1857 = vpow2.f32 %v624_v36 }
 0x282   : > { %764 = vperm.xlu1 %1803, %v2462_v52   ;;  %v598_v53 = vpop.permute.xlu0 %597 }
 0x283   : > { %v615_v11 = vsub.f32 %v2178_v25, %v598_v53 }
 0x284   : > { %1199 = vperm.xlu2 %1806, %v2465_v5   ;;  %v2476_v58 = vpop.eup %1851 }
 0x285   : > { %v2484_v24 = vpop.eup %1853 }
 0x286   : > { %v2488_v51 = vpop.eup %1855 }
 0x287   : > { %v1858_v8 = vpop.eup %1857 }
 0x28a   : > { %779 = vperm.xlu1 %1803, %v2470_v49   ;;  %v755_v32 = vpop.permute.xlu0 %754 }
 0x28b   : > { %v792_v15 = vmul.f32 %v755_v32, %v744_v50  ;;  %v747_v50 = vld [vmem:[#allocation4 + $0x18] sm:$0xff] }
 0x292   : > { %1804 = vset.pattern.permute.xlu1 %v1955_v12 }
 0x293   : > { %1164 = vperm.xlu1 %1804, %v2476_v58  }
 0x294   : > { %v1042_v61 = vpop.permute.xlu2 %1041 }
 0x295   : > { %v1051_v21 = vsub.f32 %v2308_v3, %v1042_v61  ;;  %v825_v61 = vmul.f32 %v2378_v14, %v817_v6 }
 0x297   : > { %v1066_v54 = vmul.f32 1.442695, %v1051_v21 }
 0x29b   : > { %1179 = vperm.xlu1 %1804, %v2484_v24  }
 0x29d   : > { %v583_v42 = vpop.permute.xlu2 %582 }
 0x29e   : > { %v612_v12 = vsub.f32 %v2146_v40, %v583_v42  ;;  %v628_v40 = vmul.f32 1.442695, %v615_v11 }
 0x2a0   : > { %v622_v16 = vmul.f32 1.442695, %v612_v12 }
 0x2a2   : > { %1859 = vpow2.f32 %v622_v16  ;;  %v818_v16 = vld [vmem:[#allocation3 + $0x8] sm:$0xff] }
 0x2a3   : > { %1189 = vperm.xlu1 %1804, %v2488_v51  }
 0x2a5   : > { %v593_v31 = vpop.permute.xlu2 %592 }
 0x2a6   : > { %v614_v56 = vsub.f32 %v2181_v26, %v593_v31 }
 0x2a8   : > { %v1860_v63 = vpop.eup %1859  ;;  %v626_v17 = vmul.f32 1.442695, %v614_v56 }
 0x2a9   : > { %v635_v38 = vpack.c.bf16 %v1858_v8, %v1860_v63  ;;  %v826_v63 = vmul.f32 %v2422_v47, %v818_v16 }
 0x2aa   : > { %1861 = vpow2.f32 %v626_v17 }
 0x2ab   : > { %699 = vmatmul.bf16.gmra.mxu0 %v635_v38  ;;  %728 = vmatmul.bf16.gmra.mxu1 %v635_v38  ;;  %1863 = vpow2.f32 %v628_v40 }
 0x2ac   : > { %1865 = vpow2.f32 %v1066_v54 }
 0x2ad   : > { %v603_v62 = vpop.permute.xlu2 %602 }
 0x2ae   : > { %v616_v18 = vsub.f32 %v2195_v37, %v603_v62 }
 0x2b0   : > { %v1862_v57 = vpop.eup %1861  ;;  %v630_v28 = vmul.f32 1.442695, %v616_v18 }
 0x2b1   : > { %v1864_v7 = vpop.eup %1863 }
 0x2b2   : > { %v636_v45 = vpack.c.bf16 %v1864_v7, %v1862_v57  ;;  %v1866_v23 = vpop.eup %1865 }
 0x2b5   : > { %v760_v36 = vpop.permute.xlu2 %759 }
 0x2b6   : > { %v793_v8 = vmul.f32 %v760_v36, %v745_v9 }
 0x2bb   : > { %704 = vmatmul.bf16.gmra.mxu0 %v636_v45  ;;  %733 = vmatmul.bf16.gmra.mxu1 %v636_v45 }
 0x2bd   : > { %v775_v57 = vpop.permute.xlu2 %774 }
 0x2c5   : > { %v2514_v7 = vpop.permute.xlu2 %789 }
 0x2ce   : > { %v1175_v45 = vpop.permute.xlu2 %1174 }
 0x2d4   : > { %v1105_v13 = vpop.f32.mrf.mxu2  ;;  %v1134_v41 = vpop.f32.mrf.mxu3 }
 0x2d5   : > { %1283 = vrot.lane.b32.xlu2 %v1134_v41, %s1958_s28  ;;  %1218 = vrot.lane.b32.xlu1 %v1105_v13, %s1959_s29 }
 0x2d6   : > { %v2516_v41 = vpop.permute.xlu2 %1184 }
 0x2dc   : > { %v1107_v25 = vpop.f32.mrf.mxu2  ;;  %v1136_v26 = vpop.f32.mrf.mxu3 }
 0x2dd   : > { %1285 = vrot.lane.b32.xlu1 %v1136_v26, %s1958_s28  ;;  %1220 = vrot.lane.b32.xlu0 %v1107_v25, %s1959_s29  ;;  %v746_v25 = vld [vmem:[#allocation4 + $0x10] sm:$0xff] }
 0x2de   : > { %v819_v26 = vld [vmem:[#allocation3 + $0x10] sm:$0xff]  ;;  %v2518_v21 = vpop.permute.xlu2 %1199 }
 0x2e3   : > { %v1037_v20 = vpop.permute.xlu1 %1036 }
 0x2e4   : > { %v1050_v1 = vsub.f32 %v2368_v60, %v1037_v20  ;;  %v1110_v34 = vpop.f32.mrf.mxu2  ;;  %v1139_v4 = vpop.f32.mrf.mxu3  ;;  %v827_v20 = vmul.f32 %v2462_v52, %v819_v26 }
 0x2e5   : > { %1287 = vrot.lane.b32.xlu0 %v1139_v4, %s1958_s28  ;;  %1222 = vrot.lane.b32.xlu2 %v1110_v34, %s1959_s29 }
 0x2e6   : > { %v1064_v10 = vmul.f32 1.442695, %v1050_v1 }
 0x2e8   : > { %1867 = vpow2.f32 %v1064_v10  ;;  %v770_v10 = vpop.permute.xlu0 %769 }
 0x2e9   : > { %1869 = vpow2.f32 %v630_v28  ;;  %v820_v28 = vld [vmem:[#allocation3 + $0x18] sm:$0xff] }
 0x2ec   : > { %v608_v3 = vpop.permute.xlu1 %607  ;;  %v1112_v2 = vpop.f32.mrf.mxu2 }
 0x2ed   : > { %v617_v60 = vsub.f32 %v2187_v29, %v608_v3  ;;  %v1141_v19 = vpop.f32.mrf.mxu3  ;;  %1224 = vrot.lane.b32.xlu1 %v1112_v2, %s1959_s29  ;;  %v795_v2 = vmul.f32 %v770_v10, %v747_v50 }
 0x2ee   : > { %v1868_v44 = vpop.eup %1867  ;;  %1289 = vrot.lane.b32.xlu2 %v1141_v19, %s1958_s28 }
 0x2ef   : > { %v632_v27 = vmul.f32 1.442695, %v617_v60  ;;  %v1071_v55 = vpack.c.bf16 %v1866_v23, %v1868_v44  ;;  %v1870_v31 = vpop.eup %1869  ;;  %v828_v60 = vmul.f32 %v2383_v22, %v820_v28 }
 0x2f0   : > { %v695_v37 = vpop.f32.mrf.mxu0 }
 0x2f1   : > { %1871 = vpow2.f32 %v632_v27  ;;  %v800_v0 = vadd.f32 %v792_v15, %v695_v37  ;;  %v724_v59 = vpop.f32.mrf.mxu1  ;;  %1119 = vmatmul.bf16.gmra.mxu2 %v1071_v55  ;;  %1148 = vmatmul.bf16.gmra.mxu3 %v1071_v55  ;;  %v2527_v27 = vpop.permute.xlu0 %784  ;;  %v748_v55 = vld [vmem:[#allocation4 + $0x20] sm:$0xff] }
 0x2f2   : > { %v833_v29 = vadd.f32 %v825_v61, %v724_v59  ;;  %v821_v37 = vld [vmem:[#allocation3 + $0x20] sm:$0xff]  ;;  %v796_v61 = vmul.f32 %v775_v57, %v748_v55 }
 0x2f3   : > { %809 = vst.msk [vmem:[#allocation4] sm:$0xff] %vm808_vm3, %v800_v0  ;;  %v829_v0 = vmul.f32 %v2429_v39, %v821_v37 }
 0x2f4   : > { %842 = vst.msk [vmem:[#allocation3] sm:$0xff] %vm841_vm10, %v833_v29  ;;  %v1115_v42 = vpop.f32.mrf.mxu2  ;;  %v765_v13 = vpop.permute.xlu1 %764 }
 0x2f5   : > { %v1144_v12 = vpop.f32.mrf.mxu3  ;;  %1226 = vrot.lane.b32.xlu0 %v1115_v42, %s1959_s29  ;;  %v794_v54 = vmul.f32 %v765_v13, %v746_v25  ;;  %v749_v42 = vld [vmem:[#allocation4 + $0x28] sm:$0xff] }
 0x2f6   : > { %1291 = vrot.lane.b32.xlu1 %v1144_v12, %s1958_s28  ;;  %v822_v12 = vld [vmem:[#allocation3 + $0x28] sm:$0xff] }
 0x2f7   : > { %v1872_v14 = vpop.eup %1871 }
 0x2f8   : > { %v697_v53 = vpop.f32.mrf.mxu0  ;;  %v637_v56 = vpack.c.bf16 %v1872_v14, %v1870_v31 }
 0x2f9   : > { %v801_v38 = vadd.f32 %v793_v8, %v697_v53  ;;  %v726_v11 = vpop.f32.mrf.mxu1  ;;  %v1170_v16 = vpop.permute.xlu0 %1169 }
 0x2fa   : > { %v834_v17 = vadd.f32 %v826_v63, %v726_v11  ;;  %709 = vmatmul.bf16.gmra.mxu0 %v637_v56  ;;  %738 = vmatmul.bf16.gmra.mxu1 %v637_v56  ;;  %v830_v63 = vmul.f32 %v2470_v49, %v822_v12  ;;  %v1154_v57 = vld [vmem:[#allocation4] sm:$0xff] }
 0x2fb   : > { %810 = vst.msk [vmem:[#allocation4 + $0x8] sm:$0xff] %vm808_vm3, %v801_v38  ;;  %v1259_v32 = vld [vmem:[#allocation3] sm:$0xff] }
 0x2fc   : > { %843 = vst.msk [vmem:[#allocation3 + $0x8] sm:$0xff] %vm841_vm10, %v834_v17  ;;  %v1117_v40 = vpop.f32.mrf.mxu2  ;;  %v780_v47 = vpop.permute.xlu1 %779  ;;  %v1267_v3 = vmul.f32 %v2476_v58, %v1259_v32 }
 0x2fd   : > { %1228 = vrot.lane.b32.xlu2 %v1117_v40, %s1959_s29  ;;  %v797_v14 = vmul.f32 %v780_v47, %v749_v42 }
 0x301   : > { %v2537_v13 = vpop.permute.xlu0 %1194 }
 0x305   : > { %v1165_v18 = vpop.permute.xlu1 %1164 }
 0x30d   : > { %v1180_v58 = vpop.permute.xlu1 %1179 }
 0x315   : > { %v1190_v8 = vpop.permute.xlu1 %1189 }
 0x328   : > { %v700_v1 = vpop.f32.mrf.mxu0  ;;  %v729_v34 = vpop.f32.mrf.mxu1 }
 0x329   : > { %v802_v4 = vadd.f32 %v794_v54, %v700_v1  ;;  %v835_v62 = vadd.f32 %v827_v20, %v729_v34  ;;  %v1260_v20 = vld [vmem:[#allocation3 + $0x8] sm:$0xff] }
 0x32a   : > { %v1155_v1 = vld [vmem:[#allocation4 + $0x8] sm:$0xff]  ;;  %v1268_v34 = vmul.f32 %v2392_v46, %v1260_v20 }
 0x32b   : > { %811 = vst.msk [vmem:[#allocation4 + $0x10] sm:$0xff] %vm808_vm3, %v802_v4  ;;  %v1203_v4 = vmul.f32 %v1170_v16, %v1155_v1 }
 0x32c   : > { %844 = vst.msk [vmem:[#allocation3 + $0x10] sm:$0xff] %vm841_vm10, %v835_v62 }
 0x32f   : > { %v1284_v23 = vpop.permute.xlu2 %1283 }
 0x330   : > { %v1307_v52 = vadd.f32 %v1284_v23, %v1267_v3  ;;  %v702_v19 = vpop.f32.mrf.mxu0  ;;  %v731_v6 = vpop.f32.mrf.mxu1 }
 0x331   : > { %v803_v44 = vadd.f32 %v795_v2, %v702_v19  ;;  %v836_v15 = vadd.f32 %v828_v60, %v731_v6 }
 0x332   : > { %1316 = vst.msk [vmem:[#allocation3] sm:$0xff] %vm1315_vm11, %v1307_v52  ;;  %v1156_v36 = vld [vmem:[#allocation4 + $0x10] sm:$0xff] }
 0x333   : > { %812 = vst.msk [vmem:[#allocation4 + $0x18] sm:$0xff] %vm808_vm3, %v803_v44  ;;  %v1204_v31 = vmul.f32 %v1175_v45, %v1156_v36  ;;  %v1202_v45 = vmul.f32 %v1165_v18, %v1154_v57 }
 0x334   : > { %845 = vst.msk [vmem:[#allocation3 + $0x18] sm:$0xff] %vm841_vm10, %v836_v15 }
 0x338   : > { %v705_v22 = vpop.f32.mrf.mxu0  ;;  %v734_v59 = vpop.f32.mrf.mxu1 }
 0x339   : > { %v804_v29 = vadd.f32 %v796_v61, %v705_v22  ;;  %v837_v9 = vadd.f32 %v829_v0, %v734_v59 }
 0x33a   : > { %v1157_v46 = vld [vmem:[#allocation4 + $0x18] sm:$0xff] }
 0x33b   : > { %813 = vst.msk [vmem:[#allocation4 + $0x20] sm:$0xff] %vm808_vm3, %v804_v29  ;;  %v1262_v40 = vld [vmem:[#allocation3 + $0x18] sm:$0xff]  ;;  %v1205_v19 = vmul.f32 %v1180_v58, %v1157_v46  ;;  %v1146_v29 = vpop.f32.mrf.mxu3  ;;  %v750_v58 = vld [vmem:[#allocation4 + $0x30] sm:$0xff] }
 0x33c   : > { %846 = vst.msk [vmem:[#allocation3 + $0x20] sm:$0xff] %vm841_vm10, %v837_v9  ;;  %v1270_v25 = vmul.f32 %v2484_v24, %v1262_v40  ;;  %v1261_v24 = vld [vmem:[#allocation3 + $0x10] sm:$0xff] }
 0x33d   : > { %v1269_v28 = vmul.f32 %v2443_v30, %v1261_v24  ;;  %v823_v9 = vld [vmem:[#allocation3 + $0x30] sm:$0xff] }
 0x33f   : > { %v1223_v53 = vpop.permute.xlu2 %1222 }
 0x340   : > { %v1244_v39 = vadd.f32 %v1223_v53, %v1204_v31  ;;  %v707_v56 = vpop.f32.mrf.mxu0  ;;  %v736_v38 = vpop.f32.mrf.mxu1  ;;  %v824_v53 = vld [vmem:[#allocation3 + $0x38] sm:$0xff] }
 0x341   : > { %v805_v11 = vadd.f32 %v797_v14, %v707_v56  ;;  %v838_v17 = vadd.f32 %v830_v63, %v736_v38 }
 0x342   : > { %1253 = vst.msk [vmem:[#allocation4 + $0x10] sm:$0xff] %vm1250_vm4, %v1244_v39  ;;  %v1158_v15 = vld [vmem:[#allocation4 + $0x20] sm:$0xff] }
 0x343   : > { %814 = vst.msk [vmem:[#allocation4 + $0x28] sm:$0xff] %vm808_vm3, %v805_v11  ;;  %v1263_v55 = vld [vmem:[#allocation3 + $0x20] sm:$0xff]  ;;  %v1206_v37 = vmul.f32 %v2516_v41, %v1158_v15  ;;  %v798_v41 = vmul.f32 %v2527_v27, %v750_v58 }
 0x344   : > { %847 = vst.msk [vmem:[#allocation3 + $0x28] sm:$0xff] %vm841_vm10, %v838_v17  ;;  %v1271_v30 = vmul.f32 %v2453_v35, %v1263_v55  ;;  %v831_v35 = vmul.f32 %v2389_v48, %v823_v9  ;;  %v832_v48 = vmul.f32 %v2436_v33, %v824_v53 }
 0x347   : > { %v1219_v47 = vpop.permute.xlu1 %1218 }
 0x348   : > { %v1242_v49 = vadd.f32 %v1219_v47, %v1202_v45  ;;  %v1290_v26 = vpop.permute.xlu2 %1289 }
 0x349   : > { %v1310_v54 = vadd.f32 %v1290_v26, %v1270_v25 }
 0x34a   : > { %1251 = vst.msk [vmem:[#allocation4] sm:$0xff] %vm1250_vm4, %v1242_v49  ;;  %v1159_v50 = vld [vmem:[#allocation4 + $0x28] sm:$0xff] }
 0x34b   : > { %1319 = vst.msk [vmem:[#allocation3 + $0x18] sm:$0xff] %vm1315_vm11, %v1310_v54  ;;  %v1207_v3 = vmul.f32 %v1190_v8, %v1159_v50  ;;  %v751_v8 = vld [vmem:[#allocation4 + $0x38] sm:$0xff] }
 0x34c   : > { %v799_v27 = vmul.f32 %v2514_v7, %v751_v8 }
 0x34f   : > { %v1286_v62 = vpop.permute.xlu1 %1285  ;;  %v1221_v10 = vpop.permute.xlu0 %1220 }
 0x350   : > { %v1308_v18 = vadd.f32 %v1286_v62, %v1268_v34  ;;  %v1243_v32 = vadd.f32 %v1221_v10, %v1203_v4  ;;  %v1264_v10 = vld [vmem:[#allocation3 + $0x28] sm:$0xff] }
 0x352   : > { %1317 = vst.msk [vmem:[#allocation3 + $0x8] sm:$0xff] %vm1315_vm11, %v1308_v18 }
 0x353   : > { %1252 = vst.msk [vmem:[#allocation4 + $0x8] sm:$0xff] %vm1250_vm4, %v1243_v32 }
 0x357   : > { %v1288_v2 = vpop.permute.xlu0 %1287  ;;  %v1229_v23 = vpop.permute.xlu2 %1228 }
 0x358   : > { %v1309_v60 = vadd.f32 %v1288_v2, %v1269_v28  ;;  %v1247_v52 = vadd.f32 %v1229_v23, %v1207_v3 }
 0x35a   : > { %1318 = vst.msk [vmem:[#allocation3 + $0x10] sm:$0xff] %vm1315_vm11, %v1309_v60 }
 0x35b   : > { %1256 = vst.msk [vmem:[#allocation4 + $0x28] sm:$0xff] %vm1250_vm4, %v1247_v52 }
 0x35f   : > { %v1225_v6 = vpop.permute.xlu1 %1224 }
 0x360   : > { %v1245_v44 = vadd.f32 %v1225_v6, %v1205_v19 }
 0x362   : > { %1254 = vst.msk [vmem:[#allocation4 + $0x18] sm:$0xff] %vm1250_vm4, %v1245_v44 }
 0x367   : > { %v1227_v61 = vpop.permute.xlu0 %1226 }
 0x368   : > { %v1292_v0 = vpop.permute.xlu1 %1291  ;;  %v1246_v22 = vadd.f32 %v1227_v61, %v1206_v37 }
 0x369   : > { %v1311_v59 = vadd.f32 %v1292_v0, %v1271_v30 }
 0x36a   : > { %1255 = vst.msk [vmem:[#allocation4 + $0x20] sm:$0xff] %vm1250_vm4, %v1246_v22 }
 0x36b   : > { %1320 = vst.msk [vmem:[#allocation3 + $0x20] sm:$0xff] %vm1315_vm11, %v1311_v59 }
 0x374   : > { %v1120_v36 = vpop.f32.mrf.mxu2  ;;  %v1149_v42 = vpop.f32.mrf.mxu3 }
 0x375   : > { %1295 = vrot.lane.b32.xlu2 %v1149_v42, %s1958_s28  ;;  %1230 = vrot.lane.b32.xlu1 %v1120_v36, %s1959_s29 }
 0x377   : > { %v710_v12 = vpop.f32.mrf.mxu0  ;;  %v739_v16 = vpop.f32.mrf.mxu1 }
 0x378   : > { %v806_v31 = vadd.f32 %v798_v41, %v710_v12  ;;  %v839_v14 = vadd.f32 %v831_v35, %v739_v16 }
 0x37a   : > { %815 = vst.msk [vmem:[#allocation4 + $0x30] sm:$0xff] %vm808_vm3, %v806_v31 }
 0x37b   : > { %848 = vst.msk [vmem:[#allocation3 + $0x30] sm:$0xff] %vm841_vm10, %v839_v14 }
 0x37c   : > { %v1122_v63 = vpop.f32.mrf.mxu2  ;;  %v1151_v39 = vpop.f32.mrf.mxu3 }
 0x37d   : > { %1297 = vrot.lane.b32.xlu1 %v1151_v39, %s1958_s28  ;;  %1232 = vrot.lane.b32.xlu0 %v1122_v63, %s1959_s29 }
 0x37f   : > { %v712_v56 = vpop.f32.mrf.mxu0  ;;  %v741_v38 = vpop.f32.mrf.mxu1 }
 0x380   : > { %v807_v11 = vadd.f32 %v799_v27, %v712_v56  ;;  %v840_v17 = vadd.f32 %v832_v48, %v741_v38 }
 0x381   : > { %v1160_v7 = vld [vmem:[#allocation4 + $0x30] sm:$0xff] }
 0x382   : > { %816 = vst.msk [vmem:[#allocation4 + $0x38] sm:$0xff] %vm808_vm3, %v807_v11  ;;  %v1265_v40 = vld [vmem:[#allocation3 + $0x30] sm:$0xff]  ;;  %v1208_v33 = vmul.f32 %v2537_v13, %v1160_v7  ;;  %v1272_v13 = vmul.f32 %v2488_v51, %v1264_v10 }
 0x383   : > { %849 = vst.msk [vmem:[#allocation3 + $0x38] sm:$0xff] %vm841_vm10, %v840_v17  ;;  %v1273_v57 = vmul.f32 %v2456_v43, %v1265_v40 }
 0x385   : > { %1293 = vrot.lane.b32.xlu0 %v1146_v29, %s1958_s28 }
 0x389   : > { %v1161_v54 = vld [vmem:[#allocation4 + $0x38] sm:$0xff] }
 0x38a   : > { %v1266_v26 = vld [vmem:[#allocation3 + $0x38] sm:$0xff]  ;;  %v1209_v1 = vmul.f32 %v2518_v21, %v1161_v54 }
 0x38b   : > { %v1274_v20 = vmul.f32 %v2465_v5, %v1266_v26 }
 0x3cf   : > { %v1296_v45 = vpop.permute.xlu2 %1295 }
 0x3d0   : > { %v1313_v47 = vadd.f32 %v1296_v45, %v1273_v57 }
 0x3d2   : > { %1322 = vst.msk [vmem:[#allocation3 + $0x30] sm:$0xff] %vm1315_vm11, %v1313_v47 }
 0x3e7   : > { %v1231_v25 = vpop.permute.xlu1 %1230 }
 0x3e8   : > { %v1248_v49 = vadd.f32 %v1231_v25, %v1208_v33 }
 0x3ea   : > { %1257 = vst.msk [vmem:[#allocation4 + $0x30] sm:$0xff] %vm1250_vm4, %v1248_v49 }
 0x3ef   : > { %v1298_v34 = vpop.permute.xlu1 %1297  ;;  %v1233_v4 = vpop.permute.xlu0 %1232 }
 0x3f0   : > { %v1314_v43 = vadd.f32 %v1298_v34, %v1274_v20  ;;  %v1249_v62 = vadd.f32 %v1233_v4, %v1209_v1 }
 0x3f2   : > { %1323 = vst.msk [vmem:[#allocation3 + $0x38] sm:$0xff] %vm1315_vm11, %v1314_v43 }
 0x3f3   : > { %1258 = vst.msk [vmem:[#allocation4 + $0x38] sm:$0xff] %vm1250_vm4, %v1249_v62 }
 0x3f6   : > { %1335 = sbr.rel (%p1715_p0) target bundleno = 1191 (0x4a7), region = 86 }
 0x3f7   : > { %v1294_v18 = vpop.permute.xlu0 %1293 }
 0x3f8   : > { %v1312_v32 = vadd.f32 %v1294_v18, %v1272_v13 }
 0x3fa   : > { %1321 = vst.msk [vmem:[#allocation3 + $0x28] sm:$0xff] %vm1315_vm11, %v1312_v32 }
 0x3fb   : > { %v1338_v5 = vld [vmem:[#allocation3 + $0x10] sm:$0xff]  ;;  %v1336_v21 = vld [vmem:[#allocation3] sm:$0xff]  ;;  %v1960_v24 = vmov 0   ;;  %v1339_v3 = vld [vmem:[#allocation3 + $0x18] sm:$0xff]  ;;  %v1961_v9 = vmov 1   ;;  %vm1536_vm5 = vcmask 1047680  }
 0x3fc   : > { %1874 = vset.pattern.permute.xlu1 %v1960_v24  ;;  %1873 = vset.pattern.permute.xlu0 %v1960_v24  ;;  %v1346_v50 = vmax.f32 %v1338_v5, 1e-20  ;;  %v1344_v28 = vmax.f32 %v1336_v21, 1e-20  ;;  %v1340_v2 = vld [vmem:[#allocation3 + $0x20] sm:$0xff]  ;;  %v1337_v23 = vld [vmem:[#allocation3 + $0x8] sm:$0xff] }
 0x3fd   : > { %1875 = vset.pattern.permute.xlu2 %v1960_v24  ;;  %v1348_v51 = vmax.f32 %v1340_v2, 1e-20  ;;  %v1347_v60 = vmax.f32 %v1339_v3, 1e-20  ;;  %v1345_v52 = vmax.f32 %v1337_v23, 1e-20 }
 0x3fe   : > { %1881 = vrcp.f32 %v1346_v50  ;;  %v1343_v15 = vld [vmem:[#allocation3 + $0x38] sm:$0xff]  ;;  %v1342_v55 = vld [vmem:[#allocation3 + $0x30] sm:$0xff]  ;;  %v2577_v36 = vld [vmem:[#allocation4 + $0x20] sm:$0xff]  ;;  %v1962_v26 = vmov 0.0  }
 0x3ff   : > { %1883 = vrcp.f32 %v1344_v28  ;;  %v1351_v30 = vmax.f32 %v1343_v15, 1e-20  ;;  %v1350_v61 = vmax.f32 %v1342_v55, 1e-20  ;;  %v1879_v41 = vld [vmem:[%s2670_s4] ss:$0 sm:$0xff] }
 0x400   : > { %1885 = vrcp.f32 %v1348_v51  ;;  %v1365_v16 = vld [vmem:[#allocation4 + $0x28] sm:$0xff]  ;;  %v1362_v63 = vld [vmem:[#allocation4 + $0x10] sm:$0xff]  ;;  %v1360_v39 = vld [vmem:[#allocation4] sm:$0xff] }
 0x401   : > { %v1341_v46 = vld [vmem:[#allocation3 + $0x28] sm:$0xff]  ;;  %1887 = vrcp.f32 %v1347_v60  ;;  %v2590_v27 = vld [vmem:[%s2670_s4] ss:$0 sm:$0xff]  ;;  %v1363_v7 = vld [vmem:[#allocation4 + $0x18] sm:$0xff] }
 0x402   : > { %v1349_v6 = vmax.f32 %v1341_v46, 1e-20  ;;  %1889 = vrcp.f32 %v1345_v52  ;;  %v1361_v33 = vld [vmem:[#allocation4 + $0x8] sm:$0xff]  ;;  %v1367_v10 = vld [vmem:[#allocation4 + $0x38] sm:$0xff]  ;;  %v1366_v18 = vld [vmem:[#allocation4 + $0x30] sm:$0xff] }
 0x404   : > { %v1882_v19 = vpop.eup %1881  ;;  %1891 = vrcp.f32 %v1349_v6 }
 0x405   : > { %v1884_v44 = vpop.eup %1883  ;;  %1380 = vperm.xlu1 %1874, %v1882_v19   ;;  %1893 = vrcp.f32 %v1351_v30 }
 0x406   : > { %1370 = vperm.xlu0 %1873, %v1884_v44   ;;  %v1886_v37 = vpop.eup %1885  ;;  %1895 = vrcp.f32 %v1350_v61 }
 0x407   : > { %1390 = vperm.xlu2 %1875, %v1886_v37   ;;  %v1888_v0 = vpop.eup %1887 }
 0x408   : > { %v1890_v22 = vpop.eup %1889 }
 0x40a   : > { %v1892_v59 = vpop.eup %1891 }
 0x40b   : > { %v1894_v29 = vpop.eup %1893 }
 0x40c   : > { %v1896_v58 = vpop.eup %1895 }
 0x40d   : > { %1385 = vperm.xlu1 %1874, %v1888_v0  }
 0x40e   : > { %1375 = vperm.xlu0 %1873, %v1890_v22  }
 0x40f   : > { %1395 = vperm.xlu2 %1875, %v1892_v59  }
 0x415   : > { %1405 = vperm.xlu1 %1874, %v1894_v29  }
 0x416   : > { %1400 = vperm.xlu0 %1873, %v1896_v58  }
 0x417   : > { %1876 = vset.pattern.permute.xlu2 %v1961_v9 }
 0x418   : > { %1470 = vperm.xlu2 %1876, %v1884_v44  }
 0x41d   : > { %1878 = vset.pattern.permute.xlu1 %v1961_v9 }
 0x41e   : > { %1877 = vset.pattern.permute.xlu0 %v1961_v9  ;;  %1480 = vperm.xlu1 %1878, %v1882_v19  }
 0x41f   : > { %1475 = vperm.xlu0 %1877, %v1890_v22  }
 0x420   : > { %1485 = vperm.xlu2 %1876, %v1888_v0  }
 0x426   : > { %1490 = vperm.xlu1 %1878, %v1886_v37  }
 0x427   : > { %1500 = vperm.xlu0 %1877, %v1896_v58  }
 0x428   : > { %1495 = vperm.xlu2 %1876, %v1892_v59  }
 0x42e   : > { %1505 = vperm.xlu1 %1878, %v1894_v29  }
 0x461   : > { %v1391_v42 = vpop.permute.xlu2 %1390 }
 0x462   : > { %v1412_v35 = vmul.f32 %v1391_v42, %v2577_v36 }
 0x464   : > { %v1424_v12 = vadd.f32 %v1879_v41, %v1412_v35 }
 0x466   : > { %1432 = vst.msk [vmem:[%s2075_s14 + $0x20] sm:$0xff] %vm808_vm3, %v1424_v12 }
 0x469   : > { %v1396_v31 = vpop.permute.xlu2 %1395 }
 0x46a   : > { %v1413_v14 = vmul.f32 %v1396_v31, %v1365_v16 }
 0x46c   : > { %v1425_v8 = vadd.f32 %v1879_v41, %v1413_v14 }
 0x46e   : > { %1433 = vst.msk [vmem:[%s2075_s14 + $0x28] sm:$0xff] %vm808_vm3, %v1425_v8 }
 0x472   : > { %v1471_v53 = vpop.permute.xlu2 %1470 }
 0x473   : > { %v1508_v48 = vmul.f32 %v1471_v53, %v1360_v39 }
 0x475   : > { %v1520_v57 = vadd.f32 %v2590_v27, %v1508_v48 }
 0x477   : > { %v1381_v56 = vpop.permute.xlu1 %1380 }
 0x478   : > { %v1410_v38 = vmul.f32 %v1381_v56, %v1362_v63  ;;  %v1371_v11 = vpop.permute.xlu0 %1370 }
 0x479   : > { %v1408_v17 = vmul.f32 %v1371_v11, %v1360_v39 }
 0x47a   : > { %v1422_v40 = vadd.f32 %v1879_v41, %v1410_v38  ;;  %v1486_v47 = vpop.permute.xlu2 %1485 }
 0x47b   : > { %v1420_v45 = vadd.f32 %v1879_v41, %v1408_v17  ;;  %v1511_v25 = vmul.f32 %v1486_v47, %v1363_v7 }
 0x47c   : > { %1430 = vst.msk [vmem:[%s2075_s14 + $0x10] sm:$0xff] %vm808_vm3, %v1422_v40 }
 0x47d   : > { %1428 = vst.msk [vmem:[%s2075_s14] sm:$0xff] %vm808_vm3, %v1420_v45  ;;  %v1523_v4 = vadd.f32 %v2590_v27, %v1511_v25 }
 0x47e   : > { %1528 = vst.msk [vmem:[%s2075_s14] sm:$0xff] %vm1250_vm4, %v1520_v57 }
 0x47f   : > { %v1386_v49 = vpop.permute.xlu1 %1385  ;;  %1537 = vst.msk [vmem:[%s2075_s14] sm:$0xff] %vm1536_vm5, %v1962_v26 }
 0x480   : > { %v1411_v54 = vmul.f32 %v1386_v49, %v1363_v7  ;;  %v1376_v20 = vpop.permute.xlu0 %1375 }
 0x481   : > { %v1409_v1 = vmul.f32 %v1376_v20, %v1361_v33 }
 0x482   : > { %v1423_v34 = vadd.f32 %v1879_v41, %v1411_v54  ;;  %v1496_v62 = vpop.permute.xlu2 %1495 }
 0x483   : > { %v1421_v43 = vadd.f32 %v1879_v41, %v1409_v1  ;;  %v1513_v13 = vmul.f32 %v1496_v62, %v1365_v16 }
 0x484   : > { %1431 = vst.msk [vmem:[%s2075_s14 + $0x18] sm:$0xff] %vm808_vm3, %v1423_v34 }
 0x485   : > { %1429 = vst.msk [vmem:[%s2075_s14 + $0x8] sm:$0xff] %vm808_vm3, %v1421_v43  ;;  %v1525_v5 = vadd.f32 %v2590_v27, %v1513_v13 }
 0x486   : > { %1531 = vst.msk [vmem:[%s2075_s14 + $0x18] sm:$0xff] %vm1250_vm4, %v1523_v4 }
 0x487   : > { %v1406_v32 = vpop.permute.xlu1 %1405  ;;  %1540 = vst.msk [vmem:[%s2075_s14 + $0x18] sm:$0xff] %vm1536_vm5, %v1962_v26 }
 0x488   : > { %v1415_v21 = vmul.f32 %v1406_v32, %v1367_v10  ;;  %v1401_v24 = vpop.permute.xlu0 %1400  ;;  %1533 = vst.msk [vmem:[%s2075_s14 + $0x28] sm:$0xff] %vm1250_vm4, %v1525_v5 }
 0x489   : > { %v1414_v50 = vmul.f32 %v1401_v24, %v1366_v18  ;;  %1542 = vst.msk [vmem:[%s2075_s14 + $0x28] sm:$0xff] %vm1536_vm5, %v1962_v26 }
 0x48a   : > { %v1427_v28 = vadd.f32 %v1879_v41, %v1415_v21 }
 0x48b   : > { %v1426_v3 = vadd.f32 %v1879_v41, %v1414_v50 }
 0x48c   : > { %1435 = vst.msk [vmem:[%s2075_s14 + $0x38] sm:$0xff] %vm808_vm3, %v1427_v28 }
 0x48d   : > { %1434 = vst.msk [vmem:[%s2075_s14 + $0x30] sm:$0xff] %vm808_vm3, %v1426_v3 }
 0x490   : > { %v1481_v2 = vpop.permute.xlu1 %1480 }
 0x491   : > { %v1510_v23 = vmul.f32 %v1481_v2, %v1362_v63  ;;  %v1476_v51 = vpop.permute.xlu0 %1475 }
 0x492   : > { %v1509_v60 = vmul.f32 %v1476_v51, %v1361_v33 }
 0x493   : > { %v1522_v52 = vadd.f32 %v2590_v27, %v1510_v23 }
 0x494   : > { %v1521_v46 = vadd.f32 %v2590_v27, %v1509_v60 }
 0x495   : > { %1530 = vst.msk [vmem:[%s2075_s14 + $0x10] sm:$0xff] %vm1250_vm4, %v1522_v52 }
 0x496   : > { %1539 = vst.msk [vmem:[%s2075_s14 + $0x10] sm:$0xff] %vm1536_vm5, %v1962_v26 }
 0x497   : > { %1529 = vst.msk [vmem:[%s2075_s14 + $0x8] sm:$0xff] %vm1250_vm4, %v1521_v46 }
 0x498   : > { %1538 = vst.msk [vmem:[%s2075_s14 + $0x8] sm:$0xff] %vm1536_vm5, %v1962_v26  ;;  %v1491_v19 = vpop.permute.xlu1 %1490 }
 0x499   : > { %v1512_v6 = vmul.f32 %v1491_v19, %v2577_v36  ;;  %v1501_v44 = vpop.permute.xlu0 %1500 }
 0x49a   : > { %v1514_v15 = vmul.f32 %v1501_v44, %v1366_v18 }
 0x49b   : > { %v1524_v55 = vadd.f32 %v2590_v27, %v1512_v6 }
 0x49c   : > { %v1526_v37 = vadd.f32 %v2590_v27, %v1514_v15 }
 0x49d   : > { %1532 = vst.msk [vmem:[%s2075_s14 + $0x20] sm:$0xff] %vm1250_vm4, %v1524_v55 }
 0x49e   : > { %1541 = vst.msk [vmem:[%s2075_s14 + $0x20] sm:$0xff] %vm1536_vm5, %v1962_v26 }
 0x49f   : > { %1534 = vst.msk [vmem:[%s2075_s14 + $0x30] sm:$0xff] %vm1250_vm4, %v1526_v37 }
 0x4a0   : > { %1543 = vst.msk [vmem:[%s2075_s14 + $0x30] sm:$0xff] %vm1536_vm5, %v1962_v26  ;;  %v1506_v30 = vpop.permute.xlu1 %1505 }
 0x4a1   : > { %v1515_v61 = vmul.f32 %v1506_v30, %v1367_v10 }
 0x4a3   : > { %v1527_v0 = vadd.f32 %v2590_v27, %v1515_v61 }
 0x4a5   : > { %1535 = vst.msk [vmem:[%s2075_s14 + $0x38] sm:$0xff] %vm1250_vm4, %v1527_v0 }
 0x4a6   : > { %1544 = vst.msk [vmem:[%s2075_s14 + $0x38] sm:$0xff] %vm1536_vm5, %v1962_v26 }
 0x4a7 PF: > { %s15_s24 = sadd.s32 1, %s1951_s24   ;;  %s2672_s18 = smov %s1931_s19 }
 0x4a8   : > { %p12_p1 = scmp.ge.s32.totalorder %s15_s24, 10   ;;  %s2673_s19 = smov %s2044_s6 }
 0x4a9   : > { %s2674_s20 = smov %s1943_s22  ;;  %s2675_s21 = smov %s1947_s23 }
 0x4aa   : > { %s2676_s22 = smov %s2679_s25  ;;  %s2677_s23 = smov %s2683_s26 }
 0x4ab   :  { %14 = sbr.rel (!%p12_p1) target bundleno = 4 (0x4), region = 130 }

// kernel: encoder_forward.5
= control target key start
LH: loop header
LB: loop body
LE: loop exit
PB: predicated region body
PF: predicated region fallthrough
CT: control target
= control target key end

     0   :  { %s4849_s0 = inlined_call_operand.vmem [shape: s8[256,256], index: 0, kind: input, shape index: {}]   ;;  %s4850_s1 = inlined_call_operand.vmem [shape: f32[256,4], index: 1, kind: input, shape index: {}]   ;;  %s4851_s2 = inlined_call_operand.vmem [shape: f32[4,256], index: 2, kind: input, shape index: {}]   ;;  %s4852_s3 = inlined_call_operand.vmem [shape: bf16[256,128], index: 3, kind: input, shape index: {}]   ;;  %s4853_s4 = inlined_call_operand.vmem [shape: f32[1,32], index: 4, kind: input, shape index: {}]   ;;  %s4854_s5 = inlined_call_operand.vmem [shape: bf16[256,128], index: 5, kind: output, shape index: {}]  }
   0x1   :  { %4895 = sst [smem:[#allocation24_spill]] %s4849_s0 }
   0x2   :  { %s3325_s18 = smov 0   ;;  %s3327_s19 = smov 0  }
   0x3   :  { %s3329_s20 = smov 0   ;;  %s3331_s21 = smov 0  }
   0x4   :  { %s3333_s22 = smov 0   ;;  %s3335_s23 = smov 0  }
   0x5   :  { %s3337_s24 = smov 0  }
   0x6 LB: > { %s24_s25 = sadd.s32 1, %s3266_s22  ;;  %s27_s26 = sadd.s32 1, %s3270_s23  ;;  %s3274_s24 = sphi %s3337_s24, %s15_s24   ;;  %s3270_s23 = sphi %s3335_s23, %s4964_s23   ;;  %s3266_s22 = sphi %s3333_s22, %s4963_s22   ;;  %s3262_s21 = sphi %s3331_s21, %s4962_s21   ;;  %s3258_s20 = sphi %s3329_s20, %s4961_s20   ;;  %s3254_s19 = sphi %s3327_s19, %s4960_s19   ;;  %s3250_s18 = sphi %s3325_s18, %s4959_s18  }
   0x7   : > { %p25_p0 = scmp.ge.s32.totalorder %s24_s25, 2  ;;  %p43_p1 = scmp.ne.s32.totalorder %s3254_s19, %s3250_s18 }
   0x8   : > { %p44_p2 = scmp.eq.s32.totalorder %s3274_s24, 0  ;;  %s36_s30 = sadd.s32 1, %s3254_s19 }
   0x9   : > { %s4966_s25 = smov (%p25_p0, %s24_s25), 0  ;;  %s4968_s26 = smov (!%p25_p0, %s27_s26), %s3270_s23 }
   0xa   : > { %p45_p3 = por %p44_p2, %p43_p1  ;;  %p29_p4 = scmp.ge.s32.totalorder %s4968_s26, 4 }
   0xb   : > { %s32_s27 = ssub.s32 %s3266_s22, %s4966_s25  ;;  %p2877_p6 = scmp.ge.s32.totalorder %s3274_s24, 8 }
   0xc   : > { %s4970_s26 = smov (%p29_p4, %s4968_s26), 0 }
   0xd   : > { %4896 = sst [smem:[#allocation6_spill]] %s4970_s26  ;;  %s31_s28 = ssub.s32 %s3270_s23, %s4970_s26 }
   0xe   : > { %s33_s29 = sor.u32 %s32_s27, %s31_s28  ;;  %197 = sbr.rel (%p2877_p6) target bundleno = 31 (0x1f), region = 20 }
   0xf   : > { %p34_p5 = scmp.eq.s32.totalorder %s33_s29, 0 }
  0x11   : > { %s3376_s6 = scalar_select %p34_p5, %s3254_s19, %s36_s30  }
  0x13   : > { %200 = sbr.rel (!%p45_p3) target bundleno = 31 (0x1f), region = 24  ;;  %s202_s7 = sand.u32 (%p45_p3), 1, %s3254_s19  }
  0x14   : > { %s2935_s8 = sshll.u32 (%p45_p3), %s3270_s23, 2  ;;  %s2878_s9 = sshll.u32 (%p45_p3), %s202_s7, 4 }
  0x15   : > { %s207_s10 = sadd.s32 (%p45_p3), %s3266_s22, %s2935_s8  ;;  %s4897_s0 = sld [smem:[#allocation24_spill]] (%p45_p3) }
  0x16   : > { %s2881_s11 = sshll.u32 (%p45_p3), %s207_s10, 3  ;;  %s204_s15 = scalar_lea.vmem (%p45_p3), [#allocation5], %s2878_s9 }
  0x1b   : > { %s209_s14 = scalar_lea.vmem %s4897_s0, %s2881_s11 }
  0x1c   : > { %v240_v0 = vld [vmem:[%s209_s14] sm:$0xff]  ;;  %v242_v1 = vld [vmem:[%s209_s14 + $0x10] sm:$0xff] }
  0x1d   : > { %241 = vst [vmem:[%s204_s15] sm:$0xff] %v240_v0 }
  0x1e   : > { %243 = vst [vmem:[%s204_s15 + $0x8] sm:$0xff] %v242_v1 }
  0x1f PF: > { %p2882_p7 = scmp.ge.s32.totalorder %s3274_s24, 1  ;;  %p273_p8 = scmp.lt.s32.totalorder %s3274_s24, 9 }
  0x21   : > { %p274_p9 = pnand %p2882_p7, %p273_p8 }
  0x23   : > { %277 = sbr.rel (%p274_p9) target bundleno = 2005 (0x7d5), region = 74 }
  0x28   : > { %s280_s16 = sand.u32 1, %s3250_s18   ;;  %s2884_s17 = sshll.u32 %s3262_s21, 3 }
  0x29   : > { %s3389_s27 = sshll.u32 %s280_s16, 4  ;;  %p323_p10 = scmp.lt.s32.totalorder %s2884_s17, 31 }
  0x2a   : > { %p328_p11 = scmp.lt.s32.totalorder %s3258_s20, 1  ;;  %s2887_s30 = sshll.u32 %s3258_s20, 4 }
  0x2b   : > { %s4972_s17 = smov (!%p323_p10, %s2884_s17), 31  ;;  %p333_p12 = scmp.lt.s32.totalorder %s2887_s30, 31 }
  0x2c   : > { %s329_s28 = scalar_select %p328_p11, %s3258_s20, 1 }
  0x2d   : > { %s2885_s29 = sshll.u32 %s4972_s17, 3  ;;  %s2890_s21 = sshll.u32 %s4972_s17, 2 }
  0x2e   : > { %s3397_s9 = scalar_lea.vmem %s4850_s1, %s2885_s29  ;;  %s2886_s10 = sshll.u32 %s329_s28, 2 }
  0x2f   : > { %s3402_s18 = scalar_lea.vmem %s4851_s2, %s2886_s10  ;;  %s4974_s30 = smov (!%p333_p12, %s2887_s30), 31 }
  0x30   : > { %s3407_s15 = scalar_lea.vmem %s4854_s5, %s2890_s21  ;;  %s2888_s16 = sshll.u32 %s4974_s30, 2 }
  0x31   : > { %s3412_s29 = scalar_lea.vmem %s4852_s3, %s2888_s16  ;;  %s282_s28 = scalar_lea.vmem [#allocation5], %s3389_s27 }
  0x32   : > { %p2891_p13 = scmp.ne.s32.totalorder %s3258_s20, 0 }
  0x34   : > { %349 = sbr.rel (%p2891_p13) target bundleno = 82 (0x52), region = 82 }
  0x39   : > { %vm350_vm0 = vcmask 31744   ;;  %v3276_v2 = vmov 0.0  }
  0x3a   : > { %351 = vst.msk [vmem:[#allocation2] sm:$0xff] %vm350_vm0, %v3276_v2 }
  0x3b   : > { %352 = vst.msk [vmem:[#allocation2 + $0x8] sm:$0xff] %vm350_vm0, %v3276_v2 }
  0x3c   : > { %353 = vst.msk [vmem:[#allocation2 + $0x10] sm:$0xff] %vm350_vm0, %v3276_v2 }
  0x3d   : > { %354 = vst.msk [vmem:[#allocation2 + $0x18] sm:$0xff] %vm350_vm0, %v3276_v2 }
  0x3e   : > { %355 = vst.msk [vmem:[#allocation2 + $0x20] sm:$0xff] %vm350_vm0, %v3276_v2 }
  0x3f   : > { %356 = vst.msk [vmem:[#allocation2 + $0x28] sm:$0xff] %vm350_vm0, %v3276_v2 }
  0x40   : > { %357 = vst.msk [vmem:[#allocation2 + $0x30] sm:$0xff] %vm350_vm0, %v3276_v2 }
  0x41   : > { %358 = vst.msk [vmem:[#allocation2 + $0x38] sm:$0xff] %vm350_vm0, %v3276_v2 }
  0x42   : > { %359 = vst.msk [vmem:[#allocation3] sm:$0xff] %vm350_vm0, %v3276_v2 }
  0x43   : > { %360 = vst.msk [vmem:[#allocation3 + $0x8] sm:$0xff] %vm350_vm0, %v3276_v2 }
  0x44   : > { %361 = vst.msk [vmem:[#allocation3 + $0x10] sm:$0xff] %vm350_vm0, %v3276_v2 }
  0x45   : > { %362 = vst.msk [vmem:[#allocation3 + $0x18] sm:$0xff] %vm350_vm0, %v3276_v2 }
  0x46   : > { %363 = vst.msk [vmem:[#allocation3 + $0x20] sm:$0xff] %vm350_vm0, %v3276_v2 }
  0x47   : > { %364 = vst.msk [vmem:[#allocation3 + $0x28] sm:$0xff] %vm350_vm0, %v3276_v2 }
  0x48   : > { %365 = vst.msk [vmem:[#allocation3 + $0x30] sm:$0xff] %vm350_vm0, %v3276_v2 }
  0x49   : > { %366 = vst.msk [vmem:[#allocation3 + $0x38] sm:$0xff] %vm350_vm0, %v3276_v2 }
  0x4a   : > { %367 = vst [vmem:[#allocation4] sm:$0xff] %v3276_v2 }
  0x4b   : > { %368 = vst [vmem:[#allocation4 + $0x8] sm:$0xff] %v3276_v2 }
  0x4c   : > { %369 = vst [vmem:[#allocation4 + $0x10] sm:$0xff] %v3276_v2 }
  0x4d   : > { %370 = vst [vmem:[#allocation4 + $0x18] sm:$0xff] %v3276_v2 }
  0x4e   : > { %371 = vst [vmem:[#allocation4 + $0x20] sm:$0xff] %v3276_v2 }
  0x4f   : > { %372 = vst [vmem:[#allocation4 + $0x28] sm:$0xff] %v3276_v2 }
  0x50   : > { %373 = vst [vmem:[#allocation4 + $0x30] sm:$0xff] %v3276_v2 }
  0x51   : > { %374 = vst [vmem:[#allocation4 + $0x38] sm:$0xff] %v3276_v2 }
  0x52 PF: > { %v3433_v3 = vld [vmem:[%s3397_s9 + $0x8] sm:$0xff]  ;;  %v3436_v4 = vld [vmem:[%s3397_s9 + $0x10] sm:$0xff]  ;;  %v4862_v5 = vmov 1   ;;  %v4856_v6 = vmov 0   ;;  %v3444_v7 = vld [vmem:[%s3397_s9 + $0x20] sm:$0xff]  ;;  %s3279_s0 = smov 120  }
  0x53   : > { %3022 = vset.pattern.permute.xlu0 %v4862_v5  ;;  %3019 = vset.pattern.permute.xlu1 %v4856_v6  ;;  %v3448_v8 = vld [vmem:[%s3397_s9 + $0x30] sm:$0xff]  ;;  %v3451_v9 = vld [vmem:[%s3397_s9 + $0x18] sm:$0xff]  ;;  %v3454_v10 = vld [vmem:[%s3397_s9 + $0x28] sm:$0xff]  ;;  %s3282_s26 = smov 112   ;;  %s3284_s17 = smov 1  }
  0x54   : > { %875 = vperm.xlu0 %3022, %v3433_v3   ;;  %446 = vperm.xlu1 %3019, %v3436_v4   ;;  %v432_v11 = vld [vmem:[%s3397_s9 + $0x38] sm:$0xff]  ;;  %v3461_v12 = vld [vmem:[%s3397_s9] sm:$0xff]  ;;  %s3285_s27 = smov 8   ;;  %s3286_s30 = smov 104  }
  0x55   : > { %3020 = vset.pattern.permute.xlu2 %v4856_v6  ;;  %v375_v13 = vld [vmem:[%s282_s28] sm:$0xff]  ;;  %v376_v43 = vld [vmem:[%s282_s28 + $0x8] sm:$0xff]  ;;  %s3287_s7 = smov 16   ;;  %s3288_s8 = smov 2  }
  0x56   : > { %456 = vperm.xlu2 %3020, %v3444_v7   ;;  %v379_v14 = vunpack.c.2.s8 %v375_v13  ;;  %v3479_v16 = vld [vmem:[%s3402_s18] ss:$0 sm:$0xff]  ;;  %v377_v25 = vunpack.c.0.s8 %v375_v13  ;;  %v380_v31 = vunpack.c.3.s8 %v375_v13  ;;  %v378_v33 = vunpack.c.1.s8 %v375_v13  ;;  %v3510_v1 = vld [vmem:[%s3402_s18 + $0x1] ss:$0 sm:$0xff]  ;;  %s3290_s10 = smov 3   ;;  %p2932_p0 = scmp.ne.s32.totalorder %s3258_s20, 1 }
  0x57   : > { %v382_v46 = vunpack.c.1.s8 %v376_v43  ;;  %v381_v48 = vunpack.c.0.s8 %v376_v43  ;;  %v383_v51 = vunpack.c.2.s8 %v376_v43 }
  0x58   : > { %v387_v15 = vcvt.s32.f32 %v379_v14  ;;  %v385_v29 = vcvt.s32.f32 %v377_v25  ;;  %v388_v37 = vcvt.s32.f32 %v380_v31  ;;  %v386_v41 = vcvt.s32.f32 %v378_v33 }
  0x59   : > { %v390_v55 = vcvt.s32.f32 %v382_v46  ;;  %v389_v59 = vcvt.s32.f32 %v381_v48  ;;  %v391_v63 = vcvt.s32.f32 %v383_v51  ;;  %v384_v14 = vunpack.c.3.s8 %v376_v43 }
  0x5a   : > { %v2894_v17 = vadd.f32 -1.0, %v387_v15  ;;  %v2892_v30 = vadd.f32 -1.0, %v385_v29  ;;  %v2895_v45 = vadd.f32 -1.0, %v388_v37  ;;  %v2893_v50 = vadd.f32 -1.0, %v386_v41 }
  0x5b   : > { %v2897_v13 = vadd.f32 -1.0, %v390_v55  ;;  %v392_v29 = vcvt.s32.f32 %v384_v14 }
  0x5c   : > { %900 = vperm.xlu0 %3022, %v3448_v8   ;;  %451 = vperm.xlu1 %3019, %v3451_v9   ;;  %v3484_v21 = vmul.f32 1e+30, %v2894_v17  ;;  %v3493_v36 = vmul.f32 1e+30, %v2892_v30  ;;  %v3504_v54 = vmul.f32 1e+30, %v2895_v45 }
  0x5d   : > { %v3507_v62 = vmul.f32 1e+30, %v2893_v50  ;;  %v2896_v17 = vadd.f32 -1.0, %v389_v59  ;;  %v2899_v46 = vadd.f32 -1.0, %v392_v29 }
  0x5e   : > { %461 = vperm.xlu2 %3020, %v3454_v10   ;;  %4898 = vst [vmem:[#allocation7_spill] sm:$0xff] %v3493_v36 }
  0x5f   : > { %4899 = vst [vmem:[#allocation8_spill] sm:$0xff] %v3504_v54  ;;  %v3545_v50 = vmul.f32 1e+30, %v2899_v46  ;;  %v3611_v46 = vld [vmem:[#allocation2] sm:$0xff] }
  0x60   : > { %4900 = vst [vmem:[#allocation9_spill] sm:$0xff] %v3507_v62 }
  0x61   : > { %4904 = vst [vmem:[#allocation13_spill] sm:$0xff] %v3545_v50 }
  0x64   : > { %3024 = vset.pattern.permute.xlu0 %v4856_v6  ;;  %471 = vperm.xlu1 %3019, %v432_v11  }
  0x65   : > { %436 = vperm.xlu0 %3024, %v3461_v12  }
  0x66   : > { %3023 = vset.pattern.permute.xlu2 %v4862_v5 }
  0x67   : > { %880 = vperm.xlu2 %3023, %v3436_v4  }
  0x6c   : > { %3021 = vset.pattern.permute.xlu1 %v4862_v5 }
  0x6d   : > { %441 = vperm.xlu0 %3024, %v3433_v3   ;;  %870 = vperm.xlu1 %3021, %v3461_v12  }
  0x6f   : > { %890 = vperm.xlu2 %3023, %v3444_v7  }
  0x75   : > { %466 = vperm.xlu0 %3024, %v3448_v8   ;;  %885 = vperm.xlu1 %3021, %v3451_v9  }
  0x77   : > { %905 = vperm.xlu2 %3023, %v432_v11  }
  0x7d   : > { %895 = vperm.xlu1 %3021, %v3454_v10  }
  0x7f   : > { %3026 = vset.pattern.permute.xlu2 %v4856_v6 }
  0x85   : > { %3025 = vset.pattern.permute.xlu1 %v4856_v6 }
  0xb0   : > { %v457_v27 = vpop.permute.xlu2 %456 }
  0xb1   : > { %v479_v60 = vadd.f32 %v3479_v16, %v457_v27 }
  0xb3   : > { %vm487_vm6 = vcmp.gt.f32.partialorder %v479_v60, 0.0 }
  0xb8   : > { %v462_v35 = vpop.permute.xlu2 %461 }
  0xb9   : > { %v480_v53 = vadd.f32 %v3479_v16, %v462_v35 }
  0xbb   : > { %v496_v15 = vmul.f32 0.2, %v480_v53  ;;  %vm488_vm5 = vcmp.gt.f32.partialorder %v480_v53, 0.0 }
  0xbd   : > { %v504_v31 = vsel %vm488_vm5, %v480_v53, %v496_v15 }
  0xc1   : > { %v881_v61 = vpop.permute.xlu2 %880 }
  0xc2   : > { %v911_v51 = vadd.f32 %v3510_v1, %v881_v61 }
  0xc4   : > { %vm919_vm13 = vcmp.gt.f32.partialorder %v911_v51, 0.0 }
  0xc6   : > { %v3481_v18 = vpop.permute.xlu0 %875  ;;  %v447_v19 = vpop.permute.xlu1 %446 }
  0xc7   : > { %v477_v20 = vadd.f32 %v3479_v16, %v447_v19  ;;  %v495_v19 = vmul.f32 0.2, %v479_v60  ;;  %v910_v27 = vadd.f32 %v3510_v1, %v3481_v18 }
  0xc9   : > { %v493_v22 = vmul.f32 0.2, %v477_v20  ;;  %vm485_vm1 = vcmp.gt.f32.partialorder %v477_v20, 0.0  ;;  %v503_v35 = vsel %vm487_vm6, %v479_v60, %v495_v19  ;;  %v891_v41 = vpop.permute.xlu2 %890  ;;  %v926_v43 = vmul.f32 0.2, %v910_v27 }
  0xca   : > { %vm918_vm9 = vcmp.gt.f32.partialorder %v910_v27, 0.0  ;;  %v913_v48 = vadd.f32 %v3510_v1, %v891_v41  ;;  %v927_v60 = vmul.f32 0.2, %v911_v51 }
  0xcb   : > { %v501_v23 = vsel %vm485_vm1, %v477_v20, %v493_v22  ;;  %v2898_v22 = vadd.f32 -1.0, %v391_v63  ;;  %vm842_vm1 = vcmask 7168  }
  0xcc   : > { %v3487_v24 = vadd.f32 %v501_v23, %v3484_v21  ;;  %vm921_vm12 = vcmp.gt.f32.partialorder %v913_v48, 0.0  ;;  %v935_v19 = vsel %vm919_vm13, %v911_v51, %v927_v60  ;;  %v3639_v60 = vld [vmem:[#allocation2 + $0x20] sm:$0xff] }
  0xce   : > { %v3489_v26 = vpop.permute.xlu0 %900  ;;  %527 = vmax.xlane.f32.xlu1 %v3487_v24  ;;  %v452_v28 = vpop.permute.xlu1 %451 }
  0xcf   : > { %v478_v38 = vadd.f32 %v3479_v16, %v452_v28  ;;  %v3524_v28 = vmul.f32 1e+30, %v2897_v13  ;;  %v915_v13 = vadd.f32 %v3510_v1, %v3489_v26 }
  0xd1   : > { %v494_v47 = vmul.f32 0.2, %v478_v38  ;;  %vm486_vm3 = vcmp.gt.f32.partialorder %v478_v38, 0.0  ;;  %4901 = vst [vmem:[#allocation10_spill] sm:$0xff] %v3524_v28  ;;  %v3535_v18 = vadd.f32 %v504_v31, %v3524_v28  ;;  %v906_v63 = vpop.permute.xlu2 %905  ;;  %vm923_vm0 = vcmp.gt.f32.partialorder %v915_v13, 0.0 }
  0xd2   : > { %v916_v14 = vadd.f32 %v3510_v1, %v906_v63 }
  0xd3   : > { %v502_v57 = vsel %vm486_vm3, %v478_v38, %v494_v47 }
  0xd4   : > { %v3516_v11 = vadd.f32 %v502_v57, %v3504_v54  ;;  %v929_v57 = vmul.f32 0.2, %v913_v48  ;;  %vm924_vm15 = vcmp.gt.f32.partialorder %v916_v14, 0.0 }
  0xd6   : > { %v472_v39 = vpop.permute.xlu1 %471  ;;  %v937_v15 = vsel %vm921_vm12, %v913_v48, %v929_v57  ;;  %v3621_v48 = vld [vmem:[#allocation2 + $0x18] sm:$0xff]  ;;  %v3635_v57 = vld [vmem:[#allocation2 + $0x30] sm:$0xff] }
  0xd7   : > { %v437_v32 = vpop.permute.xlu0 %436  ;;  %v482_v33 = vadd.f32 %v3479_v16, %v472_v39 }
  0xd8   : > { %v475_v34 = vadd.f32 %v3479_v16, %v437_v32  ;;  %v3526_v32 = vmul.f32 1e+30, %v2896_v17 }
  0xd9   : > { %vm490_vm10 = vcmp.gt.f32.partialorder %v482_v33, 0.0 }
  0xda   : > { %v491_v40 = vmul.f32 0.2, %v475_v34  ;;  %vm483_vm2 = vcmp.gt.f32.partialorder %v475_v34, 0.0  ;;  %4902 = vst [vmem:[#allocation11_spill] sm:$0xff] %v3526_v32  ;;  %v3538_v45 = vadd.f32 %v503_v35, %v3526_v32  ;;  %v3589_v35 = vld [vmem:[%s3412_s29 + $0x8] sm:$0xff] }
  0xdc   : > { %v499_v42 = vsel %vm483_vm2, %v475_v34, %v491_v40  ;;  %v3529_v34 = vmul.f32 1e+30, %v2898_v22  ;;  %v3568_v22 = vadd.f32 %v937_v15, %v3526_v32  ;;  %vm1316_vm2 = vcmask 15368  }
  0xdd   : > { %v3499_v44 = vadd.f32 %v499_v42, %v3493_v36 }
  0xde   : > { %4903 = vst [vmem:[#allocation12_spill] sm:$0xff] %v3529_v34 }
  0xdf   : > { %v442_v49 = vpop.permute.xlu0 %441  ;;  %523 = vmax.xlane.f32.xlu2 %v3499_v44  ;;  %v871_v58 = vpop.permute.xlu1 %870 }
  0xe0   : > { %v476_v52 = vadd.f32 %v3479_v16, %v442_v49  ;;  %v909_v25 = vadd.f32 %v3510_v1, %v871_v58  ;;  %v934_v49 = vsel %vm918_vm9, %v910_v27, %v926_v43  ;;  %v3571_v27 = vadd.f32 %v935_v19, %v3484_v21  ;;  %v3659_v19 = vld [vmem:[#allocation2 + $0x38] sm:$0xff] }
  0xe2   : > { %v492_v56 = vmul.f32 0.2, %v476_v52  ;;  %vm484_vm4 = vcmp.gt.f32.partialorder %v476_v52, 0.0  ;;  %v925_v37 = vmul.f32 0.2, %v909_v25  ;;  %vm917_vm8 = vcmp.gt.f32.partialorder %v909_v25, 0.0 }
  0xe4   : > { %v500_v0 = vsel %vm484_vm4, %v476_v52, %v492_v56  ;;  %v933_v47 = vsel %vm917_vm8, %v909_v25, %v925_v37  ;;  %v3552_v56 = vadd.f32 %v934_v49, %v3507_v62  ;;  %v932_v25 = vmul.f32 0.2, %v916_v14  ;;  %v3594_v37 = vld [vmem:[%s3412_s29 + $0x10] sm:$0xff] }
  0xe5   : > { %v3513_v2 = vadd.f32 %v500_v0, %v3507_v62  ;;  %v3549_v52 = vadd.f32 %v933_v47, %v3493_v36  ;;  %v3619_v47 = vld [vmem:[#allocation2 + $0x8] sm:$0xff] }
  0xe7   : > { %v467_v20 = vpop.permute.xlu0 %466  ;;  %525 = vmax.xlane.f32.xlu0 %v3513_v2  ;;  %529 = vmax.xlane.f32.xlu2 %v3516_v11  ;;  %v886_v40 = vpop.permute.xlu1 %885 }
  0xe8   : > { %v481_v23 = vadd.f32 %v3479_v16, %v467_v20  ;;  %v498_v16 = vmul.f32 0.2, %v482_v33  ;;  %v912_v39 = vadd.f32 %v3510_v1, %v886_v40  ;;  %v3603_v40 = vld [vmem:[#allocation2 + $0x10] sm:$0xff] }
  0xea   : > { %v497_v30 = vmul.f32 0.2, %v481_v23  ;;  %vm489_vm7 = vcmp.gt.f32.partialorder %v481_v23, 0.0  ;;  %v506_v53 = vsel %vm490_vm10, %v482_v33, %v498_v16  ;;  %v928_v55 = vmul.f32 0.2, %v912_v39 }
  0xeb   : > { %vm920_vm11 = vcmp.gt.f32.partialorder %v912_v39, 0.0  ;;  %v3555_v58 = vadd.f32 %v506_v53, %v3545_v50  ;;  %vm809_vm10 = vcmask 64512  }
  0xec   : > { %v505_v38 = vsel %vm489_vm7, %v481_v23, %v497_v30  ;;  %v936_v61 = vsel %vm920_vm11, %v912_v39, %v928_v55  ;;  %v931_v23 = vmul.f32 0.2, %v915_v13  ;;  %vm1790_vm11 = vcmask 23568  }
  0xed   : > { %v3532_v42 = vadd.f32 %v505_v38, %v3529_v34  ;;  %v3565_v17 = vadd.f32 %v936_v61, %v3504_v54  ;;  %v3599_v38 = vld [vmem:[%s3412_s29] sm:$0xff] }
  0xee   : > { %v939_v29 = vsel %vm923_vm0, %v915_v13, %v931_v23  ;;  %vm2264_vm0 = vcmask 31768  }
  0xef   : > { %535 = vmax.xlane.f32.xlu1 %v3532_v42  ;;  %533 = vmax.xlane.f32.xlu0 %v3535_v18  ;;  %v896_v59 = vpop.permute.xlu1 %895  ;;  %v3583_v33 = vadd.f32 %v939_v29, %v3529_v34 }
  0xf0   : > { %531 = vmax.xlane.f32.xlu2 %v3538_v45  ;;  %v914_v0 = vadd.f32 %v3510_v1, %v896_v59  ;;  %v940_v1 = vsel %vm924_vm15, %v916_v14, %v932_v25  ;;  %v3637_v59 = vld [vmem:[#allocation2 + $0x28] sm:$0xff] }
  0xf1   : > { %v3580_v31 = vadd.f32 %v940_v1, %v3545_v50 }
  0xf2   : > { %v930_v20 = vmul.f32 0.2, %v914_v0  ;;  %vm922_vm14 = vcmp.gt.f32.partialorder %v914_v0, 0.0 }
  0xf4   : > { %v938_v26 = vsel %vm922_vm14, %v914_v0, %v930_v20 }
  0xf5   : > { %v3577_v30 = vadd.f32 %v938_v26, %v3524_v28 }
  0xf7   : > { %959 = vmax.xlane.f32.xlu0 %v3552_v56  ;;  %957 = vmax.xlane.f32.xlu1 %v3549_v52 }
  0xf8   : > { %537 = vmax.xlane.f32.xlu2 %v3555_v58 }
  0xff   : > { %965 = vmax.xlane.f32.xlu0 %v3568_v22  ;;  %963 = vmax.xlane.f32.xlu1 %v3565_v17 }
 0x100   : > { %961 = vmax.xlane.f32.xlu2 %v3571_v27 }
 0x107   : > { %971 = vmax.xlane.f32.xlu0 %v3580_v31  ;;  %969 = vmax.xlane.f32.xlu1 %v3583_v33 }
 0x108   : > { %967 = vmax.xlane.f32.xlu2 %v3577_v30 }
 0x11b   : > { %1077 = vrot.lane.b32.xlu0 %v3594_v37, %s3279_s0 }
 0x120   : > { %1075 = vrot.lane.b32.xlu2 %v3589_v35, %s3279_s0  ;;  %1073 = vrot.lane.b32.xlu1 %v3599_v38, %s3279_s0 }
 0x141   : > { %v528_v41 = vpop.xlane.xlu1 %527 }
 0x142   : > { %v3606_v43 = vmax.f32 %v3603_v40, %v528_v41 }
 0x144   : > { %853 = vst.msk [vmem:[#allocation2 + $0x10] sm:$0xff] %vm842_vm1, %v3606_v43  ;;  %583 = vperm.xlu2 %3026, %v3606_v43  }
 0x152   : > { %v524_v16 = vpop.xlane.xlu2 %523 }
 0x153   : > { %v3614_v39 = vmax.f32 %v3611_v46, %v524_v16 }
 0x155   : > { %851 = vst.msk [vmem:[#allocation2] sm:$0xff] %vm842_vm1, %v3614_v39  ;;  %573 = vperm.xlu0 %3024, %v3614_v39  }
 0x15a   : > { %v526_v49 = vpop.xlane.xlu0 %525  ;;  %v530_v51 = vpop.xlane.xlu2 %529 }
 0x15b   : > { %v3624_v53 = vmax.f32 %v3619_v47, %v526_v49  ;;  %v3627_v55 = vmax.f32 %v3621_v48, %v530_v51 }
 0x15c   : > { %v3663_v26 = vld [vmem:[#allocation2] sm:$0xff] }
 0x15d   : > { %852 = vst.msk [vmem:[#allocation2 + $0x8] sm:$0xff] %vm842_vm1, %v3624_v53  ;;  %578 = vperm.xlu1 %3025, %v3624_v53   ;;  %588 = vperm.xlu0 %3024, %v3627_v55  }
 0x15e   : > { %854 = vst.msk [vmem:[#allocation2 + $0x18] sm:$0xff] %vm842_vm1, %v3627_v55 }
 0x162   : > { %v536_v63 = vpop.xlane.xlu1 %535  ;;  %v534_v61 = vpop.xlane.xlu0 %533 }
 0x163   : > { %v3642_v0 = vmax.f32 %v3635_v57, %v536_v63  ;;  %v3645_v13 = vmax.f32 %v3637_v59, %v534_v61  ;;  %v532_v14 = vpop.xlane.xlu2 %531 }
 0x164   : > { %v3648_v15 = vmax.f32 %v3639_v60, %v532_v14  ;;  %v3661_v20 = vld [vmem:[#allocation2 + $0x8] sm:$0xff] }
 0x165   : > { %857 = vst.msk [vmem:[#allocation2 + $0x30] sm:$0xff] %vm842_vm1, %v3642_v0  ;;  %603 = vperm.xlu2 %3026, %v3642_v0   ;;  %598 = vperm.xlu0 %3024, %v3645_v13   ;;  %v3686_v61 = vld [vmem:[#allocation2 + $0x18] sm:$0xff] }
 0x166   : > { %856 = vst.msk [vmem:[#allocation2 + $0x28] sm:$0xff] %vm842_vm1, %v3645_v13  ;;  %593 = vperm.xlu1 %3025, %v3648_v15  }
 0x167   : > { %855 = vst.msk [vmem:[#allocation2 + $0x20] sm:$0xff] %vm842_vm1, %v3648_v15 }
 0x16a   : > { %v960_v23 = vpop.xlane.xlu0 %959  ;;  %v958_v25 = vpop.xlane.xlu1 %957 }
 0x16b   : > { %v3666_v1 = vmax.f32 %v3661_v20, %v960_v23  ;;  %v3669_v29 = vmax.f32 %v3663_v26, %v958_v25  ;;  %v538_v41 = vpop.xlane.xlu2 %537  ;;  %v3694_v25 = vld [vmem:[#allocation2 + $0x10] sm:$0xff] }
 0x16c   : > { %v3672_v16 = vmax.f32 %v3659_v19, %v538_v41  ;;  %v3715_v34 = vld [vmem:[#allocation2 + $0x30] sm:$0xff] }
 0x16d   : > { %1326 = vst.msk [vmem:[#allocation2 + $0x8] sm:$0xff] %vm1316_vm2, %v3666_v1  ;;  %3027 = vset.pattern.permute.xlu2 %v4862_v5  ;;  %3029 = vset.pattern.permute.xlu0 %v4862_v5  ;;  %v3723_v32 = vld [vmem:[#allocation2 + $0x28] sm:$0xff] }
 0x16e   : > { %1325 = vst.msk [vmem:[#allocation2] sm:$0xff] %vm1316_vm2, %v3669_v29  ;;  %608 = vperm.xlu1 %3025, %v3672_v16   ;;  %1007 = vperm.xlu2 %3027, %v3669_v29   ;;  %v3684_v51 = vld [vmem:[#allocation2 + $0x20] sm:$0xff] }
 0x16f   : > { %858 = vst.msk [vmem:[#allocation2 + $0x38] sm:$0xff] %vm842_vm1, %v3672_v16 }
 0x172   : > { %v966_v49 = vpop.xlane.xlu0 %965  ;;  %v964_v63 = vpop.xlane.xlu1 %963 }
 0x173   : > { %v3689_v14 = vmax.f32 %v3684_v51, %v966_v49  ;;  %v3692_v23 = vmax.f32 %v3686_v61, %v964_v63  ;;  %v962_v41 = vpop.xlane.xlu2 %961  ;;  %v549_v49 = vsub.f32 %v3603_v40, %v3606_v43  ;;  %v548_v63 = vsub.f32 %v3619_v47, %v3624_v53 }
 0x174   : > { %v3697_v6 = vmax.f32 %v3694_v25, %v962_v41  ;;  %v551_v47 = vsub.f32 %v3639_v60, %v3648_v15  ;;  %v554_v60 = vsub.f32 %v3659_v19, %v3672_v16  ;;  %v3773_v19 = vld [vmem:[%s3412_s29 + $0x28] sm:$0xff]  ;;  %v553_v16 = vsub.f32 %v3635_v57, %v3642_v0 }
 0x175   : > { %1329 = vst.msk [vmem:[#allocation2 + $0x20] sm:$0xff] %vm1316_vm2, %v3689_v14  ;;  %v559_v62 = vmul.f32 1.442695, %v549_v49  ;;  %v557_v43 = vmul.f32 1.442695, %v548_v63  ;;  %v982_v57 = vsub.f32 %v3661_v20, %v3666_v1  ;;  %v4906_v0 = vmov 1  }
 0x176   : > { %1328 = vst.msk [vmem:[#allocation2 + $0x18] sm:$0xff] %vm1316_vm2, %v3692_v23  ;;  %3028 = vset.pattern.permute.xlu1 %v4862_v5  ;;  %1017 = vperm.xlu0 %3029, %v3697_v6   ;;  %v3713_v50 = vld [vmem:[#allocation2 + $0x38] sm:$0xff]  ;;  %v981_v20 = vsub.f32 %v3663_v26, %v3669_v29 }
 0x177   : > { %1327 = vst.msk [vmem:[#allocation2 + $0x10] sm:$0xff] %vm1316_vm2, %v3697_v6  ;;  %1022 = vperm.xlu2 %3027, %v3692_v23   ;;  %1012 = vperm.xlu1 %3028, %v3666_v1   ;;  %3052 = vpow2.f32 %v559_v62  ;;  %v3751_v62 = vld [vmem:[%s3412_s29 + $0x38] sm:$0xff]  ;;  %v985_v1 = vsub.f32 %v3684_v51, %v3689_v14 }
 0x178   : > { %3054 = vpow2.f32 %v557_v43  ;;  %687 = vmatpush.bf16.msra.mxu0 %v3751_v62  ;;  %v989_v26 = vmul.f32 1.442695, %v981_v20 }
 0x179   : > { %v997_v29 = vmul.f32 1.442695, %v985_v1 }
 0x17a   : > { %v972_v41 = vpop.xlane.xlu0 %971  ;;  %v970_v5 = vpop.xlane.xlu1 %969 }
 0x17b   : > { %v3718_v28 = vmax.f32 %v3713_v50, %v972_v41  ;;  %v3721_v54 = vmax.f32 %v3715_v34, %v970_v5  ;;  %v968_v36 = vpop.xlane.xlu2 %967  ;;  %v547_v5 = vsub.f32 %v3611_v46, %v3614_v39  ;;  %v563_v46 = vmul.f32 1.442695, %v551_v47 }
 0x17c   : > { %v3726_v40 = vmax.f32 %v3723_v32, %v968_v36  ;;  %v552_v36 = vsub.f32 %v3637_v59, %v3645_v13  ;;  %v4905_v41 = vmov 0   ;;  %v550_v59 = vsub.f32 %v3621_v48, %v3627_v55  ;;  %v3761_v13 = vld [vmem:[%s3412_s29 + $0x30] sm:$0xff] }
 0x17d   : > { %1332 = vst.msk [vmem:[#allocation2 + $0x38] sm:$0xff] %vm1316_vm2, %v3718_v28  ;;  %v555_v53 = vmul.f32 1.442695, %v547_v5  ;;  %v3743_v39 = vpop.eup %3052  ;;  %v569_v48 = vmul.f32 1.442695, %v554_v60  ;;  %688 = vmatpush.bf16.msra.mxu0 %v3761_v13 }
 0x17e   : > { %1331 = vst.msk [vmem:[#allocation2 + $0x30] sm:$0xff] %vm1316_vm2, %v3721_v54  ;;  %1027 = vperm.xlu0 %3029, %v3689_v14   ;;  %v565_v49 = vmul.f32 1.442695, %v552_v36  ;;  %v3746_v63 = vpop.eup %3054  ;;  %v561_v15 = vmul.f32 1.442695, %v550_v59  ;;  %v3781_v36 = vld [vmem:[%s3412_s29 + $0x20] sm:$0xff] }
 0x17f   : > { %1330 = vst.msk [vmem:[#allocation2 + $0x28] sm:$0xff] %vm1316_vm2, %v3726_v40  ;;  %1037 = vperm.xlu2 %3027, %v3721_v54   ;;  %1032 = vperm.xlu1 %3028, %v3726_v40   ;;  %3056 = vpow2.f32 %v555_v53  ;;  %v567_v47 = vmul.f32 1.442695, %v553_v16  ;;  %v3784_v53 = vld [vmem:[%s3412_s29 + $0x18] sm:$0xff]  ;;  %v991_v59 = vmul.f32 1.442695, %v982_v57 }
 0x180   : > { %3058 = vpow2.f32 %v565_v49 }
 0x181   : > { %3060 = vpow2.f32 %v563_v46  ;;  %689 = vmatpush.bf16.msra.mxu0 %v3773_v19 }
 0x182   : > { %3062 = vpow2.f32 %v561_v15 }
 0x183   : > { %3064 = vpow2.f32 %v569_v48 }
 0x184   : > { %3066 = vpow2.f32 %v567_v47 }
 0x185   : > { %v3763_v43 = vpop.eup %3056  ;;  %690 = vmatpush.bf16.msra.mxu0 %v3781_v36  ;;  %3068 = vpow2.f32 %v991_v59  ;;  %v4874_v59 = vmov 2  }
 0x186   : > { %1042 = vperm.xlu0 %3029, %v3718_v28   ;;  %v3766_v55 = vpop.eup %3058  ;;  %3070 = vpow2.f32 %v989_v26 }
 0x187   : > { %3031 = vset.pattern.permute.xlu2 %v4905_v41  ;;  %3032 = vset.pattern.permute.xlu1 %v4905_v41  ;;  %v3769_v5 = vpop.eup %3060  ;;  %3072 = vpow2.f32 %v997_v29 }
 0x188   : > { %760 = vperm.xlu2 %3031, %v3746_v63   ;;  %765 = vperm.xlu1 %3032, %v3743_v39   ;;  %v3787_v49 = vpop.eup %3062 }
 0x189   : > { %v3789_v46 = vpop.eup %3064  ;;  %691 = vmatpush.bf16.msra.mxu0 %v3784_v53 }
 0x18a   : > { %v3802_v60 = vpop.eup %3066 }
 0x18b   : > { %v3824_v14 = vpop.eup %3068 }
 0x18d   : > { %692 = vmatpush.bf16.msra.mxu0 %v3594_v37  ;;  %v983_v37 = vsub.f32 %v3694_v25, %v3697_v6  ;;  %v984_v6 = vsub.f32 %v3686_v61, %v3692_v23  ;;  %v3840_v25 = vpop.eup %3070  ;;  %v3874_v57 = vpop.permute.xlu0 %1077 }
 0x18e   : > { %3030 = vset.pattern.permute.xlu0 %v4905_v41  ;;  %v3280_v41 = vmov 1065369472  }
 0x18f   : > { %755 = vperm.xlu0 %3030, %v3763_v43   ;;  %716 = vmatpush.bf16.msra.mxu1 %v3280_v41  ;;  %v993_v51 = vmul.f32 1.442695, %v983_v37  ;;  %v995_v61 = vmul.f32 1.442695, %v984_v6 }
 0x190   : > { %775 = vperm.xlu2 %3031, %v3769_v5   ;;  %780 = vperm.xlu1 %3032, %v3766_v55  }
 0x191   : > { %1126 = vmatpush.bf16.msra.mxu3 %v3280_v41  ;;  %693 = vmatpush.bf16.msra.mxu0 %v3589_v35  ;;  %v988_v35 = vsub.f32 %v3713_v50, %v3718_v28  ;;  %3074 = vpow2.f32 %v993_v51  ;;  %v3842_v50 = vpop.permute.xlu2 %1075 }
 0x192   : > { %3076 = vpow2.f32 %v995_v61  ;;  %v3887_v20 = vpop.permute.xlu1 %1073 }
 0x193   : > { %717 = vmatpush.bf16.msra.mxu1 %v3280_v41  ;;  %v1003_v23 = vmul.f32 1.442695, %v988_v35 }
 0x195   : > { %1127 = vmatpush.bf16.msra.mxu3 %v3280_v41  ;;  %694 = vmatpush.bf16.msra.mxu0 %v3599_v38  ;;  %v986_v38 = vsub.f32 %v3723_v32, %v3726_v40  ;;  %3078 = vpow2.f32 %v1003_v23  ;;  %v987_v40 = vsub.f32 %v3715_v34, %v3721_v54 }
 0x197   : > { %770 = vperm.xlu0 %3030, %v3787_v49   ;;  %718 = vmatpush.bf16.msra.mxu1 %v3280_v41  ;;  %v999_v28 = vmul.f32 1.442695, %v986_v38  ;;  %v1001_v15 = vmul.f32 1.442695, %v987_v40 }
 0x198   : > { %790 = vperm.xlu2 %3031, %v3789_v46   ;;  %1079 = vrot.lane.b32.xlu1 %v3784_v53, %s3279_s0 }
 0x199   : > { %3034 = vset.pattern.permute.xlu1 %v4906_v0  ;;  %1128 = vmatpush.bf16.msra.mxu3 %v3280_v41  ;;  %3080 = vpow2.f32 %v999_v28 }
 0x19a   : > { %3082 = vpow2.f32 %v1001_v15 }
 0x19b   : > { %719 = vmatpush.bf16.msra.mxu1 %v3280_v41 }
 0x19d   : > { %1129 = vmatpush.bf16.msra.mxu3 %v3280_v41 }
 0x19e   : > { %v584_v34 = vpop.permute.xlu2 %583 }
 0x19f   : > { %785 = vperm.xlu0 %3030, %v3802_v60   ;;  %720 = vmatpush.bf16.msra.mxu1 %v3280_v41 }
 0x1a0   : > { %1081 = vrot.lane.b32.xlu2 %v3781_v36, %s3279_s0  ;;  %1085 = vrot.lane.b32.xlu1 %v3761_v13, %s3279_s0 }
 0x1a1   : > { %3035 = vset.pattern.permute.xlu2 %v4906_v0  ;;  %1130 = vmatpush.bf16.msra.mxu3 %v3280_v41 }
 0x1a3   : > { %721 = vmatpush.bf16.msra.mxu1 %v3280_v41 }
 0x1a5   : > { %1131 = vmatpush.bf16.msra.mxu3 %v3280_v41 }
 0x1a7   : > { %1083 = vrot.lane.b32.xlu0 %v3773_v19, %s3279_s0  ;;  %722 = vmatpush.bf16.msra.mxu1 %v3280_v41 }
 0x1a8   : > { %1087 = vrot.lane.b32.xlu2 %v3751_v62, %s3279_s0  ;;  %1170 = vperm.xlu1 %3034, %v3824_v14   ;;  %v3845_v62 = vpop.eup %3072 }
 0x1a9   : > { %3033 = vset.pattern.permute.xlu0 %v4906_v0  ;;  %v3848_v32 = vpop.eup %3074  ;;  %1132 = vmatpush.bf16.msra.mxu3 %v3280_v41 }
 0x1aa   : > { %v3857_v48 = vpop.eup %3076 }
 0x1ab   : > { %723 = vmatpush.bf16.msra.mxu1 %v3280_v41  ;;  %v3860_v16 = vpop.eup %3078 }
 0x1ac   : > { %v3864_v54 = vpop.eup %3080 }
 0x1ad   : > { %1133 = vmatpush.bf16.msra.mxu3 %v3280_v41  ;;  %v3872_v47 = vpop.eup %3082 }
 0x1af   : > { %1165 = vperm.xlu0 %3033, %v3840_v25   ;;  %1600 = vmatpush.bf16.msrb.mxu1 %v3280_v41 }
 0x1b0   : > { %1175 = vperm.xlu2 %3035, %v3848_v32   ;;  %1185 = vperm.xlu1 %3034, %v3845_v62  }
 0x1b1   : > { %2074 = vmatpush.bf16.msrb.mxu3 %v3280_v41 }
 0x1b3   : > { %1601 = vmatpush.bf16.msrb.mxu1 %v3280_v41 }
 0x1b5   : > { %2075 = vmatpush.bf16.msrb.mxu3 %v3280_v41 }
 0x1b7   : > { %1180 = vperm.xlu0 %3033, %v3857_v48   ;;  %1602 = vmatpush.bf16.msrb.mxu1 %v3280_v41 }
 0x1b8   : > { %1200 = vperm.xlu1 %3034, %v3860_v16   ;;  %1190 = vperm.xlu2 %3035, %v3864_v54  }
 0x1b9   : > { %2076 = vmatpush.bf16.msrb.mxu3 %v3280_v41 }
 0x1bb   : > { %1603 = vmatpush.bf16.msrb.mxu1 %v3280_v41 }
 0x1bd   : > { %2077 = vmatpush.bf16.msrb.mxu3 %v3280_v41 }
 0x1bf   : > { %1195 = vperm.xlu0 %3033, %v3872_v47   ;;  %v3878_v0 = vpop.permute.xlu2 %603  ;;  %1604 = vmatpush.bf16.msrb.mxu1 %v3280_v41 }
 0x1c0   : > { %3037 = vset.pattern.permute.xlu1 %v4874_v59  ;;  %3038 = vset.pattern.permute.xlu2 %v4874_v59 }
 0x1c1   : > { %1349 = vperm.xlu1 %3037, %v3433_v3   ;;  %1354 = vperm.xlu2 %3038, %v3436_v4  }
 0x1c2   : > { %2078 = vmatpush.bf16.msrb.mxu3 %v3280_v41 }
 0x1c3   : > { %1605 = vmatpush.bf16.msrb.mxu1 %v3280_v41 }
 0x1c6   : > { %2079 = vmatpush.bf16.msrb.mxu3 %v3280_v41 }
 0x1c7   : > { %3036 = vset.pattern.permute.xlu0 %v4874_v59  ;;  %v574_v1 = vpop.permute.xlu0 %573  ;;  %1606 = vmatpush.bf16.msrb.mxu1 %v3280_v41 }
 0x1c8   : > { %1344 = vperm.xlu0 %3036, %v3461_v12   ;;  %v1008_v37 = vpop.permute.xlu2 %1007  ;;  %v611_v3 = vsub.f32 %v3499_v44, %v574_v1 }
 0x1c9   : > { %1359 = vperm.xlu1 %3037, %v3451_v9   ;;  %1364 = vperm.xlu2 %3038, %v3444_v7   ;;  %v1045_v40 = vsub.f32 %v3549_v52, %v1008_v37 }
 0x1ca   : > { %v619_v4 = vmul.f32 1.442695, %v611_v3  ;;  %2080 = vmatpush.bf16.msrb.mxu3 %v3280_v41 }
 0x1cb   : > { %1607 = vmatpush.bf16.msrb.mxu1 %v3280_v41  ;;  %v1053_v3 = vmul.f32 1.442695, %v1045_v40 }
 0x1cc   : > { %3084 = vpow2.f32 %v619_v4 }
 0x1ce   : > { %2081 = vmatpush.bf16.msrb.mxu3 %v3280_v41 }
 0x1cf   : > { %v579_v26 = vpop.permute.xlu1 %578  ;;  %v589_v9 = vpop.permute.xlu0 %588 }
 0x1d0   : > { %v612_v29 = vsub.f32 %v3513_v2, %v579_v26  ;;  %1369 = vperm.xlu0 %3036, %v3454_v10   ;;  %v614_v2 = vsub.f32 %v3516_v11, %v589_v9  ;;  %v613_v10 = vsub.f32 %v3487_v24, %v584_v34 }
 0x1d1   : > { %v1023_v12 = vpop.permute.xlu2 %1022  ;;  %1374 = vperm.xlu1 %3037, %v3448_v8  }
 0x1d2   : > { %v621_v7 = vmul.f32 1.442695, %v612_v29  ;;  %v3085_v51 = vpop.eup %3084  ;;  %v625_v8 = vmul.f32 1.442695, %v614_v2  ;;  %v623_v61 = vmul.f32 1.442695, %v613_v10 }
 0x1d4   : > { %3086 = vpow2.f32 %v621_v7 }
 0x1d5   : > { %3088 = vpow2.f32 %v625_v8 }
 0x1d6   : > { %3090 = vpow2.f32 %v623_v61 }
 0x1d7   : > { %v599_v23 = vpop.permute.xlu0 %598  ;;  %3092 = vpow2.f32 %v1053_v3 }
 0x1d8   : > { %v594_v44 = vpop.permute.xlu1 %593  ;;  %v616_v11 = vsub.f32 %v3535_v18, %v599_v23 }
 0x1d9   : > { %v3905_v6 = vpop.permute.xlu2 %1037  ;;  %v615_v24 = vsub.f32 %v3538_v45, %v594_v44 }
 0x1da   : > { %v3087_v35 = vpop.eup %3086 }
 0x1db   : > { %v635_v38 = vpack.c.bf16 %v3087_v35, %v3085_v51  ;;  %v3089_v15 = vpop.eup %3088  ;;  %v629_v51 = vmul.f32 1.442695, %v616_v11  ;;  %v627_v52 = vmul.f32 1.442695, %v615_v24 }
 0x1dc   : > { %v3091_v26 = vpop.eup %3090 }
 0x1dd   : > { %695 = vmatmul.bf16.vlgmr.msra.gmra.mxu0 %v635_v38  ;;  %724 = vmatmul.bf16.vlgmr.msra.gmra.mxu1 %v635_v38  ;;  %v636_v7 = vpack.c.bf16 %v3089_v15, %v3091_v26  ;;  %v3093_v2 = vpop.eup %3092  ;;  %v1048_v38 = vsub.f32 %v3565_v17, %v1023_v12 }
 0x1df   : > { %v1059_v40 = vmul.f32 1.442695, %v1048_v38 }
 0x1e0   : > { %v609_v28 = vpop.permute.xlu1 %608 }
 0x1e1   : > { %v618_v15 = vsub.f32 %v3555_v58, %v609_v28 }
 0x1e2   : > { %v3909_v41 = vpop.permute.xlu2 %760 }
 0x1e3   : > { %v633_v17 = vmul.f32 1.442695, %v618_v15 }
 0x1e8   : > { %v1018_v1 = vpop.permute.xlu0 %1017 }
 0x1e9   : > { %v1013_v4 = vpop.permute.xlu1 %1012 }
 0x1ea   : > { %v1046_v34 = vsub.f32 %v3552_v56, %v1013_v4  ;;  %v3915_v29 = vpop.permute.xlu2 %775  ;;  %v1047_v56 = vsub.f32 %v3571_v27, %v1018_v1  ;;  %v617_v27 = vsub.f32 %v3532_v42, %v3878_v0 }
 0x1ec   : > { %v1055_v9 = vmul.f32 1.442695, %v1046_v34  ;;  %v1057_v61 = vmul.f32 1.442695, %v1047_v56  ;;  %v631_v12 = vmul.f32 1.442695, %v617_v27 }
 0x1ed   : > { %700 = vmatmul.bf16.gmra.mxu0 %v636_v7  ;;  %729 = vmatmul.bf16.gmra.mxu1 %v636_v7 }
 0x1ee   : > { %3094 = vpow2.f32 %v1055_v9 }
 0x1ef   : > { %3096 = vpow2.f32 %v629_v51 }
 0x1f0   : > { %v1028_v37 = vpop.permute.xlu0 %1027  ;;  %3098 = vpow2.f32 %v627_v52 }
 0x1f1   : > { %v1033_v35 = vpop.permute.xlu1 %1032  ;;  %3100 = vpow2.f32 %v1057_v61  ;;  %v1049_v28 = vsub.f32 %v3568_v22, %v1028_v37 }
 0x1f2   : > { %v3917_v18 = vpop.permute.xlu2 %790  ;;  %3102 = vpow2.f32 %v1059_v40  ;;  %v1050_v42 = vsub.f32 %v3577_v30, %v1033_v35  ;;  %v1051_v40 = vsub.f32 %v3583_v33, %v3905_v6 }
 0x1f3   : > { %3104 = vpow2.f32 %v633_v17  ;;  %v1061_v7 = vmul.f32 1.442695, %v1049_v28 }
 0x1f4   : > { %v3095_v45 = vpop.eup %3094  ;;  %3106 = vpow2.f32 %v631_v12  ;;  %v1063_v51 = vmul.f32 1.442695, %v1050_v42  ;;  %v1065_v17 = vmul.f32 1.442695, %v1051_v40 }
 0x1f5   : > { %v3920_v44 = vpack.c.bf16 %v3095_v45, %v3093_v2  ;;  %v3097_v10 = vpop.eup %3096  ;;  %3108 = vpow2.f32 %v1061_v7 }
 0x1f6   : > { %v3099_v8 = vpop.eup %3098  ;;  %3110 = vpow2.f32 %v1063_v51 }
 0x1f7   : > { %1134 = vmatmul.bf16.vlgmr.msra.gmra.mxu3 %v3920_v44  ;;  %v637_v4 = vpack.c.bf16 %v3097_v10, %v3099_v8  ;;  %v3101_v26 = vpop.eup %3100 }
 0x1f8   : > { %v1043_v23 = vpop.permute.xlu0 %1042  ;;  %v3103_v34 = vpop.eup %3102 }
 0x1f9   : > { %v3935_v0 = vpack.c.bf16 %v3103_v34, %v3101_v26  ;;  %v3105_v9 = vpop.eup %3104  ;;  %v1052_v8 = vsub.f32 %v3580_v31, %v1043_v23 }
 0x1fa   : > { %v3925_v3 = vpop.permute.xlu1 %765  ;;  %v1082_v11 = vpop.permute.xlu2 %1081 }
 0x1fb   : > { %v3107_v2 = vpop.eup %3106  ;;  %v1067_v15 = vmul.f32 1.442695, %v1052_v8 }
 0x1fc   : > { %v638_v22 = vpack.c.bf16 %v3105_v9, %v3107_v2  ;;  %v3109_v30 = vpop.eup %3108 }
 0x1fd   : > { %705 = vmatmul.bf16.gmra.mxu0 %v637_v4  ;;  %734 = vmatmul.bf16.gmra.mxu1 %v637_v4  ;;  %v3111_v35 = vpop.eup %3110  ;;  %v3953_v4 = vld [vmem:[%s3402_s18 + $0x2] ss:$0 sm:$0xff]  ;;  %3112 = vpow2.f32 %v1067_v15 }
 0x1fe   : > { %v3947_v61 = vpack.c.bf16 %v3111_v35, %v3109_v30  ;;  %3114 = vpow2.f32 %v1065_v17 }
 0x201   : > { %v3929_v1 = vpop.permute.xlu0 %755 }
 0x202   : > { %v3931_v24 = vpop.permute.xlu1 %780  ;;  %v1088_v58 = vpop.permute.xlu2 %1087 }
 0x203   : > { %1097 = vmatpush.bf16.msra.mxu2 %v1088_v58  ;;  %v3113_v28 = vpop.eup %3112 }
 0x204   : > { %v3115_v42 = vpop.eup %3114 }
 0x205   : > { %v3966_v7 = vpack.c.bf16 %v3113_v28, %v3115_v42  ;;  %v4909_v28 = vld [vmem:[#allocation11_spill] sm:$0xff] }
 0x207   : > { %1139 = vmatmul.bf16.gmra.mxu3 %v3935_v0 }
 0x209   : > { %v3938_v52 = vpop.permute.xlu0 %770 }
 0x20a   : > { %v1080_v45 = vpop.permute.xlu1 %1079  ;;  %v3940_v56 = vpop.permute.xlu2 %1175 }
 0x20d   : > { %710 = vmatmul.bf16.gmra.mxu0 %v638_v22  ;;  %739 = vmatmul.bf16.gmra.mxu1 %v638_v22 }
 0x211   : > { %v3942_v37 = vpop.permute.xlu0 %785 }
 0x212   : > { %v1086_v38 = vpop.permute.xlu1 %1085  ;;  %v3944_v10 = vpop.permute.xlu2 %1190 }
 0x213   : > { %1098 = vmatpush.bf16.msra.mxu2 %v1086_v38  ;;  %v4907_v38 = vld [vmem:[#allocation9_spill] sm:$0xff] }
 0x217   : > { %1144 = vmatmul.bf16.gmra.mxu3 %v3947_v61 }
 0x219   : > { %v1084_v27 = vpop.permute.xlu0 %1083 }
 0x21a   : > { %v3955_v12 = vpop.permute.xlu1 %1170  ;;  %1099 = vmatpush.bf16.msra.mxu2 %v1084_v27 }
 0x21b   : > { %v1355_v26 = vpop.permute.xlu2 %1354 }
 0x21c   : > { %v1385_v58 = vadd.f32 %v3953_v4, %v1355_v26 }
 0x21e   : > { %v1401_v31 = vmul.f32 0.2, %v1385_v58  ;;  %1100 = vmatpush.bf16.msra.mxu2 %v1082_v11  ;;  %vm1393_vm3 = vcmp.gt.f32.partialorder %v1385_v58, 0.0 }
 0x220   : > { %v1409_v23 = vsel %vm1393_vm3, %v1385_v58, %v1401_v31  ;;  %v4908_v31 = vld [vmem:[#allocation7_spill] sm:$0xff] }
 0x221   : > { %v3958_v33 = vpop.permute.xlu0 %1165  ;;  %v3961_v6 = vadd.f32 %v1409_v23, %v3484_v21 }
 0x222   : > { %v3963_v34 = vpop.permute.xlu1 %1185  ;;  %1101 = vmatpush.bf16.msra.mxu2 %v1080_v45 }
 0x223   : > { %1435 = vmax.xlane.f32.xlu2 %v3961_v6  ;;  %v1365_v45 = vpop.permute.xlu2 %1364 }
 0x226   : > { %1102 = vmatpush.bf16.msra.mxu2 %v3874_v57  ;;  %v1387_v57 = vadd.f32 %v3953_v4, %v1365_v45 }
 0x227   : > { %1149 = vmatmul.bf16.gmra.mxu3 %v3966_v7 }
 0x228   : > { %v1403_v40 = vmul.f32 0.2, %v1387_v57  ;;  %vm1395_vm5 = vcmp.gt.f32.partialorder %v1387_v57, 0.0 }
 0x229   : > { %v3970_v11 = vpop.permute.xlu0 %1180 }
 0x22a   : > { %v3972_v9 = vpop.permute.xlu1 %1200  ;;  %1103 = vmatpush.bf16.msra.mxu2 %v3842_v50  ;;  %v1411_v17 = vsel %vm1395_vm5, %v1387_v57, %v1403_v40  ;;  %v4910_v40 = vld [vmem:[#allocation8_spill] sm:$0xff] }
 0x22b   : > { %v3992_v42 = vadd.f32 %v1411_v17, %v4909_v28 }
 0x22e   : > { %1104 = vmatpush.bf16.msra.mxu2 %v3887_v20 }
 0x231   : > { %v3976_v51 = vpop.permute.xlu0 %1195  ;;  %1105 = vmatmul.bf16.vlgmr.msra.gmra.mxu2 %v3920_v44 }
 0x233   : > { %v1350_v2 = vpop.permute.xlu1 %1349 }
 0x234   : > { %v1384_v22 = vadd.f32 %v3953_v4, %v1350_v2 }
 0x236   : > { %v1400_v30 = vmul.f32 0.2, %v1384_v22  ;;  %vm1392_vm4 = vcmp.gt.f32.partialorder %v1384_v22, 0.0 }
 0x238   : > { %v1408_v35 = vsel %vm1392_vm4, %v1384_v22, %v1400_v30  ;;  %vm1251_vm4 = vcmask 130112  }
 0x239   : > { %v3982_v8 = vadd.f32 %v1408_v35, %v4907_v38 }
 0x23a   : > { %v1345_v50 = vpop.permute.xlu0 %1344 }
 0x23b   : > { %v1383_v20 = vadd.f32 %v3953_v4, %v1345_v50  ;;  %1433 = vmax.xlane.f32.xlu1 %v3982_v8  ;;  %v1360_v15 = vpop.permute.xlu1 %1359 }
 0x23c   : > { %v1386_v44 = vadd.f32 %v3953_v4, %v1360_v15  ;;  %v4911_v15 = vld [vmem:[#allocation10_spill] sm:$0xff] }
 0x23d   : > { %v1399_v27 = vmul.f32 0.2, %v1383_v20  ;;  %vm1391_vm6 = vcmp.gt.f32.partialorder %v1383_v20, 0.0 }
 0x23e   : > { %v1402_v58 = vmul.f32 0.2, %v1386_v44  ;;  %vm1394_vm7 = vcmp.gt.f32.partialorder %v1386_v44, 0.0 }
 0x23f   : > { %v1407_v26 = vsel %vm1391_vm6, %v1383_v20, %v1399_v27 }
 0x240   : > { %v3988_v23 = vadd.f32 %v1407_v26, %v4908_v31  ;;  %v1410_v22 = vsel %vm1394_vm7, %v1386_v44, %v1402_v58  ;;  %v4912_v44 = vld [vmem:[#allocation12_spill] sm:$0xff]  ;;  %v745_v58 = vld [vmem:[#allocation4] sm:$0xff] }
 0x241   : > { %1110 = vmatmul.bf16.gmra.mxu2 %v3935_v0  ;;  %v3999_v50 = vadd.f32 %v1410_v22, %v4910_v40 }
 0x242   : > { %1431 = vmax.xlane.f32.xlu0 %v3988_v23  ;;  %v1370_v2 = vpop.permute.xlu0 %1369 }
 0x243   : > { %v1388_v45 = vadd.f32 %v3953_v4, %v1370_v2  ;;  %1439 = vmax.xlane.f32.xlu1 %v3992_v42  ;;  %v1375_v30 = vpop.permute.xlu1 %1374  ;;  %v818_v2 = vld [vmem:[#allocation3] sm:$0xff] }
 0x244   : > { %v1389_v57 = vadd.f32 %v3953_v4, %v1375_v30  ;;  %v826_v22 = vmul.f32 %v3763_v43, %v818_v2 }
 0x245   : > { %v1404_v35 = vmul.f32 0.2, %v1388_v45  ;;  %vm1396_vm8 = vcmp.gt.f32.partialorder %v1388_v45, 0.0 }
 0x246   : > { %v1405_v0 = vmul.f32 0.2, %v1389_v57  ;;  %vm1397_vm9 = vcmp.gt.f32.partialorder %v1389_v57, 0.0 }
 0x247   : > { %v1412_v20 = vsel %vm1396_vm8, %v1388_v45, %v1404_v35  ;;  %v793_v45 = vmul.f32 %v3929_v1, %v745_v58  ;;  %vm2199_vm8 = vcmask 261312  }
 0x248   : > { %v4002_v27 = vadd.f32 %v1412_v20, %v4911_v15  ;;  %v1413_v17 = vsel %vm1397_vm9, %v1389_v57, %v1405_v0  ;;  %v746_v57 = vld [vmem:[#allocation4 + $0x8] sm:$0xff] }
 0x249   : > { %v4007_v26 = vadd.f32 %v1413_v17, %v4912_v44  ;;  %v819_v0 = vld [vmem:[#allocation3 + $0x8] sm:$0xff]  ;;  %v794_v17 = vmul.f32 %v3909_v41, %v746_v57  ;;  %v748_v57 = vld [vmem:[#allocation4 + $0x18] sm:$0xff] }
 0x24a   : > { %1437 = vmax.xlane.f32.xlu0 %v3999_v50  ;;  %1441 = vmax.xlane.f32.xlu2 %v4002_v27  ;;  %v827_v1 = vmul.f32 %v3746_v63, %v819_v0  ;;  %v821_v0 = vld [vmem:[#allocation3 + $0x18] sm:$0xff] }
 0x251   : > { %1115 = vmatmul.bf16.gmra.mxu2 %v3947_v61  ;;  %v4016_v61 = vld [vmem:[%s3397_s9 + $0x38] sm:$0xff] }
 0x252   : > { %1443 = vmax.xlane.f32.xlu0 %v4007_v26 }
 0x25a   : > { %v696_v30 = vpop.f32.mrf.mxu0  ;;  %v725_v35 = vpop.f32.mrf.mxu1 }
 0x25b   : > { %v801_v20 = vadd.f32 %v793_v45, %v696_v30  ;;  %v834_v59 = vadd.f32 %v826_v22, %v725_v35  ;;  %v747_v22 = vld [vmem:[#allocation4 + $0x10] sm:$0xff] }
 0x25c   : > { %v795_v30 = vmul.f32 %v3925_v3, %v747_v22 }
 0x25d   : > { %810 = vst.msk [vmem:[#allocation4] sm:$0xff] %vm809_vm10, %v801_v20 }
 0x25e   : > { %843 = vst.msk [vmem:[#allocation3] sm:$0xff] %vm842_vm1, %v834_v59  ;;  %v820_v59 = vld [vmem:[#allocation3 + $0x10] sm:$0xff] }
 0x25f   : > { %v828_v41 = vmul.f32 %v3743_v39, %v820_v59  ;;  %v749_v39 = vld [vmem:[#allocation4 + $0x20] sm:$0xff] }
 0x260   : > { %v797_v22 = vmul.f32 %v3915_v29, %v749_v39 }
 0x261   : > { %1120 = vmatmul.bf16.gmra.mxu2 %v3966_v7 }
 0x262   : > { %1379 = vperm.xlu2 %3038, %v4016_v61   ;;  %v698_v43 = vpop.f32.mrf.mxu0  ;;  %v727_v58 = vpop.f32.mrf.mxu1 }
 0x263   : > { %v802_v2 = vadd.f32 %v794_v17, %v698_v43  ;;  %v835_v45 = vadd.f32 %v827_v1, %v727_v58  ;;  %v796_v17 = vmul.f32 %v3938_v52, %v748_v57  ;;  %v829_v1 = vmul.f32 %v3787_v49, %v821_v0  ;;  %v750_v49 = vld [vmem:[#allocation4 + $0x28] sm:$0xff] }
 0x265   : > { %811 = vst.msk [vmem:[#allocation4 + $0x8] sm:$0xff] %vm809_vm10, %v802_v2 }
 0x266   : > { %844 = vst.msk [vmem:[#allocation3 + $0x8] sm:$0xff] %vm842_vm1, %v835_v45  ;;  %v822_v45 = vld [vmem:[#allocation3 + $0x20] sm:$0xff] }
 0x26a   : > { %v701_v35 = vpop.f32.mrf.mxu0  ;;  %v730_v7 = vpop.f32.mrf.mxu1 }
 0x26b   : > { %v803_v20 = vadd.f32 %v795_v30, %v701_v35  ;;  %v836_v63 = vadd.f32 %v828_v41, %v730_v7  ;;  %v830_v30 = vmul.f32 %v3769_v5, %v822_v45  ;;  %v823_v7 = vld [vmem:[#allocation3 + $0x28] sm:$0xff]  ;;  %v751_v5 = vld [vmem:[#allocation4 + $0x30] sm:$0xff]  ;;  %v825_v45 = vld [vmem:[#allocation3 + $0x38] sm:$0xff] }
 0x26c   : > { %v831_v57 = vmul.f32 %v3766_v55, %v823_v7  ;;  %v752_v55 = vld [vmem:[#allocation4 + $0x38] sm:$0xff] }
 0x26d   : > { %812 = vst.msk [vmem:[#allocation4 + $0x10] sm:$0xff] %vm809_vm10, %v803_v20  ;;  %v798_v20 = vmul.f32 %v3931_v24, %v750_v49 }
 0x26e   : > { %845 = vst.msk [vmem:[#allocation3 + $0x10] sm:$0xff] %vm842_vm1, %v836_v63 }
 0x272   : > { %v703_v43 = vpop.f32.mrf.mxu0  ;;  %v732_v58 = vpop.f32.mrf.mxu1 }
 0x273   : > { %v804_v2 = vadd.f32 %v796_v17, %v703_v43  ;;  %v837_v3 = vadd.f32 %v829_v1, %v732_v58  ;;  %v824_v1 = vld [vmem:[#allocation3 + $0x30] sm:$0xff]  ;;  %v799_v43 = vmul.f32 %v3942_v37, %v751_v5 }
 0x275   : > { %813 = vst.msk [vmem:[#allocation4 + $0x18] sm:$0xff] %vm809_vm10, %v804_v2  ;;  %v832_v2 = vmul.f32 %v3802_v60, %v824_v1  ;;  %v4048_v60 = vld [vmem:[#allocation2 + $0x10] sm:$0xff] }
 0x276   : > { %846 = vst.msk [vmem:[#allocation3 + $0x18] sm:$0xff] %vm842_vm1, %v837_v3 }
 0x277   : > { %4913 = vst [vmem:[#allocation9_spill] sm:$0xff] %v4048_v60 }
 0x27a   : > { %v706_v59 = vpop.f32.mrf.mxu0  ;;  %v735_v35 = vpop.f32.mrf.mxu1 }
 0x27b   : > { %v805_v41 = vadd.f32 %v797_v22, %v706_v59  ;;  %v838_v52 = vadd.f32 %v830_v30, %v735_v35  ;;  %v800_v22 = vmul.f32 %v3917_v18, %v752_v55  ;;  %v833_v30 = vmul.f32 %v3789_v46, %v825_v45  ;;  %v4055_v18 = vld [vmem:[#allocation2 + $0x8] sm:$0xff] }
 0x27d   : > { %814 = vst.msk [vmem:[#allocation4 + $0x20] sm:$0xff] %vm809_vm10, %v805_v41 }
 0x27e   : > { %847 = vst.msk [vmem:[#allocation3 + $0x20] sm:$0xff] %vm842_vm1, %v838_v52 }
 0x282   : > { %v708_v63 = vpop.f32.mrf.mxu0  ;;  %v737_v17 = vpop.f32.mrf.mxu1 }
 0x283   : > { %v806_v0 = vadd.f32 %v798_v20, %v708_v63  ;;  %v839_v29 = vadd.f32 %v831_v57, %v737_v17  ;;  %v4065_v63 = vld [vmem:[#allocation2] sm:$0xff] }
 0x284   : > { %4915 = vst [vmem:[#allocation11_spill] sm:$0xff] %v4065_v63  ;;  %v4070_v17 = vld [vmem:[#allocation2 + $0x20] sm:$0xff] }
 0x285   : > { %815 = vst.msk [vmem:[#allocation4 + $0x28] sm:$0xff] %vm809_vm10, %v806_v0 }
 0x286   : > { %848 = vst.msk [vmem:[#allocation3 + $0x28] sm:$0xff] %vm842_vm1, %v839_v29 }
 0x28a   : > { %v711_v58 = vpop.f32.mrf.mxu0  ;;  %v740_v39 = vpop.f32.mrf.mxu1 }
 0x28b   : > { %v807_v3 = vadd.f32 %v799_v43, %v711_v58  ;;  %v840_v24 = vadd.f32 %v832_v2, %v740_v39  ;;  %v4084_v58 = vld [vmem:[#allocation2 + $0x18] sm:$0xff] }
 0x28c   : > { %4917 = vst [vmem:[#allocation10_spill] sm:$0xff] %v4084_v58 }
 0x28d   : > { %816 = vst.msk [vmem:[#allocation4 + $0x30] sm:$0xff] %vm809_vm10, %v807_v3  ;;  %v4086_v3 = vld [vmem:[#allocation2 + $0x28] sm:$0xff] }
 0x28e   : > { %849 = vst.msk [vmem:[#allocation3 + $0x30] sm:$0xff] %vm842_vm1, %v840_v24 }
 0x28f   : > { %4918 = vst [vmem:[#allocation12_spill] sm:$0xff] %v4086_v3 }
 0x292   : > { %v713_v59 = vpop.f32.mrf.mxu0  ;;  %v742_v35 = vpop.f32.mrf.mxu1 }
 0x293   : > { %v808_v41 = vadd.f32 %v800_v22, %v713_v59  ;;  %v841_v37 = vadd.f32 %v833_v30, %v742_v35  ;;  %v4104_v59 = vld [vmem:[#allocation2 + $0x30] sm:$0xff] }
 0x294   : > { %4921 = vst [vmem:[#allocation16_spill] sm:$0xff] %v4104_v59 }
 0x295   : > { %817 = vst.msk [vmem:[#allocation4 + $0x38] sm:$0xff] %vm809_vm10, %v808_v41 }
 0x296   : > { %850 = vst.msk [vmem:[#allocation3 + $0x38] sm:$0xff] %vm842_vm1, %v841_v37  ;;  %v1436_v52 = vpop.xlane.xlu2 %1435 }
 0x297   : > { %v4051_v49 = vmax.f32 %v4048_v60, %v1436_v52 }
 0x299   : > { %4914 = vst [vmem:[#allocation7_spill] sm:$0xff] %v4051_v49 }
 0x29a   : > { %1801 = vst.msk [vmem:[#allocation2 + $0x10] sm:$0xff] %vm1790_vm11, %v4051_v49 }
 0x2ae   : > { %v1434_v46 = vpop.xlane.xlu1 %1433 }
 0x2af   : > { %v4058_v7 = vmax.f32 %v4055_v18, %v1434_v46 }
 0x2b1   : > { %1800 = vst.msk [vmem:[#allocation2 + $0x8] sm:$0xff] %vm1790_vm11, %v4058_v7  ;;  %1486 = vperm.xlu0 %3036, %v4058_v7  }
 0x2b5   : > { %v1432_v57 = vpop.xlane.xlu0 %1431 }
 0x2b6   : > { %v4068_v0 = vmax.f32 %v4065_v63, %v1432_v57  ;;  %v1440_v29 = vpop.xlane.xlu1 %1439  ;;  %v1260_v63 = vld [vmem:[#allocation3] sm:$0xff] }
 0x2b7   : > { %v4073_v5 = vmax.f32 %v4070_v17, %v1440_v29  ;;  %v4923_v29 = vld [vmem:[#allocation13_spill] sm:$0xff] }
 0x2b8   : > { %4916 = vst [vmem:[#allocation8_spill] sm:$0xff] %v4068_v0  ;;  %1481 = vperm.xlu2 %3038, %v4068_v0  }
 0x2b9   : > { %1799 = vst.msk [vmem:[#allocation2] sm:$0xff] %vm1790_vm11, %v4068_v0 }
 0x2ba   : > { %1803 = vst.msk [vmem:[#allocation2 + $0x20] sm:$0xff] %vm1790_vm11, %v4073_v5 }
 0x2bd   : > { %v1438_v2 = vpop.xlane.xlu0 %1437  ;;  %v1442_v39 = vpop.xlane.xlu2 %1441 }
 0x2be   : > { %v4089_v24 = vmax.f32 %v4084_v58, %v1438_v2  ;;  %v4092_v55 = vmax.f32 %v4086_v3, %v1442_v39  ;;  %v4120_v39 = vld [vmem:[%s3412_s29 + $0x8] sm:$0xff] }
 0x2c0   : > { %4919 = vst [vmem:[#allocation14_spill] sm:$0xff] %v4089_v24  ;;  %1496 = vperm.xlu0 %3036, %v4089_v24   ;;  %1501 = vperm.xlu2 %3038, %v4073_v5  }
 0x2c1   : > { %4920 = vst [vmem:[#allocation15_spill] sm:$0xff] %v4092_v55 }
 0x2c2   : > { %1802 = vst.msk [vmem:[#allocation2 + $0x18] sm:$0xff] %vm1790_vm11, %v4089_v24 }
 0x2c3   : > { %1804 = vst.msk [vmem:[#allocation2 + $0x28] sm:$0xff] %vm1790_vm11, %v4092_v55 }
 0x2c5   : > { %v1444_v30 = vpop.xlane.xlu0 %1443  ;;  %v1380_v41 = vpop.permute.xlu2 %1379 }
 0x2c6   : > { %v4107_v35 = vmax.f32 %v4104_v59, %v1444_v30  ;;  %v1390_v37 = vadd.f32 %v3953_v4, %v1380_v41  ;;  %v4876_v4 = vmov 3   ;;  %v1807_v30 = vld [vmem:[%s3397_s9] sm:$0xff] }
 0x2c7   : > { %v4133_v41 = vld [vmem:[%s3412_s29] sm:$0xff] }
 0x2c8   : > { %4922 = vst [vmem:[#allocation17_spill] sm:$0xff] %v4107_v35  ;;  %v1406_v46 = vmul.f32 0.2, %v1390_v37  ;;  %1511 = vperm.xlu0 %3036, %v4107_v35   ;;  %vm1398_vm12 = vcmp.gt.f32.partialorder %v1390_v37, 0.0 }
 0x2c9   : > { %1805 = vst.msk [vmem:[#allocation2 + $0x30] sm:$0xff] %vm1790_vm11, %v4107_v35 }
 0x2ca   : > { %v1414_v57 = vsel %vm1398_vm12, %v1390_v37, %v1406_v46 }
 0x2cb   : > { %v4116_v2 = vadd.f32 %v1414_v57, %v4923_v29 }
 0x2cd   : > { %1445 = vmax.xlane.f32.xlu1 %v4116_v2 }
 0x2d0   : > { %1549 = vrot.lane.b32.xlu0 %v4120_v39, %s3282_s26 }
 0x2d1   : > { %3039 = vset.pattern.permute.xlu0 %v4876_v4 }
 0x2d8   : > { %1818 = vperm.xlu0 %3039, %v1807_v30  }
 0x2e0   : > { %1557 = vrot.lane.b32.xlu0 %v3773_v19, %s3282_s26 }
 0x2e6   : > { %1491 = vperm.xlu1 %3037, %v4051_v49  }
 0x2e8   : > { %1559 = vrot.lane.b32.xlu0 %v3761_v13, %s3282_s26 }
 0x2ee   : > { %1506 = vperm.xlu1 %3037, %v4092_v55  }
 0x2f6   : > { %1547 = vrot.lane.b32.xlu1 %v4133_v41, %s3282_s26 }
 0x2f7   : > { %3041 = vset.pattern.permute.xlu1 %v4876_v4 }
 0x2fe   : > { %1553 = vrot.lane.b32.xlu1 %v3784_v53, %s3282_s26 }
 0x306   : > { %1555 = vrot.lane.b32.xlu1 %v3781_v36, %s3282_s26  ;;  %v4147_v36 = vld [vmem:[#allocation2 + $0x38] sm:$0xff] }
 0x312   : > { %v1482_v19 = vpop.permute.xlu2 %1481 }
 0x313   : > { %v1519_v37 = vsub.f32 %v3988_v23, %v1482_v19  ;;  %v4158_v19 = vld [vmem:[%s3412_s29 + $0x10] sm:$0xff] }
 0x315   : > { %v1527_v46 = vmul.f32 1.442695, %v1519_v37 }
 0x317   : > { %3116 = vpow2.f32 %v1527_v46 }
 0x31a   : > { %v1502_v20 = vpop.permute.xlu2 %1501 }
 0x31d   : > { %v3117_v22 = vpop.eup %3116 }
 0x323   : > { %v1487_v13 = vpop.permute.xlu0 %1486 }
 0x324   : > { %v1520_v57 = vsub.f32 %v3982_v8, %v1487_v13 }
 0x326   : > { %v1529_v30 = vmul.f32 1.442695, %v1520_v57  ;;  %v1809_v57 = vld [vmem:[%s3397_s9 + $0x10] sm:$0xff] }
 0x328   : > { %3118 = vpow2.f32 %v1529_v30 }
 0x32e   : > { %v3119_v52 = vpop.eup %3118 }
 0x32f   : > { %v4144_v45 = vpack.c.bf16 %v3119_v52, %v3117_v22  ;;  %v1808_v22 = vld [vmem:[%s3397_s9 + $0x8] sm:$0xff] }
 0x331   : > { %1608 = vmatmul.bf16.vlgmr.msrb.gmra.mxu1 %v4144_v45 }
 0x332   : > { %v1497_v52 = vpop.permute.xlu0 %1496 }
 0x333   : > { %v1522_v37 = vsub.f32 %v3999_v50, %v1497_v52  ;;  %v1523_v50 = vsub.f32 %v3992_v42, %v1502_v20 }
 0x335   : > { %v1533_v46 = vmul.f32 1.442695, %v1522_v37  ;;  %v1535_v37 = vmul.f32 1.442695, %v1523_v50 }
 0x337   : > { %3120 = vpow2.f32 %v1533_v46 }
 0x33a   : > { %v1512_v1 = vpop.permute.xlu0 %1511 }
 0x33d   : > { %v3121_v43 = vpop.eup %3120 }
 0x340   : > { %v1446_v53 = vpop.xlane.xlu1 %1445 }
 0x341   : > { %v4150_v23 = vmax.f32 %v4147_v36, %v1446_v53 }
 0x343   : > { %1806 = vst.msk [vmem:[#allocation2 + $0x38] sm:$0xff] %vm1790_vm11, %v4150_v23  ;;  %1516 = vperm.xlu2 %3038, %v4150_v23  }
 0x34b   : > { %1551 = vrot.lane.b32.xlu2 %v4158_v19, %s3282_s26 }
 0x34c   : > { %3040 = vset.pattern.permute.xlu2 %v4876_v4 }
 0x353   : > { %1823 = vperm.xlu2 %3040, %v1808_v22  }
 0x358   : > { %v1492_v13 = vpop.permute.xlu1 %1491 }
 0x359   : > { %v1521_v30 = vsub.f32 %v3961_v6, %v1492_v13  ;;  %v4172_v6 = vpop.permute.xlu0 %1549  ;;  %v4175_v13 = vld [vmem:[%s3402_s18 + $0x3] ss:$0 sm:$0xff] }
 0x35b   : > { %v1531_v53 = vmul.f32 1.442695, %v1521_v30  ;;  %1828 = vperm.xlu2 %3040, %v1809_v57  }
 0x35d   : > { %3122 = vpow2.f32 %v1531_v53 }
 0x360   : > { %v1507_v8 = vpop.permute.xlu1 %1506 }
 0x361   : > { %v1524_v55 = vsub.f32 %v4002_v27, %v1507_v8  ;;  %v1819_v57 = vpop.permute.xlu0 %1818 }
 0x362   : > { %v1857_v27 = vadd.f32 %v4175_v13, %v1819_v57 }
 0x363   : > { %v3123_v4 = vpop.eup %3122  ;;  %v1537_v52 = vmul.f32 1.442695, %v1524_v55  ;;  %v1525_v55 = vsub.f32 %v4007_v26, %v1512_v1 }
 0x364   : > { %v4168_v22 = vpack.c.bf16 %v3121_v43, %v3123_v4  ;;  %v1873_v42 = vmul.f32 0.2, %v1857_v27  ;;  %vm1865_vm13 = vcmp.gt.f32.partialorder %v1857_v27, 0.0 }
 0x365   : > { %3124 = vpow2.f32 %v1537_v52  ;;  %v1539_v4 = vmul.f32 1.442695, %v1525_v55 }
 0x366   : > { %1613 = vmatmul.bf16.gmra.mxu1 %v4168_v22  ;;  %3126 = vpow2.f32 %v1535_v37  ;;  %v1881_v20 = vsel %vm1865_vm13, %v1857_v27, %v1873_v42 }
 0x367   : > { %v4182_v43 = vadd.f32 %v1881_v20, %v4908_v31  ;;  %3128 = vpow2.f32 %v1539_v4 }
 0x369   : > { %4924 = vst [vmem:[#allocation13_spill] sm:$0xff] %v4182_v43  ;;  %v1558_v3 = vpop.permute.xlu0 %1557 }
 0x36b   : > { %v3125_v46 = vpop.eup %3124 }
 0x36c   : > { %v3127_v30 = vpop.eup %3126 }
 0x36d   : > { %v4177_v53 = vpack.c.bf16 %v3125_v46, %v3127_v30  ;;  %v3129_v46 = vpop.eup %3128 }
 0x376   : > { %1618 = vmatmul.bf16.gmra.mxu1 %v4177_v53 }
 0x384   : > { %1905 = vmax.xlane.f32.xlu2 %v4182_v43  ;;  %v1156_v43 = vld [vmem:[#allocation4 + $0x8] sm:$0xff] }
 0x39d   : > { %v1517_v8 = vpop.permute.xlu2 %1516 }
 0x39e   : > { %v1526_v50 = vsub.f32 %v4116_v2, %v1517_v8 }
 0x3a0   : > { %v1541_v52 = vmul.f32 1.442695, %v1526_v50  ;;  %v4202_v50 = vpop.f32.mrf.mxu2 }
 0x3a2   : > { %3130 = vpow2.f32 %v1541_v52  ;;  %v1135_v52 = vpop.f32.mrf.mxu3 }
 0x3a5   : > { %v4187_v37 = vpop.permute.xlu2 %1551 }
 0x3a8   : > { %v3131_v57 = vpop.eup %3130 }
 0x3a9   : > { %v4189_v30 = vpack.c.bf16 %v3131_v57, %v3129_v46  ;;  %v1810_v46 = vld [vmem:[%s3397_s9 + $0x18] sm:$0xff]  ;;  %v1813_v57 = vld [vmem:[%s3397_s9 + $0x30] sm:$0xff] }
 0x3ab   : > { %1623 = vmatmul.bf16.gmra.mxu1 %v4189_v30 }
 0x3ad   : > { %v1824_v31 = vpop.permute.xlu2 %1823 }
 0x3ae   : > { %v1858_v27 = vadd.f32 %v4175_v13, %v1824_v31  ;;  %v4206_v31 = vpop.f32.mrf.mxu3 }
 0x3b0   : > { %v1874_v26 = vmul.f32 0.2, %v1858_v27  ;;  %vm1866_vm14 = vcmp.gt.f32.partialorder %v1858_v27, 0.0 }
 0x3b2   : > { %v1882_v1 = vsel %vm1866_vm14, %v1858_v27, %v1874_v26  ;;  %v1812_v27 = vld [vmem:[%s3397_s9 + $0x28] sm:$0xff] }
 0x3b3   : > { %v4194_v2 = vadd.f32 %v1882_v1, %v4907_v38  ;;  %v1108_v38 = vpop.f32.mrf.mxu2 }
 0x3b5   : > { %4925 = vst [vmem:[#allocation18_spill] sm:$0xff] %v4194_v2  ;;  %1907 = vmax.xlane.f32.xlu1 %v4194_v2  ;;  %v1829_v42 = vpop.permute.xlu2 %1828 }
 0x3b6   : > { %v1859_v20 = vadd.f32 %v4175_v13, %v1829_v42  ;;  %v4215_v42 = vld [vmem:[%s3412_s29 + $0x38] sm:$0xff] }
 0x3b8   : > { %v1875_v55 = vmul.f32 0.2, %v1859_v20  ;;  %vm1867_vm15 = vcmp.gt.f32.partialorder %v1859_v20, 0.0 }
 0x3ba   : > { %v1883_v4 = vsel %vm1867_vm15, %v1859_v20, %v1875_v55 }
 0x3bb   : > { %v4199_v8 = vadd.f32 %v1883_v4, %v3484_v21  ;;  %v1111_v26 = vpop.f32.mrf.mxu2  ;;  %v1140_v21 = vpop.f32.mrf.mxu3  ;;  %v3184_v4 = vld [vmem:[%s3412_s29 + $0x30] sm:$0xff] }
 0x3bd   : > { %4926 = vst [vmem:[#allocation19_spill] sm:$0xff] %v4199_v8  ;;  %1909 = vmax.xlane.f32.xlu0 %v4199_v8  ;;  %v3187_v8 = vld [vmem:[%s3412_s29 + $0x18] sm:$0xff] }
 0x3c3   : > { %v4211_v1 = vpop.f32.mrf.mxu2  ;;  %v1142_v20 = vpop.f32.mrf.mxu3 }
 0x3cb   : > { %v1116_v55 = vpop.f32.mrf.mxu2 }
 0x3ce   : > { %1833 = vperm.xlu1 %3041, %v1810_v46   ;;  %v4226_v46 = vld [vmem:[#allocation2] sm:$0xff] }
 0x3cf   : > { %4927 = vst [vmem:[#allocation20_spill] sm:$0xff] %v4226_v46 }
 0x3d1   : > { %1848 = vperm.xlu0 %3039, %v1813_v57  }
 0x3d6   : > { %1843 = vperm.xlu1 %3041, %v1812_v27  }
 0x3d9   : > { %1853 = vperm.xlu0 %3039, %v4016_v61   ;;  %v4221_v61 = vpop.f32.mrf.mxu3 }
 0x3de   : > { %1284 = vrot.lane.b32.xlu1 %v1135_v52, %s3284_s17  ;;  %v1118_v52 = vpop.f32.mrf.mxu2 }
 0x3e1   : > { %1221 = vrot.lane.b32.xlu0 %v1108_v38, %s3285_s27 }
 0x3e6   : > { %1561 = vrot.lane.b32.xlu1 %v4215_v42, %s3282_s26 }
 0x3e9   : > { %1288 = vrot.lane.b32.xlu0 %v1140_v21, %s3284_s17  ;;  %v4236_v21 = vpop.f32.mrf.mxu2 }
 0x3ee   : > { %1223 = vrot.lane.b32.xlu1 %v1111_v26, %s3285_s27  ;;  %v1147_v26 = vpop.f32.mrf.mxu3 }
 0x3f1   : > { %2033 = vrot.lane.b32.xlu0 %v3184_v4, %s3286_s30  ;;  %v1123_v4 = vpop.f32.mrf.mxu2 }
 0x3f6   : > { %1290 = vrot.lane.b32.xlu1 %v1142_v20, %s3284_s17  ;;  %v1150_v20 = vpop.f32.mrf.mxu3 }
 0x3f7   : > { %v1906_v38 = vpop.xlane.xlu2 %1905 }
 0x3f8   : > { %v4229_v57 = vmax.f32 %v4226_v46, %v1906_v38  ;;  %v3185_v38 = vld [vmem:[%s3412_s29 + $0x28] sm:$0xff]  ;;  %v3186_v46 = vld [vmem:[%s3412_s29 + $0x20] sm:$0xff] }
 0x3f9   : > { %1227 = vrot.lane.b32.xlu0 %v1116_v55, %s3285_s27  ;;  %v4242_v55 = vpop.permute.xlu1 %1547 }
 0x3fa   : > { %4928 = vst [vmem:[#allocation21_spill] sm:$0xff] %v4229_v57 }
 0x3fb   : > { %2273 = vst.msk [vmem:[#allocation2] sm:$0xff] %vm2264_vm0, %v4229_v57 }
 0x3fe   : > { %1229 = vrot.lane.b32.xlu1 %v1118_v52, %s3285_s27 }
 0x401   : > { %1294 = vrot.lane.b32.xlu0 %v1147_v26, %s3284_s17  ;;  %v4246_v27 = vpop.permute.xlu1 %1553  ;;  %v1560_v26 = vpop.permute.xlu0 %1559 }
 0x406   : > { %1296 = vrot.lane.b32.xlu1 %v1150_v20, %s3284_s17  ;;  %v4252_v20 = vld [vmem:[#allocation2 + $0x8] sm:$0xff] }
 0x407   : > { %4929 = vst [vmem:[#allocation22_spill] sm:$0xff] %v4252_v20 }
 0x409   : > { %1233 = vrot.lane.b32.xlu0 %v1123_v4, %s3285_s27  ;;  %v1556_v52 = vpop.permute.xlu1 %1555 }
 0x411   : > { %2031 = vrot.lane.b32.xlu0 %v3185_v38, %s3286_s30  ;;  %v4260_v38 = vld [vmem:[#allocation2 + $0x10] sm:$0xff] }
 0x412   : > { %4930 = vst [vmem:[#allocation23_spill] sm:$0xff] %v4260_v38 }
 0x419   : > { %2029 = vrot.lane.b32.xlu0 %v3186_v46, %s3286_s30 }
 0x421   : > { %2027 = vrot.lane.b32.xlu0 %v3187_v8, %s3286_s30 }
 0x428   : > { %v1908_v35 = vpop.xlane.xlu1 %1907 }
 0x429   : > { %v4255_v4 = vmax.f32 %v4252_v20, %v1908_v35  ;;  %1955 = vperm.xlu0 %3039, %v4229_v57  }
 0x42b   : > { %2274 = vst.msk [vmem:[#allocation2 + $0x8] sm:$0xff] %vm2264_vm0, %v4255_v4 }
 0x430   : > { %v1910_v46 = vpop.xlane.xlu0 %1909 }
 0x431   : > { %v4263_v59 = vmax.f32 %v4260_v38, %v1910_v46 }
 0x433   : > { %2275 = vst.msk [vmem:[#allocation2 + $0x10] sm:$0xff] %vm2264_vm0, %v4263_v59 }
 0x440   : > { %v1834_v8 = vpop.permute.xlu1 %1833 }
 0x441   : > { %v1860_v24 = vadd.f32 %v4175_v13, %v1834_v8  ;;  %v1268_v8 = vmul.f32 %v3840_v25, %v1260_v63 }
 0x443   : > { %v1876_v58 = vmul.f32 0.2, %v1860_v24  ;;  %v1849_v35 = vpop.permute.xlu0 %1848  ;;  %vm1868_vm1 = vcmp.gt.f32.partialorder %v1860_v24, 0.0 }
 0x444   : > { %v1863_v57 = vadd.f32 %v4175_v13, %v1849_v35 }
 0x445   : > { %v1884_v60 = vsel %vm1868_vm1, %v1860_v24, %v1876_v58 }
 0x446   : > { %v4270_v49 = vadd.f32 %v1884_v60, %v4910_v40  ;;  %v1879_v46 = vmul.f32 0.2, %v1863_v57  ;;  %vm1871_vm3 = vcmp.gt.f32.partialorder %v1863_v57, 0.0  ;;  %v1204_v40 = vmul.f32 %v3955_v12, %v1156_v43 }
 0x448   : > { %1911 = vmax.xlane.f32.xlu2 %v4270_v49  ;;  %v4273_v0 = vpop.permute.xlu1 %1843  ;;  %v1887_v2 = vsel %vm1871_vm3, %v1863_v57, %v1879_v46  ;;  %v1262_v57 = vld [vmem:[#allocation3 + $0x10] sm:$0xff]  ;;  %v1811_v46 = vld [vmem:[%s3397_s9 + $0x20] sm:$0xff]  ;;  %s3289_s9 = smov 24  }
 0x449   : > { %v4279_v24 = vadd.f32 %v1887_v2, %v4912_v44  ;;  %v1270_v63 = vmul.f32 %v3848_v32, %v1262_v57  ;;  %v1157_v2 = vld [vmem:[#allocation4 + $0x10] sm:$0xff] }
 0x44a   : > { %v1205_v12 = vmul.f32 %v3940_v56, %v1157_v2 }
 0x44b   : > { %v4275_v38 = vpop.permute.xlu0 %1853 }
 0x450   : > { %v1285_v20 = vpop.permute.xlu1 %1284 }
 0x451   : > { %v1308_v58 = vadd.f32 %v1285_v20, %v1268_v8 }
 0x453   : > { %1317 = vst.msk [vmem:[#allocation3] sm:$0xff] %vm1316_vm2, %v1308_v58  ;;  %v1222_v60 = vpop.permute.xlu0 %1221  ;;  %1917 = vmax.xlane.f32.xlu0 %v4279_v24 }
 0x454   : > { %v1244_v35 = vadd.f32 %v1222_v60, %v1204_v40  ;;  %v1263_v40 = vld [vmem:[#allocation3 + $0x18] sm:$0xff]  ;;  %v1159_v60 = vld [vmem:[#allocation4 + $0x20] sm:$0xff] }
 0x455   : > { %v1271_v32 = vmul.f32 %v3857_v48, %v1263_v40  ;;  %v1207_v56 = vmul.f32 %v3963_v34, %v1159_v60 }
 0x456   : > { %1253 = vst.msk [vmem:[#allocation4 + $0x8] sm:$0xff] %vm1251_vm4, %v1244_v35 }
 0x458   : > { %v1562_v25 = vpop.permute.xlu1 %1561 }
 0x459   : > { %1571 = vmatpush.bf16.msrb.mxu0 %v1562_v25  ;;  %v1160_v25 = vld [vmem:[#allocation4 + $0x28] sm:$0xff] }
 0x45a   : > { %v1208_v48 = vmul.f32 %v3944_v10, %v1160_v25 }
 0x45b   : > { %v1289_v20 = vpop.permute.xlu0 %1288 }
 0x45c   : > { %v1310_v44 = vadd.f32 %v1289_v20, %v1270_v63 }
 0x45d   : > { %1572 = vmatpush.bf16.msrb.mxu0 %v1560_v26 }
 0x45e   : > { %1319 = vst.msk [vmem:[#allocation3 + $0x10] sm:$0xff] %vm1316_vm2, %v1310_v44  ;;  %v1266_v44 = vld [vmem:[#allocation3 + $0x30] sm:$0xff] }
 0x45f   : > { %v1274_v10 = vmul.f32 %v3872_v47, %v1266_v44  ;;  %v1152_v47 = vpop.f32.mrf.mxu3 }
 0x460   : > { %1838 = vperm.xlu2 %3040, %v1811_v46   ;;  %v1224_v43 = vpop.permute.xlu1 %1223 }
 0x461   : > { %v1245_v8 = vadd.f32 %v1224_v43, %v1205_v12  ;;  %1573 = vmatpush.bf16.msrb.mxu0 %v1558_v3 }
 0x463   : > { %1254 = vst.msk [vmem:[#allocation4 + $0x10] sm:$0xff] %vm1251_vm4, %v1245_v8  ;;  %v4290_v58 = vpop.permute.xlu0 %2033 }
 0x465   : > { %1574 = vmatpush.bf16.msrb.mxu0 %v1556_v52  ;;  %v1265_v52 = vld [vmem:[#allocation3 + $0x28] sm:$0xff] }
 0x466   : > { %v1273_v34 = vmul.f32 %v3864_v54, %v1265_v52  ;;  %v4932_v52 = vsub.f32 %v4070_v17, %v4073_v5 }
 0x468   : > { %1219 = vrot.lane.b32.xlu2 %v4202_v50, %s3285_s27  ;;  %v1291_v26 = vpop.permute.xlu1 %1290 }
 0x469   : > { %v1311_v35 = vadd.f32 %v1291_v26, %v1271_v32  ;;  %1575 = vmatpush.bf16.msrb.mxu0 %v4246_v27  ;;  %v4344_v32 = vld [vmem:[#allocation2 + $0x30] sm:$0xff]  ;;  %v4931_v26 = vsub.f32 %v4055_v18, %v4058_v7 }
 0x46b   : > { %1320 = vst.msk [vmem:[#allocation3 + $0x18] sm:$0xff] %vm1316_vm2, %v1311_v35  ;;  %v1228_v3 = vpop.permute.xlu0 %1227  ;;  %v1465_v35 = vmul.f32 1.442695, %v4931_v26 }
 0x46c   : > { %v1247_v57 = vadd.f32 %v1228_v3, %v1207_v56  ;;  %v1155_v3 = vld [vmem:[#allocation4] sm:$0xff] }
 0x46d   : > { %1576 = vmatpush.bf16.msrb.mxu0 %v4187_v37  ;;  %v1162_v37 = vld [vmem:[#allocation4 + $0x38] sm:$0xff]  ;;  %3132 = vpow2.f32 %v1465_v35 }
 0x46e   : > { %1256 = vst.msk [vmem:[#allocation4 + $0x20] sm:$0xff] %vm1251_vm4, %v1247_v57  ;;  %v1210_v54 = vmul.f32 %v3972_v9, %v1162_v37  ;;  %v1158_v37 = vld [vmem:[#allocation4 + $0x18] sm:$0xff] }
 0x470   : > { %2035 = vrot.lane.b32.xlu2 %v4215_v42, %s3286_s30  ;;  %v1230_v50 = vpop.permute.xlu1 %1229 }
 0x471   : > { %v1248_v63 = vadd.f32 %v1230_v50, %v1208_v48  ;;  %1577 = vmatpush.bf16.msrb.mxu0 %v4172_v6  ;;  %v1203_v48 = vmul.f32 %v3958_v33, %v1155_v3  ;;  %v1471_v50 = vmul.f32 1.442695, %v4932_v52  ;;  %v4934_v33 = vsub.f32 %v4147_v36, %v4150_v23  ;;  %v4936_v3 = vld [vmem:[#allocation22_spill] sm:$0xff] }
 0x472   : > { %v1206_v23 = vmul.f32 %v3970_v11, %v1158_v37  ;;  %v1161_v11 = vld [vmem:[#allocation4 + $0x30] sm:$0xff] }
 0x473   : > { %1257 = vst.msk [vmem:[#allocation4 + $0x28] sm:$0xff] %vm1251_vm4, %v1248_v63  ;;  %v1295_v27 = vpop.permute.xlu0 %1294  ;;  %v4366_v63 = vpop.eup %3132  ;;  %3134 = vpow2.f32 %v1471_v50 }
 0x474   : > { %v1313_v20 = vadd.f32 %v1295_v27, %v1273_v34  ;;  %v4933_v34 = vmov 2   ;;  %v1477_v27 = vmul.f32 1.442695, %v4934_v33  ;;  %v4937_v33 = vld [vmem:[#allocation13_spill] sm:$0xff] }
 0x475   : > { %1578 = vmatpush.bf16.msrb.mxu0 %v4242_v55 }
 0x476   : > { %1322 = vst.msk [vmem:[#allocation3 + $0x28] sm:$0xff] %vm1316_vm2, %v1313_v20  ;;  %v1261_v20 = vld [vmem:[#allocation3 + $0x8] sm:$0xff]  ;;  %3136 = vpow2.f32 %v1477_v27 }
 0x477   : > { %v1269_v17 = vmul.f32 %v3824_v14, %v1261_v20  ;;  %v1264_v14 = vld [vmem:[#allocation3 + $0x20] sm:$0xff] }
 0x478   : > { %1286 = vrot.lane.b32.xlu2 %v4206_v31, %s3284_s17  ;;  %1579 = vmatmul.bf16.vlgmr.msrb.gmra.mxu0 %v4144_v45  ;;  %v1297_v6 = vpop.permute.xlu1 %1296  ;;  %v1862_v31 = vadd.f32 %v4175_v13, %v4273_v0 }
 0x479   : > { %v1314_v42 = vadd.f32 %v1297_v6, %v1274_v10  ;;  %v4374_v44 = vpop.eup %3134 }
 0x47a   : > { %v1878_v55 = vmul.f32 0.2, %v1862_v31  ;;  %vm1870_vm5 = vcmp.gt.f32.partialorder %v1862_v31, 0.0 }
 0x47b   : > { %1323 = vst.msk [vmem:[#allocation3 + $0x30] sm:$0xff] %vm1316_vm2, %v1314_v42  ;;  %v1234_v2 = vpop.permute.xlu0 %1233  ;;  %v1272_v42 = vmul.f32 %v3845_v62, %v1264_v14  ;;  %v1864_v62 = vadd.f32 %v4175_v13, %v4275_v38 }
 0x47c   : > { %v1250_v46 = vadd.f32 %v1234_v2, %v1210_v54  ;;  %v1886_v12 = vsel %vm1870_vm5, %v1862_v31, %v1878_v55  ;;  %v4380_v36 = vpop.eup %3136  ;;  %v4935_v54 = vmov 3   ;;  %v1267_v31 = vld [vmem:[#allocation3 + $0x38] sm:$0xff] }
 0x47d   : > { %v4340_v0 = vadd.f32 %v1886_v12, %v4911_v15  ;;  %vm1872_vm7 = vcmp.gt.f32.partialorder %v1864_v62, 0.0 }
 0x47e   : > { %1259 = vst.msk [vmem:[#allocation4 + $0x38] sm:$0xff] %vm1251_vm4, %v1250_v46 }
 0x480   : > { %1225 = vrot.lane.b32.xlu2 %v4211_v1, %s3285_s27 }
 0x483   : > { %v2032_v9 = vpop.permute.xlu0 %2031 }
 0x488   : > { %1292 = vrot.lane.b32.xlu2 %v4221_v61, %s3284_s17  ;;  %1584 = vmatmul.bf16.gmra.mxu0 %v4168_v22  ;;  %v4327_v61 = vld [vmem:[#allocation2 + $0x18] sm:$0xff] }
 0x48b   : > { %v2030_v45 = vpop.permute.xlu0 %2029 }
 0x490   : > { %1231 = vrot.lane.b32.xlu2 %v4236_v21, %s3285_s27 }
 0x493   : > { %v2028_v1 = vpop.permute.xlu0 %2027 }
 0x498   : > { %1298 = vrot.lane.b32.xlu2 %v1152_v47, %s3284_s17  ;;  %1589 = vmatmul.bf16.gmra.mxu0 %v4177_v53  ;;  %v1209_v47 = vmul.f32 %v3976_v51, %v1161_v11  ;;  %v1609_v51 = vpop.f32.mrf.mxu1 }
 0x49b   : > { %v4332_v43 = vpop.permute.xlu0 %1955 }
 0x4a8   : > { %1594 = vmatmul.bf16.gmra.mxu0 %v4189_v30 }
 0x4bb   : > { %v1912_v22 = vpop.xlane.xlu2 %1911 }
 0x4bc   : > { %v4330_v21 = vmax.f32 %v4327_v61, %v1912_v22 }
 0x4be   : > { %v1932_v53 = vsub.f32 %v4327_v61, %v4330_v21  ;;  %2276 = vst.msk [vmem:[#allocation2 + $0x18] sm:$0xff] %vm2264_vm0, %v4330_v21  ;;  %1970 = vperm.xlu0 %3039, %v4330_v21  }
 0x4c1   : > { %1915 = vmax.xlane.f32.xlu2 %v4340_v0 }
 0x4c3   : > { %v1839_v30 = vpop.permute.xlu2 %1838 }
 0x4c4   : > { %v1861_v8 = vadd.f32 %v4175_v13, %v1839_v30 }
 0x4c6   : > { %v1877_v40 = vmul.f32 0.2, %v1861_v8  ;;  %v1918_v60 = vpop.xlane.xlu0 %1917  ;;  %vm1869_vm6 = vcmp.gt.f32.partialorder %v1861_v8, 0.0 }
 0x4c7   : > { %v4350_v56 = vmax.f32 %v4344_v32, %v1918_v60 }
 0x4c8   : > { %v1885_v15 = vsel %vm1869_vm6, %v1861_v8, %v1877_v40 }
 0x4c9   : > { %v1935_v57 = vsub.f32 %v4344_v32, %v4350_v56  ;;  %2279 = vst.msk [vmem:[#allocation2 + $0x30] sm:$0xff] %vm2264_vm0, %v4350_v56  ;;  %1985 = vperm.xlu0 %3039, %v4350_v56   ;;  %v4358_v25 = vadd.f32 %v1885_v15, %v4909_v28  ;;  %v1930_v15 = vsub.f32 %v4936_v3, %v4255_v4  ;;  %v4947_v3 = vld [vmem:[#allocation16_spill] sm:$0xff] }
 0x4cb   : > { %1913 = vmax.xlane.f32.xlu1 %v4358_v25  ;;  %v1220_v18 = vpop.permute.xlu2 %1219  ;;  %v1949_v27 = vmul.f32 1.442695, %v1935_v57 }
 0x4cc   : > { %v1243_v7 = vadd.f32 %v1220_v18, %v1203_v48  ;;  %v1939_v48 = vmul.f32 1.442695, %v1930_v15  ;;  %v4427_v18 = vld [vmem:[#allocation2 + $0x28] sm:$0xff]  ;;  %v4948_v15 = vld [vmem:[#allocation17_spill] sm:$0xff] }
 0x4ce   : > { %1252 = vst.msk [vmem:[#allocation4] sm:$0xff] %vm1251_vm4, %v1243_v7  ;;  %3138 = vpow2.f32 %v1939_v48  ;;  %v4949_v48 = vsub.f32 %v4947_v3, %v4948_v15  ;;  %v1734_v15 = vld [vmem:[#allocation3] sm:$0xff] }
 0x4cf   : > { %3140 = vpow2.f32 %v1949_v27 }
 0x4d1   : > { %3043 = vset.pattern.permute.xlu0 %v4933_v34 }
 0x4d2   : > { %1644 = vperm.xlu0 %3043, %v4366_v63  }
 0x4d3   : > { %v2036_v28 = vpop.permute.xlu2 %2035 }
 0x4d4   : > { %2045 = vmatpush.bf16.msrb.mxu2 %v2036_v28 }
 0x4d8   : > { %2046 = vmatpush.bf16.msrb.mxu2 %v4290_v58 }
 0x4d9   : > { %1960 = vperm.xlu2 %3040, %v4255_v4   ;;  %v1993_v4 = vsub.f32 %v4937_v33, %v4332_v43 }
 0x4da   : > { %1659 = vperm.xlu0 %3043, %v4374_v44  }
 0x4db   : > { %v1287_v5 = vpop.permute.xlu2 %1286  ;;  %v2001_v20 = vmul.f32 1.442695, %v1993_v4 }
 0x4dc   : > { %v1309_v10 = vadd.f32 %v1287_v5, %v1269_v17  ;;  %2047 = vmatpush.bf16.msrb.mxu2 %v2032_v9  ;;  %v4442_v5 = vpop.eup %3138 }
 0x4dd   : > { %3142 = vpow2.f32 %v2001_v20  ;;  %v4456_v32 = vpop.eup %3140 }
 0x4de   : > { %1318 = vst.msk [vmem:[#allocation3 + $0x8] sm:$0xff] %vm1316_vm2, %v1309_v10  ;;  %v4938_v10 = vld [vmem:[#allocation18_spill] sm:$0xff] }
 0x4e0   : > { %2048 = vmatpush.bf16.msrb.mxu2 %v2030_v45 }
 0x4e2   : > { %1674 = vperm.xlu0 %3043, %v4380_v36  }
 0x4e3   : > { %v1226_v58 = vpop.permute.xlu2 %1225  ;;  %v3143_v56 = vpop.eup %3142 }
 0x4e4   : > { %v1246_v6 = vadd.f32 %v1226_v58, %v1206_v23  ;;  %2025 = vrot.lane.b32.xlu1 %v4158_v19, %s3286_s30  ;;  %2049 = vmatpush.bf16.msrb.mxu2 %v2028_v1  ;;  %v1880_v1 = vmul.f32 0.2, %v1864_v62  ;;  %v4446_v23 = vld [vmem:[#allocation2 + $0x20] sm:$0xff] }
 0x4e6   : > { %1255 = vst.msk [vmem:[#allocation4 + $0x18] sm:$0xff] %vm1251_vm4, %v1246_v6 }
 0x4ea   : > { %3046 = vset.pattern.permute.xlu0 %v4935_v54 }
 0x4eb   : > { %v1293_v2 = vpop.permute.xlu2 %1292 }
 0x4ec   : > { %v1312_v46 = vadd.f32 %v1293_v2, %v1272_v42  ;;  %2023 = vrot.lane.b32.xlu1 %v4120_v39, %s3286_s30  ;;  %v1275_v39 = vmul.f32 %v3860_v16, %v1267_v31  ;;  %v4410_v16 = vpop.f32.mrf.mxu1  ;;  %v4939_v42 = vld [vmem:[#allocation11_spill] sm:$0xff]  ;;  %v4940_v2 = vld [vmem:[#allocation8_spill] sm:$0xff] }
 0x4ee   : > { %1321 = vst.msk [vmem:[#allocation3 + $0x20] sm:$0xff] %vm1316_vm2, %v1312_v46  ;;  %v4941_v46 = vsub.f32 %v4939_v42, %v4940_v2  ;;  %v4951_v42 = vld [vmem:[#allocation12_spill] sm:$0xff]  ;;  %v4952_v2 = vld [vmem:[#allocation15_spill] sm:$0xff] }
 0x4f0   : > { %v1463_v11 = vmul.f32 1.442695, %v4941_v46  ;;  %v4953_v46 = vsub.f32 %v4951_v42, %v4952_v2 }
 0x4f3   : > { %v1232_v9 = vpop.permute.xlu2 %1231 }
 0x4f4   : > { %v1249_v19 = vadd.f32 %v1232_v9, %v1209_v47  ;;  %2021 = vrot.lane.b32.xlu1 %v4133_v41, %s3286_s30  ;;  %v1888_v41 = vsel %vm1872_vm7, %v1864_v62, %v1880_v1  ;;  %v4414_v8 = vpop.f32.mrf.mxu1  ;;  %v4942_v9 = vld [vmem:[#allocation7_spill] sm:$0xff] }
 0x4f5   : > { %v4397_v45 = vpop.f32.mrf.mxu0  ;;  %v4406_v13 = vadd.f32 %v1888_v41, %v4923_v29 }
 0x4f6   : > { %1258 = vst.msk [vmem:[#allocation4 + $0x30] sm:$0xff] %vm1251_vm4, %v1249_v19  ;;  %v4943_v19 = vld [vmem:[#allocation9_spill] sm:$0xff] }
 0x4f7   : > { %v1457_v62 = vsub.f32 %v4943_v19, %v4942_v9 }
 0x4f9   : > { %v1467_v31 = vmul.f32 1.442695, %v1457_v62 }
 0x4fb   : > { %v1299_v55 = vpop.permute.xlu2 %1298 }
 0x4fc   : > { %v1315_v22 = vadd.f32 %v1299_v55, %v1275_v39  ;;  %1965 = vperm.xlu1 %3041, %v4263_v59   ;;  %v1616_v60 = vpop.f32.mrf.mxu1  ;;  %v4944_v55 = vld [vmem:[#allocation10_spill] sm:$0xff] }
 0x4fd   : > { %v4402_v12 = vpop.f32.mrf.mxu0 }
 0x4fe   : > { %1324 = vst.msk [vmem:[#allocation3 + $0x38] sm:$0xff] %vm1316_vm2, %v1315_v22  ;;  %v4945_v22 = vld [vmem:[#allocation14_spill] sm:$0xff]  ;;  %vm1725_vm2 = vcmask 195712  }
 0x502   : > { %1919 = vmax.xlane.f32.xlu2 %v4406_v13 }
 0x504   : > { %v4419_v29 = vpop.f32.mrf.mxu1 }
 0x505   : > { %v1585_v38 = vpop.f32.mrf.mxu0 }
 0x506   : > { %1697 = vrot.lane.b32.xlu0 %v1585_v38, %s3287_s7 }
 0x50c   : > { %v4422_v35 = vpop.f32.mrf.mxu1 }
 0x50d   : > { %v4412_v30 = vpop.f32.mrf.mxu0 }
 0x514   : > { %v1624_v52 = vpop.f32.mrf.mxu1 }
 0x515   : > { %v4416_v40 = vpop.f32.mrf.mxu0 }
 0x51d   : > { %v1592_v26 = vpop.f32.mrf.mxu0 }
 0x51e   : > { %1703 = vrot.lane.b32.xlu0 %v1592_v26, %s3287_s7 }
 0x525   : > { %v1595_v19 = vpop.f32.mrf.mxu0 }
 0x526   : > { %1758 = vrot.lane.b32.xlu0 %v1609_v51, %s3288_s8  ;;  %v4946_v51 = vsub.f32 %v4944_v55, %v4945_v22 }
 0x528   : > { %v1469_v41 = vmul.f32 1.442695, %v4946_v51 }
 0x52d   : > { %v1597_v51 = vpop.f32.mrf.mxu0 }
 0x52e   : > { %1764 = vrot.lane.b32.xlu0 %v1616_v60, %s3288_s8 }
 0x530   : > { %v1971_v60 = vpop.permute.xlu0 %1970 }
 0x531   : > { %v1996_v20 = vsub.f32 %v4270_v49, %v1971_v60  ;;  %v4955_v60 = vld [vmem:[#allocation21_spill] sm:$0xff] }
 0x534   : > { %v1916_v7 = vpop.xlane.xlu2 %1915 }
 0x535   : > { %v4430_v50 = vmax.f32 %v4427_v18, %v1916_v7  ;;  %v1475_v7 = vmul.f32 1.442695, %v4949_v48 }
 0x536   : > { %1770 = vrot.lane.b32.xlu0 %v1624_v52, %s3288_s8 }
 0x537   : > { %v1934_v28 = vsub.f32 %v4427_v18, %v4430_v50  ;;  %2278 = vst.msk [vmem:[#allocation2 + $0x28] sm:$0xff] %vm2264_vm0, %v4430_v50 }
 0x53b   : > { %v4478_v33 = vpop.permute.xlu0 %1985 }
 0x53c   : > { %v1961_v17 = vpop.permute.xlu2 %1960 }
 0x53d   : > { %v1994_v37 = vsub.f32 %v4938_v10, %v1961_v17  ;;  %v2007_v10 = vmul.f32 1.442695, %v1996_v20 }
 0x53e   : > { %2118 = vperm.xlu0 %3046, %v4442_v5   ;;  %v1914_v58 = vpop.xlane.xlu1 %1913 }
 0x53f   : > { %v2003_v6 = vmul.f32 1.442695, %v1994_v37  ;;  %v4449_v14 = vmax.f32 %v4446_v23, %v1914_v58  ;;  %v4950_v58 = vld [vmem:[#allocation19_spill] sm:$0xff] }
 0x541   : > { %3144 = vpow2.f32 %v2003_v6  ;;  %v1933_v43 = vsub.f32 %v4446_v23, %v4449_v14  ;;  %2277 = vst.msk [vmem:[#allocation2 + $0x20] sm:$0xff] %vm2264_vm0, %v4449_v14  ;;  %1975 = vperm.xlu1 %3041, %v4449_v14  }
 0x542   : > { %3146 = vpow2.f32 %v1463_v11  ;;  %v1473_v11 = vmul.f32 1.442695, %v4953_v46 }
 0x543   : > { %3148 = vpow2.f32 %v1467_v31 }
 0x544   : > { %3150 = vpow2.f32 %v1469_v41  ;;  %v4484_v17 = vpop.permute.xlu0 %1644 }
 0x545   : > { %3152 = vpow2.f32 %v1475_v7 }
 0x546   : > { %2143 = vperm.xlu0 %3046, %v4456_v32   ;;  %3154 = vpow2.f32 %v2007_v10 }
 0x547   : > { %v3145_v57 = vpop.eup %3144 }
 0x548   : > { %v2017_v47 = vpack.c.bf16 %v3145_v57, %v3143_v56  ;;  %v4465_v1 = vpop.eup %3146  ;;  %v4490_v57 = vld [vmem:[#allocation2 + $0x38] sm:$0xff] }
 0x549   : > { %1980 = vperm.xlu1 %3041, %v4430_v50   ;;  %v4472_v38 = vpop.eup %3148  ;;  %v4957_v50 = vld [vmem:[#allocation23_spill] sm:$0xff] }
 0x54a   : > { %2082 = vmatmul.bf16.vlgmr.msrb.gmra.mxu3 %v2017_v47  ;;  %v3151_v52 = vpop.eup %3150 }
 0x54b   : > { %v4480_v27 = vpop.eup %3152 }
 0x54c   : > { %v3155_v62 = vpop.eup %3154 }
 0x551   : > { %3042 = vset.pattern.permute.xlu1 %v4933_v34 }
 0x552   : > { %1639 = vperm.xlu1 %3042, %v4465_v1  }
 0x556   : > { %v2026_v39 = vpop.permute.xlu1 %2025 }
 0x557   : > { %2050 = vmatpush.bf16.msrb.mxu2 %v2026_v39 }
 0x55a   : > { %1649 = vperm.xlu1 %3042, %v4472_v38  }
 0x55e   : > { %v2024_v26 = vpop.permute.xlu1 %2023 }
 0x55f   : > { %2051 = vmatpush.bf16.msrb.mxu2 %v2024_v26 }
 0x562   : > { %1654 = vperm.xlu1 %3042, %v3151_v52  }
 0x566   : > { %v2022_v4 = vpop.permute.xlu1 %2021 }
 0x567   : > { %2052 = vmatpush.bf16.msrb.mxu2 %v2022_v4  ;;  %v1740_v4 = vld [vmem:[#allocation3 + $0x30] sm:$0xff] }
 0x568   : > { %v1748_v20 = vmul.f32 %v4480_v27, %v1740_v4 }
 0x56a   : > { %1669 = vperm.xlu1 %3042, %v4480_v27   ;;  %2053 = vmatmul.bf16.vlgmr.msrb.gmra.mxu2 %v2017_v47  ;;  %v4495_v47 = vpop.permute.xlu0 %1659 }
 0x56e   : > { %v1966_v37 = vpop.permute.xlu1 %1965 }
 0x56f   : > { %v1995_v6 = vsub.f32 %v4950_v58, %v1966_v37  ;;  %v1945_v58 = vmul.f32 1.442695, %v1933_v43 }
 0x571   : > { %v2005_v56 = vmul.f32 1.442695, %v1995_v6 }
 0x572   : > { %1695 = vrot.lane.b32.xlu1 %v4402_v12, %s3287_s7  ;;  %v4509_v22 = vpop.permute.xlu0 %1674 }
 0x573   : > { %3156 = vpow2.f32 %v2005_v56  ;;  %3045 = vset.pattern.permute.xlu1 %v4935_v54 }
 0x574   : > { %3158 = vpow2.f32 %v1473_v11 }
 0x575   : > { %v1920_v49 = vpop.xlane.xlu2 %1919 }
 0x576   : > { %v4498_v9 = vmax.f32 %v4490_v57, %v1920_v49 }
 0x578   : > { %v1936_v12 = vsub.f32 %v4490_v57, %v4498_v9  ;;  %2280 = vst.msk [vmem:[#allocation2 + $0x38] sm:$0xff] %vm2264_vm0, %v4498_v9  ;;  %1990 = vperm.xlu2 %3040, %v4498_v9  }
 0x579   : > { %v3157_v31 = vpop.eup %3156 }
 0x57a   : > { %1701 = vrot.lane.b32.xlu1 %v4416_v40, %s3287_s7  ;;  %v2018_v39 = vpack.c.bf16 %v3155_v62, %v3157_v31  ;;  %v4507_v55 = vpop.eup %3158  ;;  %v4514_v41 = vpop.permute.xlu0 %1697  ;;  %v4954_v40 = vld [vmem:[#allocation20_spill] sm:$0xff]  ;;  %v1951_v2 = vmul.f32 1.442695, %v1936_v12 }
 0x57b   : > { %v4956_v26 = vsub.f32 %v4954_v40, %v4955_v60  ;;  %v1634_v60 = vld [vmem:[#allocation4 + $0x28] sm:$0xff] }
 0x57c   : > { %2058 = vmatmul.bf16.gmra.mxu2 %v2018_v39  ;;  %2087 = vmatmul.bf16.gmra.mxu3 %v2018_v39 }
 0x57d   : > { %v1937_v3 = vmul.f32 1.442695, %v4956_v26 }
 0x57f   : > { %3160 = vpow2.f32 %v1937_v3 }
 0x580   : > { %3044 = vset.pattern.permute.xlu2 %v4933_v34 }
 0x581   : > { %1664 = vperm.xlu2 %3044, %v4507_v55  }
 0x582   : > { %1707 = vrot.lane.b32.xlu1 %v1597_v51, %s3287_s7 }
 0x585   : > { %v4534_v48 = vpop.eup %3160 }
 0x589   : > { %1693 = vrot.lane.b32.xlu2 %v4397_v45, %s3287_s7  ;;  %v1943_v45 = vmul.f32 1.442695, %v1932_v53 }
 0x58a   : > { %1762 = vrot.lane.b32.xlu1 %v4414_v8, %s3288_s8  ;;  %3047 = vset.pattern.permute.xlu2 %v4935_v54  ;;  %v1742_v54 = vmul.f32 %v4465_v1, %v1734_v15 }
 0x58b   : > { %3162 = vpow2.f32 %v1943_v45 }
 0x590   : > { %v4524_v34 = vpop.permute.xlu0 %1703 }
 0x591   : > { %1699 = vrot.lane.b32.xlu2 %v4412_v30, %s3287_s7  ;;  %v1737_v30 = vld [vmem:[#allocation3 + $0x18] sm:$0xff]  ;;  %v4542_v53 = vpop.eup %3162 }
 0x592   : > { %1768 = vrot.lane.b32.xlu1 %v4422_v35, %s3288_s8  ;;  %v1947_v35 = vmul.f32 1.442695, %v1934_v28  ;;  %v1745_v61 = vmul.f32 %v3151_v52, %v1737_v30  ;;  %v1931_v28 = vsub.f32 %v4957_v50, %v4263_v59  ;;  %v1626_v52 = vpop.f32.mrf.mxu1 }
 0x594   : > { %3164 = vpow2.f32 %v1947_v35 }
 0x598   : > { %v1759_v8 = vpop.permute.xlu0 %1758 }
 0x599   : > { %v1782_v7 = vadd.f32 %v1759_v8, %v1742_v54  ;;  %1705 = vrot.lane.b32.xlu2 %v1595_v19, %s3287_s7  ;;  %v1999_v19 = vsub.f32 %v4279_v24, %v4478_v33  ;;  %v1630_v8 = vld [vmem:[#allocation4 + $0x8] sm:$0xff] }
 0x59a   : > { %2113 = vperm.xlu1 %3045, %v4534_v48   ;;  %v4549_v37 = vpop.eup %3164 }
 0x59b   : > { %1791 = vst.msk [vmem:[#allocation3] sm:$0xff] %vm1790_vm11, %v1782_v7  ;;  %v2013_v12 = vmul.f32 1.442695, %v1999_v19  ;;  %v1678_v7 = vmul.f32 %v4484_v17, %v1630_v8  ;;  %v1635_v17 = vld [vmem:[#allocation4 + $0x30] sm:$0xff]  ;;  %v1739_v19 = vld [vmem:[#allocation3 + $0x28] sm:$0xff] }
 0x5a0   : > { %v1765_v21 = vpop.permute.xlu0 %1764 }
 0x5a1   : > { %v1785_v1 = vadd.f32 %v1765_v21, %v1745_v61  ;;  %1760 = vrot.lane.b32.xlu2 %v4410_v16, %s3288_s8  ;;  %v1941_v16 = vmul.f32 1.442695, %v1931_v28 }
 0x5a2   : > { %2128 = vperm.xlu1 %3045, %v4542_v53  }
 0x5a3   : > { %1794 = vst.msk [vmem:[#allocation3 + $0x18] sm:$0xff] %vm1790_vm11, %v1785_v1  ;;  %3166 = vpow2.f32 %v1941_v16  ;;  %v1632_v1 = vld [vmem:[#allocation4 + $0x18] sm:$0xff] }
 0x5a4   : > { %3168 = vpow2.f32 %v1945_v58 }
 0x5a8   : > { %v1771_v10 = vpop.permute.xlu0 %1770 }
 0x5a9   : > { %v1788_v18 = vadd.f32 %v1771_v10, %v1748_v20  ;;  %1766 = vrot.lane.b32.xlu2 %v4419_v29, %s3288_s8  ;;  %v4562_v29 = vpop.eup %3166 }
 0x5aa   : > { %2138 = vperm.xlu1 %3045, %v4549_v37   ;;  %v4569_v46 = vpop.eup %3168 }
 0x5ab   : > { %1797 = vst.msk [vmem:[#allocation3 + $0x30] sm:$0xff] %vm1790_vm11, %v1788_v18 }
 0x5b1   : > { %1772 = vrot.lane.b32.xlu2 %v1626_v52, %s3288_s8  ;;  %v1636_v52 = vld [vmem:[#allocation4 + $0x38] sm:$0xff] }
 0x5b2   : > { %v1684_v58 = vmul.f32 %v4509_v22, %v1636_v52 }
 0x5b3   : > { %v1976_v27 = vpop.permute.xlu1 %1975 }
 0x5b4   : > { %v1997_v6 = vsub.f32 %v4358_v25, %v1976_v27 }
 0x5b6   : > { %v2009_v59 = vmul.f32 1.442695, %v1997_v6 }
 0x5b8   : > { %3170 = vpow2.f32 %v2009_v59 }
 0x5b9   : > { %2123 = vperm.xlu2 %3047, %v4562_v29  }
 0x5bb   : > { %v1981_v56 = vpop.permute.xlu1 %1980 }
 0x5bc   : > { %v1998_v49 = vsub.f32 %v4340_v0, %v1981_v56  ;;  %v1631_v0 = vld [vmem:[#allocation4 + $0x10] sm:$0xff] }
 0x5be   : > { %v2011_v42 = vmul.f32 1.442695, %v1998_v49  ;;  %v3171_v23 = vpop.eup %3170 }
 0x5c0   : > { %3172 = vpow2.f32 %v2011_v42  ;;  %v1735_v42 = vld [vmem:[#allocation3 + $0x8] sm:$0xff] }
 0x5c1   : > { %2133 = vperm.xlu2 %3047, %v4569_v46   ;;  %3174 = vpow2.f32 %v1951_v2  ;;  %v1736_v2 = vld [vmem:[#allocation3 + $0x10] sm:$0xff] }
 0x5c2   : > { %3176 = vpow2.f32 %v2013_v12 }
 0x5c4   : > { %v1640_v25 = vpop.permute.xlu1 %1639 }
 0x5c6   : > { %v3173_v14 = vpop.eup %3172 }
 0x5c7   : > { %v2019_v43 = vpack.c.bf16 %v3173_v14, %v3171_v23  ;;  %v4572_v11 = vpop.eup %3174  ;;  %v1744_v14 = vmul.f32 %v4472_v38, %v1736_v2 }
 0x5c8   : > { %v3177_v3 = vpop.eup %3176 }
 0x5c9   : > { %2063 = vmatmul.bf16.gmra.mxu2 %v2019_v43  ;;  %2092 = vmatmul.bf16.gmra.mxu3 %v2019_v43 }
 0x5ca   : > { %2148 = vperm.xlu2 %3047, %v4572_v11  }
 0x5cc   : > { %v1650_v57 = vpop.permute.xlu1 %1649 }
 0x5cd   : > { %v1679_v9 = vmul.f32 %v1650_v57, %v1631_v0 }
 0x5cf   : > { %v1719_v62 = vadd.f32 %v4514_v41, %v1679_v9  ;;  %v1629_v41 = vld [vmem:[#allocation4] sm:$0xff] }
 0x5d0   : > { %v1738_v9 = vld [vmem:[#allocation3 + $0x20] sm:$0xff] }
 0x5d1   : > { %1728 = vst.msk [vmem:[#allocation4 + $0x10] sm:$0xff] %vm1725_vm2, %v1719_v62  ;;  %v1746_v62 = vmul.f32 %v4374_v44, %v1738_v9  ;;  %v2083_v44 = vpop.f32.mrf.mxu3 }
 0x5d2   : > { %v1991_v31 = vpop.permute.xlu2 %1990 }
 0x5d3   : > { %v2000_v39 = vsub.f32 %v4406_v13, %v1991_v31  ;;  %v1677_v13 = vmul.f32 %v1640_v25, %v1629_v41  ;;  %v1743_v25 = vmul.f32 %v4366_v63, %v1735_v42  ;;  %v1747_v63 = vmul.f32 %v4507_v55, %v1739_v19  ;;  %v2211_v19 = vld [vmem:[#allocation3 + $0x18] sm:$0xff] }
 0x5d4   : > { %v1655_v51 = vpop.permute.xlu1 %1654 }
 0x5d5   : > { %v2015_v40 = vmul.f32 1.442695, %v2000_v39  ;;  %v1680_v4 = vmul.f32 %v1655_v51, %v1632_v1 }
 0x5d7   : > { %3178 = vpow2.f32 %v2015_v40  ;;  %v1741_v40 = vld [vmem:[#allocation3 + $0x38] sm:$0xff] }
 0x5d9   : > { %v2085_v55 = vpop.f32.mrf.mxu3 }
 0x5db   : > { %v1665_v26 = vpop.permute.xlu2 %1664 }
 0x5dc   : > { %v1682_v15 = vmul.f32 %v1665_v26, %v1634_v60  ;;  %v1670_v45 = vpop.permute.xlu1 %1669  ;;  %v1749_v60 = vmul.f32 %v4380_v36, %v1741_v40  ;;  %v2119_v36 = vpop.permute.xlu0 %2118  ;;  %v2214_v40 = vld [vmem:[#allocation3 + $0x30] sm:$0xff] }
 0x5dd   : > { %v3179_v54 = vpop.eup %3178  ;;  %v1683_v27 = vmul.f32 %v1670_v45, %v1635_v17 }
 0x5de   : > { %v1722_v24 = vadd.f32 %v4524_v34, %v1682_v15  ;;  %v2020_v33 = vpack.c.bf16 %v3179_v54, %v3177_v3  ;;  %v1633_v34 = vld [vmem:[#allocation4 + $0x20] sm:$0xff] }
 0x5df   : > { %v1681_v20 = vmul.f32 %v4495_v47, %v1633_v34 }
 0x5e0   : > { %1731 = vst.msk [vmem:[#allocation4 + $0x28] sm:$0xff] %vm1725_vm2, %v1722_v24  ;;  %2068 = vmatmul.bf16.gmra.mxu2 %v2020_v33  ;;  %2097 = vmatmul.bf16.gmra.mxu3 %v2020_v33 }
 0x5e3   : > { %v1694_v30 = vpop.permute.xlu2 %1693 }
 0x5e4   : > { %v1717_v35 = vadd.f32 %v1694_v30, %v1677_v13  ;;  %v1696_v61 = vpop.permute.xlu1 %1695  ;;  %v2105_v30 = vld [vmem:[#allocation4 + $0x10] sm:$0xff] }
 0x5e5   : > { %v1718_v21 = vadd.f32 %v1696_v61, %v1678_v7 }
 0x5e6   : > { %1726 = vst.msk [vmem:[#allocation4] sm:$0xff] %vm1725_vm2, %v1717_v35 }
 0x5e7   : > { %1727 = vst.msk [vmem:[#allocation4 + $0x8] sm:$0xff] %vm1725_vm2, %v1718_v21 }
 0x5eb   : > { %v1700_v10 = vpop.permute.xlu2 %1699 }
 0x5ec   : > { %v1720_v18 = vadd.f32 %v1700_v10, %v1680_v4  ;;  %v1702_v50 = vpop.permute.xlu1 %1701  ;;  %v2144_v10 = vpop.permute.xlu0 %2143 }
 0x5ed   : > { %v1721_v28 = vadd.f32 %v1702_v50, %v1681_v20  ;;  %v2054_v16 = vpop.f32.mrf.mxu2  ;;  %v2103_v4 = vld [vmem:[#allocation4] sm:$0xff] }
 0x5ee   : > { %1729 = vst.msk [vmem:[#allocation4 + $0x18] sm:$0xff] %vm1725_vm2, %v1720_v18  ;;  %2167 = vrot.lane.b32.xlu1 %v2054_v16, %s3289_s9  ;;  %v2104_v17 = vld [vmem:[#allocation4 + $0x8] sm:$0xff] }
 0x5ef   : > { %1730 = vst.msk [vmem:[#allocation4 + $0x20] sm:$0xff] %vm1725_vm2, %v1721_v28  ;;  %v2152_v52 = vmul.f32 %v2119_v36, %v2104_v17 }
 0x5f3   : > { %v1706_v6 = vpop.permute.xlu2 %1705 }
 0x5f4   : > { %v1723_v59 = vadd.f32 %v1706_v6, %v1683_v27  ;;  %v1708_v47 = vpop.permute.xlu1 %1707 }
 0x5f5   : > { %v1724_v56 = vadd.f32 %v1708_v47, %v1684_v58  ;;  %v2056_v49 = vpop.f32.mrf.mxu2  ;;  %v2106_v47 = vld [vmem:[#allocation4 + $0x18] sm:$0xff] }
 0x5f6   : > { %1732 = vst.msk [vmem:[#allocation4 + $0x30] sm:$0xff] %vm1725_vm2, %v1723_v59  ;;  %2169 = vrot.lane.b32.xlu0 %v2056_v49, %s3289_s9 }
 0x5f7   : > { %1733 = vst.msk [vmem:[#allocation4 + $0x38] sm:$0xff] %vm1725_vm2, %v1724_v56 }
 0x5fb   : > { %v1761_v23 = vpop.permute.xlu2 %1760 }
 0x5fc   : > { %v1783_v43 = vadd.f32 %v1761_v23, %v1743_v25  ;;  %v1763_v22 = vpop.permute.xlu1 %1762  ;;  %v2108_v25 = vld [vmem:[#allocation4 + $0x28] sm:$0xff] }
 0x5fd   : > { %v1784_v0 = vadd.f32 %v1763_v22, %v1744_v14  ;;  %v2208_v22 = vld [vmem:[#allocation3] sm:$0xff] }
 0x5fe   : > { %1792 = vst.msk [vmem:[#allocation3 + $0x8] sm:$0xff] %vm1790_vm11, %v1783_v43 }
 0x5ff   : > { %1793 = vst.msk [vmem:[#allocation3 + $0x10] sm:$0xff] %vm1790_vm11, %v1784_v0  ;;  %v2059_v57 = vpop.f32.mrf.mxu2  ;;  %v2088_v54 = vpop.f32.mrf.mxu3  ;;  %v2216_v0 = vmul.f32 %v4534_v48, %v2208_v22  ;;  %v2222_v48 = vmul.f32 %v4456_v32, %v2214_v40 }
 0x600   : > { %2171 = vrot.lane.b32.xlu2 %v2059_v57, %s3289_s9 }
 0x603   : > { %v1767_v12 = vpop.permute.xlu2 %1766 }
 0x604   : > { %v1786_v31 = vadd.f32 %v1767_v12, %v1746_v62  ;;  %v1769_v39 = vpop.permute.xlu1 %1768  ;;  %v2107_v62 = vld [vmem:[#allocation4 + $0x20] sm:$0xff] }
 0x605   : > { %v1787_v38 = vadd.f32 %v1769_v39, %v1747_v63  ;;  %v2219_v63 = vmul.f32 %v4542_v53, %v2211_v19  ;;  %v2209_v53 = vld [vmem:[#allocation3 + $0x8] sm:$0xff] }
 0x606   : > { %1795 = vst.msk [vmem:[#allocation3 + $0x20] sm:$0xff] %vm1790_vm11, %v1786_v31  ;;  %v2210_v36 = vld [vmem:[#allocation3 + $0x10] sm:$0xff] }
 0x607   : > { %1796 = vst.msk [vmem:[#allocation3 + $0x28] sm:$0xff] %vm1790_vm11, %v1787_v38  ;;  %v2061_v51 = vpop.f32.mrf.mxu2  ;;  %v2090_v8 = vpop.f32.mrf.mxu3 }
 0x608   : > { %2173 = vrot.lane.b32.xlu1 %v2061_v51, %s3289_s9 }
 0x60b   : > { %v1773_v26 = vpop.permute.xlu2 %1772 }
 0x60c   : > { %v1789_v3 = vadd.f32 %v1773_v26, %v1749_v60  ;;  %v2114_v45 = vpop.permute.xlu1 %2113 }
 0x60d   : > { %v2151_v20 = vmul.f32 %v2114_v45, %v2103_v4  ;;  %v2110_v45 = vld [vmem:[#allocation4 + $0x38] sm:$0xff] }
 0x60e   : > { %1798 = vst.msk [vmem:[#allocation3 + $0x38] sm:$0xff] %vm1790_vm11, %v1789_v3  ;;  %v2109_v3 = vld [vmem:[#allocation4 + $0x30] sm:$0xff] }
 0x613   : > { %v2124_v15 = vpop.permute.xlu2 %2123 }
 0x614   : > { %v2129_v41 = vpop.permute.xlu1 %2128  ;;  %v2153_v61 = vmul.f32 %v2124_v15, %v2105_v30 }
 0x615   : > { %v2154_v56 = vmul.f32 %v2129_v41, %v2106_v47 }
 0x61b   : > { %v2134_v24 = vpop.permute.xlu2 %2133 }
 0x61c   : > { %v2139_v35 = vpop.permute.xlu1 %2138  ;;  %v2155_v12 = vmul.f32 %v2134_v24, %v2107_v62  ;;  %v2217_v24 = vmul.f32 %v4442_v5, %v2209_v53  ;;  %v2215_v5 = vld [vmem:[#allocation3 + $0x38] sm:$0xff] }
 0x61d   : > { %v2156_v23 = vmul.f32 %v2139_v35, %v2108_v25  ;;  %v2218_v35 = vmul.f32 %v4562_v29, %v2210_v36  ;;  %v2223_v4 = vmul.f32 %v4572_v11, %v2215_v5 }
 0x624   : > { %v4606_v13 = vpop.permute.xlu2 %2148 }
 0x64c   : > { %v2064_v33 = vpop.f32.mrf.mxu2  ;;  %v2093_v21 = vpop.f32.mrf.mxu3 }
 0x64d   : > { %2175 = vrot.lane.b32.xlu0 %v2064_v33, %s3289_s9 }
 0x654   : > { %v2066_v7 = vpop.f32.mrf.mxu2  ;;  %v2095_v16 = vpop.f32.mrf.mxu3 }
 0x655   : > { %2177 = vrot.lane.b32.xlu2 %v2066_v7, %s3289_s9  ;;  %v2212_v7 = vld [vmem:[#allocation3 + $0x20] sm:$0xff] }
 0x656   : > { %v2220_v30 = vmul.f32 %v4569_v46, %v2212_v7 }
 0x65a   : > { %v2172_v1 = vpop.permute.xlu2 %2171 }
 0x65b   : > { %v2193_v34 = vadd.f32 %v2172_v1, %v2153_v61 }
 0x65d   : > { %2202 = vst.msk [vmem:[#allocation4 + $0x10] sm:$0xff] %vm2199_vm8, %v2193_v34  ;;  %2232 = vrot.lane.b32.xlu2 %v2083_v44, %s3290_s10  ;;  %v2157_v44 = vmul.f32 %v2144_v10, %v2109_v3  ;;  %v2213_v34 = vld [vmem:[#allocation3 + $0x28] sm:$0xff] }
 0x660   : > { %v2168_v18 = vpop.permute.xlu1 %2167 }
 0x661   : > { %v2191_v50 = vadd.f32 %v2168_v18, %v2151_v20  ;;  %v2221_v20 = vmul.f32 %v4549_v37, %v2213_v34 }
 0x663   : > { %2200 = vst.msk [vmem:[#allocation4] sm:$0xff] %vm2199_vm8, %v2191_v50  ;;  %v2069_v28 = vpop.f32.mrf.mxu2  ;;  %v2098_v59 = vpop.f32.mrf.mxu3 }
 0x664   : > { %2179 = vrot.lane.b32.xlu1 %v2069_v28, %s3289_s9 }
 0x665   : > { %2238 = vrot.lane.b32.xlu2 %v2090_v8, %s3290_s10 }
 0x668   : > { %v2170_v27 = vpop.permute.xlu0 %2169 }
 0x669   : > { %v2192_v58 = vadd.f32 %v2170_v27, %v2152_v52 }
 0x66b   : > { %2201 = vst.msk [vmem:[#allocation4 + $0x8] sm:$0xff] %vm2199_vm8, %v2192_v58  ;;  %v2071_v6 = vpop.f32.mrf.mxu2  ;;  %v2100_v42 = vpop.f32.mrf.mxu3 }
 0x66c   : > { %2234 = vrot.lane.b32.xlu1 %v2085_v55, %s3290_s10  ;;  %2181 = vrot.lane.b32.xlu0 %v2071_v6, %s3289_s9 }
 0x66d   : > { %2244 = vrot.lane.b32.xlu2 %v2098_v59, %s3290_s10 }
 0x674   : > { %2240 = vrot.lane.b32.xlu1 %v2093_v21, %s3290_s10  ;;  %2236 = vrot.lane.b32.xlu0 %v2088_v54, %s3290_s10  ;;  %v2158_v54 = vmul.f32 %v4606_v13, %v2110_v45 }
 0x67a   : > { %v2174_v49 = vpop.permute.xlu1 %2173 }
 0x67b   : > { %v2194_v2 = vadd.f32 %v2174_v49, %v2154_v56 }
 0x67c   : > { %2246 = vrot.lane.b32.xlu1 %v2100_v42, %s3290_s10  ;;  %2242 = vrot.lane.b32.xlu0 %v2095_v16, %s3290_s10 }
 0x67d   : > { %2203 = vst.msk [vmem:[#allocation4 + $0x18] sm:$0xff] %vm2199_vm8, %v2194_v2 }
 0x6af   : > { %v2178_v14 = vpop.permute.xlu2 %2177 }
 0x6b0   : > { %v2196_v43 = vadd.f32 %v2178_v14, %v2156_v23 }
 0x6b2   : > { %2205 = vst.msk [vmem:[#allocation4 + $0x28] sm:$0xff] %vm2199_vm8, %v2196_v43 }
 0x6b7   : > { %v2233_v57 = vpop.permute.xlu2 %2232 }
 0x6b8   : > { %v2256_v9 = vadd.f32 %v2233_v57, %v2216_v0 }
 0x6ba   : > { %2265 = vst.msk [vmem:[#allocation3] sm:$0xff] %vm2264_vm0, %v2256_v9 }
 0x6bf   : > { %v2176_v31 = vpop.permute.xlu0 %2175  ;;  %v2239_v39 = vpop.permute.xlu2 %2238 }
 0x6c0   : > { %v2195_v38 = vadd.f32 %v2176_v31, %v2155_v12  ;;  %v2259_v51 = vadd.f32 %v2239_v39, %v2219_v63 }
 0x6c2   : > { %2204 = vst.msk [vmem:[#allocation4 + $0x20] sm:$0xff] %vm2199_vm8, %v2195_v38 }
 0x6c3   : > { %2268 = vst.msk [vmem:[#allocation3 + $0x18] sm:$0xff] %vm2264_vm0, %v2259_v51 }
 0x6c7   : > { %v2245_v60 = vpop.permute.xlu2 %2244 }
 0x6c8   : > { %v2262_v26 = vadd.f32 %v2245_v60, %v2222_v48 }
 0x6ca   : > { %2271 = vst.msk [vmem:[#allocation3 + $0x30] sm:$0xff] %vm2264_vm0, %v2262_v26 }
 0x6d6   : > { %v2180_v15 = vpop.permute.xlu1 %2179 }
 0x6d7   : > { %v2197_v55 = vadd.f32 %v2180_v15, %v2157_v44 }
 0x6d9   : > { %2206 = vst.msk [vmem:[#allocation4 + $0x30] sm:$0xff] %vm2199_vm8, %v2197_v55 }
 0x6de   : > { %v2235_v33 = vpop.permute.xlu1 %2234  ;;  %v2182_v41 = vpop.permute.xlu0 %2181 }
 0x6df   : > { %v2257_v8 = vadd.f32 %v2235_v33, %v2217_v24  ;;  %v2198_v32 = vadd.f32 %v2182_v41, %v2158_v54 }
 0x6e1   : > { %2266 = vst.msk [vmem:[#allocation3 + $0x8] sm:$0xff] %vm2264_vm0, %v2257_v8 }
 0x6e2   : > { %2207 = vst.msk [vmem:[#allocation4 + $0x38] sm:$0xff] %vm2199_vm8, %v2198_v32 }
 0x6e6   : > { %v2241_v61 = vpop.permute.xlu1 %2240  ;;  %v2237_v21 = vpop.permute.xlu0 %2236 }
 0x6e7   : > { %v2260_v1 = vadd.f32 %v2241_v61, %v2220_v30  ;;  %v2258_v13 = vadd.f32 %v2237_v21, %v2218_v35 }
 0x6e9   : > { %2269 = vst.msk [vmem:[#allocation3 + $0x20] sm:$0xff] %vm2264_vm0, %v2260_v1 }
 0x6ea   : > { %2267 = vst.msk [vmem:[#allocation3 + $0x10] sm:$0xff] %vm2264_vm0, %v2258_v13 }
 0x6ee   : > { %v2247_v10 = vpop.permute.xlu1 %2246  ;;  %v2243_v18 = vpop.permute.xlu0 %2242  ;;  %2284 = sbr.rel (%p2932_p0) target bundleno = 2005 (0x7d5), region = 86 }
 0x6ef   : > { %v2263_v50 = vadd.f32 %v2247_v10, %v2223_v4  ;;  %v2261_v46 = vadd.f32 %v2243_v18, %v2221_v20 }
 0x6f1   : > { %2272 = vst.msk [vmem:[#allocation3 + $0x38] sm:$0xff] %vm2264_vm0, %v2263_v50 }
 0x6f2   : > { %2270 = vst.msk [vmem:[#allocation3 + $0x28] sm:$0xff] %vm2264_vm0, %v2261_v46 }
 0x6f3   : > { %v2287_v29 = vld [vmem:[#allocation3 + $0x10] sm:$0xff]  ;;  %v2285_v28 = vld [vmem:[#allocation3] sm:$0xff]  ;;  %v3291_v16 = vmov 0   ;;  %v2288_v11 = vld [vmem:[#allocation3 + $0x18] sm:$0xff]  ;;  %v3292_v62 = vmov 1   ;;  %v3293_v12 = vmov 2  }
 0x6f4   : > { %3189 = vset.pattern.permute.xlu1 %v3291_v16  ;;  %v2295_v17 = vmax.f32 %v2287_v29, 1e-20  ;;  %3188 = vset.pattern.permute.xlu0 %v3291_v16  ;;  %v2293_v37 = vmax.f32 %v2285_v28, 1e-20  ;;  %v2289_v52 = vld [vmem:[#allocation3 + $0x20] sm:$0xff]  ;;  %v2286_v58 = vld [vmem:[#allocation3 + $0x8] sm:$0xff] }
 0x6f5   : > { %3190 = vset.pattern.permute.xlu2 %v3291_v16  ;;  %v2297_v27 = vmax.f32 %v2289_v52, 1e-20  ;;  %v2296_v6 = vmax.f32 %v2288_v11, 1e-20  ;;  %v2294_v47 = vmax.f32 %v2286_v58, 1e-20 }
 0x6f6   : > { %3204 = vrcp.f32 %v2295_v17  ;;  %v2291_v23 = vld [vmem:[#allocation3 + $0x30] sm:$0xff]  ;;  %v3294_v63 = vmov 3   ;;  %v4640_v31 = vld [vmem:[#allocation4 + $0x20] sm:$0xff]  ;;  %v4649_v60 = vld [vmem:[#allocation4 + $0x28] sm:$0xff]  ;;  %vm2393_vm9 = vcmask 60416   ;;  %vm2510_vm10 = vcmask 126016  }
 0x6f7   : > { %3206 = vrcp.f32 %v2293_v37  ;;  %v2299_v22 = vmax.f32 %v2291_v23, 1e-20  ;;  %v4645_v38 = vld [vmem:[%s4853_s4] ss:$0 sm:$0xff]  ;;  %v4665_v41 = vld [vmem:[#allocation4 + $0x10] sm:$0xff]  ;;  %v4671_v61 = vld [vmem:[#allocation4 + $0x18] sm:$0xff] }
 0x6f8   : > { %3208 = vrcp.f32 %v2297_v27  ;;  %v2292_v42 = vld [vmem:[#allocation3 + $0x38] sm:$0xff]  ;;  %v4655_v45 = vld [vmem:[#allocation4] sm:$0xff]  ;;  %v4676_v46 = vld [vmem:[#allocation4 + $0x8] sm:$0xff]  ;;  %vm2627_vm11 = vcmask 191616   ;;  %vm2744_vm12 = vcmask 257216   ;;  %vm2753_vm13 = vcmask 1043712  }
 0x6f9   : > { %v2290_v59 = vld [vmem:[#allocation3 + $0x28] sm:$0xff]  ;;  %3210 = vrcp.f32 %v2296_v6  ;;  %v2300_v14 = vmax.f32 %v2292_v42, 1e-20  ;;  %v4662_v54 = vld [vmem:[%s4853_s4] ss:$0 sm:$0xff]  ;;  %v4692_v23 = vld [vmem:[#allocation4 + $0x30] sm:$0xff] }
 0x6fa   : > { %v2298_v56 = vmax.f32 %v2290_v59, 1e-20  ;;  %3212 = vrcp.f32 %v2294_v47  ;;  %v4689_v47 = vld [vmem:[#allocation4 + $0x38] sm:$0xff] }
 0x6fc   : > { %v3205_v49 = vpop.eup %3204  ;;  %3214 = vrcp.f32 %v2298_v56 }
 0x6fd   : > { %2329 = vperm.xlu1 %3189, %v3205_v49   ;;  %v3207_v2 = vpop.eup %3206  ;;  %3216 = vrcp.f32 %v2300_v14 }
 0x6fe   : > { %v3209_v25 = vpop.eup %3208  ;;  %2319 = vperm.xlu0 %3188, %v3207_v2   ;;  %3218 = vrcp.f32 %v2299_v22 }
 0x6ff   : > { %2339 = vperm.xlu2 %3190, %v3209_v25   ;;  %v3211_v43 = vpop.eup %3210 }
 0x700   : > { %v3213_v0 = vpop.eup %3212 }
 0x702   : > { %v3215_v57 = vpop.eup %3214 }
 0x703   : > { %v3217_v9 = vpop.eup %3216 }
 0x704   : > { %v3219_v19 = vpop.eup %3218 }
 0x705   : > { %2334 = vperm.xlu1 %3189, %v3211_v43  }
 0x706   : > { %2324 = vperm.xlu0 %3188, %v3213_v0  }
 0x707   : > { %2344 = vperm.xlu2 %3190, %v3215_v57  }
 0x70d   : > { %2354 = vperm.xlu1 %3189, %v3217_v9  }
 0x70e   : > { %2349 = vperm.xlu0 %3188, %v3219_v19  }
 0x70f   : > { %3191 = vset.pattern.permute.xlu2 %v3292_v62 }
 0x710   : > { %2436 = vperm.xlu2 %3191, %v3207_v2  }
 0x715   : > { %3193 = vset.pattern.permute.xlu1 %v3292_v62 }
 0x716   : > { %2446 = vperm.xlu1 %3193, %v3205_v49   ;;  %3192 = vset.pattern.permute.xlu0 %v3292_v62  ;;  %v4706_v62 = vld [vmem:[%s4853_s4] ss:$0 sm:$0xff] }
 0x717   : > { %2441 = vperm.xlu0 %3192, %v3213_v0  }
 0x718   : > { %2451 = vperm.xlu2 %3191, %v3211_v43  }
 0x71e   : > { %2456 = vperm.xlu1 %3193, %v3209_v25  }
 0x71f   : > { %2466 = vperm.xlu0 %3192, %v3219_v19  }
 0x720   : > { %2461 = vperm.xlu2 %3191, %v3215_v57  }
 0x726   : > { %2471 = vperm.xlu1 %3193, %v3217_v9  }
 0x727   : > { %3195 = vset.pattern.permute.xlu0 %v3293_v12 }
 0x728   : > { %3194 = vset.pattern.permute.xlu2 %v3293_v12  ;;  %2558 = vperm.xlu0 %3195, %v3213_v0  }
 0x729   : > { %2553 = vperm.xlu2 %3194, %v3207_v2  }
 0x72e   : > { %3196 = vset.pattern.permute.xlu1 %v3293_v12 }
 0x72f   : > { %2563 = vperm.xlu1 %3196, %v3205_v49  }
 0x730   : > { %2583 = vperm.xlu0 %3195, %v3219_v19  }
 0x731   : > { %2568 = vperm.xlu2 %3194, %v3211_v43  }
 0x737   : > { %2573 = vperm.xlu1 %3196, %v3209_v25  }
 0x738   : > { %3198 = vset.pattern.permute.xlu0 %v3294_v63 }
 0x739   : > { %2578 = vperm.xlu2 %3194, %v3215_v57   ;;  %2675 = vperm.xlu0 %3198, %v3213_v0  }
 0x73f   : > { %2588 = vperm.xlu1 %3196, %v3217_v9  }
 0x741   : > { %3197 = vset.pattern.permute.xlu2 %v3294_v63  ;;  %2700 = vperm.xlu0 %3198, %v3219_v19  }
 0x742   : > { %2670 = vperm.xlu2 %3197, %v3207_v2  }
 0x747   : > { %3199 = vset.pattern.permute.xlu1 %v3294_v63 }
 0x748   : > { %2680 = vperm.xlu1 %3199, %v3205_v49  }
 0x74a   : > { %2685 = vperm.xlu2 %3197, %v3211_v43  }
 0x750   : > { %2690 = vperm.xlu1 %3199, %v3209_v25  }
 0x752   : > { %2695 = vperm.xlu2 %3197, %v3215_v57  }
 0x758   : > { %2705 = vperm.xlu1 %3199, %v3217_v9  }
 0x759   : > { %v2340_v39 = vpop.permute.xlu2 %2339 }
 0x75a   : > { %v2361_v51 = vmul.f32 %v2340_v39, %v4640_v31 }
 0x75c   : > { %v2373_v40 = vadd.f32 %v4645_v38, %v2361_v51 }
 0x75e   : > { %v2381_v48 = vmax.f32 %v2373_v40, 0.0 }
 0x760   : > { %v2389_v26 = vpack.c.bf16 %v2381_v48, %v2381_v48 }
 0x761   : > { %v2345_v3 = vpop.permute.xlu2 %2344 }
 0x762   : > { %2398 = vst.msk [vmem:[%s3407_s15 + $0x10] sm:$0xf] %vm2393_vm9, %v2389_v26  ;;  %v2362_v44 = vmul.f32 %v2345_v3, %v4649_v60 }
 0x764   : > { %v2374_v15 = vadd.f32 %v4645_v38, %v2362_v44 }
 0x766   : > { %v2382_v55 = vmax.f32 %v2374_v15, 0.0 }
 0x768   : > { %v2390_v53 = vpack.c.bf16 %v2382_v55, %v2382_v55 }
 0x76a   : > { %2399 = vst.msk [vmem:[%s3407_s15 + $0x14] sm:$0xf] %vm2393_vm9, %v2390_v53  ;;  %v2437_v24 = vpop.permute.xlu2 %2436 }
 0x76b   : > { %v2474_v33 = vmul.f32 %v2437_v24, %v4655_v45 }
 0x76d   : > { %v2486_v32 = vadd.f32 %v4662_v54, %v2474_v33 }
 0x76f   : > { %v2330_v8 = vpop.permute.xlu1 %2329  ;;  %v2494_v21 = vmax.f32 %v2486_v32, 0.0 }
 0x770   : > { %v2359_v7 = vmul.f32 %v2330_v8, %v4665_v41  ;;  %v2320_v36 = vpop.permute.xlu0 %2319 }
 0x771   : > { %v2357_v35 = vmul.f32 %v2320_v36, %v4655_v45  ;;  %v2502_v50 = vpack.c.bf16 %v2494_v21, %v2494_v21 }
 0x772   : > { %v2371_v30 = vadd.f32 %v4645_v38, %v2359_v7  ;;  %v2452_v1 = vpop.permute.xlu2 %2451 }
 0x773   : > { %v2369_v5 = vadd.f32 %v4645_v38, %v2357_v35  ;;  %v2477_v34 = vmul.f32 %v2452_v1, %v4671_v61 }
 0x774   : > { %v2379_v13 = vmax.f32 %v2371_v30, 0.0 }
 0x775   : > { %v2377_v20 = vmax.f32 %v2369_v5, 0.0  ;;  %v2489_v10 = vadd.f32 %v4662_v54, %v2477_v34 }
 0x776   : > { %v2387_v4 = vpack.c.bf16 %v2379_v13, %v2379_v13 }
 0x777   : > { %v2335_v18 = vpop.permute.xlu1 %2334  ;;  %v2385_v28 = vpack.c.bf16 %v2377_v20, %v2377_v20  ;;  %v2497_v37 = vmax.f32 %v2489_v10, 0.0 }
 0x778   : > { %2396 = vst.msk [vmem:[%s3407_s15 + $0x8] sm:$0xf] %vm2393_vm9, %v2387_v4  ;;  %v2360_v29 = vmul.f32 %v2335_v18, %v4671_v61  ;;  %v2325_v17 = vpop.permute.xlu0 %2324 }
 0x779   : > { %2394 = vst.msk [vmem:[%s3407_s15] sm:$0xf] %vm2393_vm9, %v2385_v28  ;;  %v2358_v52 = vmul.f32 %v2325_v17, %v4676_v46  ;;  %v2505_v56 = vpack.c.bf16 %v2497_v37, %v2497_v37 }
 0x77a   : > { %v2372_v11 = vadd.f32 %v4645_v38, %v2360_v29  ;;  %2511 = vst.msk [vmem:[%s3407_s15] sm:$0xf] %vm2510_vm10, %v2502_v50  ;;  %v2462_v27 = vpop.permute.xlu2 %2461 }
 0x77b   : > { %v2370_v6 = vadd.f32 %v4645_v38, %v2358_v52  ;;  %v2479_v59 = vmul.f32 %v2462_v27, %v4649_v60 }
 0x77c   : > { %v2380_v58 = vmax.f32 %v2372_v11, 0.0 }
 0x77d   : > { %v2378_v42 = vmax.f32 %v2370_v6, 0.0  ;;  %v2491_v2 = vadd.f32 %v4662_v54, %v2479_v59 }
 0x77e   : > { %v2388_v49 = vpack.c.bf16 %v2380_v58, %v2380_v58 }
 0x77f   : > { %v2355_v25 = vpop.permute.xlu1 %2354  ;;  %v2386_v43 = vpack.c.bf16 %v2378_v42, %v2378_v42  ;;  %v2499_v22 = vmax.f32 %v2491_v2, 0.0 }
 0x780   : > { %2397 = vst.msk [vmem:[%s3407_s15 + $0xc] sm:$0xf] %vm2393_vm9, %v2388_v49  ;;  %v2364_v14 = vmul.f32 %v2355_v25, %v4689_v47  ;;  %v2350_v0 = vpop.permute.xlu0 %2349  ;;  %v4747_v25 = vld [vmem:[%s4853_s4] ss:$0 sm:$0xff] }
 0x781   : > { %2514 = vst.msk [vmem:[%s3407_s15 + $0xc] sm:$0xf] %vm2510_vm10, %v2505_v56  ;;  %v2363_v9 = vmul.f32 %v2350_v0, %v4692_v23  ;;  %v2507_v19 = vpack.c.bf16 %v2499_v22, %v2499_v22 }
 0x782   : > { %v2376_v57 = vadd.f32 %v4645_v38, %v2364_v14  ;;  %2395 = vst.msk [vmem:[%s3407_s15 + $0x4] sm:$0xf] %vm2393_vm9, %v2386_v43 }
 0x783   : > { %v2375_v63 = vadd.f32 %v4645_v38, %v2363_v9  ;;  %2516 = vst.msk [vmem:[%s3407_s15 + $0x14] sm:$0xf] %vm2510_vm10, %v2507_v19  ;;  %v2554_v39 = vpop.permute.xlu2 %2553 }
 0x784   : > { %v2384_v12 = vmax.f32 %v2376_v57, 0.0  ;;  %v2591_v51 = vmul.f32 %v2554_v39, %v4655_v45 }
 0x785   : > { %v2383_v48 = vmax.f32 %v2375_v63, 0.0 }
 0x786   : > { %v2392_v40 = vpack.c.bf16 %v2384_v12, %v2384_v12  ;;  %v2603_v26 = vadd.f32 %v4706_v62, %v2591_v51 }
 0x787   : > { %v2391_v3 = vpack.c.bf16 %v2383_v48, %v2383_v48 }
 0x788   : > { %2401 = vst.msk [vmem:[%s3407_s15 + $0x1c] sm:$0xf] %vm2393_vm9, %v2392_v40  ;;  %v2447_v44 = vpop.permute.xlu1 %2446  ;;  %v2611_v55 = vmax.f32 %v2603_v26, 0.0 }
 0x789   : > { %v2476_v15 = vmul.f32 %v2447_v44, %v4665_v41  ;;  %2400 = vst.msk [vmem:[%s3407_s15 + $0x18] sm:$0xf] %vm2393_vm9, %v2391_v3  ;;  %v2442_v38 = vpop.permute.xlu0 %2441 }
 0x78a   : > { %v2619_v24 = vpack.c.bf16 %v2611_v55, %v2611_v55  ;;  %v2475_v33 = vmul.f32 %v2442_v38, %v4676_v46 }
 0x78b   : > { %v2488_v53 = vadd.f32 %v4662_v54, %v2476_v15  ;;  %v2569_v8 = vpop.permute.xlu2 %2568 }
 0x78c   : > { %2628 = vst.msk [vmem:[%s3407_s15] sm:$0xf] %vm2627_vm11, %v2619_v24  ;;  %v2487_v7 = vadd.f32 %v4662_v54, %v2475_v33  ;;  %v2594_v36 = vmul.f32 %v2569_v8, %v4671_v61 }
 0x78d   : > { %v2496_v32 = vmax.f32 %v2488_v53, 0.0 }
 0x78e   : > { %v2495_v35 = vmax.f32 %v2487_v7, 0.0  ;;  %v2606_v21 = vadd.f32 %v4706_v62, %v2594_v36 }
 0x78f   : > { %v2504_v30 = vpack.c.bf16 %v2496_v32, %v2496_v32 }
 0x790   : > { %v2457_v1 = vpop.permute.xlu1 %2456  ;;  %v2503_v5 = vpack.c.bf16 %v2495_v35, %v2495_v35  ;;  %v2614_v34 = vmax.f32 %v2606_v21, 0.0 }
 0x791   : > { %2513 = vst.msk [vmem:[%s3407_s15 + $0x8] sm:$0xf] %vm2510_vm10, %v2504_v30  ;;  %v2478_v13 = vmul.f32 %v2457_v1, %v4640_v31  ;;  %v2467_v4 = vpop.permute.xlu0 %2466 }
 0x792   : > { %2512 = vst.msk [vmem:[%s3407_s15 + $0x4] sm:$0xf] %vm2510_vm10, %v2503_v5  ;;  %v2622_v10 = vpack.c.bf16 %v2614_v34, %v2614_v34  ;;  %v2480_v18 = vmul.f32 %v2467_v4, %v4692_v23 }
 0x793   : > { %v2490_v20 = vadd.f32 %v4662_v54, %v2478_v13  ;;  %v2579_v50 = vpop.permute.xlu2 %2578 }
 0x794   : > { %2631 = vst.msk [vmem:[%s3407_s15 + $0xc] sm:$0xf] %vm2627_vm11, %v2622_v10  ;;  %v2492_v28 = vadd.f32 %v4662_v54, %v2480_v18  ;;  %v2596_v17 = vmul.f32 %v2579_v50, %v4649_v60 }
 0x795   : > { %v2498_v29 = vmax.f32 %v2490_v20, 0.0 }
 0x796   : > { %v2500_v11 = vmax.f32 %v2492_v28, 0.0  ;;  %v2608_v52 = vadd.f32 %v4706_v62, %v2596_v17 }
 0x797   : > { %v2506_v37 = vpack.c.bf16 %v2498_v29, %v2498_v29 }
 0x798   : > { %v2472_v27 = vpop.permute.xlu1 %2471  ;;  %v2508_v6 = vpack.c.bf16 %v2500_v11, %v2500_v11  ;;  %v2616_v59 = vmax.f32 %v2608_v52, 0.0 }
 0x799   : > { %2515 = vst.msk [vmem:[%s3407_s15 + $0x10] sm:$0xf] %vm2510_vm10, %v2506_v37  ;;  %v2481_v58 = vmul.f32 %v2472_v27, %v4689_v47 }
 0x79a   : > { %2517 = vst.msk [vmem:[%s3407_s15 + $0x18] sm:$0xf] %vm2510_vm10, %v2508_v6  ;;  %v2624_v49 = vpack.c.bf16 %v2616_v59, %v2616_v59  ;;  %v2559_v42 = vpop.permute.xlu0 %2558 }
 0x79b   : > { %v2493_v56 = vadd.f32 %v4662_v54, %v2481_v58  ;;  %v2592_v2 = vmul.f32 %v2559_v42, %v4676_v46 }
 0x79c   : > { %2633 = vst.msk [vmem:[%s3407_s15 + $0x14] sm:$0xf] %vm2627_vm11, %v2624_v49  ;;  %v2671_v43 = vpop.permute.xlu2 %2670 }
 0x79d   : > { %v2501_v14 = vmax.f32 %v2493_v56, 0.0  ;;  %v2604_v22 = vadd.f32 %v4706_v62, %v2592_v2  ;;  %v2708_v54 = vmul.f32 %v2671_v43, %v4655_v45 }
 0x79f   : > { %v2509_v0 = vpack.c.bf16 %v2501_v14, %v2501_v14  ;;  %v2612_v57 = vmax.f32 %v2604_v22, 0.0  ;;  %v2720_v9 = vadd.f32 %v4747_v25, %v2708_v54 }
 0x7a1   : > { %2518 = vst.msk [vmem:[%s3407_s15 + $0x1c] sm:$0xf] %vm2510_vm10, %v2509_v0  ;;  %v2564_v19 = vpop.permute.xlu1 %2563  ;;  %v2620_v63 = vpack.c.bf16 %v2612_v57, %v2612_v57  ;;  %v2728_v39 = vmax.f32 %v2720_v9, 0.0 }
 0x7a2   : > { %v2593_v12 = vmul.f32 %v2564_v19, %v4665_v41  ;;  %v2584_v51 = vpop.permute.xlu0 %2583 }
 0x7a3   : > { %2629 = vst.msk [vmem:[%s3407_s15 + $0x4] sm:$0xf] %vm2627_vm11, %v2620_v63  ;;  %v2736_v45 = vpack.c.bf16 %v2728_v39, %v2728_v39  ;;  %v2597_v48 = vmul.f32 %v2584_v51, %v4692_v23 }
 0x7a4   : > { %v2605_v40 = vadd.f32 %v4706_v62, %v2593_v12  ;;  %v2686_v26 = vpop.permute.xlu2 %2685 }
 0x7a5   : > { %2745 = vst.msk [vmem:[%s3407_s15] sm:$0xf] %vm2744_vm12, %v2736_v45  ;;  %v2609_v44 = vadd.f32 %v4706_v62, %v2597_v48  ;;  %v2711_v15 = vmul.f32 %v2686_v26, %v4671_v61 }
 0x7a6   : > { %v2613_v3 = vmax.f32 %v2605_v40, 0.0  ;;  %2754 = vst.msk [vmem:[%s3407_s15] sm:$0xf] %vm2753_vm13, %v3291_v16 }
 0x7a7   : > { %v2617_v38 = vmax.f32 %v2609_v44, 0.0  ;;  %v2723_v53 = vadd.f32 %v4747_v25, %v2711_v15 }
 0x7a8   : > { %v2621_v55 = vpack.c.bf16 %v2613_v3, %v2613_v3 }
 0x7a9   : > { %v2574_v24 = vpop.permute.xlu1 %2573  ;;  %v2625_v8 = vpack.c.bf16 %v2617_v38, %v2617_v38  ;;  %v2731_v32 = vmax.f32 %v2723_v53, 0.0 }
 0x7aa   : > { %2630 = vst.msk [vmem:[%s3407_s15 + $0x8] sm:$0xf] %vm2627_vm11, %v2621_v55  ;;  %v2595_v33 = vmul.f32 %v2574_v24, %v4640_v31 }
 0x7ab   : > { %2634 = vst.msk [vmem:[%s3407_s15 + $0x18] sm:$0xf] %vm2627_vm11, %v2625_v8  ;;  %v2739_v61 = vpack.c.bf16 %v2731_v32, %v2731_v32  ;;  %v2676_v36 = vpop.permute.xlu0 %2675 }
 0x7ac   : > { %v2607_v7 = vadd.f32 %v4706_v62, %v2595_v33  ;;  %v2696_v30 = vpop.permute.xlu2 %2695  ;;  %v2709_v35 = vmul.f32 %v2676_v36, %v4676_v46 }
 0x7ad   : > { %2748 = vst.msk [vmem:[%s3407_s15 + $0xc] sm:$0xf] %vm2744_vm12, %v2739_v61  ;;  %v2713_v1 = vmul.f32 %v2696_v30, %v4649_v60 }
 0x7ae   : > { %v2615_v21 = vmax.f32 %v2607_v7, 0.0  ;;  %2757 = vst.msk [vmem:[%s3407_s15 + $0xc] sm:$0xf] %vm2753_vm13, %v3291_v16  ;;  %v2721_v13 = vadd.f32 %v4747_v25, %v2709_v35 }
 0x7af   : > { %v2725_v34 = vadd.f32 %v4747_v25, %v2713_v1 }
 0x7b0   : > { %v2623_v5 = vpack.c.bf16 %v2615_v21, %v2615_v21  ;;  %v2729_v20 = vmax.f32 %v2721_v13, 0.0 }
 0x7b1   : > { %v2589_v4 = vpop.permute.xlu1 %2588  ;;  %v2733_v10 = vmax.f32 %v2725_v34, 0.0 }
 0x7b2   : > { %2632 = vst.msk [vmem:[%s3407_s15 + $0x10] sm:$0xf] %vm2627_vm11, %v2623_v5  ;;  %v2598_v46 = vmul.f32 %v2589_v4, %v4689_v47  ;;  %v2737_v60 = vpack.c.bf16 %v2729_v20, %v2729_v20 }
 0x7b3   : > { %v2741_v50 = vpack.c.bf16 %v2733_v10, %v2733_v10  ;;  %v2701_v29 = vpop.permute.xlu0 %2700 }
 0x7b4   : > { %v2610_v18 = vadd.f32 %v4706_v62, %v2598_v46  ;;  %2746 = vst.msk [vmem:[%s3407_s15 + $0x4] sm:$0xf] %vm2744_vm12, %v2737_v60  ;;  %v2714_v28 = vmul.f32 %v2701_v29, %v4692_v23 }
 0x7b5   : > { %2750 = vst.msk [vmem:[%s3407_s15 + $0x14] sm:$0xf] %vm2744_vm12, %v2741_v50 }
 0x7b6   : > { %v2618_v17 = vmax.f32 %v2610_v18, 0.0  ;;  %2759 = vst.msk [vmem:[%s3407_s15 + $0x14] sm:$0xf] %vm2753_vm13, %v3291_v16  ;;  %v2726_v37 = vadd.f32 %v4747_v25, %v2714_v28 }
 0x7b7   : > { %2755 = vst.msk [vmem:[%s3407_s15 + $0x4] sm:$0xf] %vm2753_vm13, %v3291_v16 }
 0x7b8   : > { %v2626_v11 = vpack.c.bf16 %v2618_v17, %v2618_v17  ;;  %v2734_v62 = vmax.f32 %v2726_v37, 0.0 }
 0x7ba   : > { %2635 = vst.msk [vmem:[%s3407_s15 + $0x1c] sm:$0xf] %vm2627_vm11, %v2626_v11  ;;  %v2681_v52 = vpop.permute.xlu1 %2680  ;;  %v2742_v27 = vpack.c.bf16 %v2734_v62, %v2734_v62 }
 0x7bb   : > { %v2710_v23 = vmul.f32 %v2681_v52, %v4665_v41 }
 0x7bc   : > { %2751 = vst.msk [vmem:[%s3407_s15 + $0x18] sm:$0xf] %vm2744_vm12, %v2742_v27 }
 0x7bd   : > { %v2722_v58 = vadd.f32 %v4747_v25, %v2710_v23  ;;  %2760 = vst.msk [vmem:[%s3407_s15 + $0x18] sm:$0xf] %vm2753_vm13, %v3291_v16 }
 0x7bf   : > { %v2730_v6 = vmax.f32 %v2722_v58, 0.0 }
 0x7c1   : > { %v2738_v59 = vpack.c.bf16 %v2730_v6, %v2730_v6 }
 0x7c2   : > { %v2691_v56 = vpop.permute.xlu1 %2690 }
 0x7c3   : > { %2747 = vst.msk [vmem:[%s3407_s15 + $0x8] sm:$0xf] %vm2744_vm12, %v2738_v59  ;;  %v2712_v49 = vmul.f32 %v2691_v56, %v4640_v31 }
 0x7c4   : > { %2756 = vst.msk [vmem:[%s3407_s15 + $0x8] sm:$0xf] %vm2753_vm13, %v3291_v16 }
 0x7c5   : > { %v2724_v41 = vadd.f32 %v4747_v25, %v2712_v49 }
 0x7c7   : > { %v2732_v42 = vmax.f32 %v2724_v41, 0.0 }
 0x7c9   : > { %v2740_v2 = vpack.c.bf16 %v2732_v42, %v2732_v42 }
 0x7ca   : > { %v2706_v14 = vpop.permute.xlu1 %2705 }
 0x7cb   : > { %2749 = vst.msk [vmem:[%s3407_s15 + $0x10] sm:$0xf] %vm2744_vm12, %v2740_v2  ;;  %v2715_v43 = vmul.f32 %v2706_v14, %v4689_v47 }
 0x7cc   : > { %2758 = vst.msk [vmem:[%s3407_s15 + $0x10] sm:$0xf] %vm2753_vm13, %v3291_v16 }
 0x7cd   : > { %v2727_v22 = vadd.f32 %v4747_v25, %v2715_v43 }
 0x7cf   : > { %v2735_v54 = vmax.f32 %v2727_v22, 0.0 }
 0x7d1   : > { %v2743_v0 = vpack.c.bf16 %v2735_v54, %v2735_v54 }
 0x7d3   : > { %2752 = vst.msk [vmem:[%s3407_s15 + $0x1c] sm:$0xf] %vm2744_vm12, %v2743_v0 }
 0x7d4   : > { %2761 = vst.msk [vmem:[%s3407_s15 + $0x1c] sm:$0xf] %vm2753_vm13, %v3291_v16 }
 0x7d5 PF: > { %s15_s24 = sadd.s32 1, %s3274_s24   ;;  %s4958_s29 = sld [smem:[#allocation6_spill]] }
 0x7d6   : > { %p12_p1 = scmp.ge.s32.totalorder %s15_s24, 10   ;;  %s4959_s18 = smov %s3254_s19 }
 0x7d7   : > { %s4960_s19 = smov %s3376_s6  ;;  %s4961_s20 = smov %s3266_s22 }
 0x7d8   : > { %s4962_s21 = smov %s3270_s23  ;;  %s4963_s22 = smov %s4966_s25 }
 0x7d9   :  { %14 = sbr.rel (!%p12_p1) target bundleno = 6 (0x6), region = 130 }
 0x7db   : > { %s4964_s23 = smov %s4958_s29 }

</bundles_post_ra>
